<compile_context>
chip_gen: v6e
topology: v6e:2x2x1
jax: 0.10.0
libtpu: 0.0.40
codegen_flags: <defaults>
</compile_context>

<pallas_src>
import functools

import numpy as np
import jax
import jax.numpy as jnp
from jax.experimental import pallas as pl
from jax.experimental.pallas import tpu as pltpu

INPUT_SIZE = 256   # nn.LSTM(input_size=256, ...)
N_HIDDEN = 128     # n_hidden
N_CLASS = 4        # n_class


# ----------------------------------------------------------------------------
# Fused kernel: bidirectional LSTM + attention_net + final Linear.
# Gate order follows PyTorch: [i, f, g, o];  c' = f*c + i*g,  h' = o*tanh(c').
# ----------------------------------------------------------------------------
def fused_kernel(x_ref, wih_f_ref, wih_b_ref, b_f_ref, b_b_ref,
                 whh_ref, wout_ref, bout_ref, perm_ref,
                 logits_ref, attn_ref,
                 gxf_scr, gxb_scr, outf_scr, outb_scr, *, B, S):
    H = N_HIDDEN
    f32 = jnp.float32

    # --- hoisted input projection (bias folded in) ----------------------------
    # One big bf16 MXU matmul per direction instead of 2*S tiny ones on the
    # serial recurrence path.  Results live in VMEM scratch.
    x = x_ref[...]                                               # [S*B, 256] bf16
    gxf_scr[...] = (jnp.dot(x, wih_f_ref[...], preferred_element_type=f32)
                    + b_f_ref[...])                              # [S*B, 4H] f32
    gxb_scr[...] = (jnp.dot(x, wih_b_ref[...], preferred_element_type=f32)
                    + b_b_ref[...])

    h_f = jnp.zeros((B, H), f32)
    c_f = jnp.zeros((B, H), f32)
    h_b = jnp.zeros((B, H), f32)
    c_b = jnp.zeros((B, H), f32)

    def gates_to_hc(g, c_prev):
        i = jax.nn.sigmoid(g[:, 0 * H:1 * H])
        f = jax.nn.sigmoid(g[:, 1 * H:2 * H])
        gg = jnp.tanh(g[:, 2 * H:3 * H])
        o = jax.nn.sigmoid(g[:, 3 * H:4 * H])
        c_new = f * c_prev + i * gg
        h_new = o * jnp.tanh(c_new)
        return h_new, c_new

    # --- fused forward/backward recurrence -------------------------------------
    # One S-step loop (S is small & static -> full unroll); per step a single
    # block-diagonal K=2H recurrent matmul serves both directions.
    for t in range(S):
        tb = S - 1 - t
        h_cat = jnp.concatenate([h_f, h_b], axis=1).astype(jnp.bfloat16)  # [B, 2H]
        gh = jnp.dot(h_cat, whh_ref[...], preferred_element_type=f32)     # [B, 8H]
        g_f = gxf_scr[t * B:(t + 1) * B, :] + gh[:, :4 * H]
        g_b = gxb_scr[tb * B:(tb + 1) * B, :] + gh[:, 4 * H:]
        h_f, c_f = gates_to_hc(g_f, c_f)
        h_b, c_b = gates_to_hc(g_b, c_b)
        outf_scr[:, t, :] = h_f       # lstm output, forward half, batch-major
        outb_scr[:, tb, :] = h_b      # lstm output, backward half

    # --- attention_net + final Linear (all in VMEM) -----------------------------
    tan_f = jnp.tanh(outf_scr[...])                              # [B, S, H]
    tan_b = jnp.tanh(outb_scr[...])                              # [B, S, H]

    # PyTorch `final_state.view(-1, 2H, 1)` is a row-major reshape of [2, B, H]
    # that mixes batch rows: hidden[b, :H] = stack[2b], hidden[b, H:] = stack[2b+1]
    # with stack = concat([h_f_final, h_b_final], 0).  Reproduced exactly with a
    # 0/1 permutation matmul.
    stack = jnp.concatenate([h_f, h_b], axis=0)                  # [2B, H]
    hid = jnp.dot(perm_ref[...], stack, preferred_element_type=f32)   # [2B, H]
    hidA = hid[:B, :]                                            # hidden[:, :H]
    hidB = hid[B:, :]                                            # hidden[:, H:]

    aw = (jnp.sum(tan_f * hidA[:, None, :], axis=-1)
          + jnp.sum(tan_b * hidB[:, None, :], axis=-1))          # [B, S]
    m = jnp.max(aw, axis=1, keepdims=True)
    e = jnp.exp(aw - m)
    soft = e / jnp.sum(e, axis=1, keepdims=True)                 # [B, S]
    attn_ref[...] = soft

    ctx_f = jnp.sum(tan_f * soft[:, :, None], axis=1)            # [B, H]
    ctx_b = jnp.sum(tan_b * soft[:, :, None], axis=1)            # [B, H]
    logits_ref[...] = (jnp.dot(ctx_f, wout_ref[:H, :], preferred_element_type=f32)
                       + jnp.dot(ctx_b, wout_ref[H:, :], preferred_element_type=f32)
                       + bout_ref[...])                          # [B, n_class]


# ----------------------------------------------------------------------------
# Wrapper
# ----------------------------------------------------------------------------
def bilstm_attention_forward(x, params):
    B, S, _ = x.shape
    H = N_HIDDEN

    # time-major then flattened to [S*B, 256] for the hoisted input projection
    x_flat = (jnp.transpose(x, (1, 0, 2))
              .reshape(S * B, INPUT_SIZE)
              .astype(jnp.bfloat16))

    # block-diagonal recurrent weight: [h_f | h_b] @ whh_blk = [gates_f | gates_b]
    whh_blk = jnp.zeros((2 * H, 8 * H), jnp.float32)
    whh_blk = whh_blk.at[:H, :4 * H].set(params["whh_f"])
    whh_blk = whh_blk.at[H:, 4 * H:].set(params["whh_b"])
    whh_blk = whh_blk.astype(jnp.bfloat16)

    # 0/1 permutation reproducing final_state.view(-1, 2H, 1)'s batch mixing
    perm_np = np.zeros((2 * B, 2 * B), np.float32)
    for b in range(B):
        perm_np[b, 2 * b] = 1.0          # hidden[b, :H] = stack[2b]
        perm_np[B + b, 2 * b + 1] = 1.0  # hidden[b, H:] = stack[2b+1]
    perm = jnp.asarray(perm_np)

    vmem = pl.BlockSpec(memory_space=pltpu.MemorySpace.VMEM)
    kernel = functools.partial(fused_kernel, B=B, S=S)

    logits, attn = pl.pallas_call(
        kernel,
        out_shape=(
            jax.ShapeDtypeStruct((B, N_CLASS), jnp.float32),
            jax.ShapeDtypeStruct((B, S), jnp.float32),
        ),
        in_specs=[vmem] * 9,
        out_specs=(vmem, vmem),
        scratch_shapes=[
            pltpu.VMEM((S * B, 4 * H), jnp.float32),   # precomputed fwd input gates
            pltpu.VMEM((S * B, 4 * H), jnp.float32),   # precomputed bwd input gates
            pltpu.VMEM((B, S, H), jnp.float32),        # lstm output, forward half
            pltpu.VMEM((B, S, H), jnp.float32),        # lstm output, backward half
        ],
    )(x_flat,
      params["wih_f"].astype(jnp.bfloat16),
      params["wih_b"].astype(jnp.bfloat16),
      params["b_f"], params["b_b"],
      whh_blk,
      params["w_out"], params["b_out"],
      perm)

    return logits, attn


# ----------------------------------------------------------------------------
# Deterministic parameter init (shapes from the module's __init__).
# Weights stored pre-transposed: x @ W_ih^T  ->  x @ wih, gate order [i,f,g,o].
# bias = b_ih + b_hh folded together (mathematically identical).
# ----------------------------------------------------------------------------
def init_params(key):
    ks = jax.random.split(key, 10)

    def u(k, shape, scale):
        return jax.random.uniform(k, shape, jnp.float32, -scale, scale)

    s = 1.0 / np.sqrt(N_HIDDEN)
    so = 1.0 / np.sqrt(2 * N_HIDDEN)
    return dict(
        wih_f=u(ks[0], (INPUT_SIZE, 4 * N_HIDDEN), s),
        whh_f=u(ks[1], (N_HIDDEN, 4 * N_HIDDEN), s),
        b_f=u(ks[2], (1, 4 * N_HIDDEN), s) + u(ks[3], (1, 4 * N_HIDDEN), s),
        wih_b=u(ks[4], (INPUT_SIZE, 4 * N_HIDDEN), s),
        whh_b=u(ks[5], (N_HIDDEN, 4 * N_HIDDEN), s),
        b_b=u(ks[6], (1, 4 * N_HIDDEN), s) + u(ks[7], (1, 4 * N_HIDDEN), s),
        w_out=u(ks[8], (2 * N_HIDDEN, N_CLASS), so),
        b_out=u(ks[9], (1, N_CLASS), so),
    )


# ----------------------------------------------------------------------------
# Pure-JAX reference (same math, plain f32) for a correctness check.
# ----------------------------------------------------------------------------
def reference_forward(x, params):
    B, S, _ = x.shape
    H = N_HIDDEN
    x_tm = jnp.transpose(x, (1, 0, 2))

    def cell(x_t, h, c, wih, whh, b):
        g = x_t @ wih + h @ whh + b
        i = jax.nn.sigmoid(g[:, 0 * H:1 * H])
        f = jax.nn.sigmoid(g[:, 1 * H:2 * H])
        gg = jnp.tanh(g[:, 2 * H:3 * H])
        o = jax.nn.sigmoid(g[:, 3 * H:4 * H])
        c = f * c + i * gg
        h = o * jnp.tanh(c)
        return h, c

    h_f = jnp.zeros((B, H)); c_f = jnp.zeros((B, H))
    h_b = jnp.zeros((B, H)); c_b = jnp.zeros((B, H))
    outs_f = []
    outs_b = [None] * S
    for t in range(S):
        h_f, c_f = cell(x_tm[t], h_f, c_f, params["wih_f"], params["whh_f"], params["b_f"])
        outs_f.append(h_f)
    for t in range(S - 1, -1, -1):
        h_b, c_b = cell(x_tm[t], h_b, c_b, params["wih_b"], params["whh_b"], params["b_b"])
        outs_b[t] = h_b
    out = jnp.concatenate([jnp.stack(outs_f, 0), jnp.stack(outs_b, 0)], axis=-1)
    lstm_output = jnp.tanh(jnp.transpose(out, (1, 0, 2)))        # [B, S, 2H]
    hidden = jnp.stack([h_f, h_b], 0).reshape(B, 2 * H)          # batch-mixing view
    aw = jnp.sum(lstm_output * hidden[:, None, :], axis=-1)      # [B, S]
    soft = jax.nn.softmax(aw, axis=1)
    ctx = jnp.sum(lstm_output * soft[:, :, None], axis=1)        # [B, 2H]
    logits = ctx @ params["w_out"] + params["b_out"]
    return logits, soft


if __name__ == "__main__":
    key = jax.random.PRNGKey(0)
    pkey, xkey = jax.random.split(key)
    params = init_params(pkey)

    B, S = 8, 8                                  # small demo shapes
    x = jax.random.normal(xkey, (B, S, INPUT_SIZE), jnp.float32)

    logits, attn = bilstm_attention_forward(x, params)
    jax.block_until_ready((logits, attn))

    ref_logits, ref_attn = reference_forward(x, params)
    np.testing.assert_allclose(np.asarray(logits), np.asarray(ref_logits),
                               rtol=2e-2, atol=2e-2)
    np.testing.assert_allclose(np.asarray(attn), np.asarray(ref_attn),
                               rtol=2e-2, atol=2e-2)
    print("KERNEL_OK")
</pallas_src>

<mosaic_0001>
module attributes {stable_mosaic.version = 11 : i64} {
  func.func @fused_kernel(%arg0: memref<64x256xbf16, #tpu.memory_space<vmem>>, %arg1: memref<256x512xbf16, #tpu.memory_space<vmem>>, %arg2: memref<256x512xbf16, #tpu.memory_space<vmem>>, %arg3: memref<1x512xf32, #tpu.memory_space<vmem>>, %arg4: memref<1x512xf32, #tpu.memory_space<vmem>>, %arg5: memref<256x1024xbf16, #tpu.memory_space<vmem>>, %arg6: memref<256x4xf32, #tpu.memory_space<vmem>>, %arg7: memref<1x4xf32, #tpu.memory_space<vmem>>, %arg8: memref<16x16xf32, #tpu.memory_space<vmem>>, %arg9: memref<8x4xf32, #tpu.memory_space<vmem>>, %arg10: memref<8x8xf32, #tpu.memory_space<vmem>>, %arg11: memref<64x512xf32, #tpu.memory_space<vmem>>, %arg12: memref<64x512xf32, #tpu.memory_space<vmem>>, %arg13: memref<8x8x128xf32, #tpu.memory_space<vmem>>, %arg14: memref<8x8x128xf32, #tpu.memory_space<vmem>>) attributes {dimension_semantics = [], scalar_prefetch = 0 : i64, scratch_operands = 4 : i64, tpu.core_type = #tpu.core_type<tc>} {
    %c0 = arith.constant 0 : index
    %c0_0 = arith.constant 0 : index
    %0 = vector.load %arg0[%c0, %c0_0] : memref<64x256xbf16, #tpu.memory_space<vmem>>, vector<64x256xbf16>
    %c0_1 = arith.constant 0 : index
    %c0_2 = arith.constant 0 : index
    %1 = vector.load %arg1[%c0_1, %c0_2] : memref<256x512xbf16, #tpu.memory_space<vmem>>, vector<256x512xbf16>
    %cst = arith.constant dense<0.000000e+00> : vector<64x512xf32>
    %2 = tpu.matmul %0, %1, %cst {dimension_numbers = #tpu.dot_dimension_numbers<[1], [0], [0], [1], [0, 0, 1, 1], [], []>} : vector<64x256xbf16>, vector<256x512xbf16>, vector<64x512xf32> -> vector<64x512xf32>
    %c0_3 = arith.constant 0 : index
    %c0_4 = arith.constant 0 : index
    %3 = vector.load %arg3[%c0_3, %c0_4] : memref<1x512xf32, #tpu.memory_space<vmem>>, vector<1x512xf32>
    %4 = vector.broadcast %3 : vector<1x512xf32> to vector<64x512xf32>
    %5 = arith.addf %2, %4 : vector<64x512xf32>
    %c0_5 = arith.constant 0 : index
    %c0_6 = arith.constant 0 : index
    %6 = vector.load %arg11[%c0_5, %c0_6] : memref<64x512xf32, #tpu.memory_space<vmem>>, vector<64x512xf32>
    tpu.vector_store %arg11[%c0_5, %c0_6], %5 {strides = array<i32>} : memref<64x512xf32, #tpu.memory_space<vmem>>, vector<64x512xf32>,
    %c0_7 = arith.constant 0 : index
    %c0_8 = arith.constant 0 : index
    %7 = vector.load %arg2[%c0_7, %c0_8] : memref<256x512xbf16, #tpu.memory_space<vmem>>, vector<256x512xbf16>
    %cst_9 = arith.constant dense<0.000000e+00> : vector<64x512xf32>
    %8 = tpu.matmul %0, %7, %cst_9 {dimension_numbers = #tpu.dot_dimension_numbers<[1], [0], [0], [1], [0, 0, 1, 1], [], []>} : vector<64x256xbf16>, vector<256x512xbf16>, vector<64x512xf32> -> vector<64x512xf32>
    %c0_10 = arith.constant 0 : index
    %c0_11 = arith.constant 0 : index
    %9 = vector.load %arg4[%c0_10, %c0_11] : memref<1x512xf32, #tpu.memory_space<vmem>>, vector<1x512xf32>
    %10 = vector.broadcast %9 : vector<1x512xf32> to vector<64x512xf32>
    %11 = arith.addf %8, %10 : vector<64x512xf32>
    %c0_12 = arith.constant 0 : index
    %c0_13 = arith.constant 0 : index
    %12 = vector.load %arg12[%c0_12, %c0_13] : memref<64x512xf32, #tpu.memory_space<vmem>>, vector<64x512xf32>
    tpu.vector_store %arg12[%c0_12, %c0_13], %11 {strides = array<i32>} : memref<64x512xf32, #tpu.memory_space<vmem>>, vector<64x512xf32>,
    %cst_14 = arith.constant 0.000000e+00 : f32
    %13 = vector.broadcast %cst_14 : f32 to vector<8x128xf32>
    %cst_15 = arith.constant 0.000000e+00 : f32
    %14 = vector.broadcast %cst_15 : f32 to vector<8x128xf32>
    %cst_16 = arith.constant 0.000000e+00 : f32
    %15 = vector.broadcast %cst_16 : f32 to vector<8x128xf32>
    %cst_17 = arith.constant 0.000000e+00 : f32
    %16 = vector.broadcast %cst_17 : f32 to vector<8x128xf32>
    %17 = tpu.concatenate %13, %15 in 1 : vector<8x128xf32>, vector<8x128xf32> -> vector<8x256xf32>
    %18 = arith.truncf %17 : vector<8x256xf32> to vector<8x256xbf16>
    %c0_18 = arith.constant 0 : index
    %c0_19 = arith.constant 0 : index
    %19 = vector.load %arg5[%c0_18, %c0_19] : memref<256x1024xbf16, #tpu.memory_space<vmem>>, vector<256x1024xbf16>
    %cst_20 = arith.constant dense<0.000000e+00> : vector<8x1024xf32>
    %20 = tpu.matmul %18, %19, %cst_20 {dimension_numbers = #tpu.dot_dimension_numbers<[1], [0], [0], [1], [0, 0, 1, 1], [], []>} : vector<8x256xbf16>, vector<256x1024xbf16>, vector<8x1024xf32> -> vector<8x1024xf32>
    %c0_21 = arith.constant 0 : index
    %c0_22 = arith.constant 0 : index
    %21 = vector.load %arg11[%c0_21, %c0_22] : memref<64x512xf32, #tpu.memory_space<vmem>>, vector<8x512xf32>
    %22 = vector.extract_strided_slice %20 {offsets = [0, 0], sizes = [8, 512], strides = [1, 1]} : vector<8x1024xf32> to vector<8x512xf32>
    %23 = arith.addf %21, %22 : vector<8x512xf32>
    %c56 = arith.constant 56 : index
    %c0_23 = arith.constant 0 : index
    %24 = vector.load %arg12[%c56, %c0_23] : memref<64x512xf32, #tpu.memory_space<vmem>>, vector<8x512xf32>
    %25 = vector.extract_strided_slice %20 {offsets = [0, 512], sizes = [8, 512], strides = [1, 1]} : vector<8x1024xf32> to vector<8x512xf32>
    %26 = arith.addf %24, %25 : vector<8x512xf32>
    %27 = vector.extract_strided_slice %23 {offsets = [0, 0], sizes = [8, 128], strides = [1, 1]} : vector<8x512xf32> to vector<8x128xf32>
    %28 = arith.negf %27 : vector<8x128xf32>
    %29 = math.exp %28 : vector<8x128xf32>
    %cst_24 = arith.constant 1.000000e+00 : f32
    %30 = vector.broadcast %cst_24 : f32 to vector<8x128xf32>
    %31 = arith.addf %30, %29 : vector<8x128xf32>
    %32 = arith.divf %30, %31 : vector<8x128xf32>
    %33 = vector.extract_strided_slice %23 {offsets = [0, 128], sizes = [8, 128], strides = [1, 1]} : vector<8x512xf32> to vector<8x128xf32>
    %34 = arith.negf %33 : vector<8x128xf32>
    %35 = math.exp %34 : vector<8x128xf32>
    %cst_25 = arith.constant 1.000000e+00 : f32
    %36 = vector.broadcast %cst_25 : f32 to vector<8x128xf32>
    %37 = arith.addf %36, %35 : vector<8x128xf32>
    %38 = arith.divf %36, %37 : vector<8x128xf32>
    %39 = vector.extract_strided_slice %23 {offsets = [0, 256], sizes = [8, 128], strides = [1, 1]} : vector<8x512xf32> to vector<8x128xf32>
    %40 = math.tanh %39 : vector<8x128xf32>
    %41 = vector.extract_strided_slice %23 {offsets = [0, 384], sizes = [8, 128], strides = [1, 1]} : vector<8x512xf32> to vector<8x128xf32>
    %42 = arith.negf %41 : vector<8x128xf32>
    %43 = math.exp %42 : vector<8x128xf32>
    %cst_26 = arith.constant 1.000000e+00 : f32
    %44 = vector.broadcast %cst_26 : f32 to vector<8x128xf32>
    %45 = arith.addf %44, %43 : vector<8x128xf32>
    %46 = arith.divf %44, %45 : vector<8x128xf32>
    %47 = arith.mulf %38, %14 : vector<8x128xf32>
    %48 = arith.mulf %32, %40 : vector<8x128xf32>
    %49 = arith.addf %47, %48 : vector<8x128xf32>
    %50 = math.tanh %49 : vector<8x128xf32>
    %51 = arith.mulf %46, %50 : vector<8x128xf32>
    %52 = vector.extract_strided_slice %26 {offsets = [0, 0], sizes = [8, 128], strides = [1, 1]} : vector<8x512xf32> to vector<8x128xf32>
    %53 = arith.negf %52 : vector<8x128xf32>
    %54 = math.exp %53 : vector<8x128xf32>
    %cst_27 = arith.constant 1.000000e+00 : f32
    %55 = vector.broadcast %cst_27 : f32 to vector<8x128xf32>
    %56 = arith.addf %55, %54 : vector<8x128xf32>
    %57 = arith.divf %55, %56 : vector<8x128xf32>
    %58 = vector.extract_strided_slice %26 {offsets = [0, 128], sizes = [8, 128], strides = [1, 1]} : vector<8x512xf32> to vector<8x128xf32>
    %59 = arith.negf %58 : vector<8x128xf32>
    %60 = math.exp %59 : vector<8x128xf32>
    %cst_28 = arith.constant 1.000000e+00 : f32
    %61 = vector.broadcast %cst_28 : f32 to vector<8x128xf32>
    %62 = arith.addf %61, %60 : vector<8x128xf32>
    %63 = arith.divf %61, %62 : vector<8x128xf32>
    %64 = vector.extract_strided_slice %26 {offsets = [0, 256], sizes = [8, 128], strides = [1, 1]} : vector<8x512xf32> to vector<8x128xf32>
    %65 = math.tanh %64 : vector<8x128xf32>
    %66 = vector.extract_strided_slice %26 {offsets = [0, 384], sizes = [8, 128], strides = [1, 1]} : vector<8x512xf32> to vector<8x128xf32>
    %67 = arith.negf %66 : vector<8x128xf32>
    %68 = math.exp %67 : vector<8x128xf32>
    %cst_29 = arith.constant 1.000000e+00 : f32
    %69 = vector.broadcast %cst_29 : f32 to vector<8x128xf32>
    %70 = arith.addf %69, %68 : vector<8x128xf32>
    %71 = arith.divf %69, %70 : vector<8x128xf32>
    %72 = arith.mulf %63, %16 : vector<8x128xf32>
    %73 = arith.mulf %57, %65 : vector<8x128xf32>
    %74 = arith.addf %72, %73 : vector<8x128xf32>
    %75 = math.tanh %74 : vector<8x128xf32>
    %76 = arith.mulf %71, %75 : vector<8x128xf32>
    %c0_30 = arith.constant 0 : index
    %c0_31 = arith.constant 0 : index
    %c0_32 = arith.constant 0 : index
    %77 = vector.load %arg13[%c0_30, %c0_31, %c0_32] : memref<8x8x128xf32, #tpu.memory_space<vmem>>, vector<8x1x128xf32>
    %78 = vector.shape_cast %77 : vector<8x1x128xf32> to vector<8x128xf32>
    %79 = vector.shape_cast %51 : vector<8x128xf32> to vector<8x1x128xf32>
    tpu.vector_store %arg13[%c0_30, %c0_31, %c0_32], %79 {strides = array<i32>} : memref<8x8x128xf32, #tpu.memory_space<vmem>>, vector<8x1x128xf32>,
    %c0_33 = arith.constant 0 : index
    %c7 = arith.constant 7 : index
    %c0_34 = arith.constant 0 : index
    %80 = vector.load %arg14[%c0_33, %c7, %c0_34] : memref<8x8x128xf32, #tpu.memory_space<vmem>>, vector<8x1x128xf32>
    %81 = vector.shape_cast %80 : vector<8x1x128xf32> to vector<8x128xf32>
    %82 = vector.shape_cast %76 : vector<8x128xf32> to vector<8x1x128xf32>
    tpu.vector_store %arg14[%c0_33, %c7, %c0_34], %82 {strides = array<i32>} : memref<8x8x128xf32, #tpu.memory_space<vmem>>, vector<8x1x128xf32>,
    %83 = tpu.concatenate %51, %76 in 1 : vector<8x128xf32>, vector<8x128xf32> -> vector<8x256xf32>
    %84 = arith.truncf %83 : vector<8x256xf32> to vector<8x256xbf16>
    %c0_35 = arith.constant 0 : index
    %c0_36 = arith.constant 0 : index
    %85 = vector.load %arg5[%c0_35, %c0_36] : memref<256x1024xbf16, #tpu.memory_space<vmem>>, vector<256x1024xbf16>
    %cst_37 = arith.constant dense<0.000000e+00> : vector<8x1024xf32>
    %86 = tpu.matmul %84, %85, %cst_37 {dimension_numbers = #tpu.dot_dimension_numbers<[1], [0], [0], [1], [0, 0, 1, 1], [], []>} : vector<8x256xbf16>, vector<256x1024xbf16>, vector<8x1024xf32> -> vector<8x1024xf32>
    %c8 = arith.constant 8 : index
    %c0_38 = arith.constant 0 : index
    %87 = vector.load %arg11[%c8, %c0_38] : memref<64x512xf32, #tpu.memory_space<vmem>>, vector<8x512xf32>
    %88 = vector.extract_strided_slice %86 {offsets = [0, 0], sizes = [8, 512], strides = [1, 1]} : vector<8x1024xf32> to vector<8x512xf32>
    %89 = arith.addf %87, %88 : vector<8x512xf32>
    %c48 = arith.constant 48 : index
    %c0_39 = arith.constant 0 : index
    %90 = vector.load %arg12[%c48, %c0_39] : memref<64x512xf32, #tpu.memory_space<vmem>>, vector<8x512xf32>
    %91 = vector.extract_strided_slice %86 {offsets = [0, 512], sizes = [8, 512], strides = [1, 1]} : vector<8x1024xf32> to vector<8x512xf32>
    %92 = arith.addf %90, %91 : vector<8x512xf32>
    %93 = vector.extract_strided_slice %89 {offsets = [0, 0], sizes = [8, 128], strides = [1, 1]} : vector<8x512xf32> to vector<8x128xf32>
    %94 = arith.negf %93 : vector<8x128xf32>
    %95 = math.exp %94 : vector<8x128xf32>
    %cst_40 = arith.constant 1.000000e+00 : f32
    %96 = vector.broadcast %cst_40 : f32 to vector<8x128xf32>
    %97 = arith.addf %96, %95 : vector<8x128xf32>
    %98 = arith.divf %96, %97 : vector<8x128xf32>
    %99 = vector.extract_strided_slice %89 {offsets = [0, 128], sizes = [8, 128], strides = [1, 1]} : vector<8x512xf32> to vector<8x128xf32>
    %100 = arith.negf %99 : vector<8x128xf32>
    %101 = math.exp %100 : vector<8x128xf32>
    %cst_41 = arith.constant 1.000000e+00 : f32
    %102 = vector.broadcast %cst_41 : f32 to vector<8x128xf32>
    %103 = arith.addf %102, %101 : vector<8x128xf32>
    %104 = arith.divf %102, %103 : vector<8x128xf32>
    %105 = vector.extract_strided_slice %89 {offsets = [0, 256], sizes = [8, 128], strides = [1, 1]} : vector<8x512xf32> to vector<8x128xf32>
    %106 = math.tanh %105 : vector<8x128xf32>
    %107 = vector.extract_strided_slice %89 {offsets = [0, 384], sizes = [8, 128], strides = [1, 1]} : vector<8x512xf32> to vector<8x128xf32>
    %108 = arith.negf %107 : vector<8x128xf32>
    %109 = math.exp %108 : vector<8x128xf32>
    %cst_42 = arith.constant 1.000000e+00 : f32
    %110 = vector.broadcast %cst_42 : f32 to vector<8x128xf32>
    %111 = arith.addf %110, %109 : vector<8x128xf32>
    %112 = arith.divf %110, %111 : vector<8x128xf32>
    %113 = arith.mulf %104, %49 : vector<8x128xf32>
    %114 = arith.mulf %98, %106 : vector<8x128xf32>
    %115 = arith.addf %113, %114 : vector<8x128xf32>
    %116 = math.tanh %115 : vector<8x128xf32>
    %117 = arith.mulf %112, %116 : vector<8x128xf32>
    %118 = vector.extract_strided_slice %92 {offsets = [0, 0], sizes = [8, 128], strides = [1, 1]} : vector<8x512xf32> to vector<8x128xf32>
    %119 = arith.negf %118 : vector<8x128xf32>
    %120 = math.exp %119 : vector<8x128xf32>
    %cst_43 = arith.constant 1.000000e+00 : f32
    %121 = vector.broadcast %cst_43 : f32 to vector<8x128xf32>
    %122 = arith.addf %121, %120 : vector<8x128xf32>
    %123 = arith.divf %121, %122 : vector<8x128xf32>
    %124 = vector.extract_strided_slice %92 {offsets = [0, 128], sizes = [8, 128], strides = [1, 1]} : vector<8x512xf32> to vector<8x128xf32>
    %125 = arith.negf %124 : vector<8x128xf32>
    %126 = math.exp %125 : vector<8x128xf32>
    %cst_44 = arith.constant 1.000000e+00 : f32
    %127 = vector.broadcast %cst_44 : f32 to vector<8x128xf32>
    %128 = arith.addf %127, %126 : vector<8x128xf32>
    %129 = arith.divf %127, %128 : vector<8x128xf32>
    %130 = vector.extract_strided_slice %92 {offsets = [0, 256], sizes = [8, 128], strides = [1, 1]} : vector<8x512xf32> to vector<8x128xf32>
    %131 = math.tanh %130 : vector<8x128xf32>
    %132 = vector.extract_strided_slice %92 {offsets = [0, 384], sizes = [8, 128], strides = [1, 1]} : vector<8x512xf32> to vector<8x128xf32>
    %133 = arith.negf %132 : vector<8x128xf32>
    %134 = math.exp %133 : vector<8x128xf32>
    %cst_45 = arith.constant 1.000000e+00 : f32
    %135 = vector.broadcast %cst_45 : f32 to vector<8x128xf32>
    %136 = arith.addf %135, %134 : vector<8x128xf32>
    %137 = arith.divf %135, %136 : vector<8x128xf32>
    %138 = arith.mulf %129, %74 : vector<8x128xf32>
    %139 = arith.mulf %123, %131 : vector<8x128xf32>
    %140 = arith.addf %138, %139 : vector<8x128xf32>
    %141 = math.tanh %140 : vector<8x128xf32>
    %142 = arith.mulf %137, %141 : vector<8x128xf32>
    %c0_46 = arith.constant 0 : index
    %c1 = arith.constant 1 : index
    %c0_47 = arith.constant 0 : index
    %143 = vector.load %arg13[%c0_46, %c1, %c0_47] : memref<8x8x128xf32, #tpu.memory_space<vmem>>, vector<8x1x128xf32>
    %144 = vector.shape_cast %143 : vector<8x1x128xf32> to vector<8x128xf32>
    %145 = vector.shape_cast %117 : vector<8x128xf32> to vector<8x1x128xf32>
    tpu.vector_store %arg13[%c0_46, %c1, %c0_47], %145 {strides = array<i32>} : memref<8x8x128xf32, #tpu.memory_space<vmem>>, vector<8x1x128xf32>,
    %c0_48 = arith.constant 0 : index
    %c6 = arith.constant 6 : index
    %c0_49 = arith.constant 0 : index
    %146 = vector.load %arg14[%c0_48, %c6, %c0_49] : memref<8x8x128xf32, #tpu.memory_space<vmem>>, vector<8x1x128xf32>
    %147 = vector.shape_cast %146 : vector<8x1x128xf32> to vector<8x128xf32>
    %148 = vector.shape_cast %142 : vector<8x128xf32> to vector<8x1x128xf32>
    tpu.vector_store %arg14[%c0_48, %c6, %c0_49], %148 {strides = array<i32>} : memref<8x8x128xf32, #tpu.memory_space<vmem>>, vector<8x1x128xf32>,
    %149 = tpu.concatenate %117, %142 in 1 : vector<8x128xf32>, vector<8x128xf32> -> vector<8x256xf32>
    %150 = arith.truncf %149 : vector<8x256xf32> to vector<8x256xbf16>
    %c0_50 = arith.constant 0 : index
    %c0_51 = arith.constant 0 : index
    %151 = vector.load %arg5[%c0_50, %c0_51] : memref<256x1024xbf16, #tpu.memory_space<vmem>>, vector<256x1024xbf16>
    %cst_52 = arith.constant dense<0.000000e+00> : vector<8x1024xf32>
    %152 = tpu.matmul %150, %151, %cst_52 {dimension_numbers = #tpu.dot_dimension_numbers<[1], [0], [0], [1], [0, 0, 1, 1], [], []>} : vector<8x256xbf16>, vector<256x1024xbf16>, vector<8x1024xf32> -> vector<8x1024xf32>
    %c16 = arith.constant 16 : index
    %c0_53 = arith.constant 0 : index
    %153 = vector.load %arg11[%c16, %c0_53] : memref<64x512xf32, #tpu.memory_space<vmem>>, vector<8x512xf32>
    %154 = vector.extract_strided_slice %152 {offsets = [0, 0], sizes = [8, 512], strides = [1, 1]} : vector<8x1024xf32> to vector<8x512xf32>
    %155 = arith.addf %153, %154 : vector<8x512xf32>
    %c40 = arith.constant 40 : index
    %c0_54 = arith.constant 0 : index
    %156 = vector.load %arg12[%c40, %c0_54] : memref<64x512xf32, #tpu.memory_space<vmem>>, vector<8x512xf32>
    %157 = vector.extract_strided_slice %152 {offsets = [0, 512], sizes = [8, 512], strides = [1, 1]} : vector<8x1024xf32> to vector<8x512xf32>
    %158 = arith.addf %156, %157 : vector<8x512xf32>
    %159 = vector.extract_strided_slice %155 {offsets = [0, 0], sizes = [8, 128], strides = [1, 1]} : vector<8x512xf32> to vector<8x128xf32>
    %160 = arith.negf %159 : vector<8x128xf32>
    %161 = math.exp %160 : vector<8x128xf32>
    %cst_55 = arith.constant 1.000000e+00 : f32
    %162 = vector.broadcast %cst_55 : f32 to vector<8x128xf32>
    %163 = arith.addf %162, %161 : vector<8x128xf32>
    %164 = arith.divf %162, %163 : vector<8x128xf32>
    %165 = vector.extract_strided_slice %155 {offsets = [0, 128], sizes = [8, 128], strides = [1, 1]} : vector<8x512xf32> to vector<8x128xf32>
    %166 = arith.negf %165 : vector<8x128xf32>
    %167 = math.exp %166 : vector<8x128xf32>
    %cst_56 = arith.constant 1.000000e+00 : f32
    %168 = vector.broadcast %cst_56 : f32 to vector<8x128xf32>
    %169 = arith.addf %168, %167 : vector<8x128xf32>
    %170 = arith.divf %168, %169 : vector<8x128xf32>
    %171 = vector.extract_strided_slice %155 {offsets = [0, 256], sizes = [8, 128], strides = [1, 1]} : vector<8x512xf32> to vector<8x128xf32>
    %172 = math.tanh %171 : vector<8x128xf32>
    %173 = vector.extract_strided_slice %155 {offsets = [0, 384], sizes = [8, 128], strides = [1, 1]} : vector<8x512xf32> to vector<8x128xf32>
    %174 = arith.negf %173 : vector<8x128xf32>
    %175 = math.exp %174 : vector<8x128xf32>
    %cst_57 = arith.constant 1.000000e+00 : f32
    %176 = vector.broadcast %cst_57 : f32 to vector<8x128xf32>
    %177 = arith.addf %176, %175 : vector<8x128xf32>
    %178 = arith.divf %176, %177 : vector<8x128xf32>
    %179 = arith.mulf %170, %115 : vector<8x128xf32>
    %180 = arith.mulf %164, %172 : vector<8x128xf32>
    %181 = arith.addf %179, %180 : vector<8x128xf32>
    %182 = math.tanh %181 : vector<8x128xf32>
    %183 = arith.mulf %178, %182 : vector<8x128xf32>
    %184 = vector.extract_strided_slice %158 {offsets = [0, 0], sizes = [8, 128], strides = [1, 1]} : vector<8x512xf32> to vector<8x128xf32>
    %185 = arith.negf %184 : vector<8x128xf32>
    %186 = math.exp %185 : vector<8x128xf32>
    %cst_58 = arith.constant 1.000000e+00 : f32
    %187 = vector.broadcast %cst_58 : f32 to vector<8x128xf32>
    %188 = arith.addf %187, %186 : vector<8x128xf32>
    %189 = arith.divf %187, %188 : vector<8x128xf32>
    %190 = vector.extract_strided_slice %158 {offsets = [0, 128], sizes = [8, 128], strides = [1, 1]} : vector<8x512xf32> to vector<8x128xf32>
    %191 = arith.negf %190 : vector<8x128xf32>
    %192 = math.exp %191 : vector<8x128xf32>
    %cst_59 = arith.constant 1.000000e+00 : f32
    %193 = vector.broadcast %cst_59 : f32 to vector<8x128xf32>
    %194 = arith.addf %193, %192 : vector<8x128xf32>
    %195 = arith.divf %193, %194 : vector<8x128xf32>
    %196 = vector.extract_strided_slice %158 {offsets = [0, 256], sizes = [8, 128], strides = [1, 1]} : vector<8x512xf32> to vector<8x128xf32>
    %197 = math.tanh %196 : vector<8x128xf32>
    %198 = vector.extract_strided_slice %158 {offsets = [0, 384], sizes = [8, 128], strides = [1, 1]} : vector<8x512xf32> to vector<8x128xf32>
    %199 = arith.negf %198 : vector<8x128xf32>
    %200 = math.exp %199 : vector<8x128xf32>
    %cst_60 = arith.constant 1.000000e+00 : f32
    %201 = vector.broadcast %cst_60 : f32 to vector<8x128xf32>
    %202 = arith.addf %201, %200 : vector<8x128xf32>
    %203 = arith.divf %201, %202 : vector<8x128xf32>
    %204 = arith.mulf %195, %140 : vector<8x128xf32>
    %205 = arith.mulf %189, %197 : vector<8x128xf32>
    %206 = arith.addf %204, %205 : vector<8x128xf32>
    %207 = math.tanh %206 : vector<8x128xf32>
    %208 = arith.mulf %203, %207 : vector<8x128xf32>
    %c0_61 = arith.constant 0 : index
    %c2 = arith.constant 2 : index
    %c0_62 = arith.constant 0 : index
    %209 = vector.load %arg13[%c0_61, %c2, %c0_62] : memref<8x8x128xf32, #tpu.memory_space<vmem>>, vector<8x1x128xf32>
    %210 = vector.shape_cast %209 : vector<8x1x128xf32> to vector<8x128xf32>
    %211 = vector.shape_cast %183 : vector<8x128xf32> to vector<8x1x128xf32>
    tpu.vector_store %arg13[%c0_61, %c2, %c0_62], %211 {strides = array<i32>} : memref<8x8x128xf32, #tpu.memory_space<vmem>>, vector<8x1x128xf32>,
    %c0_63 = arith.constant 0 : index
    %c5 = arith.constant 5 : index
    %c0_64 = arith.constant 0 : index
    %212 = vector.load %arg14[%c0_63, %c5, %c0_64] : memref<8x8x128xf32, #tpu.memory_space<vmem>>, vector<8x1x128xf32>
    %213 = vector.shape_cast %212 : vector<8x1x128xf32> to vector<8x128xf32>
    %214 = vector.shape_cast %208 : vector<8x128xf32> to vector<8x1x128xf32>
    tpu.vector_store %arg14[%c0_63, %c5, %c0_64], %214 {strides = array<i32>} : memref<8x8x128xf32, #tpu.memory_space<vmem>>, vector<8x1x128xf32>,
    %215 = tpu.concatenate %183, %208 in 1 : vector<8x128xf32>, vector<8x128xf32> -> vector<8x256xf32>
    %216 = arith.truncf %215 : vector<8x256xf32> to vector<8x256xbf16>
    %c0_65 = arith.constant 0 : index
    %c0_66 = arith.constant 0 : index
    %217 = vector.load %arg5[%c0_65, %c0_66] : memref<256x1024xbf16, #tpu.memory_space<vmem>>, vector<256x1024xbf16>
    %cst_67 = arith.constant dense<0.000000e+00> : vector<8x1024xf32>
    %218 = tpu.matmul %216, %217, %cst_67 {dimension_numbers = #tpu.dot_dimension_numbers<[1], [0], [0], [1], [0, 0, 1, 1], [], []>} : vector<8x256xbf16>, vector<256x1024xbf16>, vector<8x1024xf32> -> vector<8x1024xf32>
    %c24 = arith.constant 24 : index
    %c0_68 = arith.constant 0 : index
    %219 = vector.load %arg11[%c24, %c0_68] : memref<64x512xf32, #tpu.memory_space<vmem>>, vector<8x512xf32>
    %220 = vector.extract_strided_slice %218 {offsets = [0, 0], sizes = [8, 512], strides = [1, 1]} : vector<8x1024xf32> to vector<8x512xf32>
    %221 = arith.addf %219, %220 : vector<8x512xf32>
    %c32 = arith.constant 32 : index
    %c0_69 = arith.constant 0 : index
    %222 = vector.load %arg12[%c32, %c0_69] : memref<64x512xf32, #tpu.memory_space<vmem>>, vector<8x512xf32>
    %223 = vector.extract_strided_slice %218 {offsets = [0, 512], sizes = [8, 512], strides = [1, 1]} : vector<8x1024xf32> to vector<8x512xf32>
    %224 = arith.addf %222, %223 : vector<8x512xf32>
    %225 = vector.extract_strided_slice %221 {offsets = [0, 0], sizes = [8, 128], strides = [1, 1]} : vector<8x512xf32> to vector<8x128xf32>
    %226 = arith.negf %225 : vector<8x128xf32>
    %227 = math.exp %226 : vector<8x128xf32>
    %cst_70 = arith.constant 1.000000e+00 : f32
    %228 = vector.broadcast %cst_70 : f32 to vector<8x128xf32>
    %229 = arith.addf %228, %227 : vector<8x128xf32>
    %230 = arith.divf %228, %229 : vector<8x128xf32>
    %231 = vector.extract_strided_slice %221 {offsets = [0, 128], sizes = [8, 128], strides = [1, 1]} : vector<8x512xf32> to vector<8x128xf32>
    %232 = arith.negf %231 : vector<8x128xf32>
    %233 = math.exp %232 : vector<8x128xf32>
    %cst_71 = arith.constant 1.000000e+00 : f32
    %234 = vector.broadcast %cst_71 : f32 to vector<8x128xf32>
    %235 = arith.addf %234, %233 : vector<8x128xf32>
    %236 = arith.divf %234, %235 : vector<8x128xf32>
    %237 = vector.extract_strided_slice %221 {offsets = [0, 256], sizes = [8, 128], strides = [1, 1]} : vector<8x512xf32> to vector<8x128xf32>
    %238 = math.tanh %237 : vector<8x128xf32>
    %239 = vector.extract_strided_slice %221 {offsets = [0, 384], sizes = [8, 128], strides = [1, 1]} : vector<8x512xf32> to vector<8x128xf32>
    %240 = arith.negf %239 : vector<8x128xf32>
    %241 = math.exp %240 : vector<8x128xf32>
    %cst_72 = arith.constant 1.000000e+00 : f32
    %242 = vector.broadcast %cst_72 : f32 to vector<8x128xf32>
    %243 = arith.addf %242, %241 : vector<8x128xf32>
    %244 = arith.divf %242, %243 : vector<8x128xf32>
    %245 = arith.mulf %236, %181 : vector<8x128xf32>
    %246 = arith.mulf %230, %238 : vector<8x128xf32>
    %247 = arith.addf %245, %246 : vector<8x128xf32>
    %248 = math.tanh %247 : vector<8x128xf32>
    %249 = arith.mulf %244, %248 : vector<8x128xf32>
    %250 = vector.extract_strided_slice %224 {offsets = [0, 0], sizes = [8, 128], strides = [1, 1]} : vector<8x512xf32> to vector<8x128xf32>
    %251 = arith.negf %250 : vector<8x128xf32>
    %252 = math.exp %251 : vector<8x128xf32>
    %cst_73 = arith.constant 1.000000e+00 : f32
    %253 = vector.broadcast %cst_73 : f32 to vector<8x128xf32>
    %254 = arith.addf %253, %252 : vector<8x128xf32>
    %255 = arith.divf %253, %254 : vector<8x128xf32>
    %256 = vector.extract_strided_slice %224 {offsets = [0, 128], sizes = [8, 128], strides = [1, 1]} : vector<8x512xf32> to vector<8x128xf32>
    %257 = arith.negf %256 : vector<8x128xf32>
    %258 = math.exp %257 : vector<8x128xf32>
    %cst_74 = arith.constant 1.000000e+00 : f32
    %259 = vector.broadcast %cst_74 : f32 to vector<8x128xf32>
    %260 = arith.addf %259, %258 : vector<8x128xf32>
    %261 = arith.divf %259, %260 : vector<8x128xf32>
    %262 = vector.extract_strided_slice %224 {offsets = [0, 256], sizes = [8, 128], strides = [1, 1]} : vector<8x512xf32> to vector<8x128xf32>
    %263 = math.tanh %262 : vector<8x128xf32>
    %264 = vector.extract_strided_slice %224 {offsets = [0, 384], sizes = [8, 128], strides = [1, 1]} : vector<8x512xf32> to vector<8x128xf32>
    %265 = arith.negf %264 : vector<8x128xf32>
    %266 = math.exp %265 : vector<8x128xf32>
    %cst_75 = arith.constant 1.000000e+00 : f32
    %267 = vector.broadcast %cst_75 : f32 to vector<8x128xf32>
    %268 = arith.addf %267, %266 : vector<8x128xf32>
    %269 = arith.divf %267, %268 : vector<8x128xf32>
    %270 = arith.mulf %261, %206 : vector<8x128xf32>
    %271 = arith.mulf %255, %263 : vector<8x128xf32>
    %272 = arith.addf %270, %271 : vector<8x128xf32>
    %273 = math.tanh %272 : vector<8x128xf32>
    %274 = arith.mulf %269, %273 : vector<8x128xf32>
    %c0_76 = arith.constant 0 : index
    %c3 = arith.constant 3 : index
    %c0_77 = arith.constant 0 : index
    %275 = vector.load %arg13[%c0_76, %c3, %c0_77] : memref<8x8x128xf32, #tpu.memory_space<vmem>>, vector<8x1x128xf32>
    %276 = vector.shape_cast %275 : vector<8x1x128xf32> to vector<8x128xf32>
    %277 = vector.shape_cast %249 : vector<8x128xf32> to vector<8x1x128xf32>
    tpu.vector_store %arg13[%c0_76, %c3, %c0_77], %277 {strides = array<i32>} : memref<8x8x128xf32, #tpu.memory_space<vmem>>, vector<8x1x128xf32>,
    %c0_78 = arith.constant 0 : index
    %c4 = arith.constant 4 : index
    %c0_79 = arith.constant 0 : index
    %278 = vector.load %arg14[%c0_78, %c4, %c0_79] : memref<8x8x128xf32, #tpu.memory_space<vmem>>, vector<8x1x128xf32>
    %279 = vector.shape_cast %278 : vector<8x1x128xf32> to vector<8x128xf32>
    %280 = vector.shape_cast %274 : vector<8x128xf32> to vector<8x1x128xf32>
    tpu.vector_store %arg14[%c0_78, %c4, %c0_79], %280 {strides = array<i32>} : memref<8x8x128xf32, #tpu.memory_space<vmem>>, vector<8x1x128xf32>,
    %281 = tpu.concatenate %249, %274 in 1 : vector<8x128xf32>, vector<8x128xf32> -> vector<8x256xf32>
    %282 = arith.truncf %281 : vector<8x256xf32> to vector<8x256xbf16>
    %c0_80 = arith.constant 0 : index
    %c0_81 = arith.constant 0 : index
    %283 = vector.load %arg5[%c0_80, %c0_81] : memref<256x1024xbf16, #tpu.memory_space<vmem>>, vector<256x1024xbf16>
    %cst_82 = arith.constant dense<0.000000e+00> : vector<8x1024xf32>
    %284 = tpu.matmul %282, %283, %cst_82 {dimension_numbers = #tpu.dot_dimension_numbers<[1], [0], [0], [1], [0, 0, 1, 1], [], []>} : vector<8x256xbf16>, vector<256x1024xbf16>, vector<8x1024xf32> -> vector<8x1024xf32>
    %c32_83 = arith.constant 32 : index
    %c0_84 = arith.constant 0 : index
    %285 = vector.load %arg11[%c32_83, %c0_84] : memref<64x512xf32, #tpu.memory_space<vmem>>, vector<8x512xf32>
    %286 = vector.extract_strided_slice %284 {offsets = [0, 0], sizes = [8, 512], strides = [1, 1]} : vector<8x1024xf32> to vector<8x512xf32>
    %287 = arith.addf %285, %286 : vector<8x512xf32>
    %c24_85 = arith.constant 24 : index
    %c0_86 = arith.constant 0 : index
    %288 = vector.load %arg12[%c24_85, %c0_86] : memref<64x512xf32, #tpu.memory_space<vmem>>, vector<8x512xf32>
    %289 = vector.extract_strided_slice %284 {offsets = [0, 512], sizes = [8, 512], strides = [1, 1]} : vector<8x1024xf32> to vector<8x512xf32>
    %290 = arith.addf %288, %289 : vector<8x512xf32>
    %291 = vector.extract_strided_slice %287 {offsets = [0, 0], sizes = [8, 128], strides = [1, 1]} : vector<8x512xf32> to vector<8x128xf32>
    %292 = arith.negf %291 : vector<8x128xf32>
    %293 = math.exp %292 : vector<8x128xf32>
    %cst_87 = arith.constant 1.000000e+00 : f32
    %294 = vector.broadcast %cst_87 : f32 to vector<8x128xf32>
    %295 = arith.addf %294, %293 : vector<8x128xf32>
    %296 = arith.divf %294, %295 : vector<8x128xf32>
    %297 = vector.extract_strided_slice %287 {offsets = [0, 128], sizes = [8, 128], strides = [1, 1]} : vector<8x512xf32> to vector<8x128xf32>
    %298 = arith.negf %297 : vector<8x128xf32>
    %299 = math.exp %298 : vector<8x128xf32>
    %cst_88 = arith.constant 1.000000e+00 : f32
    %300 = vector.broadcast %cst_88 : f32 to vector<8x128xf32>
    %301 = arith.addf %300, %299 : vector<8x128xf32>
    %302 = arith.divf %300, %301 : vector<8x128xf32>
    %303 = vector.extract_strided_slice %287 {offsets = [0, 256], sizes = [8, 128], strides = [1, 1]} : vector<8x512xf32> to vector<8x128xf32>
    %304 = math.tanh %303 : vector<8x128xf32>
    %305 = vector.extract_strided_slice %287 {offsets = [0, 384], sizes = [8, 128], strides = [1, 1]} : vector<8x512xf32> to vector<8x128xf32>
    %306 = arith.negf %305 : vector<8x128xf32>
    %307 = math.exp %306 : vector<8x128xf32>
    %cst_89 = arith.constant 1.000000e+00 : f32
    %308 = vector.broadcast %cst_89 : f32 to vector<8x128xf32>
    %309 = arith.addf %308, %307 : vector<8x128xf32>
    %310 = arith.divf %308, %309 : vector<8x128xf32>
    %311 = arith.mulf %302, %247 : vector<8x128xf32>
    %312 = arith.mulf %296, %304 : vector<8x128xf32>
    %313 = arith.addf %311, %312 : vector<8x128xf32>
    %314 = math.tanh %313 : vector<8x128xf32>
    %315 = arith.mulf %310, %314 : vector<8x128xf32>
    %316 = vector.extract_strided_slice %290 {offsets = [0, 0], sizes = [8, 128], strides = [1, 1]} : vector<8x512xf32> to vector<8x128xf32>
    %317 = arith.negf %316 : vector<8x128xf32>
    %318 = math.exp %317 : vector<8x128xf32>
    %cst_90 = arith.constant 1.000000e+00 : f32
    %319 = vector.broadcast %cst_90 : f32 to vector<8x128xf32>
    %320 = arith.addf %319, %318 : vector<8x128xf32>
    %321 = arith.divf %319, %320 : vector<8x128xf32>
    %322 = vector.extract_strided_slice %290 {offsets = [0, 128], sizes = [8, 128], strides = [1, 1]} : vector<8x512xf32> to vector<8x128xf32>
    %323 = arith.negf %322 : vector<8x128xf32>
    %324 = math.exp %323 : vector<8x128xf32>
    %cst_91 = arith.constant 1.000000e+00 : f32
    %325 = vector.broadcast %cst_91 : f32 to vector<8x128xf32>
    %326 = arith.addf %325, %324 : vector<8x128xf32>
    %327 = arith.divf %325, %326 : vector<8x128xf32>
    %328 = vector.extract_strided_slice %290 {offsets = [0, 256], sizes = [8, 128], strides = [1, 1]} : vector<8x512xf32> to vector<8x128xf32>
    %329 = math.tanh %328 : vector<8x128xf32>
    %330 = vector.extract_strided_slice %290 {offsets = [0, 384], sizes = [8, 128], strides = [1, 1]} : vector<8x512xf32> to vector<8x128xf32>
    %331 = arith.negf %330 : vector<8x128xf32>
    %332 = math.exp %331 : vector<8x128xf32>
    %cst_92 = arith.constant 1.000000e+00 : f32
    %333 = vector.broadcast %cst_92 : f32 to vector<8x128xf32>
    %334 = arith.addf %333, %332 : vector<8x128xf32>
    %335 = arith.divf %333, %334 : vector<8x128xf32>
    %336 = arith.mulf %327, %272 : vector<8x128xf32>
    %337 = arith.mulf %321, %329 : vector<8x128xf32>
    %338 = arith.addf %336, %337 : vector<8x128xf32>
    %339 = math.tanh %338 : vector<8x128xf32>
    %340 = arith.mulf %335, %339 : vector<8x128xf32>
    %c0_93 = arith.constant 0 : index
    %c4_94 = arith.constant 4 : index
    %c0_95 = arith.constant 0 : index
    %341 = vector.load %arg13[%c0_93, %c4_94, %c0_95] : memref<8x8x128xf32, #tpu.memory_space<vmem>>, vector<8x1x128xf32>
    %342 = vector.shape_cast %341 : vector<8x1x128xf32> to vector<8x128xf32>
    %343 = vector.shape_cast %315 : vector<8x128xf32> to vector<8x1x128xf32>
    tpu.vector_store %arg13[%c0_93, %c4_94, %c0_95], %343 {strides = array<i32>} : memref<8x8x128xf32, #tpu.memory_space<vmem>>, vector<8x1x128xf32>,
    %c0_96 = arith.constant 0 : index
    %c3_97 = arith.constant 3 : index
    %c0_98 = arith.constant 0 : index
    %344 = vector.load %arg14[%c0_96, %c3_97, %c0_98] : memref<8x8x128xf32, #tpu.memory_space<vmem>>, vector<8x1x128xf32>
    %345 = vector.shape_cast %344 : vector<8x1x128xf32> to vector<8x128xf32>
    %346 = vector.shape_cast %340 : vector<8x128xf32> to vector<8x1x128xf32>
    tpu.vector_store %arg14[%c0_96, %c3_97, %c0_98], %346 {strides = array<i32>} : memref<8x8x128xf32, #tpu.memory_space<vmem>>, vector<8x1x128xf32>,
    %347 = tpu.concatenate %315, %340 in 1 : vector<8x128xf32>, vector<8x128xf32> -> vector<8x256xf32>
    %348 = arith.truncf %347 : vector<8x256xf32> to vector<8x256xbf16>
    %c0_99 = arith.constant 0 : index
    %c0_100 = arith.constant 0 : index
    %349 = vector.load %arg5[%c0_99, %c0_100] : memref<256x1024xbf16, #tpu.memory_space<vmem>>, vector<256x1024xbf16>
    %cst_101 = arith.constant dense<0.000000e+00> : vector<8x1024xf32>
    %350 = tpu.matmul %348, %349, %cst_101 {dimension_numbers = #tpu.dot_dimension_numbers<[1], [0], [0], [1], [0, 0, 1, 1], [], []>} : vector<8x256xbf16>, vector<256x1024xbf16>, vector<8x1024xf32> -> vector<8x1024xf32>
    %c40_102 = arith.constant 40 : index
    %c0_103 = arith.constant 0 : index
    %351 = vector.load %arg11[%c40_102, %c0_103] : memref<64x512xf32, #tpu.memory_space<vmem>>, vector<8x512xf32>
    %352 = vector.extract_strided_slice %350 {offsets = [0, 0], sizes = [8, 512], strides = [1, 1]} : vector<8x1024xf32> to vector<8x512xf32>
    %353 = arith.addf %351, %352 : vector<8x512xf32>
    %c16_104 = arith.constant 16 : index
    %c0_105 = arith.constant 0 : index
    %354 = vector.load %arg12[%c16_104, %c0_105] : memref<64x512xf32, #tpu.memory_space<vmem>>, vector<8x512xf32>
    %355 = vector.extract_strided_slice %350 {offsets = [0, 512], sizes = [8, 512], strides = [1, 1]} : vector<8x1024xf32> to vector<8x512xf32>
    %356 = arith.addf %354, %355 : vector<8x512xf32>
    %357 = vector.extract_strided_slice %353 {offsets = [0, 0], sizes = [8, 128], strides = [1, 1]} : vector<8x512xf32> to vector<8x128xf32>
    %358 = arith.negf %357 : vector<8x128xf32>
    %359 = math.exp %358 : vector<8x128xf32>
    %cst_106 = arith.constant 1.000000e+00 : f32
    %360 = vector.broadcast %cst_106 : f32 to vector<8x128xf32>
    %361 = arith.addf %360, %359 : vector<8x128xf32>
    %362 = arith.divf %360, %361 : vector<8x128xf32>
    %363 = vector.extract_strided_slice %353 {offsets = [0, 128], sizes = [8, 128], strides = [1, 1]} : vector<8x512xf32> to vector<8x128xf32>
    %364 = arith.negf %363 : vector<8x128xf32>
    %365 = math.exp %364 : vector<8x128xf32>
    %cst_107 = arith.constant 1.000000e+00 : f32
    %366 = vector.broadcast %cst_107 : f32 to vector<8x128xf32>
    %367 = arith.addf %366, %365 : vector<8x128xf32>
    %368 = arith.divf %366, %367 : vector<8x128xf32>
    %369 = vector.extract_strided_slice %353 {offsets = [0, 256], sizes = [8, 128], strides = [1, 1]} : vector<8x512xf32> to vector<8x128xf32>
    %370 = math.tanh %369 : vector<8x128xf32>
    %371 = vector.extract_strided_slice %353 {offsets = [0, 384], sizes = [8, 128], strides = [1, 1]} : vector<8x512xf32> to vector<8x128xf32>
    %372 = arith.negf %371 : vector<8x128xf32>
    %373 = math.exp %372 : vector<8x128xf32>
    %cst_108 = arith.constant 1.000000e+00 : f32
    %374 = vector.broadcast %cst_108 : f32 to vector<8x128xf32>
    %375 = arith.addf %374, %373 : vector<8x128xf32>
    %376 = arith.divf %374, %375 : vector<8x128xf32>
    %377 = arith.mulf %368, %313 : vector<8x128xf32>
    %378 = arith.mulf %362, %370 : vector<8x128xf32>
    %379 = arith.addf %377, %378 : vector<8x128xf32>
    %380 = math.tanh %379 : vector<8x128xf32>
    %381 = arith.mulf %376, %380 : vector<8x128xf32>
    %382 = vector.extract_strided_slice %356 {offsets = [0, 0], sizes = [8, 128], strides = [1, 1]} : vector<8x512xf32> to vector<8x128xf32>
    %383 = arith.negf %382 : vector<8x128xf32>
    %384 = math.exp %383 : vector<8x128xf32>
    %cst_109 = arith.constant 1.000000e+00 : f32
    %385 = vector.broadcast %cst_109 : f32 to vector<8x128xf32>
    %386 = arith.addf %385, %384 : vector<8x128xf32>
    %387 = arith.divf %385, %386 : vector<8x128xf32>
    %388 = vector.extract_strided_slice %356 {offsets = [0, 128], sizes = [8, 128], strides = [1, 1]} : vector<8x512xf32> to vector<8x128xf32>
    %389 = arith.negf %388 : vector<8x128xf32>
    %390 = math.exp %389 : vector<8x128xf32>
    %cst_110 = arith.constant 1.000000e+00 : f32
    %391 = vector.broadcast %cst_110 : f32 to vector<8x128xf32>
    %392 = arith.addf %391, %390 : vector<8x128xf32>
    %393 = arith.divf %391, %392 : vector<8x128xf32>
    %394 = vector.extract_strided_slice %356 {offsets = [0, 256], sizes = [8, 128], strides = [1, 1]} : vector<8x512xf32> to vector<8x128xf32>
    %395 = math.tanh %394 : vector<8x128xf32>
    %396 = vector.extract_strided_slice %356 {offsets = [0, 384], sizes = [8, 128], strides = [1, 1]} : vector<8x512xf32> to vector<8x128xf32>
    %397 = arith.negf %396 : vector<8x128xf32>
    %398 = math.exp %397 : vector<8x128xf32>
    %cst_111 = arith.constant 1.000000e+00 : f32
    %399 = vector.broadcast %cst_111 : f32 to vector<8x128xf32>
    %400 = arith.addf %399, %398 : vector<8x128xf32>
    %401 = arith.divf %399, %400 : vector<8x128xf32>
    %402 = arith.mulf %393, %338 : vector<8x128xf32>
    %403 = arith.mulf %387, %395 : vector<8x128xf32>
    %404 = arith.addf %402, %403 : vector<8x128xf32>
    %405 = math.tanh %404 : vector<8x128xf32>
    %406 = arith.mulf %401, %405 : vector<8x128xf32>
    %c0_112 = arith.constant 0 : index
    %c5_113 = arith.constant 5 : index
    %c0_114 = arith.constant 0 : index
    %407 = vector.load %arg13[%c0_112, %c5_113, %c0_114] : memref<8x8x128xf32, #tpu.memory_space<vmem>>, vector<8x1x128xf32>
    %408 = vector.shape_cast %407 : vector<8x1x128xf32> to vector<8x128xf32>
    %409 = vector.shape_cast %381 : vector<8x128xf32> to vector<8x1x128xf32>
    tpu.vector_store %arg13[%c0_112, %c5_113, %c0_114], %409 {strides = array<i32>} : memref<8x8x128xf32, #tpu.memory_space<vmem>>, vector<8x1x128xf32>,
    %c0_115 = arith.constant 0 : index
    %c2_116 = arith.constant 2 : index
    %c0_117 = arith.constant 0 : index
    %410 = vector.load %arg14[%c0_115, %c2_116, %c0_117] : memref<8x8x128xf32, #tpu.memory_space<vmem>>, vector<8x1x128xf32>
    %411 = vector.shape_cast %410 : vector<8x1x128xf32> to vector<8x128xf32>
    %412 = vector.shape_cast %406 : vector<8x128xf32> to vector<8x1x128xf32>
    tpu.vector_store %arg14[%c0_115, %c2_116, %c0_117], %412 {strides = array<i32>} : memref<8x8x128xf32, #tpu.memory_space<vmem>>, vector<8x1x128xf32>,
    %413 = tpu.concatenate %381, %406 in 1 : vector<8x128xf32>, vector<8x128xf32> -> vector<8x256xf32>
    %414 = arith.truncf %413 : vector<8x256xf32> to vector<8x256xbf16>
    %c0_118 = arith.constant 0 : index
    %c0_119 = arith.constant 0 : index
    %415 = vector.load %arg5[%c0_118, %c0_119] : memref<256x1024xbf16, #tpu.memory_space<vmem>>, vector<256x1024xbf16>
    %cst_120 = arith.constant dense<0.000000e+00> : vector<8x1024xf32>
    %416 = tpu.matmul %414, %415, %cst_120 {dimension_numbers = #tpu.dot_dimension_numbers<[1], [0], [0], [1], [0, 0, 1, 1], [], []>} : vector<8x256xbf16>, vector<256x1024xbf16>, vector<8x1024xf32> -> vector<8x1024xf32>
    %c48_121 = arith.constant 48 : index
    %c0_122 = arith.constant 0 : index
    %417 = vector.load %arg11[%c48_121, %c0_122] : memref<64x512xf32, #tpu.memory_space<vmem>>, vector<8x512xf32>
    %418 = vector.extract_strided_slice %416 {offsets = [0, 0], sizes = [8, 512], strides = [1, 1]} : vector<8x1024xf32> to vector<8x512xf32>
    %419 = arith.addf %417, %418 : vector<8x512xf32>
    %c8_123 = arith.constant 8 : index
    %c0_124 = arith.constant 0 : index
    %420 = vector.load %arg12[%c8_123, %c0_124] : memref<64x512xf32, #tpu.memory_space<vmem>>, vector<8x512xf32>
    %421 = vector.extract_strided_slice %416 {offsets = [0, 512], sizes = [8, 512], strides = [1, 1]} : vector<8x1024xf32> to vector<8x512xf32>
    %422 = arith.addf %420, %421 : vector<8x512xf32>
    %423 = vector.extract_strided_slice %419 {offsets = [0, 0], sizes = [8, 128], strides = [1, 1]} : vector<8x512xf32> to vector<8x128xf32>
    %424 = arith.negf %423 : vector<8x128xf32>
    %425 = math.exp %424 : vector<8x128xf32>
    %cst_125 = arith.constant 1.000000e+00 : f32
    %426 = vector.broadcast %cst_125 : f32 to vector<8x128xf32>
    %427 = arith.addf %426, %425 : vector<8x128xf32>
    %428 = arith.divf %426, %427 : vector<8x128xf32>
    %429 = vector.extract_strided_slice %419 {offsets = [0, 128], sizes = [8, 128], strides = [1, 1]} : vector<8x512xf32> to vector<8x128xf32>
    %430 = arith.negf %429 : vector<8x128xf32>
    %431 = math.exp %430 : vector<8x128xf32>
    %cst_126 = arith.constant 1.000000e+00 : f32
    %432 = vector.broadcast %cst_126 : f32 to vector<8x128xf32>
    %433 = arith.addf %432, %431 : vector<8x128xf32>
    %434 = arith.divf %432, %433 : vector<8x128xf32>
    %435 = vector.extract_strided_slice %419 {offsets = [0, 256], sizes = [8, 128], strides = [1, 1]} : vector<8x512xf32> to vector<8x128xf32>
    %436 = math.tanh %435 : vector<8x128xf32>
    %437 = vector.extract_strided_slice %419 {offsets = [0, 384], sizes = [8, 128], strides = [1, 1]} : vector<8x512xf32> to vector<8x128xf32>
    %438 = arith.negf %437 : vector<8x128xf32>
    %439 = math.exp %438 : vector<8x128xf32>
    %cst_127 = arith.constant 1.000000e+00 : f32
    %440 = vector.broadcast %cst_127 : f32 to vector<8x128xf32>
    %441 = arith.addf %440, %439 : vector<8x128xf32>
    %442 = arith.divf %440, %441 : vector<8x128xf32>
    %443 = arith.mulf %434, %379 : vector<8x128xf32>
    %444 = arith.mulf %428, %436 : vector<8x128xf32>
    %445 = arith.addf %443, %444 : vector<8x128xf32>
    %446 = math.tanh %445 : vector<8x128xf32>
    %447 = arith.mulf %442, %446 : vector<8x128xf32>
    %448 = vector.extract_strided_slice %422 {offsets = [0, 0], sizes = [8, 128], strides = [1, 1]} : vector<8x512xf32> to vector<8x128xf32>
    %449 = arith.negf %448 : vector<8x128xf32>
    %450 = math.exp %449 : vector<8x128xf32>
    %cst_128 = arith.constant 1.000000e+00 : f32
    %451 = vector.broadcast %cst_128 : f32 to vector<8x128xf32>
    %452 = arith.addf %451, %450 : vector<8x128xf32>
    %453 = arith.divf %451, %452 : vector<8x128xf32>
    %454 = vector.extract_strided_slice %422 {offsets = [0, 128], sizes = [8, 128], strides = [1, 1]} : vector<8x512xf32> to vector<8x128xf32>
    %455 = arith.negf %454 : vector<8x128xf32>
    %456 = math.exp %455 : vector<8x128xf32>
    %cst_129 = arith.constant 1.000000e+00 : f32
    %457 = vector.broadcast %cst_129 : f32 to vector<8x128xf32>
    %458 = arith.addf %457, %456 : vector<8x128xf32>
    %459 = arith.divf %457, %458 : vector<8x128xf32>
    %460 = vector.extract_strided_slice %422 {offsets = [0, 256], sizes = [8, 128], strides = [1, 1]} : vector<8x512xf32> to vector<8x128xf32>
    %461 = math.tanh %460 : vector<8x128xf32>
    %462 = vector.extract_strided_slice %422 {offsets = [0, 384], sizes = [8, 128], strides = [1, 1]} : vector<8x512xf32> to vector<8x128xf32>
    %463 = arith.negf %462 : vector<8x128xf32>
    %464 = math.exp %463 : vector<8x128xf32>
    %cst_130 = arith.constant 1.000000e+00 : f32
    %465 = vector.broadcast %cst_130 : f32 to vector<8x128xf32>
    %466 = arith.addf %465, %464 : vector<8x128xf32>
    %467 = arith.divf %465, %466 : vector<8x128xf32>
    %468 = arith.mulf %459, %404 : vector<8x128xf32>
    %469 = arith.mulf %453, %461 : vector<8x128xf32>
    %470 = arith.addf %468, %469 : vector<8x128xf32>
    %471 = math.tanh %470 : vector<8x128xf32>
    %472 = arith.mulf %467, %471 : vector<8x128xf32>
    %c0_131 = arith.constant 0 : index
    %c6_132 = arith.constant 6 : index
    %c0_133 = arith.constant 0 : index
    %473 = vector.load %arg13[%c0_131, %c6_132, %c0_133] : memref<8x8x128xf32, #tpu.memory_space<vmem>>, vector<8x1x128xf32>
    %474 = vector.shape_cast %473 : vector<8x1x128xf32> to vector<8x128xf32>
    %475 = vector.shape_cast %447 : vector<8x128xf32> to vector<8x1x128xf32>
    tpu.vector_store %arg13[%c0_131, %c6_132, %c0_133], %475 {strides = array<i32>} : memref<8x8x128xf32, #tpu.memory_space<vmem>>, vector<8x1x128xf32>,
    %c0_134 = arith.constant 0 : index
    %c1_135 = arith.constant 1 : index
    %c0_136 = arith.constant 0 : index
    %476 = vector.load %arg14[%c0_134, %c1_135, %c0_136] : memref<8x8x128xf32, #tpu.memory_space<vmem>>, vector<8x1x128xf32>
    %477 = vector.shape_cast %476 : vector<8x1x128xf32> to vector<8x128xf32>
    %478 = vector.shape_cast %472 : vector<8x128xf32> to vector<8x1x128xf32>
    tpu.vector_store %arg14[%c0_134, %c1_135, %c0_136], %478 {strides = array<i32>} : memref<8x8x128xf32, #tpu.memory_space<vmem>>, vector<8x1x128xf32>,
    %479 = tpu.concatenate %447, %472 in 1 : vector<8x128xf32>, vector<8x128xf32> -> vector<8x256xf32>
    %480 = arith.truncf %479 : vector<8x256xf32> to vector<8x256xbf16>
    %c0_137 = arith.constant 0 : index
    %c0_138 = arith.constant 0 : index
    %481 = vector.load %arg5[%c0_137, %c0_138] : memref<256x1024xbf16, #tpu.memory_space<vmem>>, vector<256x1024xbf16>
    %cst_139 = arith.constant dense<0.000000e+00> : vector<8x1024xf32>
    %482 = tpu.matmul %480, %481, %cst_139 {dimension_numbers = #tpu.dot_dimension_numbers<[1], [0], [0], [1], [0, 0, 1, 1], [], []>} : vector<8x256xbf16>, vector<256x1024xbf16>, vector<8x1024xf32> -> vector<8x1024xf32>
    %c56_140 = arith.constant 56 : index
    %c0_141 = arith.constant 0 : index
    %483 = vector.load %arg11[%c56_140, %c0_141] : memref<64x512xf32, #tpu.memory_space<vmem>>, vector<8x512xf32>
    %484 = vector.extract_strided_slice %482 {offsets = [0, 0], sizes = [8, 512], strides = [1, 1]} : vector<8x1024xf32> to vector<8x512xf32>
    %485 = arith.addf %483, %484 : vector<8x512xf32>
    %c0_142 = arith.constant 0 : index
    %c0_143 = arith.constant 0 : index
    %486 = vector.load %arg12[%c0_142, %c0_143] : memref<64x512xf32, #tpu.memory_space<vmem>>, vector<8x512xf32>
    %487 = vector.extract_strided_slice %482 {offsets = [0, 512], sizes = [8, 512], strides = [1, 1]} : vector<8x1024xf32> to vector<8x512xf32>
    %488 = arith.addf %486, %487 : vector<8x512xf32>
    %489 = vector.extract_strided_slice %485 {offsets = [0, 0], sizes = [8, 128], strides = [1, 1]} : vector<8x512xf32> to vector<8x128xf32>
    %490 = arith.negf %489 : vector<8x128xf32>
    %491 = math.exp %490 : vector<8x128xf32>
    %cst_144 = arith.constant 1.000000e+00 : f32
    %492 = vector.broadcast %cst_144 : f32 to vector<8x128xf32>
    %493 = arith.addf %492, %491 : vector<8x128xf32>
    %494 = arith.divf %492, %493 : vector<8x128xf32>
    %495 = vector.extract_strided_slice %485 {offsets = [0, 128], sizes = [8, 128], strides = [1, 1]} : vector<8x512xf32> to vector<8x128xf32>
    %496 = arith.negf %495 : vector<8x128xf32>
    %497 = math.exp %496 : vector<8x128xf32>
    %cst_145 = arith.constant 1.000000e+00 : f32
    %498 = vector.broadcast %cst_145 : f32 to vector<8x128xf32>
    %499 = arith.addf %498, %497 : vector<8x128xf32>
    %500 = arith.divf %498, %499 : vector<8x128xf32>
    %501 = vector.extract_strided_slice %485 {offsets = [0, 256], sizes = [8, 128], strides = [1, 1]} : vector<8x512xf32> to vector<8x128xf32>
    %502 = math.tanh %501 : vector<8x128xf32>
    %503 = vector.extract_strided_slice %485 {offsets = [0, 384], sizes = [8, 128], strides = [1, 1]} : vector<8x512xf32> to vector<8x128xf32>
    %504 = arith.negf %503 : vector<8x128xf32>
    %505 = math.exp %504 : vector<8x128xf32>
    %cst_146 = arith.constant 1.000000e+00 : f32
    %506 = vector.broadcast %cst_146 : f32 to vector<8x128xf32>
    %507 = arith.addf %506, %505 : vector<8x128xf32>
    %508 = arith.divf %506, %507 : vector<8x128xf32>
    %509 = arith.mulf %500, %445 : vector<8x128xf32>
    %510 = arith.mulf %494, %502 : vector<8x128xf32>
    %511 = arith.addf %509, %510 : vector<8x128xf32>
    %512 = math.tanh %511 : vector<8x128xf32>
    %513 = arith.mulf %508, %512 : vector<8x128xf32>
    %514 = vector.extract_strided_slice %488 {offsets = [0, 0], sizes = [8, 128], strides = [1, 1]} : vector<8x512xf32> to vector<8x128xf32>
    %515 = arith.negf %514 : vector<8x128xf32>
    %516 = math.exp %515 : vector<8x128xf32>
    %cst_147 = arith.constant 1.000000e+00 : f32
    %517 = vector.broadcast %cst_147 : f32 to vector<8x128xf32>
    %518 = arith.addf %517, %516 : vector<8x128xf32>
    %519 = arith.divf %517, %518 : vector<8x128xf32>
    %520 = vector.extract_strided_slice %488 {offsets = [0, 128], sizes = [8, 128], strides = [1, 1]} : vector<8x512xf32> to vector<8x128xf32>
    %521 = arith.negf %520 : vector<8x128xf32>
    %522 = math.exp %521 : vector<8x128xf32>
    %cst_148 = arith.constant 1.000000e+00 : f32
    %523 = vector.broadcast %cst_148 : f32 to vector<8x128xf32>
    %524 = arith.addf %523, %522 : vector<8x128xf32>
    %525 = arith.divf %523, %524 : vector<8x128xf32>
    %526 = vector.extract_strided_slice %488 {offsets = [0, 256], sizes = [8, 128], strides = [1, 1]} : vector<8x512xf32> to vector<8x128xf32>
    %527 = math.tanh %526 : vector<8x128xf32>
    %528 = vector.extract_strided_slice %488 {offsets = [0, 384], sizes = [8, 128], strides = [1, 1]} : vector<8x512xf32> to vector<8x128xf32>
    %529 = arith.negf %528 : vector<8x128xf32>
    %530 = math.exp %529 : vector<8x128xf32>
    %cst_149 = arith.constant 1.000000e+00 : f32
    %531 = vector.broadcast %cst_149 : f32 to vector<8x128xf32>
    %532 = arith.addf %531, %530 : vector<8x128xf32>
    %533 = arith.divf %531, %532 : vector<8x128xf32>
    %534 = arith.mulf %525, %470 : vector<8x128xf32>
    %535 = arith.mulf %519, %527 : vector<8x128xf32>
    %536 = arith.addf %534, %535 : vector<8x128xf32>
    %537 = math.tanh %536 : vector<8x128xf32>
    %538 = arith.mulf %533, %537 : vector<8x128xf32>
    %c0_150 = arith.constant 0 : index
    %c7_151 = arith.constant 7 : index
    %c0_152 = arith.constant 0 : index
    %539 = vector.load %arg13[%c0_150, %c7_151, %c0_152] : memref<8x8x128xf32, #tpu.memory_space<vmem>>, vector<8x1x128xf32>
    %540 = vector.shape_cast %539 : vector<8x1x128xf32> to vector<8x128xf32>
    %541 = vector.shape_cast %513 : vector<8x128xf32> to vector<8x1x128xf32>
    tpu.vector_store %arg13[%c0_150, %c7_151, %c0_152], %541 {strides = array<i32>} : memref<8x8x128xf32, #tpu.memory_space<vmem>>, vector<8x1x128xf32>,
    %c0_153 = arith.constant 0 : index
    %c0_154 = arith.constant 0 : index
    %c0_155 = arith.constant 0 : index
    %542 = vector.load %arg14[%c0_153, %c0_154, %c0_155] : memref<8x8x128xf32, #tpu.memory_space<vmem>>, vector<8x1x128xf32>
    %543 = vector.shape_cast %542 : vector<8x1x128xf32> to vector<8x128xf32>
    %544 = vector.shape_cast %538 : vector<8x128xf32> to vector<8x1x128xf32>
    tpu.vector_store %arg14[%c0_153, %c0_154, %c0_155], %544 {strides = array<i32>} : memref<8x8x128xf32, #tpu.memory_space<vmem>>, vector<8x1x128xf32>,
    %c0_156 = arith.constant 0 : index
    %c0_157 = arith.constant 0 : index
    %c0_158 = arith.constant 0 : index
    %545 = vector.load %arg13[%c0_156, %c0_157, %c0_158] : memref<8x8x128xf32, #tpu.memory_space<vmem>>, vector<8x8x128xf32>
    %546 = math.tanh %545 : vector<8x8x128xf32>
    %c0_159 = arith.constant 0 : index
    %c0_160 = arith.constant 0 : index
    %c0_161 = arith.constant 0 : index
    %547 = vector.load %arg14[%c0_159, %c0_160, %c0_161] : memref<8x8x128xf32, #tpu.memory_space<vmem>>, vector<8x8x128xf32>
    %548 = math.tanh %547 : vector<8x8x128xf32>
    %549 = tpu.concatenate %513, %538 in 0 : vector<8x128xf32>, vector<8x128xf32> -> vector<16x128xf32>
    %c0_162 = arith.constant 0 : index
    %c0_163 = arith.constant 0 : index
    %550 = vector.load %arg8[%c0_162, %c0_163] : memref<16x16xf32, #tpu.memory_space<vmem>>, vector<16x16xf32>
    %cst_164 = arith.constant dense<0.000000e+00> : vector<16x128xf32>
    %551 = tpu.matmul %550, %549, %cst_164 {dimension_numbers = #tpu.dot_dimension_numbers<[1], [0], [0], [1], [0, 0, 1, 1], [], []>} : vector<16x16xf32>, vector<16x128xf32>, vector<16x128xf32> -> vector<16x128xf32>
    %552 = vector.extract_strided_slice %551 {offsets = [0, 0], sizes = [8, 128], strides = [1, 1]} : vector<16x128xf32> to vector<8x128xf32>
    %553 = vector.extract_strided_slice %551 {offsets = [8, 0], sizes = [8, 128], strides = [1, 1]} : vector<16x128xf32> to vector<8x128xf32>
    %554 = vector.shape_cast %552 : vector<8x128xf32> to vector<8x1x128xf32>
    %555 = vector.broadcast %554 : vector<8x1x128xf32> to vector<8x8x128xf32>
    %556 = arith.mulf %546, %555 : vector<8x8x128xf32>
    %cst_165 = arith.constant dense<0.000000e+00> : vector<8x8xf32>
    %557 = vector.multi_reduction <add>, %556, %cst_165 [2] : vector<8x8x128xf32> to vector<8x8xf32>
    %558 = vector.shape_cast %553 : vector<8x128xf32> to vector<8x1x128xf32>
    %559 = vector.broadcast %558 : vector<8x1x128xf32> to vector<8x8x128xf32>
    %560 = arith.mulf %548, %559 : vector<8x8x128xf32>
    %cst_166 = arith.constant dense<0.000000e+00> : vector<8x8xf32>
    %561 = vector.multi_reduction <add>, %560, %cst_166 [2] : vector<8x8x128xf32> to vector<8x8xf32>
    %562 = arith.addf %557, %561 : vector<8x8xf32>
    %cst_167 = arith.constant dense<0xFF800000> : vector<8xf32>
    %563 = vector.multi_reduction <maximumf>, %562, %cst_167 [1] : vector<8x8xf32> to vector<8xf32>
    %564 = vector.shape_cast %563 : vector<8xf32> to vector<8x1xf32>
    %565 = vector.broadcast %564 : vector<8x1xf32> to vector<8x8xf32>
    %566 = arith.subf %562, %565 : vector<8x8xf32>
    %567 = math.exp %566 : vector<8x8xf32>
    %cst_168 = arith.constant dense<0.000000e+00> : vector<8xf32>
    %568 = vector.multi_reduction <add>, %567, %cst_168 [1] : vector<8x8xf32> to vector<8xf32>
    %569 = vector.shape_cast %568 : vector<8xf32> to vector<8x1xf32>
    %570 = vector.broadcast %569 : vector<8x1xf32> to vector<8x8xf32>
    %571 = arith.divf %567, %570 : vector<8x8xf32>
    %c0_169 = arith.constant 0 : index
    %c0_170 = arith.constant 0 : index
    %572 = vector.load %arg10[%c0_169, %c0_170] : memref<8x8xf32, #tpu.memory_space<vmem>>, vector<8x8xf32>
    tpu.vector_store %arg10[%c0_169, %c0_170], %571 {strides = array<i32>} : memref<8x8xf32, #tpu.memory_space<vmem>>, vector<8x8xf32>,
    %573 = vector.shape_cast %571 : vector<8x8xf32> to vector<8x8x1xf32>
    %574 = vector.broadcast %573 : vector<8x8x1xf32> to vector<8x8x128xf32>
    %575 = arith.mulf %546, %574 : vector<8x8x128xf32>
    %cst_171 = arith.constant dense<0.000000e+00> : vector<8x128xf32>
    %576 = vector.multi_reduction <add>, %575, %cst_171 [1] : vector<8x8x128xf32> to vector<8x128xf32>
    %577 = vector.shape_cast %571 : vector<8x8xf32> to vector<8x8x1xf32>
    %578 = vector.broadcast %577 : vector<8x8x1xf32> to vector<8x8x128xf32>
    %579 = arith.mulf %548, %578 : vector<8x8x128xf32>
    %cst_172 = arith.constant dense<0.000000e+00> : vector<8x128xf32>
    %580 = vector.multi_reduction <add>, %579, %cst_172 [1] : vector<8x8x128xf32> to vector<8x128xf32>
    %c0_173 = arith.constant 0 : index
    %c0_174 = arith.constant 0 : index
    %581 = vector.load %arg6[%c0_173, %c0_174] : memref<256x4xf32, #tpu.memory_space<vmem>>, vector<128x4xf32>
    %cst_175 = arith.constant dense<0.000000e+00> : vector<8x4xf32>
    %582 = tpu.matmul %576, %581, %cst_175 {dimension_numbers = #tpu.dot_dimension_numbers<[1], [0], [0], [1], [0, 0, 1, 1], [], []>} : vector<8x128xf32>, vector<128x4xf32>, vector<8x4xf32> -> vector<8x4xf32>
    %c128 = arith.constant 128 : index
    %c0_176 = arith.constant 0 : index
    %583 = vector.load %arg6[%c128, %c0_176] : memref<256x4xf32, #tpu.memory_space<vmem>>, vector<128x4xf32>
    %cst_177 = arith.constant dense<0.000000e+00> : vector<8x4xf32>
    %584 = tpu.matmul %580, %583, %cst_177 {dimension_numbers = #tpu.dot_dimension_numbers<[1], [0], [0], [1], [0, 0, 1, 1], [], []>} : vector<8x128xf32>, vector<128x4xf32>, vector<8x4xf32> -> vector<8x4xf32>
    %585 = arith.addf %582, %584 : vector<8x4xf32>
    %c0_178 = arith.constant 0 : index
    %c0_179 = arith.constant 0 : index
    %586 = vector.load %arg7[%c0_178, %c0_179] : memref<1x4xf32, #tpu.memory_space<vmem>>, vector<1x4xf32>
    %587 = vector.broadcast %586 : vector<1x4xf32> to vector<8x4xf32>
    %588 = arith.addf %585, %587 : vector<8x4xf32>
    %c0_180 = arith.constant 0 : index
    %c0_181 = arith.constant 0 : index
    %589 = vector.load %arg9[%c0_180, %c0_181] : memref<8x4xf32, #tpu.memory_space<vmem>>, vector<8x4xf32>
    tpu.vector_store %arg9[%c0_180, %c0_181], %588 {strides = array<i32>} : memref<8x4xf32, #tpu.memory_space<vmem>>, vector<8x4xf32>,
    return
  }
}

</mosaic_0001>

<bundles_post_ra>
// kernel: tpu_custom_call.1
= control target key start
LH: loop header
LB: loop body
LE: loop exit
PB: predicated region body
PF: predicated region fallthrough
CT: control target
= control target key end

     0   :  { %16 = vsyncpa [#allocation7], 0  ;;  %s16016_s0 = inlined_call_operand.vmem [shape: bf16[64,256], index: 0, kind: input, shape index: {}]   ;;  %s16017_s1 = inlined_call_operand.hbm [shape: bf16[256,512], index: 1, kind: input, shape index: {}]   ;;  %s16018_s2 = inlined_call_operand.hbm [shape: bf16[256,512], index: 2, kind: input, shape index: {}]   ;;  %s16019_s3 = inlined_call_operand.vmem [shape: f32[1,512], index: 3, kind: input, shape index: {}]   ;;  %s16020_s4 = inlined_call_operand.vmem [shape: f32[1,512], index: 4, kind: input, shape index: {}]   ;;  %s16021_s5 = inlined_call_operand.hbm [shape: bf16[256,1024], index: 5, kind: input, shape index: {}]   ;;  %s16022_s6 = inlined_call_operand.vmem [shape: f32[256,4], index: 6, kind: input, shape index: {}]   ;;  %s16023_s7 = inlined_call_operand.vmem [shape: f32[1,4], index: 7, kind: input, shape index: {}]   ;;  %s16024_s8 = inlined_call_operand.vmem [shape: f32[16,16], index: 8, kind: input, shape index: {}]   ;;  %s16025_s9 = inlined_call_operand.vmem [shape: f32[8,4], index: 9, kind: output, shape index: {0}]   ;;  %s16026_s10 = inlined_call_operand.hbm [shape: f32[8,8], index: 10, kind: output, shape index: {1}]  }
   0x1   :  { %17 = vsyncpa [#allocation10], 0 }
   0x2   :  { %18 = vsyncpa [#allocation8], 0  ;;  %s13383_s13 = smov [#allocation9]   ;;  %s13384_s15 = smov [#allocation6]  }
   0x3   :  { %s38_s14 = sshll.u32 %s13383_s13, 4  ;;  %s26_s16 = sshll.u32 %s13384_s15, 4  ;;  %s39_s14 = int_to_ptr.vmem [resolvable:$true] %s38_s14  ;;  %s27_s16 = int_to_ptr.vmem [resolvable:$true] %s26_s16 }
   0x4   :  { %s13305_s17 = scalar_lea.vmem %s39_s14, 8192  ;;  %p13310_p1 = scmp.lt.s32.totalorder %s39_s14, %s39_s14 }
   0x5   :  { %p13306_p0 = scmp.ne.s32.totalorder %s39_s14, %s13305_s17  ;;  %p13311_p2 = scmp.lt.s32.totalorder %s13305_s17, %s13305_s17 }
   0x7   :  { %p13312_p3 = por %p13311_p2, %p13310_p1 }
   0x9   :  { %p13313_p4 = pnand %p13312_p3, %p13306_p0 }
   0xb   :  { %13316 = shalt.err (!%p13313_p4)
}
   0xc   :  { %s13385_s18 = smov 256   ;;  %s13386_s19 = smov 16  }
   0xd   :  { %44 = dma.hbm_to_vmem [thread:$0]  %s16018_s2, 8192, %s39_s14, [#allocation10], %s13385_s18, %s13385_s18, %s13386_s19  }
   0xe   :  { %s13325_s22 = scalar_lea.vmem %s27_s16, 8192  ;;  %p13330_p6 = scmp.lt.s32.totalorder %s27_s16, %s27_s16 }
   0xf   :  { %p13326_p5 = scmp.ne.s32.totalorder %s27_s16, %s13325_s22  ;;  %p13331_p7 = scmp.lt.s32.totalorder %s13325_s22, %s13325_s22 }
  0x11   :  { %p13332_p8 = por %p13331_p7, %p13330_p6 }
  0x13   :  { %p13333_p9 = pnand %p13332_p8, %p13326_p5 }
  0x15   :  { %13336 = shalt.err (!%p13333_p9)
}
  0x16   :  { %32 = dma.hbm_to_vmem [thread:$0]  %s16017_s1, 8192, %s27_s16, [#allocation7], %s13385_s18, %s13385_s18, %s13386_s19  }
  0x17   :  { %s13387_s25 = smov [#allocation11]  }
  0x18   :  { %s54_s26 = sshll.u32 %s13387_s25, 4  ;;  %s55_s26 = int_to_ptr.vmem [resolvable:$true] %s54_s26 }
  0x19   :  { %s13345_s27 = scalar_lea.vmem %s55_s26, 16384  ;;  %p13350_p11 = scmp.lt.s32.totalorder %s55_s26, %s55_s26 }
  0x1a   :  { %p13346_p10 = scmp.ne.s32.totalorder %s55_s26, %s13345_s27  ;;  %p13351_p12 = scmp.lt.s32.totalorder %s13345_s27, %s13345_s27 }
  0x1c   :  { %p13352_p13 = por %p13351_p12, %p13350_p11 }
  0x1e   :  { %p13353_p0 = pnand %p13352_p13, %p13346_p10 }
  0x20   :  { %13356 = shalt.err (!%p13353_p0)
}
  0x21   :  { %s13388_s2 = smov 512   ;;  %s13389_s28 = smov 32  }
  0x22   :  { %60 = dma.hbm_to_vmem [thread:$0]  %s16021_s5, 16384, %s55_s26, [#allocation10], %s13388_s2, %s13388_s2, %s13389_s28  }
  0x23   :  { %13377 = dma.done.wait [#allocation7], 8192  }
  0x24   :  { %13378 = vsyncadd [#allocation7], 4294959104 }
  0x25   :  { %13379 = dma.done.wait [#allocation10], 24576  }
  0x26   :  { %13380 = vsyncadd [#allocation10], 4294942720  ;;  %v12773_v0 = vld [vmem:[#allocation6 + $0xe4] ss:$16 sps:$4 sm:$0xff]   ;;  %v12775_v1 = vld [vmem:[#allocation6 + $0xec] ss:$16 sps:$4 sm:$0xff]  }
  0x27   :  { %530 = vmatprep.subr.bf16.mxu0 %v12773_v0  ;;  %v12777_v2 = vld [vmem:[#allocation6 + $0xe0] ss:$16 sps:$4 sm:$0xff]   ;;  %v12778_v3 = vld [vmem:[#allocation6 + $0xe8] ss:$16 sps:$4 sm:$0xff]   ;;  %603 = vmatprep.subr.bf16.mxu1 %v12775_v1  ;;  %v12779_v4 = vld [vmem:[#allocation6 + $0xc4] ss:$16 sps:$4 sm:$0xff]  }
  0x28   :  { %531 = vmatpush1.bf16.msra.mxu0 %v12777_v2  ;;  %604 = vmatpush1.bf16.msra.mxu1 %v12778_v3  ;;  %v12781_v5 = vld [vmem:[#allocation6 + $0xcc] ss:$16 sps:$4 sm:$0xff]   ;;  %v12783_v6 = vld [vmem:[#allocation6 + $0xc0] ss:$16 sps:$4 sm:$0xff]   ;;  %v12784_v7 = vld [vmem:[#allocation6 + $0xc8] ss:$16 sps:$4 sm:$0xff]  }
  0x29   :  { %532 = vmatprep.subr.bf16.mxu0 %v12779_v4  ;;  %605 = vmatprep.subr.bf16.mxu1 %v12781_v5  ;;  %v12785_v8 = vld [vmem:[#allocation6 + $0xa4] ss:$16 sps:$4 sm:$0xff]   ;;  %v12787_v9 = vld [vmem:[#allocation6 + $0xac] ss:$16 sps:$4 sm:$0xff]   ;;  %v12789_v10 = vld [vmem:[#allocation6 + $0xa0] ss:$16 sps:$4 sm:$0xff]  }
  0x2a   :  { %v12790_v11 = vld [vmem:[#allocation6 + $0xa8] ss:$16 sps:$4 sm:$0xff]   ;;  %v12791_v12 = vld [vmem:[#allocation6 + $0x84] ss:$16 sps:$4 sm:$0xff]   ;;  %v12793_v13 = vld [vmem:[#allocation6 + $0x8c] ss:$16 sps:$4 sm:$0xff]  }
  0x2b   :  { %v12795_v14 = vld [vmem:[#allocation6 + $0x80] ss:$16 sps:$4 sm:$0xff]   ;;  %v12796_v15 = vld [vmem:[#allocation6 + $0x88] ss:$16 sps:$4 sm:$0xff]   ;;  %v12797_v16 = vld [vmem:[#allocation6 + $0x64] ss:$16 sps:$4 sm:$0xff]  }
  0x2c   :  { %533 = vmatpush1.bf16.msra.mxu0 %v12783_v6  ;;  %606 = vmatpush1.bf16.msra.mxu1 %v12784_v7  ;;  %v12799_v17 = vld [vmem:[#allocation6 + $0x6c] ss:$16 sps:$4 sm:$0xff]   ;;  %v12801_v18 = vld [vmem:[#allocation6 + $0x60] ss:$16 sps:$4 sm:$0xff]   ;;  %v12802_v19 = vld [vmem:[#allocation6 + $0x68] ss:$16 sps:$4 sm:$0xff]  }
  0x2d   :  { %534 = vmatprep.subr.bf16.mxu0 %v12785_v8  ;;  %607 = vmatprep.subr.bf16.mxu1 %v12787_v9  ;;  %v12803_v20 = vld [vmem:[#allocation6 + $0x44] ss:$16 sps:$4 sm:$0xff]   ;;  %v12805_v21 = vld [vmem:[#allocation6 + $0x4c] ss:$16 sps:$4 sm:$0xff]   ;;  %v12807_v22 = vld [vmem:[#allocation6 + $0x40] ss:$16 sps:$4 sm:$0xff]  }
  0x2e   :  { %v12808_v23 = vld [vmem:[#allocation6 + $0x48] ss:$16 sps:$4 sm:$0xff]   ;;  %v12809_v24 = vld [vmem:[#allocation6 + $0x24] ss:$16 sps:$4 sm:$0xff]   ;;  %v12811_v25 = vld [vmem:[#allocation6 + $0x2c] ss:$16 sps:$4 sm:$0xff]  }
  0x2f   :  { %v12813_v26 = vld [vmem:[#allocation6 + $0x20] ss:$16 sps:$4 sm:$0xff]   ;;  %v12814_v27 = vld [vmem:[#allocation6 + $0x28] ss:$16 sps:$4 sm:$0xff]   ;;  %v12815_v28 = vld [vmem:[#allocation6 + $0x4] ss:$16 sps:$4 sm:$0xff]  }
  0x30   :  { %535 = vmatpush1.bf16.msra.mxu0 %v12789_v10  ;;  %608 = vmatpush1.bf16.msra.mxu1 %v12790_v11  ;;  %v12817_v29 = vld [vmem:[#allocation6 + $0xc] ss:$16 sps:$4 sm:$0xff]   ;;  %v12819_v30 = vld [vmem:[#allocation6] ss:$16 sps:$4 sm:$0xff]   ;;  %v12820_v31 = vld [vmem:[#allocation6 + $0x8] ss:$16 sps:$4 sm:$0xff]  }
  0x31   :  { %536 = vmatprep.subr.bf16.mxu0 %v12791_v12  ;;  %609 = vmatprep.subr.bf16.mxu1 %v12793_v13  ;;  %v12821_v32 = vld [vmem:[#allocation6 + $0x1e4] ss:$16 sps:$4 sm:$0xff]   ;;  %v12823_v33 = vld [vmem:[#allocation6 + $0x1ec] ss:$16 sps:$4 sm:$0xff]   ;;  %v12825_v34 = vld [vmem:[#allocation6 + $0x1e0] ss:$16 sps:$4 sm:$0xff]  }
  0x32   :  { %v12826_v35 = vld [vmem:[#allocation6 + $0x1e8] ss:$16 sps:$4 sm:$0xff]   ;;  %v12827_v36 = vld [vmem:[#allocation6 + $0x1c4] ss:$16 sps:$4 sm:$0xff]   ;;  %v12829_v37 = vld [vmem:[#allocation6 + $0x1cc] ss:$16 sps:$4 sm:$0xff]  }
  0x33   :  { %v12831_v38 = vld [vmem:[#allocation6 + $0x1c0] ss:$16 sps:$4 sm:$0xff]   ;;  %v12832_v39 = vld [vmem:[#allocation6 + $0x1c8] ss:$16 sps:$4 sm:$0xff]   ;;  %v12833_v40 = vld [vmem:[#allocation6 + $0x1a4] ss:$16 sps:$4 sm:$0xff]  }
  0x34   :  { %537 = vmatpush1.bf16.msra.mxu0 %v12795_v14  ;;  %610 = vmatpush1.bf16.msra.mxu1 %v12796_v15  ;;  %v12835_v41 = vld [vmem:[#allocation6 + $0x1ac] ss:$16 sps:$4 sm:$0xff]   ;;  %v12837_v42 = vld [vmem:[#allocation6 + $0x1a0] ss:$16 sps:$4 sm:$0xff]   ;;  %v12838_v43 = vld [vmem:[#allocation6 + $0x1a8] ss:$16 sps:$4 sm:$0xff]  }
  0x35   :  { %538 = vmatprep.subr.bf16.mxu0 %v12797_v16  ;;  %611 = vmatprep.subr.bf16.mxu1 %v12799_v17  ;;  %v12839_v44 = vld [vmem:[#allocation6 + $0x184] ss:$16 sps:$4 sm:$0xff]   ;;  %v12841_v45 = vld [vmem:[#allocation6 + $0x18c] ss:$16 sps:$4 sm:$0xff]   ;;  %v12843_v46 = vld [vmem:[#allocation6 + $0x180] ss:$16 sps:$4 sm:$0xff]  }
  0x36   :  { %v12844_v47 = vld [vmem:[#allocation6 + $0x188] ss:$16 sps:$4 sm:$0xff]   ;;  %v13463_v48 = vld [vmem:[%s16016_s0 + $0x4] ss:$8 sps:$4 sm:$0xff]   ;;  %v12849_v51 = vld [vmem:[#allocation6 + $0x160] ss:$16 sps:$4 sm:$0xff]  }
  0x37   :  { %v12845_v49 = vld [vmem:[#allocation6 + $0x164] ss:$16 sps:$4 sm:$0xff]   ;;  %v12847_v50 = vld [vmem:[#allocation6 + $0x16c] ss:$16 sps:$4 sm:$0xff]   ;;  %562 = vmatprep.mubr.bf16.mxu0 %v13463_v48  ;;  %635 = vmatprep.mubr.bf16.mxu1 %v13463_v48  ;;  %v12850_v52 = vld [vmem:[#allocation6 + $0x168] ss:$16 sps:$4 sm:$0xff]  }
  0x38   :  { %539 = vmatpush1.bf16.msra.mxu0 %v12801_v18  ;;  %612 = vmatpush1.bf16.msra.mxu1 %v12802_v19  ;;  %v12851_v53 = vld [vmem:[#allocation6 + $0x144] ss:$16 sps:$4 sm:$0xff]   ;;  %v12853_v54 = vld [vmem:[#allocation6 + $0x14c] ss:$16 sps:$4 sm:$0xff]   ;;  %v12855_v55 = vld [vmem:[#allocation6 + $0x140] ss:$16 sps:$4 sm:$0xff]  }
  0x39   :  { %540 = vmatprep.subr.bf16.mxu0 %v12803_v20  ;;  %613 = vmatprep.subr.bf16.mxu1 %v12805_v21  ;;  %v12856_v56 = vld [vmem:[#allocation6 + $0x148] ss:$16 sps:$4 sm:$0xff]   ;;  %v12857_v57 = vld [vmem:[#allocation6 + $0x124] ss:$16 sps:$4 sm:$0xff]   ;;  %v12859_v58 = vld [vmem:[#allocation6 + $0x12c] ss:$16 sps:$4 sm:$0xff]  }
  0x3a   :  { %v12861_v59 = vld [vmem:[#allocation6 + $0x120] ss:$16 sps:$4 sm:$0xff]   ;;  %v12862_v60 = vld [vmem:[#allocation6 + $0x128] ss:$16 sps:$4 sm:$0xff]   ;;  %v12863_v61 = vld [vmem:[#allocation6 + $0x104] ss:$16 sps:$4 sm:$0xff]  }
  0x3b   :  { %v12865_v62 = vld [vmem:[#allocation6 + $0x10c] ss:$16 sps:$4 sm:$0xff]   ;;  %v12867_v63 = vld [vmem:[#allocation6 + $0x100] ss:$16 sps:$4 sm:$0xff]   ;;  %v12868_v0 = vld [vmem:[#allocation6 + $0x108] ss:$16 sps:$4 sm:$0xff]  }
  0x3c   :  { %541 = vmatpush1.bf16.msra.mxu0 %v12807_v22  ;;  %614 = vmatpush1.bf16.msra.mxu1 %v12808_v23  ;;  %v12874_v1 = vld [vmem:[#allocation9 + $0xe4] ss:$16 sps:$4 sm:$0xff]   ;;  %v12877_v2 = vld [vmem:[#allocation9 + $0xec] ss:$16 sps:$4 sm:$0xff]   ;;  %v13470_v3 = vld [vmem:[%s16016_s0] ss:$8 sps:$4 sm:$0xff]  }
  0x3d   :  { %542 = vmatprep.subr.bf16.mxu0 %v12809_v24  ;;  %615 = vmatprep.subr.bf16.mxu1 %v12811_v25  ;;  %v12872_v4 = vld [vmem:[#allocation9 + $0xe0] ss:$16 sps:$4 sm:$0xff]   ;;  %v12875_v5 = vld [vmem:[#allocation9 + $0xe8] ss:$16 sps:$4 sm:$0xff]   ;;  %v12880_v6 = vld [vmem:[#allocation9 + $0xc4] ss:$16 sps:$4 sm:$0xff]  }
  0x3e   :  { %v12883_v7 = vld [vmem:[#allocation9 + $0xcc] ss:$16 sps:$4 sm:$0xff]   ;;  %v12878_v8 = vld [vmem:[#allocation9 + $0xc0] ss:$16 sps:$4 sm:$0xff]   ;;  %v12881_v9 = vld [vmem:[#allocation9 + $0xc8] ss:$16 sps:$4 sm:$0xff]  }
  0x3f   :  { %v12886_v10 = vld [vmem:[#allocation9 + $0xa4] ss:$16 sps:$4 sm:$0xff]   ;;  %v12889_v12 = vld [vmem:[#allocation9 + $0xac] ss:$16 sps:$4 sm:$0xff]   ;;  %v12884_v13 = vld [vmem:[#allocation9 + $0xa0] ss:$16 sps:$4 sm:$0xff]  }
  0x40   :  { %543 = vmatpush1.bf16.msra.mxu0 %v12813_v26  ;;  %616 = vmatpush1.bf16.msra.mxu1 %v12814_v27  ;;  %v13477_v11 = vld [vmem:[%s16016_s0 + $0x14] ss:$8 sps:$4 sm:$0xff]   ;;  %v12887_v14 = vld [vmem:[#allocation9 + $0xa8] ss:$16 sps:$4 sm:$0xff]   ;;  %v12890_v18 = vld [vmem:[#allocation9 + $0x80] ss:$16 sps:$4 sm:$0xff]  }
  0x41   :  { %544 = vmatprep.subr.bf16.mxu0 %v12815_v28  ;;  %617 = vmatprep.subr.bf16.mxu1 %v12817_v29  ;;  %v13484_v15 = vld [vmem:[%s16016_s0 + $0x10] ss:$8 sps:$4 sm:$0xff]   ;;  %v12892_v16 = vld [vmem:[#allocation9 + $0x84] ss:$16 sps:$4 sm:$0xff]   ;;  %v12895_v17 = vld [vmem:[#allocation9 + $0x8c] ss:$16 sps:$4 sm:$0xff]  }
  0x42   :  { %v12893_v19 = vld [vmem:[#allocation9 + $0x88] ss:$16 sps:$4 sm:$0xff]   ;;  %v13491_v20 = vld [vmem:[%s16016_s0 + $0x24] ss:$8 sps:$4 sm:$0xff]   ;;  %v12896_v23 = vld [vmem:[#allocation9 + $0x60] ss:$16 sps:$4 sm:$0xff]  }
  0x43   :  { %v12898_v21 = vld [vmem:[#allocation9 + $0x64] ss:$16 sps:$4 sm:$0xff]   ;;  %v12901_v22 = vld [vmem:[#allocation9 + $0x6c] ss:$16 sps:$4 sm:$0xff]   ;;  %v12899_v24 = vld [vmem:[#allocation9 + $0x68] ss:$16 sps:$4 sm:$0xff]  }
  0x44   :  { %545 = vmatpush1.bf16.msra.mxu0 %v12819_v30  ;;  %618 = vmatpush1.bf16.msra.mxu1 %v12820_v31  ;;  %v13498_v25 = vld [vmem:[%s16016_s0 + $0x20] ss:$8 sps:$4 sm:$0xff]   ;;  %v12904_v26 = vld [vmem:[#allocation9 + $0x44] ss:$16 sps:$4 sm:$0xff]   ;;  %v12907_v27 = vld [vmem:[#allocation9 + $0x4c] ss:$16 sps:$4 sm:$0xff]  }
  0x45   :  { %546 = vmatprep.subr.bf16.mxu0 %v12821_v32  ;;  %619 = vmatprep.subr.bf16.mxu1 %v12823_v33  ;;  %v13503_v28 = vld [vmem:[%s16016_s0 + $0x34] ss:$8 sps:$4 sm:$0xff]   ;;  %v12902_v29 = vld [vmem:[#allocation9 + $0x40] ss:$16 sps:$4 sm:$0xff]   ;;  %v12905_v30 = vld [vmem:[#allocation9 + $0x48] ss:$16 sps:$4 sm:$0xff]  }
  0x46   :  { %v12910_v31 = vld [vmem:[#allocation9 + $0x24] ss:$16 sps:$4 sm:$0xff]   ;;  %v12913_v32 = vld [vmem:[#allocation9 + $0x2c] ss:$16 sps:$4 sm:$0xff]   ;;  %v12908_v33 = vld [vmem:[#allocation9 + $0x20] ss:$16 sps:$4 sm:$0xff]  }
  0x47   :  { %vm10365_vm0 = vcmask 130048   ;;  %vm10725_vm1 = vcmask 1041409   ;;  %vm10727_vm2 = vcmask 1042434   ;;  %vm10729_vm3 = vcmask 1043459  }
  0x48   :  { %547 = vmatpush2.bf16.msra.mxu0 %v12825_v34  ;;  %620 = vmatpush2.bf16.msra.mxu1 %v12826_v35  ;;  %v12911_v34 = vld [vmem:[#allocation9 + $0x28] ss:$16 sps:$4 sm:$0xff]   ;;  %vm10731_vm4 = vcmask 1044484   ;;  %vm10733_vm5 = vcmask 1045509   ;;  %vm10735_vm6 = vcmask 1046534   ;;  %vm10737_vm7 = vcmask 1047559  }
  0x49   :  { %548 = vmatprep.subr.bf16.mxu0 %v12827_v36  ;;  %621 = vmatprep.subr.bf16.mxu1 %v12829_v37  ;;  %v13512_v35 = vld [vmem:[%s16016_s0 + $0x30] ss:$8 sps:$4 sm:$0xff]   ;;  %v12916_v36 = vld [vmem:[#allocation9 + $0x4] ss:$16 sps:$4 sm:$0xff]   ;;  %v12919_v37 = vld [vmem:[#allocation9 + $0xc] ss:$16 sps:$4 sm:$0xff]  }
  0x4a   :  { %vm10740_vm8 = vcmask 64512   ;;  %vm13394_vm9 = vmmov 0  }
  0x4c   :  { %549 = vmatpush2.bf16.msra.mxu0 %v12831_v38  ;;  %622 = vmatpush2.bf16.msra.mxu1 %v12832_v39  ;;  %v12914_v38 = vld [vmem:[#allocation9] ss:$16 sps:$4 sm:$0xff]   ;;  %v12917_v39 = vld [vmem:[#allocation9 + $0x8] ss:$16 sps:$4 sm:$0xff]  }
  0x4d   :  { %550 = vmatprep.subr.bf16.mxu0 %v12833_v40  ;;  %623 = vmatprep.subr.bf16.mxu1 %v12835_v41  ;;  %v12922_v40 = vld [vmem:[#allocation9 + $0x1e4] ss:$16 sps:$4 sm:$0xff]   ;;  %v12925_v41 = vld [vmem:[#allocation9 + $0x1ec] ss:$16 sps:$4 sm:$0xff]  }
  0x50   :  { %551 = vmatpush2.bf16.msra.mxu0 %v12837_v42  ;;  %624 = vmatpush2.bf16.msra.mxu1 %v12838_v43  ;;  %v12920_v42 = vld [vmem:[#allocation9 + $0x1e0] ss:$16 sps:$4 sm:$0xff]   ;;  %v12923_v43 = vld [vmem:[#allocation9 + $0x1e8] ss:$16 sps:$4 sm:$0xff]  }
  0x51   :  { %552 = vmatprep.subr.bf16.mxu0 %v12839_v44  ;;  %625 = vmatprep.subr.bf16.mxu1 %v12841_v45  ;;  %v12931_v44 = vld [vmem:[#allocation9 + $0x1c4] ss:$16 sps:$4 sm:$0xff]   ;;  %v12934_v45 = vld [vmem:[#allocation9 + $0x1cc] ss:$16 sps:$4 sm:$0xff]  }
  0x54   :  { %553 = vmatpush2.bf16.msra.mxu0 %v12843_v46  ;;  %626 = vmatpush2.bf16.msra.mxu1 %v12844_v47  ;;  %v12929_v46 = vld [vmem:[#allocation9 + $0x1c0] ss:$16 sps:$4 sm:$0xff]   ;;  %v12932_v47 = vld [vmem:[#allocation9 + $0x1c8] ss:$16 sps:$4 sm:$0xff]  }
  0x55   :  { %554 = vmatprep.subr.bf16.mxu0 %v12845_v49  ;;  %627 = vmatprep.subr.bf16.mxu1 %v12847_v50  ;;  %v12937_v49 = vld [vmem:[#allocation9 + $0x1a4] ss:$16 sps:$4 sm:$0xff]   ;;  %v12940_v50 = vld [vmem:[#allocation9 + $0x1ac] ss:$16 sps:$4 sm:$0xff]  }
  0x58   :  { %555 = vmatpush2.bf16.msra.mxu0 %v12849_v51  ;;  %628 = vmatpush2.bf16.msra.mxu1 %v12850_v52  ;;  %v12935_v51 = vld [vmem:[#allocation9 + $0x1a0] ss:$16 sps:$4 sm:$0xff]   ;;  %v12946_v52 = vld [vmem:[#allocation9 + $0x184] ss:$16 sps:$4 sm:$0xff]  }
  0x59   :  { %556 = vmatprep.subr.bf16.mxu0 %v12851_v53  ;;  %629 = vmatprep.subr.bf16.mxu1 %v12853_v54  ;;  %v12949_v53 = vld [vmem:[#allocation9 + $0x18c] ss:$16 sps:$4 sm:$0xff]   ;;  %v12944_v54 = vld [vmem:[#allocation9 + $0x180] ss:$16 sps:$4 sm:$0xff]  }
  0x5c   :  { %557 = vmatpush2.bf16.msra.mxu0 %v12855_v55  ;;  %630 = vmatpush2.bf16.msra.mxu1 %v12856_v56  ;;  %v12947_v55 = vld [vmem:[#allocation9 + $0x188] ss:$16 sps:$4 sm:$0xff]   ;;  %v12952_v56 = vld [vmem:[#allocation9 + $0x164] ss:$16 sps:$4 sm:$0xff]  }
  0x5d   :  { %558 = vmatprep.subr.bf16.mxu0 %v12857_v57  ;;  %631 = vmatprep.subr.bf16.mxu1 %v12859_v58  ;;  %v12955_v57 = vld [vmem:[#allocation9 + $0x16c] ss:$16 sps:$4 sm:$0xff]   ;;  %v12950_v58 = vld [vmem:[#allocation9 + $0x160] ss:$16 sps:$4 sm:$0xff]  }
  0x60   :  { %559 = vmatpush2.bf16.msra.mxu0 %v12861_v59  ;;  %632 = vmatpush2.bf16.msra.mxu1 %v12862_v60  ;;  %v12953_v59 = vld [vmem:[#allocation9 + $0x168] ss:$16 sps:$4 sm:$0xff]   ;;  %v12961_v60 = vld [vmem:[#allocation9 + $0x144] ss:$16 sps:$4 sm:$0xff]  }
  0x61   :  { %560 = vmatprep.subr.bf16.mxu0 %v12863_v61  ;;  %633 = vmatprep.subr.bf16.mxu1 %v12865_v62  ;;  %v12964_v61 = vld [vmem:[#allocation9 + $0x14c] ss:$16 sps:$4 sm:$0xff]   ;;  %v12959_v62 = vld [vmem:[#allocation9 + $0x140] ss:$16 sps:$4 sm:$0xff]  }
  0x64   :  { %561 = vmatpush2.bf16.msra.mxu0 %v12867_v63  ;;  %634 = vmatpush2.bf16.msra.mxu1 %v12868_v0  ;;  %v12962_v63 = vld [vmem:[#allocation9 + $0x148] ss:$16 sps:$4 sm:$0xff]   ;;  %v12967_v0 = vld [vmem:[#allocation9 + $0x124] ss:$16 sps:$4 sm:$0xff]  }
  0x65   :  { %1114 = vmatprep.subr.bf16.mxu0 %v12874_v1  ;;  %1187 = vmatprep.subr.bf16.mxu1 %v12877_v2  ;;  %v12970_v1 = vld [vmem:[#allocation9 + $0x12c] ss:$16 sps:$4 sm:$0xff]   ;;  %v12965_v2 = vld [vmem:[#allocation9 + $0x120] ss:$16 sps:$4 sm:$0xff]  }
  0x67   :  { %563 = vmatmul.mubr.bf16.vlgmr.msra.gmra.mxu0 %v13470_v3  ;;  %636 = vmatmul.mubr.bf16.vlgmr.msra.gmra.mxu1 %v13470_v3 }
  0x68   :  { %1115 = vmatpush1.bf16.msra.mxu0 %v12872_v4  ;;  %1188 = vmatpush1.bf16.msra.mxu1 %v12875_v5  ;;  %v12968_v4 = vld [vmem:[#allocation9 + $0x128] ss:$16 sps:$4 sm:$0xff]   ;;  %v12973_v5 = vld [vmem:[#allocation9 + $0x104] ss:$16 sps:$4 sm:$0xff]  }
  0x69   :  { %1116 = vmatprep.subr.bf16.mxu0 %v12880_v6  ;;  %1189 = vmatprep.subr.bf16.mxu1 %v12883_v7  ;;  %v12976_v6 = vld [vmem:[#allocation9 + $0x10c] ss:$16 sps:$4 sm:$0xff]   ;;  %v1349_v7 = vld [vmem:[#allocation11 + $0x1c0] sm:$0xff] }
  0x6a   :  { %572 = vmatprep.mubr.bf16.mxu0 %v13477_v11  ;;  %645 = vmatprep.mubr.bf16.mxu1 %v13477_v11 }
  0x6c   :  { %1117 = vmatpush1.bf16.msra.mxu0 %v12878_v8  ;;  %1190 = vmatpush1.bf16.msra.mxu1 %v12881_v9  ;;  %v1353_v8 = vld [vmem:[#allocation11 + $0x1e0] sm:$0xff]  ;;  %v1350_v9 = vld [vmem:[#allocation11 + $0x1c8] sm:$0xff] }
  0x6d   :  { %1118 = vmatprep.subr.bf16.mxu0 %v12886_v10  ;;  %1191 = vmatprep.subr.bf16.mxu1 %v12889_v12  ;;  %v1354_v10 = vld [vmem:[#allocation11 + $0x1e8] sm:$0xff]  ;;  %v12971_v12 = vld [vmem:[#allocation9 + $0x100] ss:$16 sps:$4 sm:$0xff]  }
  0x6f   :  { %573 = vmatmul.mubr.bf16.gmra.mxu0 %v13484_v15  ;;  %646 = vmatmul.mubr.bf16.gmra.mxu1 %v13484_v15 }
  0x70   :  { %1119 = vmatpush1.bf16.msra.mxu0 %v12884_v13  ;;  %1192 = vmatpush1.bf16.msra.mxu1 %v12887_v14  ;;  %v12974_v13 = vld [vmem:[#allocation9 + $0x108] ss:$16 sps:$4 sm:$0xff]   ;;  %v11561_v14 = vcombine.high %v1349_v7, %v1353_v8 }
  0x71   :  { %1120 = vmatprep.subr.bf16.mxu0 %v12892_v16  ;;  %1193 = vmatprep.subr.bf16.mxu1 %v12895_v17  ;;  %v11563_v16 = vcombine.high %v1350_v9, %v1354_v10  ;;  %v1341_v17 = vld [vmem:[#allocation11 + $0x180] sm:$0xff] }
  0x72   :  { %582 = vmatprep.mubr.bf16.mxu0 %v13491_v20  ;;  %655 = vmatprep.mubr.bf16.mxu1 %v13491_v20 }
  0x74   :  { %1121 = vmatpush1.bf16.msra.mxu0 %v12890_v18  ;;  %1194 = vmatpush1.bf16.msra.mxu1 %v12893_v19  ;;  %v1345_v18 = vld [vmem:[#allocation11 + $0x1a0] sm:$0xff]  ;;  %v1342_v19 = vld [vmem:[#allocation11 + $0x188] sm:$0xff] }
  0x75   :  { %1122 = vmatprep.subr.bf16.mxu0 %v12898_v21  ;;  %1195 = vmatprep.subr.bf16.mxu1 %v12901_v22  ;;  %v1346_v21 = vld [vmem:[#allocation11 + $0x1a8] sm:$0xff]  ;;  %v11560_v22 = vcombine.low %v1349_v7, %v1353_v8 }
  0x77   :  { %583 = vmatmul.mubr.bf16.gmra.mxu0 %v13498_v25  ;;  %656 = vmatmul.mubr.bf16.gmra.mxu1 %v13498_v25 }
  0x78   :  { %1123 = vmatpush1.bf16.msra.mxu0 %v12896_v23  ;;  %1196 = vmatpush1.bf16.msra.mxu1 %v12899_v24  ;;  %v11562_v23 = vcombine.low %v1350_v9, %v1354_v10  ;;  %v11553_v24 = vcombine.high %v1341_v17, %v1345_v18  ;;  %v1413_v9 = vld [vmem:[#allocation11 + $0x3c0] sm:$0xff] }
  0x79   :  { %1124 = vmatprep.subr.bf16.mxu0 %v12904_v26  ;;  %1197 = vmatprep.subr.bf16.mxu1 %v12907_v27  ;;  %v11555_v26 = vcombine.high %v1342_v19, %v1346_v21  ;;  %v1333_v27 = vld [vmem:[#allocation11 + $0x140] sm:$0xff] }
  0x7a   :  { %592 = vmatprep.mubr.bf16.mxu0 %v13503_v28  ;;  %665 = vmatprep.mubr.bf16.mxu1 %v13503_v28  ;;  %v1417_v10 = vld [vmem:[#allocation11 + $0x3e0] sm:$0xff] }
  0x7c   :  { %1125 = vmatpush1.bf16.msra.mxu0 %v12902_v29  ;;  %1198 = vmatpush1.bf16.msra.mxu1 %v12905_v30  ;;  %v1337_v29 = vld [vmem:[#allocation11 + $0x160] sm:$0xff]  ;;  %v1334_v30 = vld [vmem:[#allocation11 + $0x148] sm:$0xff] }
  0x7d   :  { %1126 = vmatprep.subr.bf16.mxu0 %v12910_v31  ;;  %1199 = vmatprep.subr.bf16.mxu1 %v12913_v32  ;;  %v1338_v31 = vld [vmem:[#allocation11 + $0x168] sm:$0xff]  ;;  %v11552_v32 = vcombine.low %v1341_v17, %v1345_v18  ;;  %v1405_v18 = vld [vmem:[#allocation11 + $0x380] sm:$0xff] }
  0x7f   :  { %593 = vmatmul.mubr.bf16.gmra.mxu0 %v13512_v35  ;;  %666 = vmatmul.mubr.bf16.gmra.mxu1 %v13512_v35 }
  0x80   :  { %1127 = vmatpush1.bf16.msra.mxu0 %v12908_v33  ;;  %1200 = vmatpush1.bf16.msra.mxu1 %v12911_v34  ;;  %v11554_v33 = vcombine.low %v1342_v19, %v1346_v21  ;;  %v11545_v34 = vcombine.high %v1333_v27, %v1337_v29  ;;  %v1409_v19 = vld [vmem:[#allocation11 + $0x3a0] sm:$0xff]  ;;  %v1406_v21 = vld [vmem:[#allocation11 + $0x388] sm:$0xff] }
  0x81   :  { %1128 = vmatprep.subr.bf16.mxu0 %v12916_v36  ;;  %1201 = vmatprep.subr.bf16.mxu1 %v12919_v37  ;;  %v11547_v36 = vcombine.high %v1334_v30, %v1338_v31  ;;  %v1325_v37 = vld [vmem:[#allocation11 + $0x100] sm:$0xff] }
  0x82   :  { %1146 = vmatprep.mubr.bf16.mxu0 %v13463_v48  ;;  %1219 = vmatprep.mubr.bf16.mxu1 %v13463_v48  ;;  %v12938_v48 = vld [vmem:[#allocation9 + $0x1a8] ss:$16 sps:$4 sm:$0xff]  }
  0x84   :  { %1129 = vmatpush1.bf16.msra.mxu0 %v12914_v38  ;;  %1202 = vmatpush1.bf16.msra.mxu1 %v12917_v39  ;;  %v1329_v38 = vld [vmem:[#allocation11 + $0x120] sm:$0xff]  ;;  %v1326_v39 = vld [vmem:[#allocation11 + $0x108] sm:$0xff] }
  0x85   :  { %1130 = vmatprep.subr.bf16.mxu0 %v12922_v40  ;;  %1203 = vmatprep.subr.bf16.mxu1 %v12925_v41  ;;  %v1330_v40 = vld [vmem:[#allocation11 + $0x128] sm:$0xff]  ;;  %v11544_v41 = vcombine.low %v1333_v27, %v1337_v29  ;;  %v1397_v29 = vld [vmem:[#allocation11 + $0x340] sm:$0xff] }
  0x88   :  { %1131 = vmatpush2.bf16.msra.mxu0 %v12920_v42  ;;  %1204 = vmatpush2.bf16.msra.mxu1 %v12923_v43  ;;  %v11537_v42 = vcombine.high %v1325_v37, %v1329_v38  ;;  %v11539_v43 = vcombine.high %v1326_v39, %v1330_v40 }
  0x89   :  { %1132 = vmatprep.subr.bf16.mxu0 %v12931_v44  ;;  %1205 = vmatprep.subr.bf16.mxu1 %v12934_v45  ;;  %v1317_v44 = vld [vmem:[#allocation11 + $0xc0] sm:$0xff] }
  0x8a   :  { %v1321_v45 = vld [vmem:[#allocation11 + $0xe0] sm:$0xff] }
  0x8c   :  { %1133 = vmatpush2.bf16.msra.mxu0 %v12929_v46  ;;  %1206 = vmatpush2.bf16.msra.mxu1 %v12932_v47  ;;  %v1318_v46 = vld [vmem:[#allocation11 + $0xc8] sm:$0xff] }
  0x8d   :  { %1134 = vmatprep.subr.bf16.mxu0 %v12937_v49  ;;  %1207 = vmatprep.subr.bf16.mxu1 %v12940_v50  ;;  %v1322_v47 = vld [vmem:[#allocation11 + $0xe8] sm:$0xff]  ;;  %v11536_v49 = vcombine.low %v1325_v37, %v1329_v38  ;;  %v11529_v50 = vcombine.high %v1317_v44, %v1321_v45  ;;  %v1389_v38 = vld [vmem:[#allocation11 + $0x300] sm:$0xff] }
  0x90   :  { %1135 = vmatpush2.bf16.msra.mxu0 %v12935_v51  ;;  %1208 = vmatpush2.bf16.msra.mxu1 %v12938_v48  ;;  %v11531_v51 = vcombine.high %v1318_v46, %v1322_v47  ;;  %v1309_v48 = vld [vmem:[#allocation11 + $0x80] sm:$0xff] }
  0x91   :  { %1136 = vmatprep.subr.bf16.mxu0 %v12946_v52  ;;  %1209 = vmatprep.subr.bf16.mxu1 %v12949_v53  ;;  %v1313_v52 = vld [vmem:[#allocation11 + $0xa0] sm:$0xff]  ;;  %v1310_v53 = vld [vmem:[#allocation11 + $0x88] sm:$0xff] }
  0x94   :  { %1137 = vmatpush2.bf16.msra.mxu0 %v12944_v54  ;;  %1210 = vmatpush2.bf16.msra.mxu1 %v12947_v55  ;;  %v1314_v54 = vld [vmem:[#allocation11 + $0xa8] sm:$0xff]  ;;  %v11528_v55 = vcombine.low %v1317_v44, %v1321_v45  ;;  %v1381_v45 = vld [vmem:[#allocation11 + $0x2c0] sm:$0xff] }
  0x95   :  { %1138 = vmatprep.subr.bf16.mxu0 %v12952_v56  ;;  %1211 = vmatprep.subr.bf16.mxu1 %v12955_v57  ;;  %v11521_v56 = vcombine.high %v1309_v48, %v1313_v52  ;;  %v11523_v57 = vcombine.high %v1310_v53, %v1314_v54 }
  0x98   :  { %1139 = vmatpush2.bf16.msra.mxu0 %v12950_v58  ;;  %1212 = vmatpush2.bf16.msra.mxu1 %v12953_v59  ;;  %v1301_v58 = vld [vmem:[#allocation11 + $0x40] sm:$0xff] }
  0x99   :  { %1140 = vmatprep.subr.bf16.mxu0 %v12961_v60  ;;  %1213 = vmatprep.subr.bf16.mxu1 %v12964_v61  ;;  %v1305_v59 = vld [vmem:[#allocation11 + $0x60] sm:$0xff]  ;;  %v1302_v60 = vld [vmem:[#allocation11 + $0x48] sm:$0xff] }
  0x9a   :  { %v1306_v61 = vld [vmem:[#allocation11 + $0x68] sm:$0xff] }
  0x9c   :  { %1141 = vmatpush2.bf16.msra.mxu0 %v12959_v62  ;;  %1214 = vmatpush2.bf16.msra.mxu1 %v12962_v63  ;;  %v11520_v62 = vcombine.low %v1309_v48, %v1313_v52  ;;  %v11513_v63 = vcombine.high %v1301_v58, %v1305_v59  ;;  %v1373_v52 = vld [vmem:[#allocation11 + $0x280] sm:$0xff] }
  0x9d   :  { %1142 = vmatprep.subr.bf16.mxu0 %v12967_v0  ;;  %1215 = vmatprep.subr.bf16.mxu1 %v12970_v1  ;;  %v11515_v0 = vcombine.high %v1302_v60, %v1306_v61  ;;  %v1293_v1 = vld [vmem:[#allocation11] sm:$0xff] }
  0xa0   :  { %1143 = vmatpush2.bf16.msra.mxu0 %v12965_v2  ;;  %1216 = vmatpush2.bf16.msra.mxu1 %v12968_v4  ;;  %v1297_v2 = vld [vmem:[#allocation11 + $0x20] sm:$0xff]  ;;  %v1294_v4 = vld [vmem:[#allocation11 + $0x8] sm:$0xff] }
  0xa1   :  { %1144 = vmatprep.subr.bf16.mxu0 %v12973_v5  ;;  %1217 = vmatprep.subr.bf16.mxu1 %v12976_v6  ;;  %v1298_v5 = vld [vmem:[#allocation11 + $0x28] sm:$0xff]  ;;  %v11512_v6 = vcombine.low %v1301_v58, %v1305_v59  ;;  %v11505_v7 = vcombine.high %v1293_v1, %v1297_v2  ;;  %v1365_v59 = vld [vmem:[#allocation11 + $0x240] sm:$0xff] }
  0xa2   :  { %v11507_v8 = vcombine.high %v1294_v4, %v1298_v5 }
  0xa4   :  { %1145 = vmatpush2.bf16.msra.mxu0 %v12971_v12  ;;  %1218 = vmatpush2.bf16.msra.mxu1 %v12974_v13  ;;  %v1414_v12 = vld [vmem:[#allocation11 + $0x3c8] sm:$0xff] }
  0xa5   :  { %2061 = vmatprep.subr.bf16.mxu0 %v11561_v14  ;;  %2102 = vmatprep.subr.bf16.mxu1 %v11563_v16  ;;  %v1418_v13 = vld [vmem:[#allocation11 + $0x3e8] sm:$0xff]  ;;  %v11504_v14 = vcombine.low %v1293_v1, %v1297_v2  ;;  %v11625_v16 = vcombine.high %v1413_v9, %v1417_v10  ;;  %v1357_v2 = vld [vmem:[#allocation11 + $0x200] sm:$0xff] }
  0xa6   :  { %v11627_v17 = vcombine.high %v1414_v12, %v1418_v13 }
  0xa7   :  { %1147 = vmatmul.mubr.bf16.vlgmr.msra.gmra.mxu0 %v13470_v3  ;;  %1220 = vmatmul.mubr.bf16.vlgmr.msra.gmra.mxu1 %v13470_v3  ;;  %v11546_v3 = vcombine.low %v1334_v30, %v1338_v31  ;;  %v1401_v30 = vld [vmem:[#allocation11 + $0x360] sm:$0xff]  ;;  %v1398_v31 = vld [vmem:[#allocation11 + $0x348] sm:$0xff] }
  0xa8   :  { %2062 = vmatpush1.bf16.msra.mxu0 %v11560_v22  ;;  %2103 = vmatpush1.bf16.msra.mxu1 %v11562_v23  ;;  %v1410_v22 = vld [vmem:[#allocation11 + $0x3a8] sm:$0xff]  ;;  %v13390_v23 = vmov 0.0|0.0  }
  0xa9   :  { %2063 = vmatprep.subr.bf16.mxu0 %v11553_v24  ;;  %2104 = vmatprep.subr.bf16.mxu1 %v11555_v26  ;;  %v11626_v24 = vcombine.low %v1414_v12, %v1418_v13  ;;  %v11617_v26 = vcombine.high %v1405_v18, %v1409_v19  ;;  %v11619_v27 = vcombine.high %v1406_v21, %v1410_v22  ;;  %v1355_v12 = vld [vmem:[#allocation11 + $0x1f0] sm:$0xff]  ;;  %v1352_v13 = vld [vmem:[#allocation11 + $0x1d8] sm:$0xff] }
  0xaa   :  { %1156 = vmatprep.mubr.bf16.mxu0 %v13477_v11  ;;  %1229 = vmatprep.mubr.bf16.mxu1 %v13477_v11  ;;  %v11538_v11 = vcombine.low %v1326_v39, %v1330_v40  ;;  %v1393_v39 = vld [vmem:[#allocation11 + $0x320] sm:$0xff]  ;;  %v1390_v40 = vld [vmem:[#allocation11 + $0x308] sm:$0xff] }
  0xac   :  { %2064 = vmatpush1.bf16.msra.mxu0 %v11552_v32  ;;  %2105 = vmatpush1.bf16.msra.mxu1 %v11554_v33  ;;  %v1402_v32 = vld [vmem:[#allocation11 + $0x368] sm:$0xff]  ;;  %v11616_v33 = vcombine.low %v1405_v18, %v1409_v19  ;;  %v1343_v19 = vld [vmem:[#allocation11 + $0x190] sm:$0xff] }
  0xad   :  { %2065 = vmatprep.subr.bf16.mxu0 %v11545_v34  ;;  %2106 = vmatprep.subr.bf16.mxu1 %v11547_v36  ;;  %v11618_v34 = vcombine.low %v1406_v21, %v1410_v22  ;;  %v11609_v36 = vcombine.high %v1397_v29, %v1401_v30  ;;  %v11611_v37 = vcombine.high %v1398_v31, %v1402_v32  ;;  %v1347_v21 = vld [vmem:[#allocation11 + $0x1b0] sm:$0xff]  ;;  %v1344_v22 = vld [vmem:[#allocation11 + $0x198] sm:$0xff] }
  0xaf   :  { %1157 = vmatmul.mubr.bf16.gmra.mxu0 %v13484_v15  ;;  %1230 = vmatmul.mubr.bf16.gmra.mxu1 %v13484_v15  ;;  %v11530_v15 = vcombine.low %v1318_v46, %v1322_v47  ;;  %v1385_v46 = vld [vmem:[#allocation11 + $0x2e0] sm:$0xff]  ;;  %v1382_v47 = vld [vmem:[#allocation11 + $0x2c8] sm:$0xff] }
  0xb0   :  { %2066 = vmatpush1.bf16.msra.mxu0 %v11544_v41  ;;  %2107 = vmatpush1.bf16.msra.mxu1 %v11546_v3  ;;  %v1394_v41 = vld [vmem:[#allocation11 + $0x328] sm:$0xff]  ;;  %v11608_v3 = vcombine.low %v1397_v29, %v1401_v30  ;;  %v1335_v30 = vld [vmem:[#allocation11 + $0x150] sm:$0xff] }
  0xb1   :  { %2067 = vmatprep.subr.bf16.mxu0 %v11537_v42  ;;  %2108 = vmatprep.subr.bf16.mxu1 %v11539_v43  ;;  %v11610_v42 = vcombine.low %v1398_v31, %v1402_v32  ;;  %v11601_v43 = vcombine.high %v1389_v38, %v1393_v39  ;;  %v11603_v44 = vcombine.high %v1390_v40, %v1394_v41  ;;  %v1339_v31 = vld [vmem:[#allocation11 + $0x170] sm:$0xff]  ;;  %v1336_v32 = vld [vmem:[#allocation11 + $0x158] sm:$0xff] }
  0xb2   :  { %1166 = vmatprep.mubr.bf16.mxu0 %v13491_v20  ;;  %1239 = vmatprep.mubr.bf16.mxu1 %v13491_v20  ;;  %v11522_v20 = vcombine.low %v1310_v53, %v1314_v54  ;;  %v1377_v53 = vld [vmem:[#allocation11 + $0x2a0] sm:$0xff]  ;;  %v1374_v54 = vld [vmem:[#allocation11 + $0x288] sm:$0xff] }
  0xb4   :  { %2068 = vmatpush1.bf16.msra.mxu0 %v11536_v49  ;;  %2109 = vmatpush1.bf16.msra.mxu1 %v11538_v11  ;;  %v1386_v49 = vld [vmem:[#allocation11 + $0x2e8] sm:$0xff]  ;;  %v11600_v11 = vcombine.low %v1389_v38, %v1393_v39  ;;  %v1327_v39 = vld [vmem:[#allocation11 + $0x110] sm:$0xff] }
  0xb5   :  { %2069 = vmatprep.subr.bf16.mxu0 %v11529_v50  ;;  %2110 = vmatprep.subr.bf16.mxu1 %v11531_v51  ;;  %v11602_v50 = vcombine.low %v1390_v40, %v1394_v41  ;;  %v11593_v51 = vcombine.high %v1381_v45, %v1385_v46  ;;  %v11595_v48 = vcombine.high %v1382_v47, %v1386_v49  ;;  %v1331_v40 = vld [vmem:[#allocation11 + $0x130] sm:$0xff]  ;;  %v1328_v41 = vld [vmem:[#allocation11 + $0x118] sm:$0xff] }
  0xb7   :  { %1167 = vmatmul.mubr.bf16.gmra.mxu0 %v13498_v25  ;;  %1240 = vmatmul.mubr.bf16.gmra.mxu1 %v13498_v25  ;;  %v11514_v25 = vcombine.low %v1302_v60, %v1306_v61  ;;  %v1369_v60 = vld [vmem:[#allocation11 + $0x260] sm:$0xff]  ;;  %v1366_v61 = vld [vmem:[#allocation11 + $0x248] sm:$0xff] }
  0xb8   :  { %2070 = vmatpush1.bf16.msra.mxu0 %v11528_v55  ;;  %2111 = vmatpush1.bf16.msra.mxu1 %v11530_v15  ;;  %v1378_v55 = vld [vmem:[#allocation11 + $0x2a8] sm:$0xff]  ;;  %v11592_v15 = vcombine.low %v1381_v45, %v1385_v46  ;;  %v1319_v46 = vld [vmem:[#allocation11 + $0xd0] sm:$0xff] }
  0xb9   :  { %2071 = vmatprep.subr.bf16.mxu0 %v11521_v56  ;;  %2112 = vmatprep.subr.bf16.mxu1 %v11523_v57  ;;  %v11594_v56 = vcombine.low %v1382_v47, %v1386_v49  ;;  %v11585_v57 = vcombine.high %v1373_v52, %v1377_v53  ;;  %v11587_v58 = vcombine.high %v1374_v54, %v1378_v55  ;;  %v1323_v47 = vld [vmem:[#allocation11 + $0xf0] sm:$0xff]  ;;  %v1320_v49 = vld [vmem:[#allocation11 + $0xd8] sm:$0xff] }
  0xba   :  { %1176 = vmatprep.mubr.bf16.mxu0 %v13503_v28  ;;  %1249 = vmatprep.mubr.bf16.mxu1 %v13503_v28  ;;  %v11506_v28 = vcombine.low %v1294_v4, %v1298_v5  ;;  %v1361_v4 = vld [vmem:[#allocation11 + $0x220] sm:$0xff]  ;;  %v1358_v5 = vld [vmem:[#allocation11 + $0x208] sm:$0xff] }
  0xbc   :  { %2072 = vmatpush1.bf16.msra.mxu0 %v11520_v62  ;;  %2113 = vmatpush1.bf16.msra.mxu1 %v11522_v20  ;;  %v1370_v62 = vld [vmem:[#allocation11 + $0x268] sm:$0xff]  ;;  %v11584_v20 = vcombine.low %v1373_v52, %v1377_v53  ;;  %v1311_v53 = vld [vmem:[#allocation11 + $0x90] sm:$0xff] }
  0xbd   :  { %2073 = vmatprep.subr.bf16.mxu0 %v11513_v63  ;;  %2114 = vmatprep.subr.bf16.mxu1 %v11515_v0  ;;  %v11586_v63 = vcombine.low %v1374_v54, %v1378_v55  ;;  %v11577_v0 = vcombine.high %v1365_v59, %v1369_v60  ;;  %v11579_v1 = vcombine.high %v1366_v61, %v1370_v62  ;;  %v1315_v54 = vld [vmem:[#allocation11 + $0xb0] sm:$0xff]  ;;  %v1312_v55 = vld [vmem:[#allocation11 + $0x98] sm:$0xff] }
  0xbf   :  { %1177 = vmatmul.mubr.bf16.gmra.mxu0 %v13512_v35  ;;  %1250 = vmatmul.mubr.bf16.gmra.mxu1 %v13512_v35  ;;  %v11624_v35 = vcombine.low %v1413_v9, %v1417_v10  ;;  %v1351_v10 = vld [vmem:[#allocation11 + $0x1d0] sm:$0xff] }
  0xc0   :  { %2074 = vmatpush1.bf16.msra.mxu0 %v11512_v6  ;;  %2115 = vmatpush1.bf16.msra.mxu1 %v11514_v25  ;;  %v1362_v6 = vld [vmem:[#allocation11 + $0x228] sm:$0xff]  ;;  %v11576_v25 = vcombine.low %v1365_v59, %v1369_v60  ;;  %v1303_v60 = vld [vmem:[#allocation11 + $0x50] sm:$0xff] }
  0xc1   :  { %2075 = vmatprep.subr.bf16.mxu0 %v11505_v7  ;;  %2116 = vmatprep.subr.bf16.mxu1 %v11507_v8  ;;  %v11578_v7 = vcombine.low %v1366_v61, %v1370_v62  ;;  %v11569_v8 = vcombine.high %v1357_v2, %v1361_v4  ;;  %v11571_v9 = vcombine.high %v1358_v5, %v1362_v6  ;;  %v1307_v61 = vld [vmem:[#allocation11 + $0x70] sm:$0xff]  ;;  %v1304_v62 = vld [vmem:[#allocation11 + $0x58] sm:$0xff] }
  0xc2   :  { %2093 = vmatprep.mubr.bf16.mxu0 %v13390_v23  ;;  %2134 = vmatprep.mubr.bf16.mxu1 %v13390_v23 }
  0xc4   :  { %2076 = vmatpush1.bf16.msra.mxu0 %v11504_v14  ;;  %2117 = vmatpush1.bf16.msra.mxu1 %v11506_v28  ;;  %v1356_v14 = vld [vmem:[#allocation11 + $0x1f8] sm:$0xff]  ;;  %v11568_v28 = vcombine.low %v1357_v2, %v1361_v4  ;;  %v1295_v4 = vld [vmem:[#allocation11 + $0x10] sm:$0xff] }
  0xc5   :  { %2077 = vmatprep.subr.bf16.mxu0 %v11625_v16  ;;  %2118 = vmatprep.subr.bf16.mxu1 %v11627_v17  ;;  %v11570_v16 = vcombine.low %v1358_v5, %v1362_v6  ;;  %v11565_v17 = vcombine.high %v1351_v10, %v1355_v12  ;;  %v11567_v18 = vcombine.high %v1352_v13, %v1356_v14  ;;  %v1299_v5 = vld [vmem:[#allocation11 + $0x30] sm:$0xff]  ;;  %v1296_v6 = vld [vmem:[#allocation11 + $0x18] sm:$0xff] }
  0xc8   :  { %2078 = vmatpush2.bf16.msra.mxu0 %v11624_v35  ;;  %2119 = vmatpush2.bf16.msra.mxu1 %v11626_v24  ;;  %v1348_v35 = vld [vmem:[#allocation11 + $0x1b8] sm:$0xff]  ;;  %v11564_v24 = vcombine.low %v1351_v10, %v1355_v12  ;;  %v1415_v12 = vld [vmem:[#allocation11 + $0x3d0] sm:$0xff] }
  0xc9   :  { %2079 = vmatprep.subr.bf16.mxu0 %v11617_v26  ;;  %2120 = vmatprep.subr.bf16.mxu1 %v11619_v27  ;;  %v11566_v26 = vcombine.low %v1352_v13, %v1356_v14  ;;  %v11557_v27 = vcombine.high %v1343_v19, %v1347_v21  ;;  %v11559_v29 = vcombine.high %v1344_v22, %v1348_v35  ;;  %v1419_v13 = vld [vmem:[#allocation11 + $0x3f0] sm:$0xff]  ;;  %v1416_v14 = vld [vmem:[#allocation11 + $0x3d8] sm:$0xff] }
  0xcc   :  { %2080 = vmatpush2.bf16.msra.mxu0 %v11616_v33  ;;  %2121 = vmatpush2.bf16.msra.mxu1 %v11618_v34  ;;  %v1340_v33 = vld [vmem:[#allocation11 + $0x178] sm:$0xff]  ;;  %v11556_v34 = vcombine.low %v1343_v19, %v1347_v21  ;;  %v1407_v21 = vld [vmem:[#allocation11 + $0x390] sm:$0xff] }
  0xcd   :  { %2081 = vmatprep.subr.bf16.mxu0 %v11609_v36  ;;  %2122 = vmatprep.subr.bf16.mxu1 %v11611_v37  ;;  %v11558_v36 = vcombine.low %v1344_v22, %v1348_v35  ;;  %v11549_v37 = vcombine.high %v1335_v30, %v1339_v31  ;;  %v11551_v38 = vcombine.high %v1336_v32, %v1340_v33  ;;  %v1411_v22 = vld [vmem:[#allocation11 + $0x3b0] sm:$0xff]  ;;  %v1408_v35 = vld [vmem:[#allocation11 + $0x398] sm:$0xff] }
  0xd0   :  { %2082 = vmatpush2.bf16.msra.mxu0 %v11608_v3  ;;  %2123 = vmatpush2.bf16.msra.mxu1 %v11610_v42  ;;  %v1332_v3 = vld [vmem:[#allocation11 + $0x138] sm:$0xff]  ;;  %v11548_v42 = vcombine.low %v1335_v30, %v1339_v31  ;;  %v1399_v31 = vld [vmem:[#allocation11 + $0x350] sm:$0xff] }
  0xd1   :  { %2083 = vmatprep.subr.bf16.mxu0 %v11601_v43  ;;  %2124 = vmatprep.subr.bf16.mxu1 %v11603_v44  ;;  %v11550_v43 = vcombine.low %v1336_v32, %v1340_v33  ;;  %v11541_v44 = vcombine.high %v1327_v39, %v1331_v40  ;;  %v11543_v45 = vcombine.high %v1328_v41, %v1332_v3  ;;  %v1403_v32 = vld [vmem:[#allocation11 + $0x370] sm:$0xff]  ;;  %v1400_v33 = vld [vmem:[#allocation11 + $0x358] sm:$0xff] }
  0xd4   :  { %2084 = vmatpush2.bf16.msra.mxu0 %v11600_v11  ;;  %2125 = vmatpush2.bf16.msra.mxu1 %v11602_v50  ;;  %v1324_v11 = vld [vmem:[#allocation11 + $0xf8] sm:$0xff]  ;;  %v11540_v50 = vcombine.low %v1327_v39, %v1331_v40  ;;  %v1391_v40 = vld [vmem:[#allocation11 + $0x310] sm:$0xff] }
  0xd5   :  { %2085 = vmatprep.subr.bf16.mxu0 %v11593_v51  ;;  %2126 = vmatprep.subr.bf16.mxu1 %v11595_v48  ;;  %v11542_v51 = vcombine.low %v1328_v41, %v1332_v3  ;;  %v11533_v48 = vcombine.high %v1319_v46, %v1323_v47  ;;  %v11535_v52 = vcombine.high %v1320_v49, %v1324_v11  ;;  %v1395_v41 = vld [vmem:[#allocation11 + $0x330] sm:$0xff]  ;;  %v1392_v3 = vld [vmem:[#allocation11 + $0x318] sm:$0xff] }
  0xd8   :  { %2086 = vmatpush2.bf16.msra.mxu0 %v11592_v15  ;;  %2127 = vmatpush2.bf16.msra.mxu1 %v11594_v56  ;;  %v1316_v15 = vld [vmem:[#allocation11 + $0xb8] sm:$0xff]  ;;  %v11532_v56 = vcombine.low %v1319_v46, %v1323_v47  ;;  %v1383_v47 = vld [vmem:[#allocation11 + $0x2d0] sm:$0xff] }
  0xd9   :  { %2087 = vmatprep.subr.bf16.mxu0 %v11585_v57  ;;  %2128 = vmatprep.subr.bf16.mxu1 %v11587_v58  ;;  %v11534_v57 = vcombine.low %v1320_v49, %v1324_v11  ;;  %v11525_v58 = vcombine.high %v1311_v53, %v1315_v54  ;;  %v11527_v59 = vcombine.high %v1312_v55, %v1316_v15  ;;  %v1387_v49 = vld [vmem:[#allocation11 + $0x2f0] sm:$0xff]  ;;  %v1384_v11 = vld [vmem:[#allocation11 + $0x2d8] sm:$0xff] }
  0xdc   :  { %2088 = vmatpush2.bf16.msra.mxu0 %v11584_v20  ;;  %2129 = vmatpush2.bf16.msra.mxu1 %v11586_v63  ;;  %v1308_v20 = vld [vmem:[#allocation11 + $0x78] sm:$0xff]  ;;  %v11524_v63 = vcombine.low %v1311_v53, %v1315_v54  ;;  %v1375_v54 = vld [vmem:[#allocation11 + $0x290] sm:$0xff] }
  0xdd   :  { %2089 = vmatprep.subr.bf16.mxu0 %v11577_v0  ;;  %2130 = vmatprep.subr.bf16.mxu1 %v11579_v1  ;;  %v11526_v0 = vcombine.low %v1312_v55, %v1316_v15  ;;  %v11517_v1 = vcombine.high %v1303_v60, %v1307_v61  ;;  %v11519_v2 = vcombine.high %v1304_v62, %v1308_v20  ;;  %v1379_v55 = vld [vmem:[#allocation11 + $0x2b0] sm:$0xff]  ;;  %v1376_v15 = vld [vmem:[#allocation11 + $0x298] sm:$0xff] }
  0xe0   :  { %2090 = vmatpush2.bf16.msra.mxu0 %v11576_v25  ;;  %2131 = vmatpush2.bf16.msra.mxu1 %v11578_v7  ;;  %v1300_v25 = vld [vmem:[#allocation11 + $0x38] sm:$0xff]  ;;  %v11516_v7 = vcombine.low %v1303_v60, %v1307_v61  ;;  %v1367_v61 = vld [vmem:[#allocation11 + $0x250] sm:$0xff] }
  0xe1   :  { %2091 = vmatprep.subr.bf16.mxu0 %v11569_v8  ;;  %2132 = vmatprep.subr.bf16.mxu1 %v11571_v9  ;;  %v11518_v8 = vcombine.low %v1304_v62, %v1308_v20  ;;  %v11509_v9 = vcombine.high %v1295_v4, %v1299_v5  ;;  %v11511_v10 = vcombine.high %v1296_v6, %v1300_v25  ;;  %v1371_v62 = vld [vmem:[#allocation11 + $0x270] sm:$0xff]  ;;  %v1368_v20 = vld [vmem:[#allocation11 + $0x258] sm:$0xff] }
  0xe4   :  { %2092 = vmatpush2.bf16.msra.mxu0 %v11568_v28  ;;  %2133 = vmatpush2.bf16.msra.mxu1 %v11570_v16  ;;  %v1420_v28 = vld [vmem:[#allocation11 + $0x3f8] sm:$0xff]  ;;  %v11508_v16 = vcombine.low %v1295_v4, %v1299_v5  ;;  %v1359_v5 = vld [vmem:[#allocation11 + $0x210] sm:$0xff] }
  0xe5   :  { %2143 = vmatprep.subr.bf16.mxu0 %v11565_v17  ;;  %2184 = vmatprep.subr.bf16.mxu1 %v11567_v18  ;;  %v11510_v17 = vcombine.low %v1296_v6, %v1300_v25  ;;  %v11629_v18 = vcombine.high %v1415_v12, %v1419_v13  ;;  %v11631_v19 = vcombine.high %v1416_v14, %v1420_v28  ;;  %v1363_v6 = vld [vmem:[#allocation11 + $0x230] sm:$0xff]  ;;  %v1360_v25 = vld [vmem:[#allocation11 + $0x218] sm:$0xff] }
  0xe7   :  { %2094 = vmatmul.mubr.bf16.vlgmr.msra.gmra.mxu0 %v13390_v23  ;;  %2135 = vmatmul.mubr.bf16.vlgmr.msra.gmra.mxu1 %v13390_v23 }
  0xe8   :  { %2144 = vmatpush1.bf16.msra.mxu0 %v11564_v24  ;;  %2185 = vmatpush1.bf16.msra.mxu1 %v11566_v26  ;;  %v1412_v24 = vld [vmem:[#allocation11 + $0x3b8] sm:$0xff]  ;;  %v11628_v26 = vcombine.low %v1415_v12, %v1419_v13  ;;  %v16027_v13 = vlaneseq }
  0xe9   :  { %2145 = vmatprep.subr.bf16.mxu0 %v11557_v27  ;;  %2186 = vmatprep.subr.bf16.mxu1 %v11559_v29  ;;  %v11630_v27 = vcombine.low %v1416_v14, %v1420_v28  ;;  %v11621_v29 = vcombine.high %v1407_v21, %v1411_v22  ;;  %v11623_v30 = vcombine.high %v1408_v35, %v1412_v24 }
  0xea   :  { %2175 = vmatprep.mubr.bf16.mxu0 %v13390_v23  ;;  %2216 = vmatprep.mubr.bf16.mxu1 %v13390_v23  ;;  %v11572_v14 = vcombine.low %v1359_v5, %v1363_v6 }
  0xec   :  { %2146 = vmatpush1.bf16.msra.mxu0 %v11556_v34  ;;  %2187 = vmatpush1.bf16.msra.mxu1 %v11558_v36  ;;  %v1404_v34 = vld [vmem:[#allocation11 + $0x378] sm:$0xff]  ;;  %v11620_v36 = vcombine.low %v1407_v21, %v1411_v22  ;;  %v148_v21 = vld [vmem:[%s16019_s3] sm:$0xf] }
  0xed   :  { %2147 = vmatprep.subr.bf16.mxu0 %v11549_v37  ;;  %2188 = vmatprep.subr.bf16.mxu1 %v11551_v38  ;;  %v11622_v37 = vcombine.low %v1408_v35, %v1412_v24  ;;  %v11613_v38 = vcombine.high %v1399_v31, %v1403_v32  ;;  %v11615_v39 = vcombine.high %v1400_v33, %v1404_v34 }
  0xf0   :  { %2148 = vmatpush1.bf16.msra.mxu0 %v11548_v42  ;;  %2189 = vmatpush1.bf16.msra.mxu1 %v11550_v43  ;;  %v1396_v42 = vld [vmem:[#allocation11 + $0x338] sm:$0xff]  ;;  %v11612_v43 = vcombine.low %v1399_v31, %v1403_v32 }
  0xf1   :  { %2149 = vmatprep.subr.bf16.mxu0 %v11541_v44  ;;  %2190 = vmatprep.subr.bf16.mxu1 %v11543_v45  ;;  %v11614_v44 = vcombine.low %v1400_v33, %v1404_v34  ;;  %v11605_v45 = vcombine.high %v1391_v40, %v1395_v41  ;;  %v11607_v46 = vcombine.high %v1392_v3, %v1396_v42 }
  0xf4   :  { %2150 = vmatpush1.bf16.msra.mxu0 %v11540_v50  ;;  %2191 = vmatpush1.bf16.msra.mxu1 %v11542_v51  ;;  %v1388_v50 = vld [vmem:[#allocation11 + $0x2f8] sm:$0xff]  ;;  %v11604_v51 = vcombine.low %v1391_v40, %v1395_v41 }
  0xf5   :  { %2151 = vmatprep.subr.bf16.mxu0 %v11533_v48  ;;  %2192 = vmatprep.subr.bf16.mxu1 %v11535_v52  ;;  %v11606_v48 = vcombine.low %v1392_v3, %v1396_v42  ;;  %v11597_v52 = vcombine.high %v1383_v47, %v1387_v49  ;;  %v11599_v53 = vcombine.high %v1384_v11, %v1388_v50 }
  0xf8   :  { %2152 = vmatpush1.bf16.msra.mxu0 %v11532_v56  ;;  %2193 = vmatpush1.bf16.msra.mxu1 %v11534_v57  ;;  %v1380_v56 = vld [vmem:[#allocation11 + $0x2b8] sm:$0xff]  ;;  %v11596_v57 = vcombine.low %v1383_v47, %v1387_v49 }
  0xf9   :  { %2153 = vmatprep.subr.bf16.mxu0 %v11525_v58  ;;  %2194 = vmatprep.subr.bf16.mxu1 %v11527_v59  ;;  %v11598_v58 = vcombine.low %v1384_v11, %v1388_v50  ;;  %v11589_v59 = vcombine.high %v1375_v54, %v1379_v55  ;;  %v11591_v60 = vcombine.high %v1376_v15, %v1380_v56 }
  0xfc   :  { %2154 = vmatpush1.bf16.msra.mxu0 %v11524_v63  ;;  %2195 = vmatpush1.bf16.msra.mxu1 %v11526_v0  ;;  %v1372_v63 = vld [vmem:[#allocation11 + $0x278] sm:$0xff]  ;;  %v11588_v0 = vcombine.low %v1375_v54, %v1379_v55 }
  0xfd   :  { %2155 = vmatprep.subr.bf16.mxu0 %v11517_v1  ;;  %2196 = vmatprep.subr.bf16.mxu1 %v11519_v2  ;;  %v11590_v1 = vcombine.low %v1376_v15, %v1380_v56  ;;  %v11581_v2 = vcombine.high %v1367_v61, %v1371_v62  ;;  %v11583_v4 = vcombine.high %v1368_v20, %v1372_v63 }
 0x100   :  { %2156 = vmatpush1.bf16.msra.mxu0 %v11516_v7  ;;  %2197 = vmatpush1.bf16.msra.mxu1 %v11518_v8  ;;  %v1364_v7 = vld [vmem:[#allocation11 + $0x238] sm:$0xff]  ;;  %v11580_v8 = vcombine.low %v1367_v61, %v1371_v62 }
 0x101   :  { %2157 = vmatprep.subr.bf16.mxu0 %v11509_v9  ;;  %2198 = vmatprep.subr.bf16.mxu1 %v11511_v10  ;;  %v11582_v9 = vcombine.low %v1368_v20, %v1372_v63  ;;  %v11573_v10 = vcombine.high %v1359_v5, %v1363_v6  ;;  %v11575_v12 = vcombine.high %v1360_v25, %v1364_v7 }
 0x102   :  { %v11574_v28 = vcombine.low %v1360_v25, %v1364_v7 }
 0x104   :  { %2158 = vmatpush1.bf16.msra.mxu0 %v11508_v16  ;;  %2199 = vmatpush1.bf16.msra.mxu1 %v11510_v17  ;;  %v13539_v16 = vshrl.u32 %v16027_v13, 7 }
 0x105   :  { %2159 = vmatprep.subr.bf16.mxu0 %v11629_v18  ;;  %2200 = vmatprep.subr.bf16.mxu1 %v11631_v19 }
 0x106   :  { %16263 = vst [vmem:[#allocation16_spill] sm:$0xff] %v13539_v16  ;;  %v13542_v17 = vsub.s32 2, %v13539_v16  ;;  %v13545_v18 = vsub.s32 0, %v13539_v16  ;;  %v13548_v19 = vsub.s32 3, %v13539_v16  ;;  %v13560_v24 = vsub.s32 1, %v13539_v16 }
 0x108   :  { %2160 = vmatpush2.bf16.msra.mxu0 %v11628_v26  ;;  %2201 = vmatpush2.bf16.msra.mxu1 %v11630_v27  ;;  %16264 = vst [vmem:[#allocation17_spill] sm:$0xff] %v13542_v17  ;;  %16265 = vst [vmem:[#allocation18_spill] sm:$0xff] %v13545_v18  ;;  %v13563_v26 = vrot.slane %v148_v21, %v13542_v17  ;;  %v13573_v31 = vrot.slane %v148_v21, %v13548_v19 }
 0x109   :  { %2161 = vmatprep.subr.bf16.mxu0 %v11621_v29  ;;  %2202 = vmatprep.subr.bf16.mxu1 %v11623_v30  ;;  %16266 = vst [vmem:[#allocation19_spill] sm:$0xff] %v13548_v19  ;;  %16267 = vst [vmem:[#allocation20_spill] sm:$0xff] %v13560_v24  ;;  %v13570_v30 = vrot.slane %v148_v21, %v13545_v18  ;;  %v13576_v33 = vrot.slane %v148_v21, %v13560_v24 }
 0x10c   :  { %2162 = vmatpush2.bf16.msra.mxu0 %v11620_v36  ;;  %2203 = vmatpush2.bf16.msra.mxu1 %v11622_v37 }
 0x10d   :  { %2163 = vmatprep.subr.bf16.mxu0 %v11613_v38  ;;  %2204 = vmatprep.subr.bf16.mxu1 %v11615_v39 }
 0x110   :  { %2164 = vmatpush2.bf16.msra.mxu0 %v11612_v43  ;;  %2205 = vmatpush2.bf16.msra.mxu1 %v11614_v44 }
 0x111   :  { %2165 = vmatprep.subr.bf16.mxu0 %v11605_v45  ;;  %2206 = vmatprep.subr.bf16.mxu1 %v11607_v46 }
 0x114   :  { %2166 = vmatpush2.bf16.msra.mxu0 %v11604_v51  ;;  %2207 = vmatpush2.bf16.msra.mxu1 %v11606_v48 }
 0x115   :  { %2167 = vmatprep.subr.bf16.mxu0 %v11597_v52  ;;  %2208 = vmatprep.subr.bf16.mxu1 %v11599_v53 }
 0x118   :  { %2168 = vmatpush2.bf16.msra.mxu0 %v11596_v57  ;;  %2209 = vmatpush2.bf16.msra.mxu1 %v11598_v58 }
 0x119   :  { %2169 = vmatprep.subr.bf16.mxu0 %v11589_v59  ;;  %2210 = vmatprep.subr.bf16.mxu1 %v11591_v60 }
 0x11c   :  { %2170 = vmatpush2.bf16.msra.mxu0 %v11588_v0  ;;  %2211 = vmatpush2.bf16.msra.mxu1 %v11590_v1 }
 0x11d   :  { %2171 = vmatprep.subr.bf16.mxu0 %v11581_v2  ;;  %2212 = vmatprep.subr.bf16.mxu1 %v11583_v4 }
 0x120   :  { %2172 = vmatpush2.bf16.msra.mxu0 %v11580_v8  ;;  %2213 = vmatpush2.bf16.msra.mxu1 %v11582_v9 }
 0x121   :  { %2173 = vmatprep.subr.bf16.mxu0 %v11573_v10  ;;  %2214 = vmatprep.subr.bf16.mxu1 %v11575_v12 }
 0x124   :  { %2174 = vmatpush2.bf16.msra.mxu0 %v11572_v14  ;;  %2215 = vmatpush2.bf16.msra.mxu1 %v11574_v28 }
 0x127   :  { %v13553_v22 = vpop.f32.mrf.mxu0  ;;  %2176 = vmatmul.mubr.bf16.vlgmr.msra.gmra.mxu0 %v13390_v23  ;;  %2217 = vmatmul.mubr.bf16.vlgmr.msra.gmra.mxu1 %v13390_v23  ;;  %v13557_v35 = vpop.f32.mrf.mxu1 }
 0x129   :  { %v13565_v27 = vpop.f32.mrf.mxu0  ;;  %v13567_v29 = vpop.f32.mrf.mxu1 }
 0x12b   :  { %v568_v32 = vpop.f32.mrf.mxu0  ;;  %v641_v23 = vpop.f32.mrf.mxu1 }
 0x12c   :  { %v13579_v34 = vadd.f32 %v568_v32, %v13570_v30  ;;  %v13582_v36 = vadd.f32 %v641_v23, %v13563_v26 }
 0x12d   :  { %v570_v37 = vpop.f32.mrf.mxu0  ;;  %v643_v38 = vpop.f32.mrf.mxu1 }
 0x12e   :  { %16268 = vst [vmem:[#allocation21_spill] sm:$0xff] %v13579_v34  ;;  %16269 = vst [vmem:[#allocation22_spill] sm:$0xff] %v13582_v36  ;;  %v13585_v39 = vadd.f32 %v570_v37, %v13576_v33  ;;  %v13588_v40 = vadd.f32 %v643_v38, %v13573_v31  ;;  %v2520_v34 = vld [vmem:[#allocation11 + $0x308] sm:$0xff] }
 0x12f   :  { %v574_v41 = vpop.f32.mrf.mxu0  ;;  %v647_v3 = vpop.f32.mrf.mxu1 }
 0x130   :  { %16270 = vst [vmem:[#allocation23_spill] sm:$0xff] %v13585_v39  ;;  %16271 = vst [vmem:[#allocation24_spill] sm:$0xff] %v13588_v40  ;;  %v13591_v42 = vadd.f32 %v574_v41, %v13570_v30  ;;  %v13594_v43 = vadd.f32 %v647_v3, %v13563_v26  ;;  %v2532_v40 = vld [vmem:[#allocation11 + $0x368] sm:$0xff] }
 0x131   :  { %v576_v44 = vpop.f32.mrf.mxu0  ;;  %v649_v45 = vpop.f32.mrf.mxu1 }
 0x132   :  { %16272 = vst [vmem:[#allocation25_spill] sm:$0xff] %v13591_v42  ;;  %16273 = vst [vmem:[#allocation26_spill] sm:$0xff] %v13594_v43  ;;  %v13597_v46 = vadd.f32 %v576_v44, %v13576_v33  ;;  %v13600_v47 = vadd.f32 %v649_v45, %v13573_v31  ;;  %v2479_v44 = vld [vmem:[#allocation11 + $0x1c0] sm:$0xff] }
 0x133   :  { %v578_v49 = vpop.f32.mrf.mxu0  ;;  %v651_v11 = vpop.f32.mrf.mxu1  ;;  %v2483_v45 = vld [vmem:[#allocation11 + $0x1e0] sm:$0xff] }
 0x134   :  { %16274 = vst [vmem:[#allocation27_spill] sm:$0xff] %v13597_v46  ;;  %16275 = vst [vmem:[#allocation28_spill] sm:$0xff] %v13600_v47  ;;  %v13603_v50 = vadd.f32 %v578_v49, %v13570_v30  ;;  %v13606_v51 = vadd.f32 %v651_v11, %v13563_v26  ;;  %v2480_v49 = vld [vmem:[#allocation11 + $0x1c8] sm:$0xff]  ;;  %v13662_v11 = vcombine.low %v2479_v44, %v2483_v45  ;;  %v2535_v42 = vld [vmem:[#allocation11 + $0x380] sm:$0xff] }
 0x135   :  { %v580_v48 = vpop.f32.mrf.mxu0  ;;  %v653_v52 = vpop.f32.mrf.mxu1  ;;  %v2548_v47 = vld [vmem:[#allocation11 + $0x3e8] sm:$0xff] }
 0x136   :  { %16276 = vst [vmem:[#allocation29_spill] sm:$0xff] %v13603_v50  ;;  %16277 = vst [vmem:[#allocation30_spill] sm:$0xff] %v13606_v51  ;;  %v13609_v53 = vadd.f32 %v580_v48, %v13576_v33  ;;  %v13612_v54 = vadd.f32 %v653_v52, %v13573_v31  ;;  %v13664_v48 = vcombine.high %v2479_v44, %v2483_v45  ;;  %v2484_v52 = vld [vmem:[#allocation11 + $0x1e8] sm:$0xff] }
 0x137   :  { %v584_v55 = vpop.f32.mrf.mxu0  ;;  %v657_v15 = vpop.f32.mrf.mxu1 }
 0x138   :  { %16278 = vst [vmem:[#allocation31_spill] sm:$0xff] %v13609_v53  ;;  %16279 = vst [vmem:[#allocation32_spill] sm:$0xff] %v13612_v54  ;;  %v13615_v56 = vadd.f32 %v584_v55, %v13570_v30  ;;  %v13618_v57 = vadd.f32 %v657_v15, %v13563_v26  ;;  %v2471_v55 = vld [vmem:[#allocation11 + $0x180] sm:$0xff]  ;;  %3191 = vmatprep.subr.bf16.mxu0 %v13664_v48  ;;  %v2428_v54 = vld [vmem:[#allocation11 + $0x28] sm:$0xff] }
 0x139   :  { %v586_v58 = vpop.f32.mrf.mxu0  ;;  %v659_v59 = vpop.f32.mrf.mxu1  ;;  %v2475_v15 = vld [vmem:[#allocation11 + $0x1a0] sm:$0xff]  ;;  %3192 = vmatpush1.bf16.msra.mxu0 %v13662_v11 }
 0x13a   :  { %16280 = vst [vmem:[#allocation33_spill] sm:$0xff] %v13615_v56  ;;  %16281 = vst [vmem:[#allocation34_spill] sm:$0xff] %v13618_v57  ;;  %v13621_v60 = vadd.f32 %v586_v58, %v13576_v33  ;;  %v13624_v61 = vadd.f32 %v659_v59, %v13573_v31  ;;  %v13666_v58 = vcombine.low %v2480_v49, %v2484_v52 }
 0x13b   :  { %v588_v62 = vpop.f32.mrf.mxu0  ;;  %v661_v20 = vpop.f32.mrf.mxu1  ;;  %v13668_v59 = vcombine.high %v2480_v49, %v2484_v52  ;;  %v2463_v52 = vld [vmem:[#allocation11 + $0x140] sm:$0xff] }
 0x13c   :  { %16282 = vst [vmem:[#allocation35_spill] sm:$0xff] %v13621_v60  ;;  %16283 = vst [vmem:[#allocation36_spill] sm:$0xff] %v13624_v61  ;;  %v13627_v63 = vadd.f32 %v588_v62, %v13570_v30  ;;  %v13630_v0 = vadd.f32 %v661_v20, %v13563_v26  ;;  %v13670_v62 = vcombine.high %v2471_v55, %v2475_v15  ;;  %v2472_v20 = vld [vmem:[#allocation11 + $0x188] sm:$0xff] }
 0x13d   :  { %v590_v1 = vpop.f32.mrf.mxu0  ;;  %v663_v2 = vpop.f32.mrf.mxu1  ;;  %3232 = vmatprep.subr.bf16.mxu1 %v13668_v59  ;;  %v2436_v61 = vld [vmem:[#allocation11 + $0x68] sm:$0xff] }
 0x13e   :  { %16284 = vst [vmem:[#allocation37_spill] sm:$0xff] %v13627_v63  ;;  %16285 = vst [vmem:[#allocation38_spill] sm:$0xff] %v13630_v0  ;;  %v13633_v4 = vadd.f32 %v590_v1, %v13576_v33  ;;  %v13636_v5 = vadd.f32 %v663_v2, %v13573_v31  ;;  %v2476_v1 = vld [vmem:[#allocation11 + $0x1a8] sm:$0xff]  ;;  %3233 = vmatpush1.bf16.msra.mxu1 %v13666_v58  ;;  %3193 = vmatprep.subr.bf16.mxu0 %v13670_v62 }
 0x13f   :  { %v594_v6 = vpop.f32.mrf.mxu0  ;;  %v667_v25 = vpop.f32.mrf.mxu1  ;;  %v13673_v2 = vcombine.high %v2472_v20, %v2476_v1 }
 0x140   :  { %16286 = vst [vmem:[#allocation39_spill] sm:$0xff] %v13633_v4  ;;  %16287 = vst [vmem:[#allocation40_spill] sm:$0xff] %v13636_v5  ;;  %v13639_v7 = vadd.f32 %v594_v6, %v13570_v30  ;;  %v13642_v8 = vadd.f32 %v667_v25, %v13563_v26  ;;  %v13677_v6 = vcombine.low %v2471_v55, %v2475_v15  ;;  %v2467_v55 = vld [vmem:[#allocation11 + $0x160] sm:$0xff]  ;;  %v2464_v15 = vld [vmem:[#allocation11 + $0x148] sm:$0xff] }
 0x141   :  { %v596_v9 = vpop.f32.mrf.mxu0  ;;  %v669_v10 = vpop.f32.mrf.mxu1  ;;  %v13681_v25 = vcombine.low %v2472_v20, %v2476_v1  ;;  %3234 = vmatprep.subr.bf16.mxu1 %v13673_v2  ;;  %v13707_v13 = vcombine.high %v2463_v52, %v2467_v55  ;;  %v2444_v5 = vld [vmem:[#allocation11 + $0xa8] sm:$0xff] }
 0x142   :  { %16288 = vst [vmem:[#allocation41_spill] sm:$0xff] %v13639_v7  ;;  %16289 = vst [vmem:[#allocation42_spill] sm:$0xff] %v13642_v8  ;;  %v13645_v12 = vadd.f32 %v596_v9, %v13576_v33  ;;  %v13648_v14 = vadd.f32 %v669_v10, %v13573_v31  ;;  %3194 = vmatpush1.bf16.msra.mxu0 %v13677_v6  ;;  %v772_v9 = vld [vmem:[%s16020_s4] sm:$0xf] }
 0x143   :  { %v598_v28 = vpop.f32.mrf.mxu0  ;;  %v671_v21 = vpop.f32.mrf.mxu1  ;;  %3235 = vmatpush1.bf16.msra.mxu1 %v13681_v25  ;;  %v13690_v10 = vrot.slane %v772_v9, %v13545_v18  ;;  %3195 = vmatprep.subr.bf16.mxu0 %v13707_v13 }
 0x144   :  { %16290 = vst [vmem:[#allocation43_spill] sm:$0xff] %v13645_v12  ;;  %16291 = vst [vmem:[#allocation44_spill] sm:$0xff] %v13648_v14  ;;  %v13651_v32 = vadd.f32 %v598_v28, %v13570_v30  ;;  %v13654_v23 = vadd.f32 %v671_v21, %v13563_v26  ;;  %v13693_v28 = vrot.slane %v772_v9, %v13542_v17  ;;  %v2468_v17 = vld [vmem:[#allocation11 + $0x168] sm:$0xff] }
 0x145   :  { %v600_v37 = vpop.f32.mrf.mxu0  ;;  %v673_v38 = vpop.f32.mrf.mxu1  ;;  %v13696_v21 = vrot.slane %v772_v9, %v13560_v24  ;;  %v2452_v14 = vld [vmem:[#allocation11 + $0xe8] sm:$0xff] }
 0x146   :  { %16292 = vst [vmem:[#allocation45_spill] sm:$0xff] %v13651_v32  ;;  %16293 = vst [vmem:[#allocation46_spill] sm:$0xff] %v13654_v23  ;;  %v13657_v41 = vadd.f32 %v600_v37, %v13576_v33  ;;  %v13660_v3 = vadd.f32 %v673_v38, %v13573_v31  ;;  %v13699_v37 = vrot.slane %v772_v9, %v13548_v19 }
 0x147   :  { %v13715_v19 = vcombine.low %v2463_v52, %v2467_v55  ;;  %v2456_v52 = vld [vmem:[#allocation11 + $0x108] sm:$0xff] }
 0x148   :  { %16294 = vst [vmem:[#allocation47_spill] sm:$0xff] %v13657_v41  ;;  %16295 = vst [vmem:[#allocation48_spill] sm:$0xff] %v13660_v3  ;;  %v2460_v3 = vld [vmem:[#allocation11 + $0x128] sm:$0xff] }
 0x149   :  { %3196 = vmatpush1.bf16.msra.mxu0 %v13715_v19 }
 0x167   :  { %v1148_v38 = vpop.f32.mrf.mxu0  ;;  %v1221_v44 = vpop.f32.mrf.mxu1 }
 0x168   :  { %v13702_v45 = vadd.f32 %v1148_v38, %v13690_v10  ;;  %v13705_v49 = vadd.f32 %v1221_v44, %v13693_v28  ;;  %v13717_v38 = vcombine.low %v2464_v15, %v2468_v17 }
 0x169   :  { %v1150_v20 = vpop.f32.mrf.mxu0  ;;  %v1223_v1 = vpop.f32.mrf.mxu1 }
 0x16a   :  { %16296 = vst [vmem:[#allocation49_spill] sm:$0xff] %v13702_v45  ;;  %16297 = vst [vmem:[#allocation50_spill] sm:$0xff] %v13705_v49  ;;  %v13710_v24 = vadd.f32 %v1150_v20, %v13696_v21  ;;  %v13713_v9 = vadd.f32 %v1223_v1, %v13699_v37  ;;  %v13720_v49 = vcombine.high %v2464_v15, %v2468_v17  ;;  %v2455_v20 = vld [vmem:[#allocation11 + $0x100] sm:$0xff] }
 0x16b   :  { %v1152_v44 = vpop.f32.mrf.mxu0  ;;  %v1225_v18 = vpop.f32.mrf.mxu1  ;;  %v2459_v1 = vld [vmem:[#allocation11 + $0x120] sm:$0xff] }
 0x16c   :  { %16298 = vst [vmem:[#allocation51_spill] sm:$0xff] %v13710_v24  ;;  %16299 = vst [vmem:[#allocation52_spill] sm:$0xff] %v13713_v9  ;;  %v13723_v45 = vadd.f32 %v1152_v44, %v13690_v10  ;;  %v13726_v23 = vadd.f32 %v1225_v18, %v13693_v28  ;;  %3236 = vmatprep.subr.bf16.mxu1 %v13720_v49  ;;  %v13730_v24 = vcombine.high %v2455_v20, %v2459_v1 }
 0x16d   :  { %v1154_v55 = vpop.f32.mrf.mxu0  ;;  %v1227_v9 = vpop.f32.mrf.mxu1  ;;  %3237 = vmatpush1.bf16.msra.mxu1 %v13717_v38  ;;  %v13739_v18 = vcombine.low %v2455_v20, %v2459_v1  ;;  %v13741_v44 = vcombine.low %v2456_v52, %v2460_v3  ;;  %v2448_v20 = vld [vmem:[#allocation11 + $0xc8] sm:$0xff] }
 0x16e   :  { %16300 = vst [vmem:[#allocation53_spill] sm:$0xff] %v13723_v45  ;;  %16301 = vst [vmem:[#allocation54_spill] sm:$0xff] %v13726_v23  ;;  %v13733_v17 = vadd.f32 %v1154_v55, %v13696_v21  ;;  %v13736_v15 = vadd.f32 %v1227_v9, %v13699_v37  ;;  %3197 = vmatprep.subr.bf16.mxu0 %v13730_v24  ;;  %v13744_v23 = vcombine.high %v2456_v52, %v2460_v3  ;;  %v2447_v9 = vld [vmem:[#allocation11 + $0xc0] sm:$0xff] }
 0x16f   :  { %v1158_v41 = vpop.f32.mrf.mxu0  ;;  %v1231_v32 = vpop.f32.mrf.mxu1  ;;  %3198 = vmatpush1.bf16.msra.mxu0 %v13739_v18  ;;  %v13765_v52 = vcombine.low %v2448_v20, %v2452_v14 }
 0x170   :  { %16302 = vst [vmem:[#allocation55_spill] sm:$0xff] %v13733_v17  ;;  %16303 = vst [vmem:[#allocation56_spill] sm:$0xff] %v13736_v15  ;;  %v13747_v45 = vadd.f32 %v1158_v41, %v13690_v10  ;;  %v13750_v55 = vadd.f32 %v1231_v32, %v13693_v28  ;;  %v2451_v15 = vld [vmem:[#allocation11 + $0xe0] sm:$0xff]  ;;  %3238 = vmatprep.subr.bf16.mxu1 %v13744_v23 }
 0x171   :  { %v1160_v1 = vpop.f32.mrf.mxu0  ;;  %v1233_v17 = vpop.f32.mrf.mxu1  ;;  %v13754_v8 = vcombine.high %v2447_v9, %v2451_v15  ;;  %3239 = vmatpush1.bf16.msra.mxu1 %v13741_v44  ;;  %v13763_v32 = vcombine.low %v2447_v9, %v2451_v15  ;;  %v2440_v15 = vld [vmem:[#allocation11 + $0x88] sm:$0xff] }
 0x172   :  { %16304 = vst [vmem:[#allocation57_spill] sm:$0xff] %v13747_v45  ;;  %16305 = vst [vmem:[#allocation58_spill] sm:$0xff] %v13750_v55  ;;  %v13757_v3 = vadd.f32 %v1160_v1, %v13696_v21  ;;  %v13760_v41 = vadd.f32 %v1233_v17, %v13699_v37  ;;  %v13768_v55 = vcombine.high %v2448_v20, %v2452_v14  ;;  %v2439_v17 = vld [vmem:[#allocation11 + $0x80] sm:$0xff] }
 0x173   :  { %v1162_v12 = vpop.f32.mrf.mxu0  ;;  %v1235_v7 = vpop.f32.mrf.mxu1  ;;  %3199 = vmatprep.subr.bf16.mxu0 %v13754_v8  ;;  %v13789_v20 = vcombine.low %v2440_v15, %v2444_v5 }
 0x174   :  { %16306 = vst [vmem:[#allocation59_spill] sm:$0xff] %v13757_v3  ;;  %16307 = vst [vmem:[#allocation60_spill] sm:$0xff] %v13760_v41  ;;  %v13771_v45 = vadd.f32 %v1162_v12, %v13690_v10  ;;  %v13774_v1 = vadd.f32 %v1235_v7, %v13693_v28  ;;  %3200 = vmatpush1.bf16.msra.mxu0 %v13763_v32  ;;  %v2443_v41 = vld [vmem:[#allocation11 + $0xa0] sm:$0xff]  ;;  %3240 = vmatprep.subr.bf16.mxu1 %v13768_v55 }
 0x175   :  { %v1164_v9 = vpop.f32.mrf.mxu0  ;;  %v1237_v3 = vpop.f32.mrf.mxu1  ;;  %v13778_v0 = vcombine.high %v2439_v17, %v2443_v41  ;;  %3241 = vmatpush1.bf16.msra.mxu1 %v13765_v52  ;;  %v13787_v7 = vcombine.low %v2439_v17, %v2443_v41  ;;  %v2432_v41 = vld [vmem:[#allocation11 + $0x48] sm:$0xff] }
 0x176   :  { %16308 = vst [vmem:[#allocation61_spill] sm:$0xff] %v13771_v45  ;;  %16309 = vst [vmem:[#allocation62_spill] sm:$0xff] %v13774_v1  ;;  %v13781_v14 = vadd.f32 %v1164_v9, %v13696_v21  ;;  %v13784_v12 = vadd.f32 %v1237_v3, %v13699_v37  ;;  %v13792_v1 = vcombine.high %v2440_v15, %v2444_v5  ;;  %v2431_v3 = vld [vmem:[#allocation11 + $0x40] sm:$0xff] }
 0x177   :  { %v1168_v4 = vpop.f32.mrf.mxu0  ;;  %v1241_v63 = vpop.f32.mrf.mxu1  ;;  %3201 = vmatprep.subr.bf16.mxu0 %v13778_v0  ;;  %v13813_v15 = vcombine.low %v2432_v41, %v2436_v61 }
 0x178   :  { %16310 = vst [vmem:[#allocation63_spill] sm:$0xff] %v13781_v14  ;;  %16311 = vst [vmem:[#allocation64_spill] sm:$0xff] %v13784_v12  ;;  %v13795_v45 = vadd.f32 %v1168_v4, %v13690_v10  ;;  %v13798_v9 = vadd.f32 %v1241_v63, %v13693_v28  ;;  %3202 = vmatpush1.bf16.msra.mxu0 %v13787_v7  ;;  %v2435_v12 = vld [vmem:[#allocation11 + $0x60] sm:$0xff]  ;;  %3242 = vmatprep.subr.bf16.mxu1 %v13792_v1 }
 0x179   :  { %v1170_v17 = vpop.f32.mrf.mxu0  ;;  %v1243_v14 = vpop.f32.mrf.mxu1  ;;  %v13802_v57 = vcombine.high %v2431_v3, %v2435_v12  ;;  %3243 = vmatpush1.bf16.msra.mxu1 %v13789_v20  ;;  %v13811_v63 = vcombine.low %v2431_v3, %v2435_v12  ;;  %v2424_v12 = vld [vmem:[#allocation11 + $0x8] sm:$0xff] }
 0x17a   :  { %16312 = vst [vmem:[#allocation65_spill] sm:$0xff] %v13795_v45  ;;  %16313 = vst [vmem:[#allocation66_spill] sm:$0xff] %v13798_v9  ;;  %v13805_v5 = vadd.f32 %v1170_v17, %v13696_v21  ;;  %v13808_v4 = vadd.f32 %v1243_v14, %v13699_v37  ;;  %v13816_v9 = vcombine.high %v2432_v41, %v2436_v61  ;;  %v2423_v14 = vld [vmem:[#allocation11] sm:$0xff] }
 0x17b   :  { %v1172_v60 = vpop.f32.mrf.mxu0  ;;  %v1245_v56 = vpop.f32.mrf.mxu1  ;;  %3203 = vmatprep.subr.bf16.mxu0 %v13802_v57  ;;  %v13837_v41 = vcombine.low %v2424_v12, %v2428_v54 }
 0x17c   :  { %16314 = vst [vmem:[#allocation67_spill] sm:$0xff] %v13805_v5  ;;  %16315 = vst [vmem:[#allocation68_spill] sm:$0xff] %v13808_v4  ;;  %v13819_v45 = vadd.f32 %v1172_v60, %v13690_v10  ;;  %v13822_v17 = vadd.f32 %v1245_v56, %v13693_v28  ;;  %3204 = vmatpush1.bf16.msra.mxu0 %v13811_v63  ;;  %v2427_v4 = vld [vmem:[#allocation11 + $0x20] sm:$0xff]  ;;  %3244 = vmatprep.subr.bf16.mxu1 %v13816_v9 }
 0x17d   :  { %v1174_v3 = vpop.f32.mrf.mxu0  ;;  %v1247_v5 = vpop.f32.mrf.mxu1  ;;  %v13826_v51 = vcombine.high %v2423_v14, %v2427_v4  ;;  %3245 = vmatpush1.bf16.msra.mxu1 %v13813_v15  ;;  %v13835_v56 = vcombine.low %v2423_v14, %v2427_v4  ;;  %16321 = vst [vmem:[#allocation74_spill] sm:$0xff] %v13837_v41  ;;  %v2544_v4 = vld [vmem:[#allocation11 + $0x3c8] sm:$0xff] }
 0x17e   :  { %16316 = vst [vmem:[#allocation69_spill] sm:$0xff] %v13819_v45  ;;  %16317 = vst [vmem:[#allocation70_spill] sm:$0xff] %v13822_v17  ;;  %v13829_v61 = vadd.f32 %v1174_v3, %v13696_v21  ;;  %v13832_v60 = vadd.f32 %v1247_v5, %v13699_v37  ;;  %v13840_v17 = vcombine.high %v2424_v12, %v2428_v54  ;;  %v2543_v5 = vld [vmem:[#allocation11 + $0x3c0] sm:$0xff] }
 0x17f   :  { %16320 = vst [vmem:[#allocation73_spill] sm:$0xff] %v13835_v56  ;;  %v1178_v53 = vpop.f32.mrf.mxu0  ;;  %v1251_v50 = vpop.f32.mrf.mxu1  ;;  %3205 = vmatprep.subr.bf16.mxu0 %v13826_v51  ;;  %v13861_v12 = vcombine.low %v2544_v4, %v2548_v47  ;;  %v13864_v46 = vcombine.high %v2544_v4, %v2548_v47  ;;  %v2527_v4 = vld [vmem:[#allocation11 + $0x340] sm:$0xff] }
 0x180   :  { %16318 = vst [vmem:[#allocation71_spill] sm:$0xff] %v13829_v61  ;;  %16319 = vst [vmem:[#allocation72_spill] sm:$0xff] %v13832_v60  ;;  %v13843_v45 = vadd.f32 %v1178_v53, %v13690_v10  ;;  %v13846_v3 = vadd.f32 %v1251_v50, %v13693_v28  ;;  %3206 = vmatpush1.bf16.msra.mxu0 %v13835_v56  ;;  %v2547_v60 = vld [vmem:[#allocation11 + $0x3e0] sm:$0xff]  ;;  %3246 = vmatprep.subr.bf16.mxu1 %v13840_v17 }
 0x181   :  { %v1180_v14 = vpop.f32.mrf.mxu0  ;;  %v1253_v61 = vpop.f32.mrf.mxu1  ;;  %v13850_v43 = vcombine.high %v2543_v5, %v2547_v60  ;;  %3247 = vmatpush1.bf16.msra.mxu1 %v13837_v41  ;;  %v13859_v50 = vcombine.low %v2543_v5, %v2547_v60  ;;  %16328 = vst [vmem:[#allocation81_spill] sm:$0xff] %v13861_v12  ;;  %16329 = vst [vmem:[#allocation82_spill] sm:$0xff] %v13864_v46  ;;  %v638_v56 = vadd.f32 %v13557_v35, %v13563_v26  ;;  %v13391_v35 = vmov 1966171168  }
 0x182   :  { %16322 = vst [vmem:[#allocation75_spill] sm:$0xff] %v13843_v45  ;;  %16323 = vst [vmem:[#allocation76_spill] sm:$0xff] %v13846_v3  ;;  %v13853_v54 = vadd.f32 %v1180_v14, %v13696_v21  ;;  %v13856_v53 = vadd.f32 %v1253_v61, %v13699_v37  ;;  %v2539_v3 = vld [vmem:[#allocation11 + $0x3a0] sm:$0xff]  ;;  %v2536_v45 = vld [vmem:[#allocation11 + $0x388] sm:$0xff]  ;;  %3248 = vmatprep.subr.bf16.mxu1 %v13864_v46  ;;  %v2292_v26 = vunpack.c.l.s4 %v13391_v35 }
 0x183   :  { %16324 = vst [vmem:[#allocation77_spill] sm:$0xff] %v13850_v43  ;;  %16327 = vst [vmem:[#allocation80_spill] sm:$0xff] %v13859_v50  ;;  %3207 = vmatprep.subr.bf16.mxu0 %v13850_v43  ;;  %v13868_v14 = vcombine.high %v2535_v42, %v2539_v3  ;;  %v2540_v61 = vld [vmem:[#allocation11 + $0x3a8] sm:$0xff]  ;;  %v13871_v60 = vcombine.low %v2535_v42, %v2539_v3  ;;  %v2491_v46 = vld [vmem:[#allocation11 + $0x220] sm:$0xff] }
 0x184   :  { %16325 = vst [vmem:[#allocation78_spill] sm:$0xff] %v13853_v54  ;;  %16326 = vst [vmem:[#allocation79_spill] sm:$0xff] %v13856_v53  ;;  %3208 = vmatpush2.bf16.msra.mxu0 %v13859_v50  ;;  %v13873_v5 = vcombine.low %v2536_v45, %v2540_v61  ;;  %v13876_v47 = vcombine.high %v2536_v45, %v2540_v61  ;;  %v2531_v53 = vld [vmem:[#allocation11 + $0x360] sm:$0xff]  ;;  %v2528_v54 = vld [vmem:[#allocation11 + $0x348] sm:$0xff] }
 0x185   :  { %16330 = vst [vmem:[#allocation83_spill] sm:$0xff] %v13868_v14  ;;  %3249 = vmatpush2.bf16.msra.mxu1 %v13861_v12  ;;  %16331 = vst [vmem:[#allocation84_spill] sm:$0xff] %v13871_v60  ;;  %3209 = vmatprep.subr.bf16.mxu0 %v13868_v14  ;;  %v13880_v36 = vcombine.high %v2527_v4, %v2531_v53  ;;  %v13883_v42 = vcombine.low %v2527_v4, %v2531_v53  ;;  %v2519_v45 = vld [vmem:[#allocation11 + $0x300] sm:$0xff]  ;;  %v2500_v50 = vld [vmem:[#allocation11 + $0x268] sm:$0xff] }
 0x186   :  { %16332 = vst [vmem:[#allocation85_spill] sm:$0xff] %v13873_v5  ;;  %16333 = vst [vmem:[#allocation86_spill] sm:$0xff] %v13876_v47  ;;  %3250 = vmatprep.subr.bf16.mxu1 %v13876_v47  ;;  %v13885_v3 = vcombine.low %v2528_v54, %v2532_v40  ;;  %v13887_v39 = vcombine.high %v2528_v54, %v2532_v40  ;;  %v2523_v61 = vld [vmem:[#allocation11 + $0x320] sm:$0xff]  ;;  %v2524_v47 = vld [vmem:[#allocation11 + $0x328] sm:$0xff] }
 0x187   :  { %16334 = vst [vmem:[#allocation87_spill] sm:$0xff] %v13880_v36  ;;  %16335 = vst [vmem:[#allocation88_spill] sm:$0xff] %v13883_v42  ;;  %v13895_v53 = vcombine.low %v2519_v45, %v2523_v61  ;;  %v13897_v4 = vcombine.low %v2520_v34, %v2524_v47  ;;  %v13899_v40 = vcombine.high %v2520_v34, %v2524_v47  ;;  %v2511_v54 = vld [vmem:[#allocation11 + $0x2c0] sm:$0xff] }
 0x188   :  { %3210 = vmatpush2.bf16.msra.mxu0 %v13871_v60  ;;  %16336 = vst [vmem:[#allocation89_spill] sm:$0xff] %v13885_v3  ;;  %16337 = vst [vmem:[#allocation90_spill] sm:$0xff] %v13887_v39  ;;  %v13892_v60 = vcombine.high %v2519_v45, %v2523_v61  ;;  %v2503_v45 = vld [vmem:[#allocation11 + $0x280] sm:$0xff] }
 0x189   :  { %3251 = vmatpush2.bf16.msra.mxu1 %v13873_v5  ;;  %3211 = vmatprep.subr.bf16.mxu0 %v13880_v36  ;;  %16339 = vst [vmem:[#allocation92_spill] sm:$0xff] %v13895_v53  ;;  %16340 = vst [vmem:[#allocation93_spill] sm:$0xff] %v13897_v4  ;;  %v2507_v61 = vld [vmem:[#allocation11 + $0x2a0] sm:$0xff] }
 0x18a   :  { %3252 = vmatprep.subr.bf16.mxu1 %v13887_v39  ;;  %16338 = vst [vmem:[#allocation91_spill] sm:$0xff] %v13892_v60  ;;  %16341 = vst [vmem:[#allocation94_spill] sm:$0xff] %v13899_v40  ;;  %v2512_v39 = vld [vmem:[#allocation11 + $0x2c8] sm:$0xff]  ;;  %v2495_v14 = vld [vmem:[#allocation11 + $0x240] sm:$0xff] }
 0x18c   :  { %3212 = vmatpush2.bf16.msra.mxu0 %v13883_v42  ;;  %v2515_v42 = vld [vmem:[#allocation11 + $0x2e0] sm:$0xff] }
 0x18d   :  { %3253 = vmatpush2.bf16.msra.mxu1 %v13885_v3  ;;  %3213 = vmatprep.subr.bf16.mxu0 %v13892_v60  ;;  %v13904_v36 = vcombine.low %v2511_v54, %v2515_v42  ;;  %v13906_v5 = vcombine.high %v2511_v54, %v2515_v42  ;;  %v2516_v3 = vld [vmem:[#allocation11 + $0x2e8] sm:$0xff]  ;;  %v13913_v60 = vcombine.high %v2503_v45, %v2507_v61  ;;  %v2499_v42 = vld [vmem:[#allocation11 + $0x260] sm:$0xff] }
 0x18e   :  { %3254 = vmatprep.subr.bf16.mxu1 %v13899_v40  ;;  %v13909_v34 = vcombine.low %v2512_v39, %v2516_v3  ;;  %v13911_v47 = vcombine.high %v2512_v39, %v2516_v3  ;;  %v2504_v40 = vld [vmem:[#allocation11 + $0x288] sm:$0xff]  ;;  %v13920_v54 = vcombine.low %v2503_v45, %v2507_v61  ;;  %v13923_v39 = vcombine.high %v2495_v14, %v2499_v42 }
 0x18f   :  { %16342 = vst [vmem:[#allocation95_spill] sm:$0xff] %v13904_v36  ;;  %16343 = vst [vmem:[#allocation96_spill] sm:$0xff] %v13906_v5  ;;  %v13932_v45 = vcombine.low %v2495_v14, %v2499_v42  ;;  %v2488_v61 = vld [vmem:[#allocation11 + $0x208] sm:$0xff]  ;;  %v13950_v42 = vpop.f32.mrf.mxu1 }
 0x190   :  { %3214 = vmatpush2.bf16.msra.mxu0 %v13895_v53  ;;  %16344 = vst [vmem:[#allocation97_spill] sm:$0xff] %v13909_v34  ;;  %16345 = vst [vmem:[#allocation98_spill] sm:$0xff] %v13911_v47  ;;  %v2508_v53 = vld [vmem:[#allocation11 + $0x2a8] sm:$0xff] }
 0x191   :  { %3255 = vmatpush2.bf16.msra.mxu1 %v13897_v4  ;;  %16346 = vst [vmem:[#allocation99_spill] sm:$0xff] %v13913_v60  ;;  %3215 = vmatprep.subr.bf16.mxu0 %v13906_v5  ;;  %v13916_v12 = vcombine.high %v2504_v40, %v2508_v53  ;;  %16348 = vst [vmem:[#allocation101_spill] sm:$0xff] %v13920_v54  ;;  %v2496_v4 = vld [vmem:[#allocation11 + $0x248] sm:$0xff]  ;;  %v13926_v3 = vcombine.low %v2504_v40, %v2508_v53  ;;  %v2487_v5 = vld [vmem:[#allocation11 + $0x200] sm:$0xff] }
 0x192   :  { %3256 = vmatprep.subr.bf16.mxu1 %v13911_v47  ;;  %16349 = vst [vmem:[#allocation102_spill] sm:$0xff] %v13923_v39  ;;  %v13929_v43 = vcombine.high %v2496_v4, %v2500_v50  ;;  %16352 = vst [vmem:[#allocation105_spill] sm:$0xff] %v13932_v45  ;;  %v13938_v53 = vcombine.low %v2496_v4, %v2500_v50  ;;  %v2481_v50 = vld [vmem:[#allocation11 + $0x1d0] sm:$0xff] }
 0x193   :  { %16347 = vst [vmem:[#allocation100_spill] sm:$0xff] %v13916_v12  ;;  %16350 = vst [vmem:[#allocation103_spill] sm:$0xff] %v13926_v3  ;;  %v2485_v4 = vld [vmem:[#allocation11 + $0x1f0] sm:$0xff] }
 0x194   :  { %3216 = vmatpush2.bf16.msra.mxu0 %v13904_v36  ;;  %16351 = vst [vmem:[#allocation104_spill] sm:$0xff] %v13929_v43  ;;  %v2492_v36 = vld [vmem:[#allocation11 + $0x228] sm:$0xff]  ;;  %16354 = vst [vmem:[#allocation107_spill] sm:$0xff] %v13938_v53 }
 0x195   :  { %3217 = vmatprep.subr.bf16.mxu0 %v13913_v60  ;;  %3257 = vmatpush2.bf16.msra.mxu1 %v13909_v34  ;;  %v13935_v60 = vcombine.high %v2487_v5, %v2491_v46  ;;  %v13941_v40 = vcombine.high %v2488_v61, %v2492_v36  ;;  %v13948_v14 = vcombine.low %v2488_v61, %v2492_v36 }
 0x196   :  { %3258 = vmatprep.subr.bf16.mxu1 %v13916_v12  ;;  %v13944_v12 = vcombine.low %v2487_v5, %v2491_v46  ;;  %v2486_v46 = vld [vmem:[#allocation11 + $0x1f8] sm:$0xff]  ;;  %v13959_v5 = vcombine.low %v2481_v50, %v2485_v4 }
 0x197   :  { %16353 = vst [vmem:[#allocation106_spill] sm:$0xff] %v13935_v60  ;;  %16355 = vst [vmem:[#allocation108_spill] sm:$0xff] %v13941_v40 }
 0x198   :  { %3218 = vmatpush2.bf16.msra.mxu0 %v13920_v54  ;;  %16356 = vst [vmem:[#allocation109_spill] sm:$0xff] %v13944_v12  ;;  %16357 = vst [vmem:[#allocation110_spill] sm:$0xff] %v13948_v14 }
 0x199   :  { %3219 = vmatprep.subr.bf16.mxu0 %v13923_v39  ;;  %3259 = vmatpush2.bf16.msra.mxu1 %v13926_v3  ;;  %v13954_v39 = vpop.f32.mrf.mxu0 }
 0x19a   :  { %3260 = vmatprep.subr.bf16.mxu1 %v13929_v43  ;;  %v2482_v43 = vld [vmem:[#allocation11 + $0x1d8] sm:$0xff] }
 0x19b   :  { %v13961_v36 = vcombine.low %v2482_v43, %v2486_v46  ;;  %v13963_v61 = vcombine.high %v2482_v43, %v2486_v46 }
 0x19c   :  { %3220 = vmatpush2.bf16.msra.mxu0 %v13932_v45  ;;  %v13956_v45 = vcombine.high %v2481_v50, %v2485_v4  ;;  %v567_v50 = vadd.f32 %v13565_v27, %v13576_v33 }
 0x19d   :  { %3221 = vmatprep.subr.bf16.mxu0 %v13935_v60  ;;  %3261 = vmatpush2.bf16.msra.mxu1 %v13938_v53  ;;  %16359 = vst [vmem:[#allocation112_spill] sm:$0xff] %v13963_v61  ;;  %v13965_v60 = vpop.f32.mrf.mxu1 }
 0x19e   :  { %3262 = vmatprep.subr.bf16.mxu1 %v13941_v40  ;;  %16358 = vst [vmem:[#allocation111_spill] sm:$0xff] %v13956_v45  ;;  %v565_v40 = vadd.f32 %v13553_v22, %v13570_v30  ;;  %v640_v22 = vadd.f32 %v13567_v29, %v13573_v31 }
 0x1a0   :  { %3222 = vmatpush2.bf16.msra.mxu0 %v13944_v12  ;;  %v13969_v12 = vpop.f32.mrf.mxu0 }
 0x1a1   :  { %3263 = vmatpush2.bf16.msra.mxu1 %v13948_v14  ;;  %3273 = vmatprep.subr.bf16.mxu0 %v13956_v45  ;;  %v1185_v35 = vadd.f32 %v13969_v12, %v13696_v21  ;;  %v1256_v12 = vadd.f32 %v13950_v42, %v13693_v28 }
 0x1a2   :  { %3314 = vmatprep.subr.bf16.mxu1 %v13963_v61 }
 0x1a7   :  { %v2095_v53 = vpop.f32.mrf.mxu0  ;;  %v2136_v3 = vpop.f32.mrf.mxu1 }
 0x1a8   :  { %v2229_v4 = vadd.f32 %v2095_v53, %v565_v40  ;;  %v2231_v27 = vadd.f32 %v2136_v3, %v638_v56  ;;  %v2293_v56 = vunpack.c.0.s8 %v2292_v26 }
 0x1a9   :  { %v2097_v14 = vpop.f32.mrf.mxu0  ;;  %v2138_v43 = vpop.f32.mrf.mxu1 }
 0x1aa   :  { %v11632_v46 = vmul.f32 -1.442695, %v2229_v4  ;;  %v2230_v54 = vadd.f32 %v2097_v14, %v567_v50  ;;  %v2232_v30 = vadd.f32 %v2138_v43, %v640_v22  ;;  %v13983_v4 = vsub.s32 %v2293_v56, %v13539_v16  ;;  %v2437_v16 = vld [vmem:[#allocation11 + $0x70] sm:$0xff] }
 0x1ab   :  { %v2099_v34 = vpop.f32.mrf.mxu0  ;;  %v2140_v47 = vpop.f32.mrf.mxu1 }
 0x1ac   :  { %12977 = vpow2.f32 %v11632_v46  ;;  %v11633_v45 = vmul.f32 -1.442695, %v2230_v54  ;;  %v11634_v33 = vmul.f32 -1.442695, %v2232_v30 }
 0x1ad   :  { %v2100_v61 = vpop.f32.mrf.mxu0  ;;  %v2141_v41 = vpop.f32.mrf.mxu1 }
 0x1ae   :  { %12979 = vpow2.f32 %v11633_v45 }
 0x1af   :  { %12981 = vtanh.f32 %v2231_v27 }
 0x1b0   :  { %12983 = vpow2.f32 %v11634_v33 }
 0x1b9   :  { %v12978_v53 = vpop.eup %12977 }
 0x1ba   :  { %v2244_v40 = vadd.f32 1.0, %v12978_v53 }
 0x1bb   :  { %v12980_v14 = vpop.eup %12979 }
 0x1bc   :  { %12985 = vrcp.f32 %v2244_v40  ;;  %v2250_v34 = vadd.f32 1.0, %v12980_v14  ;;  %v12982_v47 = vpop.eup %12981 }
 0x1bd   :  { %v12984_v41 = vpop.eup %12983 }
 0x1be   :  { %12987 = vrcp.f32 %v2250_v34  ;;  %v2257_v29 = vadd.f32 1.0, %v12984_v41  ;;  %v1183_v41 = vadd.f32 %v13954_v39, %v13690_v10 }
 0x1c0   :  { %12989 = vrcp.f32 %v2257_v29 }
 0x1c9   :  { %v12986_v54 = vpop.eup %12985 }
 0x1ca   :  { %v2261_v45 = vmul.f32 %v12986_v54, %v12982_v47 }
 0x1cb   :  { %v12988_v61 = vpop.eup %12987 }
 0x1cc   :  { %v2260_v31 = vmul.f32 0.0, %v12988_v61 }
 0x1cd   :  { %v12990_v3 = vpop.eup %12989 }
 0x1ce   :  { %v13979_v50 = vadd.f32 %v2261_v45, %v2260_v31 }
 0x1d0   :  { %12991 = vtanh.f32 %v13979_v50 }
 0x1dd   :  { %v12992_v43 = vpop.eup %12991 }
 0x1de   :  { %v13985_v46 = vmul.f32 %v12992_v43, %v12990_v3 }
 0x1e0   :  { %v2290_v22 = vcombine.high %v13985_v46, %v13985_v46  ;;  %v2297_v30 = vrot.slane %v13985_v46, %v13983_v4 }
 0x1e2   :  { %v2304_v27 = vrot.slane %v2290_v22, %v13983_v4  ;;  %v2305_v33 = vcombine.high %v2297_v30, %v2297_v30  ;;  %v2313_v53 = vrot.slane %v2297_v30, %v13983_v4  ;;  %11638 = vst.sshfl [vmem:[#allocation4] sm:$0x1 pattern:$0x73625140] %v2297_v30 }
 0x1e4   :  { %v2306_v40 = vcombine.high %v2304_v27, %v2304_v27  ;;  %v2320_v14 = vrot.slane %v2304_v27, %v13983_v4  ;;  %v2327_v34 = vrot.slane %v2305_v33, %v13983_v4  ;;  %v2335_v47 = vcombine.high %v2313_v53, %v2313_v53  ;;  %11639 = vst.sshfl [vmem:[#allocation4 + $0x8] sm:$0x1 pattern:$0x73625140] %v2305_v33 }
 0x1e5   :  { %11640 = vst.sshfl [vmem:[#allocation4 + $0x20] sm:$0x1 pattern:$0x73625140] %v2304_v27 }
 0x1e6   :  { %v2334_v54 = vrot.slane %v2306_v40, %v13983_v4  ;;  %v2336_v45 = vcombine.high %v2320_v14, %v2320_v14  ;;  %v2337_v61 = vcombine.high %v2327_v34, %v2327_v34  ;;  %2349 = vst [vmem:[#allocation4 + $0x10] sm:$0x1] %v2335_v47  ;;  %11641 = vst.sshfl [vmem:[#allocation4 + $0x28] sm:$0x1 pattern:$0x73625140] %v2306_v40 }
 0x1e7   :  { %v2177_v29 = vpop.f32.mrf.mxu0  ;;  %v2218_v31 = vpop.f32.mrf.mxu1  ;;  %v1258_v40 = vadd.f32 %v13965_v60, %v13699_v37 }
 0x1e8   :  { %v2237_v26 = vadd.f32 %v2177_v29, %v1183_v41  ;;  %v2338_v56 = vcombine.high %v2334_v54, %v2334_v54  ;;  %2350 = vst [vmem:[#allocation4 + $0x18] sm:$0x1] %v2337_v61  ;;  %2353 = vst [vmem:[#allocation4 + $0x30] sm:$0x1] %v2336_v45  ;;  %v2239_v14 = vadd.f32 %v2218_v31, %v1256_v12 }
 0x1e9   :  { %v2179_v3 = vpop.f32.mrf.mxu0  ;;  %v2220_v43 = vpop.f32.mrf.mxu1 }
 0x1ea   :  { %v11635_v22 = vmul.f32 -1.442695, %v2237_v26  ;;  %v2238_v30 = vadd.f32 %v2179_v3, %v1185_v35  ;;  %2354 = vst [vmem:[#allocation4 + $0x38] sm:$0x1] %v2338_v56  ;;  %v2240_v21 = vadd.f32 %v2220_v43, %v1258_v40  ;;  %v2473_v43 = vld [vmem:[#allocation11 + $0x190] sm:$0xff] }
 0x1eb   :  { %v2181_v10 = vpop.f32.mrf.mxu0  ;;  %v2222_v39 = vpop.f32.mrf.mxu1 }
 0x1ec   :  { %12993 = vpow2.f32 %v11635_v22  ;;  %v11636_v27 = vmul.f32 -1.442695, %v2238_v30  ;;  %v11637_v34 = vmul.f32 -1.442695, %v2240_v21  ;;  %v2477_v22 = vld [vmem:[#allocation11 + $0x1b0] sm:$0xff] }
 0x1ed   :  { %v2182_v33 = vpop.f32.mrf.mxu0  ;;  %v2223_v53 = vpop.f32.mrf.mxu1  ;;  %v14012_v40 = vcombine.high %v2473_v43, %v2477_v22  ;;  %v2465_v21 = vld [vmem:[#allocation11 + $0x150] sm:$0xff] }
 0x1ee   :  { %12995 = vpow2.f32 %v11636_v27  ;;  %v2474_v27 = vld [vmem:[#allocation11 + $0x198] sm:$0xff]  ;;  %v14010_v53 = vpack.c.bf16 %v13985_v46, %v13985_v46  ;;  %v14018_v46 = vcombine.low %v2473_v43, %v2477_v22  ;;  %v2457_v43 = vld [vmem:[#allocation11 + $0x110] sm:$0xff] }
 0x1ef   :  { %12997 = vtanh.f32 %v2239_v14  ;;  %v2478_v33 = vld [vmem:[#allocation11 + $0x1b8] sm:$0xff]  ;;  %v2461_v22 = vld [vmem:[#allocation11 + $0x130] sm:$0xff] }
 0x1f0   :  { %12999 = vpow2.f32 %v11637_v34 }
 0x1f9   :  { %v12994_v47 = vpop.eup %12993 }
 0x1fa   :  { %v2268_v41 = vadd.f32 1.0, %v12994_v47  ;;  %v2469_v47 = vld [vmem:[#allocation11 + $0x170] sm:$0xff] }
 0x1fb   :  { %v12996_v54 = vpop.eup %12995 }
 0x1fc   :  { %13001 = vrcp.f32 %v2268_v41  ;;  %v2274_v45 = vadd.f32 1.0, %v12996_v54  ;;  %v12998_v61 = vpop.eup %12997  ;;  %v2466_v41 = vld [vmem:[#allocation11 + $0x158] sm:$0xff] }
 0x1fd   :  { %v13000_v29 = vpop.eup %12999  ;;  %v2470_v54 = vld [vmem:[#allocation11 + $0x178] sm:$0xff] }
 0x1fe   :  { %13003 = vrcp.f32 %v2274_v45  ;;  %v2281_v37 = vadd.f32 1.0, %v13000_v29  ;;  %v14020_v45 = vcombine.high %v2474_v27, %v2478_v33 }
 0x200   :  { %13005 = vrcp.f32 %v2281_v37  ;;  %v14028_v37 = vcombine.high %v2465_v21, %v2469_v47 }
 0x209   :  { %v13002_v35 = vpop.eup %13001 }
 0x20a   :  { %v2285_v26 = vmul.f32 %v13002_v35, %v12998_v61 }
 0x20b   :  { %v13004_v56 = vpop.eup %13003 }
 0x20c   :  { %v2284_v60 = vmul.f32 0.0, %v13004_v56  ;;  %v14026_v56 = vcombine.low %v2474_v27, %v2478_v33  ;;  %v14036_v33 = vcombine.low %v2465_v21, %v2469_v47  ;;  %v14048_v21 = vcombine.low %v2457_v43, %v2461_v22 }
 0x20d   :  { %v13006_v28 = vpop.eup %13005 }
 0x20e   :  { %v14004_v3 = vadd.f32 %v2285_v26, %v2284_v60  ;;  %v14030_v60 = vcombine.high %v2466_v41, %v2470_v54  ;;  %16362 = vst [vmem:[#allocation115_spill] sm:$0xff] %v14048_v21 }
 0x210   :  { %13007 = vtanh.f32 %v14004_v3 }
 0x21d   :  { %v13008_v42 = vpop.eup %13007 }
 0x21e   :  { %v2288_v31 = vmul.f32 %v13008_v42, %v13006_v28 }
 0x220   :  { %v2356_v30 = vcombine.high %v2288_v31, %v2288_v31  ;;  %v2363_v10 = vrot.slane %v2288_v31, %v13983_v4  ;;  %v2422_v39 = vpack.c.bf16 %v2288_v31, %v2288_v31 }
 0x222   :  { %v2370_v12 = vrot.slane %v2356_v30, %v13983_v4  ;;  %v2371_v14 = vcombine.high %v2363_v10, %v2363_v10  ;;  %v2379_v34 = vrot.slane %v2363_v10, %v13983_v4  ;;  %11642 = vst.sshfl [vmem:[#allocation5 + $0x7] sm:$0x1 pattern:$0x73625140] %v2363_v10  ;;  %3223 = vmatprep.mubr.bf16.mxu0 %v2422_v39  ;;  %v2458_v30 = vld [vmem:[#allocation11 + $0x118] sm:$0xff] }
 0x223   :  { %3264 = vmatprep.mubr.bf16.mxu1 %v2422_v39  ;;  %3224 = vmatmul.mubr.bf16.vlgmr.msra.gmra.mxu0 %v14010_v53  ;;  %v2462_v10 = vld [vmem:[#allocation11 + $0x138] sm:$0xff] }
 0x224   :  { %3265 = vmatmul.mubr.bf16.vlgmr.msra.gmra.mxu1 %v14010_v53  ;;  %v2372_v61 = vcombine.high %v2370_v12, %v2370_v12  ;;  %v2386_v29 = vrot.slane %v2370_v12, %v13983_v4  ;;  %v2393_v35 = vrot.slane %v2371_v14, %v13983_v4  ;;  %v2401_v26 = vcombine.high %v2379_v34, %v2379_v34  ;;  %v2449_v34 = vld [vmem:[#allocation11 + $0xd0] sm:$0xff] }
 0x225   :  { %11643 = vst.sshfl [vmem:[#allocation5 + $0xf] sm:$0x1 pattern:$0x73625140] %v2371_v14  ;;  %3274 = vmatpush1.bf16.msra.mxu0 %v13959_v5  ;;  %3315 = vmatpush1.bf16.msra.mxu1 %v13961_v36  ;;  %v14045_v14 = vcombine.high %v2458_v30, %v2462_v10  ;;  %v14052_v47 = vcombine.low %v2458_v30, %v2462_v10 }
 0x226   :  { %11644 = vst.sshfl [vmem:[#allocation5 + $0x27] sm:$0x1 pattern:$0x73625140] %v2370_v12  ;;  %3305 = vmatprep.mubr.bf16.mxu0 %v2422_v39  ;;  %v2400_v28 = vrot.slane %v2372_v61, %v13983_v4  ;;  %v2402_v42 = vcombine.high %v2386_v29, %v2386_v29  ;;  %v2403_v31 = vcombine.high %v2393_v35, %v2393_v35  ;;  %2415 = vst [vmem:[#allocation5 + $0x17] sm:$0x1] %v2401_v26 }
 0x227   :  { %11645 = vst.sshfl [vmem:[#allocation5 + $0x2f] sm:$0x1 pattern:$0x73625140] %v2372_v61  ;;  %3346 = vmatprep.mubr.bf16.mxu1 %v2422_v39  ;;  %3275 = vmatprep.subr.bf16.mxu0 %v14012_v40  ;;  %v14040_v39 = vcombine.low %v2466_v41, %v2470_v54  ;;  %v14042_v12 = vcombine.high %v2457_v43, %v2461_v22  ;;  %16361 = vst [vmem:[#allocation114_spill] sm:$0xff] %v14045_v14  ;;  %v2453_v61 = vld [vmem:[#allocation11 + $0xf0] sm:$0xff] }
 0x228   :  { %3316 = vmatprep.subr.bf16.mxu1 %v14020_v45  ;;  %v2404_v27 = vcombine.high %v2400_v28, %v2400_v28  ;;  %2416 = vst [vmem:[#allocation5 + $0x1f] sm:$0x1] %v2403_v31  ;;  %2419 = vst [vmem:[#allocation5 + $0x37] sm:$0x1] %v2402_v42  ;;  %v2450_v29 = vld [vmem:[#allocation11 + $0xd8] sm:$0xff]  ;;  %v14054_v41 = vcombine.high %v2449_v34, %v2453_v61  ;;  %v2441_v26 = vld [vmem:[#allocation11 + $0x90] sm:$0xff]  ;;  %v14060_v43 = vcombine.low %v2449_v34, %v2453_v61 }
 0x229   :  { %3276 = vmatpush1.bf16.msra.mxu0 %v14018_v46  ;;  %3317 = vmatpush1.bf16.msra.mxu1 %v14026_v56  ;;  %16360 = vst [vmem:[#allocation113_spill] sm:$0xff] %v14042_v12  ;;  %v2454_v35 = vld [vmem:[#allocation11 + $0xf8] sm:$0xff]  ;;  %16363 = vst [vmem:[#allocation116_spill] sm:$0xff] %v14052_v47  ;;  %v2445_v28 = vld [vmem:[#allocation11 + $0xb0] sm:$0xff] }
 0x22a   :  { %3277 = vmatprep.subr.bf16.mxu0 %v14028_v37  ;;  %2420 = vst [vmem:[#allocation5 + $0x3f] sm:$0x1] %v2404_v27  ;;  %3318 = vmatprep.subr.bf16.mxu1 %v14030_v60  ;;  %16364 = vst [vmem:[#allocation117_spill] sm:$0xff] %v14054_v41  ;;  %v14057_v54 = vcombine.high %v2450_v29, %v2454_v35  ;;  %v2442_v42 = vld [vmem:[#allocation11 + $0x98] sm:$0xff]  ;;  %v14064_v22 = vcombine.low %v2450_v29, %v2454_v35  ;;  %v2433_v27 = vld [vmem:[#allocation11 + $0x50] sm:$0xff] }
 0x22b   :  { %v2446_v31 = vld [vmem:[#allocation11 + $0xb8] sm:$0xff]  ;;  %16366 = vst [vmem:[#allocation119_spill] sm:$0xff] %v14060_v43  ;;  %v14066_v30 = vcombine.high %v2441_v26, %v2445_v28  ;;  %v14072_v34 = vcombine.low %v2441_v26, %v2445_v28  ;;  %v14078_v29 = vcombine.high %v2433_v27, %v2437_v16  ;;  %v14084_v26 = vcombine.low %v2433_v27, %v2437_v16 }
 0x22c   :  { %16365 = vst [vmem:[#allocation118_spill] sm:$0xff] %v14057_v54  ;;  %16367 = vst [vmem:[#allocation120_spill] sm:$0xff] %v14064_v22  ;;  %v14069_v10 = vcombine.high %v2442_v42, %v2446_v31  ;;  %v14076_v61 = vcombine.low %v2442_v42, %v2446_v31 }
 0x22d   :  { %3278 = vmatpush1.bf16.msra.mxu0 %v14036_v33  ;;  %3319 = vmatpush1.bf16.msra.mxu1 %v14040_v39  ;;  %16368 = vst [vmem:[#allocation121_spill] sm:$0xff] %v14066_v30  ;;  %16370 = vst [vmem:[#allocation123_spill] sm:$0xff] %v14072_v34 }
 0x22e   :  { %3279 = vmatprep.subr.bf16.mxu0 %v14042_v12  ;;  %3320 = vmatprep.subr.bf16.mxu1 %v14045_v14  ;;  %16369 = vst [vmem:[#allocation122_spill] sm:$0xff] %v14069_v10  ;;  %v2434_v14 = vld [vmem:[#allocation11 + $0x58] sm:$0xff]  ;;  %16371 = vst [vmem:[#allocation124_spill] sm:$0xff] %v14076_v61 }
 0x22f   :  { %v2438_v12 = vld [vmem:[#allocation11 + $0x78] sm:$0xff]  ;;  %16372 = vst [vmem:[#allocation125_spill] sm:$0xff] %v14078_v29  ;;  %16374 = vst [vmem:[#allocation127_spill] sm:$0xff] %v14084_v26 }
 0x230   :  { %v14081_v35 = vcombine.high %v2434_v14, %v2438_v12  ;;  %v14088_v28 = vcombine.low %v2434_v14, %v2438_v12 }
 0x231   :  { %3280 = vmatpush1.bf16.msra.mxu0 %v14048_v21  ;;  %3321 = vmatpush1.bf16.msra.mxu1 %v14052_v47  ;;  %v2426_v47 = vld [vmem:[#allocation11 + $0x18] sm:$0xff] }
 0x232   :  { %3281 = vmatprep.subr.bf16.mxu0 %v14054_v41  ;;  %3322 = vmatprep.subr.bf16.mxu1 %v14057_v54  ;;  %16373 = vst [vmem:[#allocation126_spill] sm:$0xff] %v14081_v35  ;;  %v2425_v54 = vld [vmem:[#allocation11 + $0x10] sm:$0xff]  ;;  %v2430_v21 = vld [vmem:[#allocation11 + $0x38] sm:$0xff]  ;;  %16375 = vst [vmem:[#allocation128_spill] sm:$0xff] %v14088_v28 }
 0x233   :  { %v2429_v41 = vld [vmem:[#allocation11 + $0x30] sm:$0xff]  ;;  %v14093_v31 = vcombine.high %v2426_v47, %v2430_v21  ;;  %v14100_v12 = vcombine.low %v2426_v47, %v2430_v21 }
 0x234   :  { %v14090_v42 = vcombine.high %v2425_v54, %v2429_v41  ;;  %v14096_v16 = vcombine.low %v2425_v54, %v2429_v41 }
 0x235   :  { %3282 = vmatpush1.bf16.msra.mxu0 %v14060_v43  ;;  %3323 = vmatpush1.bf16.msra.mxu1 %v14064_v22  ;;  %16377 = vst [vmem:[#allocation130_spill] sm:$0xff] %v14093_v31  ;;  %v2546_v22 = vld [vmem:[#allocation11 + $0x3d8] sm:$0xff]  ;;  %16379 = vst [vmem:[#allocation132_spill] sm:$0xff] %v14100_v12 }
 0x236   :  { %3283 = vmatprep.subr.bf16.mxu0 %v14066_v30  ;;  %3324 = vmatprep.subr.bf16.mxu1 %v14069_v10  ;;  %16376 = vst [vmem:[#allocation129_spill] sm:$0xff] %v14090_v42  ;;  %v2545_v10 = vld [vmem:[#allocation11 + $0x3d0] sm:$0xff]  ;;  %v2550_v43 = vld [vmem:[#allocation11 + $0x3f8] sm:$0xff]  ;;  %16378 = vst [vmem:[#allocation131_spill] sm:$0xff] %v14096_v16 }
 0x237   :  { %v2549_v30 = vld [vmem:[#allocation11 + $0x3f0] sm:$0xff]  ;;  %v14105_v27 = vcombine.high %v2546_v22, %v2550_v43  ;;  %v14112_v21 = vcombine.low %v2546_v22, %v2550_v43 }
 0x238   :  { %v14102_v14 = vcombine.high %v2545_v10, %v2549_v30  ;;  %v14108_v41 = vcombine.low %v2545_v10, %v2549_v30 }
 0x239   :  { %3284 = vmatpush1.bf16.msra.mxu0 %v14072_v34  ;;  %3325 = vmatpush1.bf16.msra.mxu1 %v14076_v61  ;;  %16381 = vst [vmem:[#allocation134_spill] sm:$0xff] %v14105_v27  ;;  %v2538_v61 = vld [vmem:[#allocation11 + $0x398] sm:$0xff]  ;;  %16383 = vst [vmem:[#allocation136_spill] sm:$0xff] %v14112_v21 }
 0x23a   :  { %3285 = vmatprep.subr.bf16.mxu0 %v14078_v29  ;;  %3326 = vmatprep.subr.bf16.mxu1 %v14081_v35  ;;  %16380 = vst [vmem:[#allocation133_spill] sm:$0xff] %v14102_v14  ;;  %v2537_v35 = vld [vmem:[#allocation11 + $0x390] sm:$0xff]  ;;  %v2542_v34 = vld [vmem:[#allocation11 + $0x3b8] sm:$0xff]  ;;  %16382 = vst [vmem:[#allocation135_spill] sm:$0xff] %v14108_v41 }
 0x23b   :  { %v2541_v29 = vld [vmem:[#allocation11 + $0x3b0] sm:$0xff]  ;;  %v14117_v54 = vcombine.high %v2538_v61, %v2542_v34  ;;  %v14124_v43 = vcombine.low %v2538_v61, %v2542_v34 }
 0x23c   :  { %v14114_v47 = vcombine.high %v2537_v35, %v2541_v29  ;;  %v14120_v30 = vcombine.low %v2537_v35, %v2541_v29 }
 0x23d   :  { %3286 = vmatpush1.bf16.msra.mxu0 %v14084_v26  ;;  %3327 = vmatpush1.bf16.msra.mxu1 %v14088_v28  ;;  %16385 = vst [vmem:[#allocation138_spill] sm:$0xff] %v14117_v54  ;;  %v2530_v28 = vld [vmem:[#allocation11 + $0x358] sm:$0xff]  ;;  %16387 = vst [vmem:[#allocation140_spill] sm:$0xff] %v14124_v43 }
 0x23e   :  { %3287 = vmatprep.subr.bf16.mxu0 %v14090_v42  ;;  %3328 = vmatprep.subr.bf16.mxu1 %v14093_v31  ;;  %16384 = vst [vmem:[#allocation137_spill] sm:$0xff] %v14114_v47  ;;  %v2529_v31 = vld [vmem:[#allocation11 + $0x350] sm:$0xff]  ;;  %v2534_v26 = vld [vmem:[#allocation11 + $0x378] sm:$0xff]  ;;  %16386 = vst [vmem:[#allocation139_spill] sm:$0xff] %v14120_v30 }
 0x23f   :  { %v2533_v42 = vld [vmem:[#allocation11 + $0x370] sm:$0xff]  ;;  %v14129_v10 = vcombine.high %v2530_v28, %v2534_v26  ;;  %v14136_v34 = vcombine.low %v2530_v28, %v2534_v26 }
 0x240   :  { %v14126_v22 = vcombine.high %v2529_v31, %v2533_v42  ;;  %v14132_v29 = vcombine.low %v2529_v31, %v2533_v42 }
 0x241   :  { %3288 = vmatpush1.bf16.msra.mxu0 %v14096_v16  ;;  %3329 = vmatpush1.bf16.msra.mxu1 %v14100_v12  ;;  %16389 = vst [vmem:[#allocation142_spill] sm:$0xff] %v14129_v10  ;;  %v2522_v12 = vld [vmem:[#allocation11 + $0x318] sm:$0xff]  ;;  %16391 = vst [vmem:[#allocation144_spill] sm:$0xff] %v14136_v34 }
 0x242   :  { %3289 = vmatprep.subr.bf16.mxu0 %v14102_v14  ;;  %3330 = vmatprep.subr.bf16.mxu1 %v14105_v27  ;;  %16388 = vst [vmem:[#allocation141_spill] sm:$0xff] %v14126_v22  ;;  %v2521_v27 = vld [vmem:[#allocation11 + $0x310] sm:$0xff]  ;;  %v2526_v16 = vld [vmem:[#allocation11 + $0x338] sm:$0xff]  ;;  %16390 = vst [vmem:[#allocation143_spill] sm:$0xff] %v14132_v29 }
 0x243   :  { %v2525_v14 = vld [vmem:[#allocation11 + $0x330] sm:$0xff]  ;;  %v14141_v35 = vcombine.high %v2522_v12, %v2526_v16  ;;  %v14148_v26 = vcombine.low %v2522_v12, %v2526_v16 }
 0x244   :  { %v14138_v61 = vcombine.high %v2521_v27, %v2525_v14  ;;  %v14144_v42 = vcombine.low %v2521_v27, %v2525_v14 }
 0x245   :  { %3290 = vmatpush2.bf16.msra.mxu0 %v14108_v41  ;;  %3331 = vmatpush2.bf16.msra.mxu1 %v14112_v21  ;;  %16393 = vst [vmem:[#allocation146_spill] sm:$0xff] %v14141_v35  ;;  %v2514_v21 = vld [vmem:[#allocation11 + $0x2d8] sm:$0xff]  ;;  %16395 = vst [vmem:[#allocation148_spill] sm:$0xff] %v14148_v26 }
 0x246   :  { %3291 = vmatprep.subr.bf16.mxu0 %v14114_v47  ;;  %3332 = vmatprep.subr.bf16.mxu1 %v14117_v54  ;;  %16392 = vst [vmem:[#allocation145_spill] sm:$0xff] %v14138_v61  ;;  %v2513_v54 = vld [vmem:[#allocation11 + $0x2d0] sm:$0xff]  ;;  %v2518_v41 = vld [vmem:[#allocation11 + $0x2f8] sm:$0xff]  ;;  %16394 = vst [vmem:[#allocation147_spill] sm:$0xff] %v14144_v42 }
 0x247   :  { %v2517_v47 = vld [vmem:[#allocation11 + $0x2f0] sm:$0xff]  ;;  %v14153_v31 = vcombine.high %v2514_v21, %v2518_v41  ;;  %v14160_v16 = vcombine.low %v2514_v21, %v2518_v41 }
 0x248   :  { %v14150_v28 = vcombine.high %v2513_v54, %v2517_v47  ;;  %v14156_v14 = vcombine.low %v2513_v54, %v2517_v47 }
 0x249   :  { %3292 = vmatpush2.bf16.msra.mxu0 %v14120_v30  ;;  %3333 = vmatpush2.bf16.msra.mxu1 %v14124_v43  ;;  %16397 = vst [vmem:[#allocation150_spill] sm:$0xff] %v14153_v31  ;;  %v2506_v43 = vld [vmem:[#allocation11 + $0x298] sm:$0xff] }
 0x24a   :  { %3293 = vmatprep.subr.bf16.mxu0 %v14126_v22  ;;  %3334 = vmatprep.subr.bf16.mxu1 %v14129_v10  ;;  %16396 = vst [vmem:[#allocation149_spill] sm:$0xff] %v14150_v28  ;;  %v2505_v10 = vld [vmem:[#allocation11 + $0x290] sm:$0xff]  ;;  %v2510_v30 = vld [vmem:[#allocation11 + $0x2b8] sm:$0xff] }
 0x24b   :  { %v2509_v22 = vld [vmem:[#allocation11 + $0x2b0] sm:$0xff]  ;;  %v14165_v27 = vcombine.high %v2506_v43, %v2510_v30  ;;  %v14172_v41 = vcombine.low %v2506_v43, %v2510_v30 }
 0x24c   :  { %v14162_v12 = vcombine.high %v2505_v10, %v2509_v22  ;;  %v14168_v47 = vcombine.low %v2505_v10, %v2509_v22 }
 0x24d   :  { %3294 = vmatpush2.bf16.msra.mxu0 %v14132_v29  ;;  %3335 = vmatpush2.bf16.msra.mxu1 %v14136_v34  ;;  %16398 = vst [vmem:[#allocation151_spill] sm:$0xff] %v14165_v27  ;;  %v2498_v34 = vld [vmem:[#allocation11 + $0x258] sm:$0xff] }
 0x24e   :  { %3295 = vmatprep.subr.bf16.mxu0 %v14138_v61  ;;  %3336 = vmatprep.subr.bf16.mxu1 %v14141_v35  ;;  %v2497_v35 = vld [vmem:[#allocation11 + $0x250] sm:$0xff]  ;;  %v2502_v29 = vld [vmem:[#allocation11 + $0x278] sm:$0xff] }
 0x24f   :  { %v2501_v61 = vld [vmem:[#allocation11 + $0x270] sm:$0xff]  ;;  %v14177_v54 = vcombine.high %v2498_v34, %v2502_v29  ;;  %v14184_v30 = vcombine.low %v2498_v34, %v2502_v29  ;;  %v16430_v29 = vld [vmem:[#allocation108_spill] sm:$0xff] }
 0x250   :  { %v14174_v21 = vcombine.high %v2497_v35, %v2501_v61  ;;  %v14180_v22 = vcombine.low %v2497_v35, %v2501_v61  ;;  %v16431_v34 = vld [vmem:[#allocation109_spill] sm:$0xff]  ;;  %v16432_v35 = vld [vmem:[#allocation110_spill] sm:$0xff] }
 0x251   :  { %3296 = vmatpush2.bf16.msra.mxu0 %v14144_v42  ;;  %3337 = vmatpush2.bf16.msra.mxu1 %v14148_v26  ;;  %v2490_v26 = vld [vmem:[#allocation11 + $0x218] sm:$0xff] }
 0x252   :  { %3297 = vmatprep.subr.bf16.mxu0 %v14150_v28  ;;  %3338 = vmatprep.subr.bf16.mxu1 %v14153_v31  ;;  %v2489_v31 = vld [vmem:[#allocation11 + $0x210] sm:$0xff]  ;;  %v2494_v42 = vld [vmem:[#allocation11 + $0x238] sm:$0xff] }
 0x253   :  { %v2493_v28 = vld [vmem:[#allocation11 + $0x230] sm:$0xff]  ;;  %v14189_v10 = vcombine.high %v2490_v26, %v2494_v42  ;;  %v14196_v61 = vcombine.low %v2490_v26, %v2494_v42  ;;  %v16433_v42 = vld [vmem:[#allocation111_spill] sm:$0xff]  ;;  %v16434_v26 = vld [vmem:[#allocation112_spill] sm:$0xff] }
 0x254   :  { %v14186_v43 = vcombine.high %v2489_v31, %v2493_v28 }
 0x255   :  { %3298 = vmatpush2.bf16.msra.mxu0 %v14156_v14  ;;  %3339 = vmatpush2.bf16.msra.mxu1 %v14160_v16 }
 0x256   :  { %3299 = vmatprep.subr.bf16.mxu0 %v14162_v12  ;;  %3340 = vmatprep.subr.bf16.mxu1 %v14165_v27  ;;  %v14192_v27 = vcombine.low %v2489_v31, %v2493_v28 }
 0x259   :  { %3300 = vmatpush2.bf16.msra.mxu0 %v14168_v47  ;;  %3341 = vmatpush2.bf16.msra.mxu1 %v14172_v41 }
 0x25a   :  { %3301 = vmatprep.subr.bf16.mxu0 %v14174_v21  ;;  %3342 = vmatprep.subr.bf16.mxu1 %v14177_v54 }
 0x25d   :  { %3302 = vmatpush2.bf16.msra.mxu0 %v14180_v22  ;;  %3343 = vmatpush2.bf16.msra.mxu1 %v14184_v30 }
 0x25e   :  { %3303 = vmatprep.subr.bf16.mxu0 %v14186_v43  ;;  %3344 = vmatprep.subr.bf16.mxu1 %v14189_v10 }
 0x261   :  { %3304 = vmatpush2.bf16.msra.mxu0 %v14192_v27  ;;  %3345 = vmatpush2.bf16.msra.mxu1 %v14196_v61 }
 0x262   :  { %4321 = vmatprep.subr.bf16.mxu0 %v13664_v48  ;;  %4362 = vmatprep.subr.bf16.mxu1 %v13668_v59  ;;  %v16407_v48 = vld [vmem:[#allocation84_spill] sm:$0xff]  ;;  %v16410_v59 = vld [vmem:[#allocation90_spill] sm:$0xff] }
 0x264   :  { %3306 = vmatmul.mubr.bf16.vlgmr.msra.gmra.mxu0 %v14010_v53  ;;  %3347 = vmatmul.mubr.bf16.vlgmr.msra.gmra.mxu1 %v14010_v53  ;;  %v16429_v53 = vld [vmem:[#allocation106_spill] sm:$0xff] }
 0x265   :  { %4322 = vmatpush1.bf16.msra.mxu0 %v13662_v11  ;;  %4363 = vmatpush1.bf16.msra.mxu1 %v13666_v58  ;;  %v16406_v11 = vld [vmem:[#allocation86_spill] sm:$0xff]  ;;  %v16409_v58 = vld [vmem:[#allocation87_spill] sm:$0xff] }
 0x266   :  { %4323 = vmatprep.subr.bf16.mxu0 %v13670_v62  ;;  %4364 = vmatprep.subr.bf16.mxu1 %v13673_v2  ;;  %v16411_v62 = vld [vmem:[#allocation88_spill] sm:$0xff]  ;;  %v16412_v2 = vld [vmem:[#allocation89_spill] sm:$0xff] }
 0x269   :  { %4324 = vmatpush1.bf16.msra.mxu0 %v13677_v6  ;;  %4365 = vmatpush1.bf16.msra.mxu1 %v13681_v25  ;;  %v16413_v6 = vld [vmem:[#allocation91_spill] sm:$0xff]  ;;  %v16414_v25 = vld [vmem:[#allocation94_spill] sm:$0xff] }
 0x26a   :  { %4325 = vmatprep.subr.bf16.mxu0 %v13707_v13  ;;  %4366 = vmatprep.subr.bf16.mxu1 %v13720_v49  ;;  %v16399_v13 = vld [vmem:[#allocation73_spill] sm:$0xff]  ;;  %v16415_v49 = vld [vmem:[#allocation92_spill] sm:$0xff] }
 0x26d   :  { %4326 = vmatpush1.bf16.msra.mxu0 %v13715_v19  ;;  %4367 = vmatpush1.bf16.msra.mxu1 %v13717_v38  ;;  %v16400_v19 = vld [vmem:[#allocation74_spill] sm:$0xff]  ;;  %v16416_v38 = vld [vmem:[#allocation93_spill] sm:$0xff] }
 0x26e   :  { %4327 = vmatprep.subr.bf16.mxu0 %v13730_v24  ;;  %4368 = vmatprep.subr.bf16.mxu1 %v13744_v23  ;;  %v16401_v24 = vld [vmem:[#allocation77_spill] sm:$0xff]  ;;  %v16405_v23 = vld [vmem:[#allocation83_spill] sm:$0xff] }
 0x271   :  { %4328 = vmatpush1.bf16.msra.mxu0 %v13739_v18  ;;  %4369 = vmatpush1.bf16.msra.mxu1 %v13741_v44  ;;  %v16417_v18 = vld [vmem:[#allocation96_spill] sm:$0xff]  ;;  %v16418_v44 = vld [vmem:[#allocation98_spill] sm:$0xff] }
 0x272   :  { %4329 = vmatprep.subr.bf16.mxu0 %v13754_v8  ;;  %4370 = vmatprep.subr.bf16.mxu1 %v13768_v55  ;;  %v16403_v8 = vld [vmem:[#allocation80_spill] sm:$0xff]  ;;  %v16419_v55 = vld [vmem:[#allocation95_spill] sm:$0xff] }
 0x275   :  { %4330 = vmatpush1.bf16.msra.mxu0 %v13763_v32  ;;  %4371 = vmatpush1.bf16.msra.mxu1 %v13765_v52  ;;  %v16420_v32 = vld [vmem:[#allocation97_spill] sm:$0xff]  ;;  %v16421_v52 = vld [vmem:[#allocation99_spill] sm:$0xff] }
 0x276   :  { %4331 = vmatprep.subr.bf16.mxu0 %v13778_v0  ;;  %4372 = vmatprep.subr.bf16.mxu1 %v13792_v1  ;;  %v16402_v0 = vld [vmem:[#allocation82_spill] sm:$0xff]  ;;  %v16422_v1 = vld [vmem:[#allocation100_spill] sm:$0xff] }
 0x279   :  { %4332 = vmatpush1.bf16.msra.mxu0 %v13787_v7  ;;  %4373 = vmatpush1.bf16.msra.mxu1 %v13789_v20  ;;  %v16423_v7 = vld [vmem:[#allocation101_spill] sm:$0xff]  ;;  %v16424_v20 = vld [vmem:[#allocation103_spill] sm:$0xff] }
 0x27a   :  { %4333 = vmatprep.subr.bf16.mxu0 %v13802_v57  ;;  %4374 = vmatprep.subr.bf16.mxu1 %v13816_v9  ;;  %v16404_v57 = vld [vmem:[#allocation81_spill] sm:$0xff]  ;;  %v16425_v9 = vld [vmem:[#allocation102_spill] sm:$0xff] }
 0x27d   :  { %4334 = vmatpush1.bf16.msra.mxu0 %v13811_v63  ;;  %4375 = vmatpush1.bf16.msra.mxu1 %v13813_v15  ;;  %v16426_v63 = vld [vmem:[#allocation104_spill] sm:$0xff]  ;;  %v16427_v15 = vld [vmem:[#allocation105_spill] sm:$0xff] }
 0x27e   :  { %4335 = vmatprep.subr.bf16.mxu0 %v13826_v51  ;;  %4376 = vmatprep.subr.bf16.mxu1 %v13840_v17  ;;  %v16408_v51 = vld [vmem:[#allocation85_spill] sm:$0xff]  ;;  %v16428_v17 = vld [vmem:[#allocation107_spill] sm:$0xff] }
 0x281   :  { %4336 = vmatpush1.bf16.msra.mxu0 %v16399_v13  ;;  %4377 = vmatpush1.bf16.msra.mxu1 %v16400_v19  ;;  %v16435_v13 = vld [vmem:[#allocation21_spill] sm:$0xff] }
 0x282   :  { %4337 = vmatprep.subr.bf16.mxu0 %v16401_v24  ;;  %4378 = vmatprep.subr.bf16.mxu1 %v16402_v0 }
 0x285   :  { %4338 = vmatpush2.bf16.msra.mxu0 %v16403_v8  ;;  %4379 = vmatpush2.bf16.msra.mxu1 %v16404_v57  ;;  %v16436_v57 = vld [vmem:[#allocation23_spill] sm:$0xff] }
 0x286   :  { %4339 = vmatprep.subr.bf16.mxu0 %v16405_v23  ;;  %4380 = vmatprep.subr.bf16.mxu1 %v16406_v11 }
 0x289   :  { %4340 = vmatpush2.bf16.msra.mxu0 %v16407_v48  ;;  %4381 = vmatpush2.bf16.msra.mxu1 %v16408_v51 }
 0x28a   :  { %4341 = vmatprep.subr.bf16.mxu0 %v16409_v58  ;;  %4382 = vmatprep.subr.bf16.mxu1 %v16410_v59 }
 0x28d   :  { %4342 = vmatpush2.bf16.msra.mxu0 %v16411_v62  ;;  %4383 = vmatpush2.bf16.msra.mxu1 %v16412_v2  ;;  %v16437_v62 = vld [vmem:[#allocation24_spill] sm:$0xff] }
 0x28e   :  { %4343 = vmatprep.subr.bf16.mxu0 %v16413_v6  ;;  %4384 = vmatprep.subr.bf16.mxu1 %v16414_v25  ;;  %v16438_v6 = vld [vmem:[#allocation22_spill] sm:$0xff] }
 0x291   :  { %4344 = vmatpush2.bf16.msra.mxu0 %v16415_v49  ;;  %4385 = vmatpush2.bf16.msra.mxu1 %v16416_v38 }
 0x292   :  { %4345 = vmatprep.subr.bf16.mxu0 %v16417_v18  ;;  %4386 = vmatprep.subr.bf16.mxu1 %v16418_v44 }
 0x295   :  { %4346 = vmatpush2.bf16.msra.mxu0 %v16419_v55  ;;  %4387 = vmatpush2.bf16.msra.mxu1 %v16420_v32 }
 0x296   :  { %4347 = vmatprep.subr.bf16.mxu0 %v16421_v52  ;;  %4388 = vmatprep.subr.bf16.mxu1 %v16422_v1 }
 0x299   :  { %4348 = vmatpush2.bf16.msra.mxu0 %v16423_v7  ;;  %4389 = vmatpush2.bf16.msra.mxu1 %v16424_v20 }
 0x29a   :  { %4349 = vmatprep.subr.bf16.mxu0 %v16425_v9  ;;  %4390 = vmatprep.subr.bf16.mxu1 %v16426_v63 }
 0x29d   :  { %4350 = vmatpush2.bf16.msra.mxu0 %v16427_v15  ;;  %4391 = vmatpush2.bf16.msra.mxu1 %v16428_v17 }
 0x29e   :  { %4351 = vmatprep.subr.bf16.mxu0 %v16429_v53  ;;  %4392 = vmatprep.subr.bf16.mxu1 %v16430_v29 }
 0x2a1   :  { %4352 = vmatpush2.bf16.msra.mxu0 %v16431_v34  ;;  %4393 = vmatpush2.bf16.msra.mxu1 %v16432_v35 }
 0x2a2   :  { %4403 = vmatprep.subr.bf16.mxu0 %v16433_v42  ;;  %4444 = vmatprep.subr.bf16.mxu1 %v16434_v26 }
 0x2e3   :  { %v3225_v28 = vpop.f32.mrf.mxu0 }
 0x2e4   :  { %v3266_v31 = vpop.f32.mrf.mxu1  ;;  %v3359_v19 = vadd.f32 %v3225_v28, %v16435_v13 }
 0x2e5   :  { %v3227_v24 = vpop.f32.mrf.mxu0  ;;  %v3361_v25 = vadd.f32 %v3266_v31, %v16438_v6 }
 0x2e6   :  { %v3268_v0 = vpop.f32.mrf.mxu1  ;;  %v11774_v8 = vmul.f32 -1.442695, %v3359_v19  ;;  %v3360_v23 = vadd.f32 %v3227_v24, %v16436_v57 }
 0x2e7   :  { %v3229_v11 = vpop.f32.mrf.mxu0  ;;  %v3362_v2 = vadd.f32 %v3268_v0, %v16437_v62  ;;  %v16440_v62 = vld [vmem:[#allocation78_spill] sm:$0xff] }
 0x2e8   :  { %v3270_v48 = vpop.f32.mrf.mxu1  ;;  %13009 = vpow2.f32 %v11774_v8  ;;  %v11775_v51 = vmul.f32 -1.442695, %v3360_v23  ;;  %v16439_v23 = vld [vmem:[#allocation75_spill] sm:$0xff] }
 0x2e9   :  { %v3230_v58 = vpop.f32.mrf.mxu0  ;;  %v11776_v49 = vmul.f32 -1.442695, %v3362_v2 }
 0x2ea   :  { %v3271_v59 = vpop.f32.mrf.mxu1  ;;  %13011 = vpow2.f32 %v11775_v51 }
 0x2eb   :  { %13013 = vtanh.f32 %v3361_v25 }
 0x2ec   :  { %13015 = vpow2.f32 %v11776_v49 }
 0x2f5   :  { %v13010_v38 = vpop.eup %13009 }
 0x2f6   :  { %v3374_v18 = vadd.f32 1.0, %v13010_v38 }
 0x2f7   :  { %v13012_v44 = vpop.eup %13011 }
 0x2f8   :  { %13017 = vrcp.f32 %v3374_v18  ;;  %v3380_v55 = vadd.f32 1.0, %v13012_v44  ;;  %v13014_v32 = vpop.eup %13013 }
 0x2f9   :  { %v13016_v52 = vpop.eup %13015 }
 0x2fa   :  { %13019 = vrcp.f32 %v3380_v55  ;;  %v3387_v9 = vadd.f32 1.0, %v13016_v52  ;;  %v16441_v55 = vld [vmem:[#allocation79_spill] sm:$0xff]  ;;  %v16442_v52 = vld [vmem:[#allocation76_spill] sm:$0xff] }
 0x2fc   :  { %13021 = vrcp.f32 %v3387_v9 }
 0x305   :  { %v13018_v1 = vpop.eup %13017 }
 0x306   :  { %v3391_v7 = vmul.f32 %v13018_v1, %v13014_v32 }
 0x307   :  { %v13020_v20 = vpop.eup %13019 }
 0x308   :  { %v3390_v63 = vmul.f32 %v13020_v20, %v13979_v50 }
 0x309   :  { %v13022_v17 = vpop.eup %13021 }
 0x30a   :  { %v14274_v15 = vadd.f32 %v3391_v7, %v3390_v63 }
 0x30c   :  { %13023 = vtanh.f32 %v14274_v15 }
 0x319   :  { %v13024_v53 = vpop.eup %13023 }
 0x31a   :  { %v14277_v29 = vmul.f32 %v13024_v53, %v13022_v17 }
 0x31c   :  { %v3420_v34 = vcombine.high %v14277_v29, %v14277_v29  ;;  %v3427_v35 = vrot.slane %v14277_v29, %v13983_v4 }
 0x31e   :  { %v3434_v42 = vrot.slane %v3420_v34, %v13983_v4  ;;  %v3435_v26 = vcombine.high %v3427_v35, %v3427_v35  ;;  %v3443_v50 = vrot.slane %v3427_v35, %v13983_v4  ;;  %11780 = vst.sshfl [vmem:[#allocation4 + $0x1] sm:$0x1 pattern:$0x73625140] %v3427_v35 }
 0x320   :  { %v3436_v28 = vcombine.high %v3434_v42, %v3434_v42  ;;  %v3450_v31 = vrot.slane %v3434_v42, %v13983_v4  ;;  %v3457_v13 = vrot.slane %v3435_v26, %v13983_v4  ;;  %v3465_v19 = vcombine.high %v3443_v50, %v3443_v50  ;;  %11781 = vst.sshfl [vmem:[#allocation4 + $0x9] sm:$0x1 pattern:$0x73625140] %v3435_v26 }
 0x321   :  { %11782 = vst.sshfl [vmem:[#allocation4 + $0x21] sm:$0x1 pattern:$0x73625140] %v3434_v42 }
 0x322   :  { %v3464_v24 = vrot.slane %v3436_v28, %v13983_v4  ;;  %v3466_v0 = vcombine.high %v3450_v31, %v3450_v31  ;;  %v3467_v8 = vcombine.high %v3457_v13, %v3457_v13  ;;  %3479 = vst [vmem:[#allocation4 + $0x11] sm:$0x1] %v3465_v19  ;;  %11783 = vst.sshfl [vmem:[#allocation4 + $0x29] sm:$0x1 pattern:$0x73625140] %v3436_v28 }
 0x324   :  { %v3307_v57 = vpop.f32.mrf.mxu0  ;;  %v3348_v48 = vpop.f32.mrf.mxu1  ;;  %v3468_v51 = vcombine.high %v3464_v24, %v3464_v24  ;;  %3480 = vst [vmem:[#allocation4 + $0x19] sm:$0x1] %v3467_v8  ;;  %3483 = vst [vmem:[#allocation4 + $0x31] sm:$0x1] %v3466_v0 }
 0x325   :  { %v3367_v11 = vadd.f32 %v3307_v57, %v16439_v23  ;;  %v3369_v1 = vadd.f32 %v3348_v48, %v16442_v52  ;;  %v14299_v23 = vpack.c.bf16 %v14277_v29, %v14277_v29  ;;  %v16459_v52 = vld [vmem:[#allocation129_spill] sm:$0xff] }
 0x326   :  { %v3309_v58 = vpop.f32.mrf.mxu0  ;;  %v3350_v6 = vpop.f32.mrf.mxu1  ;;  %3484 = vst [vmem:[#allocation4 + $0x39] sm:$0x1] %v3468_v51 }
 0x327   :  { %v11777_v59 = vmul.f32 -1.442695, %v3367_v11  ;;  %v3368_v2 = vadd.f32 %v3309_v58, %v16440_v62  ;;  %v3370_v32 = vadd.f32 %v3350_v6, %v16441_v55  ;;  %v16457_v55 = vld [vmem:[#allocation127_spill] sm:$0xff] }
 0x328   :  { %v3311_v25 = vpop.f32.mrf.mxu0  ;;  %v3352_v38 = vpop.f32.mrf.mxu1 }
 0x329   :  { %13025 = vpow2.f32 %v11777_v59  ;;  %v11778_v49 = vmul.f32 -1.442695, %v3368_v2  ;;  %v11779_v7 = vmul.f32 -1.442695, %v3370_v32  ;;  %v16454_v38 = vld [vmem:[#allocation124_spill] sm:$0xff] }
 0x32a   :  { %v3312_v18 = vpop.f32.mrf.mxu0  ;;  %v3353_v44 = vpop.f32.mrf.mxu1  ;;  %v16458_v32 = vld [vmem:[#allocation128_spill] sm:$0xff] }
 0x32b   :  { %13027 = vpow2.f32 %v11778_v49  ;;  %v16450_v49 = vld [vmem:[#allocation120_spill] sm:$0xff]  ;;  %v16455_v18 = vld [vmem:[#allocation125_spill] sm:$0xff]  ;;  %v16456_v44 = vld [vmem:[#allocation126_spill] sm:$0xff] }
 0x32c   :  { %13029 = vtanh.f32 %v3369_v1  ;;  %v16460_v1 = vld [vmem:[#allocation130_spill] sm:$0xff] }
 0x32d   :  { %13031 = vpow2.f32 %v11779_v7  ;;  %v16461_v7 = vld [vmem:[#allocation131_spill] sm:$0xff] }
 0x336   :  { %v13026_v20 = vpop.eup %13025 }
 0x337   :  { %v3398_v9 = vadd.f32 1.0, %v13026_v20  ;;  %v16462_v20 = vld [vmem:[#allocation132_spill] sm:$0xff] }
 0x338   :  { %v13028_v63 = vpop.eup %13027 }
 0x339   :  { %13033 = vrcp.f32 %v3398_v9  ;;  %v3404_v17 = vadd.f32 1.0, %v13028_v63  ;;  %v13030_v53 = vpop.eup %13029  ;;  %v16463_v9 = vld [vmem:[#allocation133_spill] sm:$0xff]  ;;  %v16464_v63 = vld [vmem:[#allocation134_spill] sm:$0xff] }
 0x33a   :  { %v13032_v34 = vpop.eup %13031 }
 0x33b   :  { %13035 = vrcp.f32 %v3404_v17  ;;  %v3411_v50 = vadd.f32 1.0, %v13032_v34  ;;  %v16465_v17 = vld [vmem:[#allocation135_spill] sm:$0xff]  ;;  %v16467_v34 = vld [vmem:[#allocation137_spill] sm:$0xff] }
 0x33d   :  { %13037 = vrcp.f32 %v3411_v50  ;;  %v16471_v50 = vld [vmem:[#allocation141_spill] sm:$0xff] }
 0x346   :  { %v13034_v35 = vpop.eup %13033 }
 0x347   :  { %v3415_v42 = vmul.f32 %v13034_v35, %v13030_v53  ;;  %v16466_v53 = vld [vmem:[#allocation136_spill] sm:$0xff]  ;;  %v16468_v35 = vld [vmem:[#allocation138_spill] sm:$0xff] }
 0x348   :  { %v13036_v26 = vpop.eup %13035 }
 0x349   :  { %v3414_v28 = vmul.f32 %v13036_v26, %v14004_v3  ;;  %v16470_v26 = vld [vmem:[#allocation140_spill] sm:$0xff] }
 0x34a   :  { %v13038_v13 = vpop.eup %13037 }
 0x34b   :  { %v14293_v31 = vadd.f32 %v3415_v42, %v3414_v28  ;;  %v16469_v42 = vld [vmem:[#allocation139_spill] sm:$0xff]  ;;  %v16472_v28 = vld [vmem:[#allocation142_spill] sm:$0xff] }
 0x34d   :  { %13039 = vtanh.f32 %v14293_v31 }
 0x35a   :  { %v13040_v19 = vpop.eup %13039 }
 0x35b   :  { %v3418_v24 = vmul.f32 %v13040_v19, %v13038_v13  ;;  %v16473_v13 = vld [vmem:[#allocation143_spill] sm:$0xff]  ;;  %v16474_v19 = vld [vmem:[#allocation144_spill] sm:$0xff] }
 0x35d   :  { %v3486_v0 = vcombine.high %v3418_v24, %v3418_v24  ;;  %v3493_v8 = vrot.slane %v3418_v24, %v13983_v4  ;;  %v3552_v57 = vpack.c.bf16 %v3418_v24, %v3418_v24  ;;  %v16475_v24 = vld [vmem:[#allocation145_spill] sm:$0xff] }
 0x35f   :  { %v3500_v11 = vrot.slane %v3486_v0, %v13983_v4  ;;  %v3501_v48 = vcombine.high %v3493_v8, %v3493_v8  ;;  %v3509_v3 = vrot.slane %v3493_v8, %v13983_v4  ;;  %11784 = vst.sshfl [vmem:[#allocation5 + $0x6] sm:$0x1 pattern:$0x73625140] %v3493_v8  ;;  %4353 = vmatprep.mubr.bf16.mxu0 %v3552_v57  ;;  %v16476_v0 = vld [vmem:[#allocation146_spill] sm:$0xff]  ;;  %v16477_v8 = vld [vmem:[#allocation147_spill] sm:$0xff] }
 0x360   :  { %4394 = vmatprep.mubr.bf16.mxu1 %v3552_v57  ;;  %4354 = vmatmul.mubr.bf16.vlgmr.msra.gmra.mxu0 %v14299_v23 }
 0x361   :  { %4395 = vmatmul.mubr.bf16.vlgmr.msra.gmra.mxu1 %v14299_v23  ;;  %v3502_v51 = vcombine.high %v3500_v11, %v3500_v11  ;;  %v3516_v58 = vrot.slane %v3500_v11, %v13983_v4  ;;  %v3523_v59 = vrot.slane %v3501_v48, %v13983_v4  ;;  %v3531_v62 = vcombine.high %v3509_v3, %v3509_v3  ;;  %v16481_v3 = vld [vmem:[#allocation151_spill] sm:$0xff] }
 0x362   :  { %11785 = vst.sshfl [vmem:[#allocation5 + $0xe] sm:$0x1 pattern:$0x73625140] %v3501_v48  ;;  %4404 = vmatpush1.bf16.msra.mxu0 %v13959_v5  ;;  %4445 = vmatpush1.bf16.msra.mxu1 %v13961_v36  ;;  %v16443_v5 = vld [vmem:[#allocation113_spill] sm:$0xff]  ;;  %v16444_v36 = vld [vmem:[#allocation114_spill] sm:$0xff] }
 0x363   :  { %11786 = vst.sshfl [vmem:[#allocation5 + $0x26] sm:$0x1 pattern:$0x73625140] %v3500_v11  ;;  %4435 = vmatprep.mubr.bf16.mxu0 %v3552_v57  ;;  %v3530_v29 = vrot.slane %v3502_v51, %v13983_v4  ;;  %v3532_v2 = vcombine.high %v3516_v58, %v3516_v58  ;;  %v3533_v6 = vcombine.high %v3523_v59, %v3523_v59  ;;  %3545 = vst [vmem:[#allocation5 + $0x16] sm:$0x1] %v3531_v62 }
 0x364   :  { %11787 = vst.sshfl [vmem:[#allocation5 + $0x2e] sm:$0x1 pattern:$0x73625140] %v3502_v51  ;;  %4476 = vmatprep.mubr.bf16.mxu1 %v3552_v57  ;;  %4405 = vmatprep.subr.bf16.mxu0 %v14012_v40  ;;  %v16445_v40 = vld [vmem:[#allocation115_spill] sm:$0xff]  ;;  %v16478_v57 = vld [vmem:[#allocation148_spill] sm:$0xff] }
 0x365   :  { %4446 = vmatprep.subr.bf16.mxu1 %v14020_v45  ;;  %v3534_v25 = vcombine.high %v3530_v29, %v3530_v29  ;;  %3546 = vst [vmem:[#allocation5 + $0x1e] sm:$0x1] %v3533_v6  ;;  %3549 = vst [vmem:[#allocation5 + $0x36] sm:$0x1] %v3532_v2  ;;  %v16446_v45 = vld [vmem:[#allocation116_spill] sm:$0xff]  ;;  %v16479_v11 = vld [vmem:[#allocation149_spill] sm:$0xff] }
 0x366   :  { %4406 = vmatpush1.bf16.msra.mxu0 %v14018_v46  ;;  %4447 = vmatpush1.bf16.msra.mxu1 %v14026_v56  ;;  %v16447_v46 = vld [vmem:[#allocation117_spill] sm:$0xff]  ;;  %v16448_v56 = vld [vmem:[#allocation118_spill] sm:$0xff]  ;;  %v4723_v59 = vld [vmem:[#allocation11 + $0x140] sm:$0xff] }
 0x367   :  { %4407 = vmatprep.subr.bf16.mxu0 %v14028_v37  ;;  %3550 = vst [vmem:[#allocation5 + $0x3e] sm:$0x1] %v3534_v25  ;;  %4448 = vmatprep.subr.bf16.mxu1 %v14030_v60  ;;  %v16449_v37 = vld [vmem:[#allocation119_spill] sm:$0xff]  ;;  %v16451_v60 = vld [vmem:[#allocation121_spill] sm:$0xff]  ;;  %v16480_v48 = vld [vmem:[#allocation150_spill] sm:$0xff] }
 0x368   :  { %v4727_v62 = vld [vmem:[#allocation11 + $0x160] sm:$0xff]  ;;  %v4724_v29 = vld [vmem:[#allocation11 + $0x148] sm:$0xff] }
 0x369   :  { %v14396_v2 = vcombine.high %v4723_v59, %v4727_v62  ;;  %v4728_v6 = vld [vmem:[#allocation11 + $0x168] sm:$0xff]  ;;  %v14398_v25 = vcombine.low %v4723_v59, %v4727_v62 }
 0x36a   :  { %4408 = vmatpush1.bf16.msra.mxu0 %v14036_v33  ;;  %4449 = vmatpush1.bf16.msra.mxu1 %v14040_v39  ;;  %v16452_v33 = vld [vmem:[#allocation122_spill] sm:$0xff]  ;;  %v16453_v39 = vld [vmem:[#allocation123_spill] sm:$0xff] }
 0x36b   :  { %4409 = vmatprep.subr.bf16.mxu0 %v16443_v5  ;;  %4450 = vmatprep.subr.bf16.mxu1 %v16444_v36  ;;  %v14400_v5 = vcombine.low %v4724_v29, %v4728_v6  ;;  %v14402_v36 = vcombine.high %v4724_v29, %v4728_v6  ;;  %v4795_v6 = vld [vmem:[#allocation11 + $0x380] sm:$0xff] }
 0x36e   :  { %4410 = vmatpush1.bf16.msra.mxu0 %v16445_v40  ;;  %4451 = vmatpush1.bf16.msra.mxu1 %v16446_v45  ;;  %v4715_v40 = vld [vmem:[#allocation11 + $0x100] sm:$0xff] }
 0x36f   :  { %4411 = vmatprep.subr.bf16.mxu0 %v16447_v46  ;;  %4452 = vmatprep.subr.bf16.mxu1 %v16448_v56  ;;  %v4719_v45 = vld [vmem:[#allocation11 + $0x120] sm:$0xff]  ;;  %v4716_v46 = vld [vmem:[#allocation11 + $0x108] sm:$0xff] }
 0x370   :  { %v14408_v56 = vcombine.high %v4715_v40, %v4719_v45 }
 0x372   :  { %4412 = vmatpush1.bf16.msra.mxu0 %v16449_v37  ;;  %4453 = vmatpush1.bf16.msra.mxu1 %v16450_v49  ;;  %v4720_v37 = vld [vmem:[#allocation11 + $0x128] sm:$0xff]  ;;  %v14410_v49 = vcombine.low %v4715_v40, %v4719_v45  ;;  %v4799_v40 = vld [vmem:[#allocation11 + $0x3a0] sm:$0xff] }
 0x373   :  { %4413 = vmatprep.subr.bf16.mxu0 %v16451_v60  ;;  %4454 = vmatprep.subr.bf16.mxu1 %v16452_v33  ;;  %v14412_v60 = vcombine.low %v4716_v46, %v4720_v37  ;;  %v14414_v33 = vcombine.high %v4716_v46, %v4720_v37  ;;  %v4796_v45 = vld [vmem:[#allocation11 + $0x388] sm:$0xff]  ;;  %v14480_v46 = vcombine.high %v4795_v6, %v4799_v40 }
 0x374   :  { %v4800_v37 = vld [vmem:[#allocation11 + $0x3a8] sm:$0xff] }
 0x376   :  { %4414 = vmatpush1.bf16.msra.mxu0 %v16453_v39  ;;  %4455 = vmatpush1.bf16.msra.mxu1 %v16454_v38  ;;  %v4707_v39 = vld [vmem:[#allocation11 + $0xc0] sm:$0xff] }
 0x377   :  { %4415 = vmatprep.subr.bf16.mxu0 %v16455_v18  ;;  %4456 = vmatprep.subr.bf16.mxu1 %v16456_v44  ;;  %v4711_v38 = vld [vmem:[#allocation11 + $0xe0] sm:$0xff]  ;;  %v4708_v18 = vld [vmem:[#allocation11 + $0xc8] sm:$0xff] }
 0x378   :  { %v14420_v44 = vcombine.high %v4707_v39, %v4711_v38 }
 0x37a   :  { %4416 = vmatpush1.bf16.msra.mxu0 %v16457_v55  ;;  %4457 = vmatpush1.bf16.msra.mxu1 %v16458_v32  ;;  %v4712_v55 = vld [vmem:[#allocation11 + $0xe8] sm:$0xff]  ;;  %v14422_v32 = vcombine.low %v4707_v39, %v4711_v38  ;;  %v14482_v39 = vcombine.low %v4795_v6, %v4799_v40  ;;  %v14484_v38 = vcombine.low %v4796_v45, %v4800_v37  ;;  %v4775_v6 = vld [vmem:[#allocation11 + $0x2e0] sm:$0xff] }
 0x37b   :  { %4417 = vmatprep.subr.bf16.mxu0 %v16459_v52  ;;  %4458 = vmatprep.subr.bf16.mxu1 %v16460_v1  ;;  %v14424_v52 = vcombine.low %v4708_v18, %v4712_v55  ;;  %v14426_v1 = vcombine.high %v4708_v18, %v4712_v55  ;;  %v14486_v18 = vcombine.high %v4796_v45, %v4800_v37  ;;  %v4787_v55 = vld [vmem:[#allocation11 + $0x340] sm:$0xff]  ;;  %v4772_v40 = vld [vmem:[#allocation11 + $0x2c8] sm:$0xff] }
 0x37c   :  { %16482 = vst [vmem:[#allocation73_spill] sm:$0xff] %v14482_v39  ;;  %16483 = vst [vmem:[#allocation74_spill] sm:$0xff] %v14484_v38 }
 0x37d   :  { %16484 = vst [vmem:[#allocation77_spill] sm:$0xff] %v14486_v18 }
 0x37e   :  { %4418 = vmatpush1.bf16.msra.mxu0 %v16461_v7  ;;  %4459 = vmatpush1.bf16.msra.mxu1 %v16462_v20  ;;  %v4699_v7 = vld [vmem:[#allocation11 + $0x80] sm:$0xff] }
 0x37f   :  { %4419 = vmatprep.subr.bf16.mxu0 %v16463_v9  ;;  %4460 = vmatprep.subr.bf16.mxu1 %v16464_v63  ;;  %v4703_v20 = vld [vmem:[#allocation11 + $0xa0] sm:$0xff]  ;;  %v4700_v9 = vld [vmem:[#allocation11 + $0x88] sm:$0xff] }
 0x380   :  { %v14432_v63 = vcombine.high %v4699_v7, %v4703_v20 }
 0x382   :  { %4420 = vmatpush2.bf16.msra.mxu0 %v16465_v17  ;;  %4461 = vmatpush2.bf16.msra.mxu1 %v16466_v53  ;;  %v4704_v17 = vld [vmem:[#allocation11 + $0xa8] sm:$0xff]  ;;  %v14434_v53 = vcombine.low %v4699_v7, %v4703_v20  ;;  %v4791_v7 = vld [vmem:[#allocation11 + $0x360] sm:$0xff] }
 0x383   :  { %4421 = vmatprep.subr.bf16.mxu0 %v16467_v34  ;;  %4462 = vmatprep.subr.bf16.mxu1 %v16468_v35  ;;  %v14436_v34 = vcombine.low %v4700_v9, %v4704_v17  ;;  %v14438_v35 = vcombine.high %v4700_v9, %v4704_v17  ;;  %v4788_v20 = vld [vmem:[#allocation11 + $0x348] sm:$0xff]  ;;  %v14492_v9 = vcombine.high %v4787_v55, %v4791_v7 }
 0x384   :  { %v4792_v17 = vld [vmem:[#allocation11 + $0x368] sm:$0xff] }
 0x385   :  { %16485 = vst [vmem:[#allocation82_spill] sm:$0xff] %v14492_v9 }
 0x386   :  { %4422 = vmatpush2.bf16.msra.mxu0 %v16469_v42  ;;  %4463 = vmatpush2.bf16.msra.mxu1 %v16470_v26  ;;  %v4691_v42 = vld [vmem:[#allocation11 + $0x40] sm:$0xff] }
 0x387   :  { %4423 = vmatprep.subr.bf16.mxu0 %v16471_v50  ;;  %4464 = vmatprep.subr.bf16.mxu1 %v16472_v28  ;;  %v4695_v26 = vld [vmem:[#allocation11 + $0x60] sm:$0xff]  ;;  %v4692_v50 = vld [vmem:[#allocation11 + $0x48] sm:$0xff] }
 0x388   :  { %v14444_v28 = vcombine.high %v4691_v42, %v4695_v26 }
 0x38a   :  { %4424 = vmatpush2.bf16.msra.mxu0 %v16473_v13  ;;  %4465 = vmatpush2.bf16.msra.mxu1 %v16474_v19  ;;  %v4696_v13 = vld [vmem:[#allocation11 + $0x68] sm:$0xff]  ;;  %v14446_v19 = vcombine.low %v4691_v42, %v4695_v26  ;;  %v14494_v42 = vcombine.low %v4787_v55, %v4791_v7  ;;  %v14496_v26 = vcombine.low %v4788_v20, %v4792_v17  ;;  %v4763_v7 = vld [vmem:[#allocation11 + $0x280] sm:$0xff] }
 0x38b   :  { %4425 = vmatprep.subr.bf16.mxu0 %v16475_v24  ;;  %4466 = vmatprep.subr.bf16.mxu1 %v16476_v0  ;;  %v14448_v24 = vcombine.low %v4692_v50, %v4696_v13  ;;  %v14450_v0 = vcombine.high %v4692_v50, %v4696_v13  ;;  %v14498_v50 = vcombine.high %v4788_v20, %v4792_v17  ;;  %v4779_v13 = vld [vmem:[#allocation11 + $0x300] sm:$0xff]  ;;  %v4776_v55 = vld [vmem:[#allocation11 + $0x2e8] sm:$0xff] }
 0x38c   :  { %16486 = vst [vmem:[#allocation80_spill] sm:$0xff] %v14494_v42  ;;  %16487 = vst [vmem:[#allocation81_spill] sm:$0xff] %v14496_v26  ;;  %v4767_v20 = vld [vmem:[#allocation11 + $0x2a0] sm:$0xff]  ;;  %v14520_v17 = vcombine.low %v4772_v40, %v4776_v55 }
 0x38d   :  { %16488 = vst [vmem:[#allocation83_spill] sm:$0xff] %v14498_v50 }
 0x38e   :  { %4426 = vmatpush2.bf16.msra.mxu0 %v16477_v8  ;;  %4467 = vmatpush2.bf16.msra.mxu1 %v16478_v57  ;;  %v4683_v8 = vld [vmem:[#allocation11] sm:$0xff]  ;;  %16495 = vst [vmem:[#allocation89_spill] sm:$0xff] %v14520_v17 }
 0x38f   :  { %4427 = vmatprep.subr.bf16.mxu0 %v16479_v11  ;;  %4468 = vmatprep.subr.bf16.mxu1 %v16480_v48  ;;  %v4687_v57 = vld [vmem:[#allocation11 + $0x20] sm:$0xff]  ;;  %v4684_v11 = vld [vmem:[#allocation11 + $0x8] sm:$0xff] }
 0x390   :  { %v14456_v48 = vcombine.high %v4683_v8, %v4687_v57 }
 0x392   :  { %4428 = vmatpush2.bf16.msra.mxu0 %v14156_v14  ;;  %4469 = vmatpush2.bf16.msra.mxu1 %v14160_v16  ;;  %v4739_v14 = vld [vmem:[#allocation11 + $0x1c0] sm:$0xff] }
 0x393   :  { %4429 = vmatprep.subr.bf16.mxu0 %v14162_v12  ;;  %4470 = vmatprep.subr.bf16.mxu1 %v16481_v3  ;;  %v4743_v16 = vld [vmem:[#allocation11 + $0x1e0] sm:$0xff]  ;;  %v4740_v12 = vld [vmem:[#allocation11 + $0x1c8] sm:$0xff] }
 0x394   :  { %v4688_v3 = vld [vmem:[#allocation11 + $0x28] sm:$0xff] }
 0x396   :  { %4430 = vmatpush2.bf16.msra.mxu0 %v14168_v47  ;;  %4471 = vmatpush2.bf16.msra.mxu1 %v14172_v41  ;;  %v14372_v47 = vcombine.low %v4739_v14, %v4743_v16  ;;  %v14374_v41 = vcombine.high %v4739_v14, %v4743_v16  ;;  %v14458_v14 = vcombine.low %v4683_v8, %v4687_v57  ;;  %v4783_v8 = vld [vmem:[#allocation11 + $0x320] sm:$0xff]  ;;  %v4780_v57 = vld [vmem:[#allocation11 + $0x308] sm:$0xff] }
 0x397   :  { %4431 = vmatprep.subr.bf16.mxu0 %v14174_v21  ;;  %4472 = vmatprep.subr.bf16.mxu1 %v14177_v54  ;;  %v4744_v21 = vld [vmem:[#allocation11 + $0x1e8] sm:$0xff]  ;;  %v4731_v54 = vld [vmem:[#allocation11 + $0x180] sm:$0xff]  ;;  %v14460_v16 = vcombine.low %v4684_v11, %v4688_v3 }
 0x39a   :  { %4432 = vmatpush2.bf16.msra.mxu0 %v14180_v22  ;;  %4473 = vmatpush2.bf16.msra.mxu1 %v14184_v30  ;;  %v4735_v22 = vld [vmem:[#allocation11 + $0x1a0] sm:$0xff]  ;;  %v14376_v30 = vcombine.low %v4740_v12, %v4744_v21 }
 0x39b   :  { %4433 = vmatprep.subr.bf16.mxu0 %v14186_v43  ;;  %4474 = vmatprep.subr.bf16.mxu1 %v14189_v10  ;;  %v14378_v43 = vcombine.high %v4740_v12, %v4744_v21  ;;  %v4732_v10 = vld [vmem:[#allocation11 + $0x188] sm:$0xff]  ;;  %v14387_v51 = vcombine.low %v4731_v54, %v4735_v22  ;;  %v14462_v12 = vcombine.high %v4684_v11, %v4688_v3  ;;  %v4803_v21 = vld [vmem:[#allocation11 + $0x3c0] sm:$0xff] }
 0x39c   :  { %v14504_v11 = vcombine.high %v4779_v13, %v4783_v8  ;;  %v4784_v3 = vld [vmem:[#allocation11 + $0x328] sm:$0xff] }
 0x39e   :  { %4434 = vmatpush2.bf16.msra.mxu0 %v14192_v27  ;;  %4475 = vmatpush2.bf16.msra.mxu1 %v14196_v61  ;;  %v14380_v27 = vcombine.high %v4731_v54, %v4735_v22  ;;  %v4736_v61 = vld [vmem:[#allocation11 + $0x1a8] sm:$0xff]  ;;  %v4807_v54 = vld [vmem:[#allocation11 + $0x3e0] sm:$0xff]  ;;  %16489 = vst [vmem:[#allocation86_spill] sm:$0xff] %v14504_v11 }
 0x39f   :  { %5451 = vmatprep.subr.bf16.mxu0 %v14374_v41  ;;  %5492 = vmatprep.subr.bf16.mxu1 %v14378_v43  ;;  %v14391_v58 = vcombine.low %v4732_v10, %v4736_v61  ;;  %v4804_v22 = vld [vmem:[#allocation11 + $0x3c8] sm:$0xff]  ;;  %v14470_v59 = vcombine.low %v4803_v21, %v4807_v54 }
 0x3a1   :  { %4436 = vmatmul.mubr.bf16.vlgmr.msra.gmra.mxu0 %v14299_v23  ;;  %4477 = vmatmul.mubr.bf16.vlgmr.msra.gmra.mxu1 %v14299_v23  ;;  %v14383_v23 = vcombine.high %v4732_v10, %v4736_v61  ;;  %v14468_v10 = vcombine.high %v4803_v21, %v4807_v54  ;;  %v4808_v61 = vld [vmem:[#allocation11 + $0x3e8] sm:$0xff]  ;;  %v14506_v21 = vcombine.low %v4779_v13, %v4783_v8 }
 0x3a2   :  { %5452 = vmatpush1.bf16.msra.mxu0 %v14372_v47  ;;  %5493 = vmatpush1.bf16.msra.mxu1 %v14376_v30  ;;  %v14472_v62 = vcombine.low %v4804_v22, %v4808_v61  ;;  %v14474_v29 = vcombine.high %v4804_v22, %v4808_v61  ;;  %v14508_v54 = vcombine.low %v4780_v57, %v4784_v3  ;;  %v4771_v61 = vld [vmem:[#allocation11 + $0x2c0] sm:$0xff] }
 0x3a3   :  { %5453 = vmatprep.subr.bf16.mxu0 %v14380_v27  ;;  %5494 = vmatprep.subr.bf16.mxu1 %v14383_v23  ;;  %16490 = vst [vmem:[#allocation84_spill] sm:$0xff] %v14506_v21  ;;  %v14510_v22 = vcombine.high %v4780_v57, %v4784_v3  ;;  %v14516_v45 = vcombine.low %v4771_v61, %v4775_v6  ;;  %v4764_v57 = vld [vmem:[#allocation11 + $0x288] sm:$0xff] }
 0x3a4   :  { %16491 = vst [vmem:[#allocation85_spill] sm:$0xff] %v14508_v54  ;;  %v14518_v37 = vcombine.high %v4771_v61, %v4775_v6  ;;  %v14522_v13 = vcombine.high %v4772_v40, %v4776_v55  ;;  %v14524_v8 = vcombine.high %v4763_v7, %v4767_v20  ;;  %v4768_v3 = vld [vmem:[#allocation11 + $0x2a8] sm:$0xff]  ;;  %v14531_v6 = vcombine.low %v4763_v7, %v4767_v20 }
 0x3a5   :  { %16492 = vst [vmem:[#allocation87_spill] sm:$0xff] %v14510_v22  ;;  %16493 = vst [vmem:[#allocation90_spill] sm:$0xff] %v14516_v45  ;;  %v4760_v61 = vld [vmem:[#allocation11 + $0x268] sm:$0xff]  ;;  %v14535_v40 = vcombine.low %v4764_v57, %v4768_v3 }
 0x3a6   :  { %5454 = vmatpush1.bf16.msra.mxu0 %v14387_v51  ;;  %5495 = vmatpush1.bf16.msra.mxu1 %v14391_v58  ;;  %16494 = vst [vmem:[#allocation88_spill] sm:$0xff] %v14518_v37  ;;  %16496 = vst [vmem:[#allocation91_spill] sm:$0xff] %v14522_v13 }
 0x3a7   :  { %5455 = vmatprep.subr.bf16.mxu0 %v14396_v2  ;;  %5496 = vmatprep.subr.bf16.mxu1 %v14402_v36  ;;  %16497 = vst [vmem:[#allocation94_spill] sm:$0xff] %v14524_v8  ;;  %16499 = vst [vmem:[#allocation93_spill] sm:$0xff] %v14531_v6 }
 0x3a8   :  { %16500 = vst [vmem:[#allocation96_spill] sm:$0xff] %v14535_v40 }
 0x3aa   :  { %5456 = vmatpush1.bf16.msra.mxu0 %v14398_v25  ;;  %5497 = vmatpush1.bf16.msra.mxu1 %v14400_v5 }
 0x3ab   :  { %5457 = vmatprep.subr.bf16.mxu0 %v14408_v56  ;;  %5498 = vmatprep.subr.bf16.mxu1 %v14414_v33 }
 0x3ae   :  { %5458 = vmatpush1.bf16.msra.mxu0 %v14410_v49  ;;  %5499 = vmatpush1.bf16.msra.mxu1 %v14412_v60 }
 0x3af   :  { %5459 = vmatprep.subr.bf16.mxu0 %v14420_v44  ;;  %5500 = vmatprep.subr.bf16.mxu1 %v14426_v1 }
 0x3b2   :  { %5460 = vmatpush1.bf16.msra.mxu0 %v14422_v32  ;;  %5501 = vmatpush1.bf16.msra.mxu1 %v14424_v52 }
 0x3b3   :  { %5461 = vmatprep.subr.bf16.mxu0 %v14432_v63  ;;  %5502 = vmatprep.subr.bf16.mxu1 %v14438_v35 }
 0x3b6   :  { %5462 = vmatpush1.bf16.msra.mxu0 %v14434_v53  ;;  %5503 = vmatpush1.bf16.msra.mxu1 %v14436_v34 }
 0x3b7   :  { %5463 = vmatprep.subr.bf16.mxu0 %v14444_v28  ;;  %5504 = vmatprep.subr.bf16.mxu1 %v14450_v0 }
 0x3ba   :  { %5464 = vmatpush1.bf16.msra.mxu0 %v14446_v19  ;;  %5505 = vmatpush1.bf16.msra.mxu1 %v14448_v24 }
 0x3bb   :  { %5465 = vmatprep.subr.bf16.mxu0 %v14456_v48  ;;  %5506 = vmatprep.subr.bf16.mxu1 %v14462_v12 }
 0x3be   :  { %5466 = vmatpush1.bf16.msra.mxu0 %v14458_v14  ;;  %5507 = vmatpush1.bf16.msra.mxu1 %v14460_v16 }
 0x3bf   :  { %5467 = vmatprep.subr.bf16.mxu0 %v14468_v10  ;;  %5508 = vmatprep.subr.bf16.mxu1 %v14474_v29 }
 0x3c2   :  { %5468 = vmatpush2.bf16.msra.mxu0 %v14470_v59  ;;  %5509 = vmatpush2.bf16.msra.mxu1 %v14472_v62 }
 0x3c3   :  { %5469 = vmatprep.subr.bf16.mxu0 %v14480_v46  ;;  %5510 = vmatprep.subr.bf16.mxu1 %v14486_v18 }
 0x3c6   :  { %5470 = vmatpush2.bf16.msra.mxu0 %v14482_v39  ;;  %5511 = vmatpush2.bf16.msra.mxu1 %v14484_v38 }
 0x3c7   :  { %5471 = vmatprep.subr.bf16.mxu0 %v14492_v9  ;;  %5512 = vmatprep.subr.bf16.mxu1 %v14498_v50  ;;  %v4748_v50 = vld [vmem:[#allocation11 + $0x208] sm:$0xff] }
 0x3ca   :  { %5472 = vmatpush2.bf16.msra.mxu0 %v14494_v42  ;;  %5513 = vmatpush2.bf16.msra.mxu1 %v14496_v26  ;;  %v4747_v26 = vld [vmem:[#allocation11 + $0x200] sm:$0xff] }
 0x3cb   :  { %5473 = vmatprep.subr.bf16.mxu0 %v14504_v11  ;;  %5514 = vmatprep.subr.bf16.mxu1 %v14510_v22  ;;  %v14527_v22 = vcombine.high %v4764_v57, %v4768_v3  ;;  %v4756_v11 = vld [vmem:[#allocation11 + $0x248] sm:$0xff]  ;;  %v4751_v42 = vld [vmem:[#allocation11 + $0x220] sm:$0xff] }
 0x3cc   :  { %v14547_v20 = vcombine.low %v4756_v11, %v4760_v61  ;;  %v14549_v57 = vcombine.high %v4747_v26, %v4751_v42 }
 0x3cd   :  { %16498 = vst [vmem:[#allocation92_spill] sm:$0xff] %v14527_v22 }
 0x3ce   :  { %5474 = vmatpush2.bf16.msra.mxu0 %v14506_v21  ;;  %5515 = vmatpush2.bf16.msra.mxu1 %v14508_v54  ;;  %v4755_v21 = vld [vmem:[#allocation11 + $0x240] sm:$0xff]  ;;  %16504 = vst [vmem:[#allocation99_spill] sm:$0xff] %v14547_v20  ;;  %16505 = vst [vmem:[#allocation100_spill] sm:$0xff] %v14549_v57 }
 0x3cf   :  { %5475 = vmatprep.subr.bf16.mxu0 %v14518_v37  ;;  %v4759_v54 = vld [vmem:[#allocation11 + $0x260] sm:$0xff]  ;;  %5516 = vmatprep.subr.bf16.mxu1 %v14522_v13  ;;  %v14540_v37 = vcombine.high %v4756_v11, %v4760_v61  ;;  %v4752_v13 = vld [vmem:[#allocation11 + $0x228] sm:$0xff]  ;;  %v4741_v11 = vld [vmem:[#allocation11 + $0x1d0] sm:$0xff] }
 0x3d0   :  { %v14537_v55 = vcombine.high %v4755_v21, %v4759_v54  ;;  %v14543_v7 = vcombine.low %v4755_v21, %v4759_v54  ;;  %v14552_v3 = vcombine.high %v4748_v50, %v4752_v13  ;;  %v14559_v21 = vcombine.low %v4748_v50, %v4752_v13  ;;  %v4745_v54 = vld [vmem:[#allocation11 + $0x1f0] sm:$0xff]  ;;  %v4742_v61 = vld [vmem:[#allocation11 + $0x1d8] sm:$0xff] }
 0x3d1   :  { %16502 = vst [vmem:[#allocation95_spill] sm:$0xff] %v14540_v37 }
 0x3d2   :  { %5476 = vmatpush2.bf16.msra.mxu0 %v14516_v45  ;;  %5517 = vmatpush2.bf16.msra.mxu1 %v14520_v17  ;;  %16501 = vst [vmem:[#allocation98_spill] sm:$0xff] %v14537_v55  ;;  %16503 = vst [vmem:[#allocation97_spill] sm:$0xff] %v14543_v7  ;;  %v16515_v45 = vld [vmem:[#allocation26_spill] sm:$0xff] }
 0x3d3   :  { %5477 = vmatprep.subr.bf16.mxu0 %v14524_v8  ;;  %5518 = vmatprep.subr.bf16.mxu1 %v14527_v22  ;;  %16506 = vst [vmem:[#allocation101_spill] sm:$0xff] %v14552_v3  ;;  %v14555_v22 = vcombine.low %v4747_v26, %v4751_v42  ;;  %16508 = vst [vmem:[#allocation102_spill] sm:$0xff] %v14559_v21  ;;  %v14566_v42 = vcombine.low %v4741_v11, %v4745_v54 }
 0x3d5   :  { %16507 = vst [vmem:[#allocation103_spill] sm:$0xff] %v14555_v22 }
 0x3d6   :  { %5478 = vmatpush2.bf16.msra.mxu0 %v14531_v6  ;;  %5519 = vmatpush2.bf16.msra.mxu1 %v14535_v40  ;;  %v16513_v40 = vld [vmem:[#allocation27_spill] sm:$0xff] }
 0x3d7   :  { %5479 = vmatprep.subr.bf16.mxu0 %v14537_v55  ;;  %5520 = vmatprep.subr.bf16.mxu1 %v14540_v37  ;;  %v14564_v37 = vcombine.high %v4741_v11, %v4745_v54 }
 0x3d9   :  { %16509 = vst [vmem:[#allocation104_spill] sm:$0xff] %v14564_v37 }
 0x3da   :  { %5480 = vmatpush2.bf16.msra.mxu0 %v14543_v7  ;;  %5521 = vmatpush2.bf16.msra.mxu1 %v14547_v20  ;;  %v4746_v7 = vld [vmem:[#allocation11 + $0x1f8] sm:$0xff] }
 0x3db   :  { %5481 = vmatprep.subr.bf16.mxu0 %v14549_v57  ;;  %5522 = vmatprep.subr.bf16.mxu1 %v14552_v3  ;;  %v14568_v26 = vcombine.low %v4742_v61, %v4746_v7  ;;  %v14570_v20 = vcombine.high %v4742_v61, %v4746_v7  ;;  %v16514_v61 = vld [vmem:[#allocation28_spill] sm:$0xff] }
 0x3dd   :  { %16510 = vst [vmem:[#allocation105_spill] sm:$0xff] %v14568_v26  ;;  %16511 = vst [vmem:[#allocation107_spill] sm:$0xff] %v14570_v20 }
 0x3de   :  { %5482 = vmatpush2.bf16.msra.mxu0 %v14555_v22  ;;  %5523 = vmatpush2.bf16.msra.mxu1 %v14559_v21  ;;  %v16512_v22 = vld [vmem:[#allocation25_spill] sm:$0xff] }
 0x3df   :  { %5533 = vmatprep.subr.bf16.mxu0 %v14564_v37  ;;  %5574 = vmatprep.subr.bf16.mxu1 %v14570_v20 }
 0x420   :  { %v4355_v50 = vpop.f32.mrf.mxu0 }
 0x421   :  { %v4396_v13 = vpop.f32.mrf.mxu1  ;;  %v4489_v3 = vadd.f32 %v4355_v50, %v16512_v22 }
 0x422   :  { %v4357_v57 = vpop.f32.mrf.mxu0  ;;  %v4491_v20 = vadd.f32 %v4396_v13, %v16515_v45 }
 0x423   :  { %v4398_v55 = vpop.f32.mrf.mxu1  ;;  %v11916_v21 = vmul.f32 -1.442695, %v4489_v3  ;;  %v4490_v6 = vadd.f32 %v4357_v57, %v16513_v40 }
 0x424   :  { %v4359_v8 = vpop.f32.mrf.mxu0  ;;  %v4492_v37 = vadd.f32 %v4398_v55, %v16514_v61 }
 0x425   :  { %v4400_v11 = vpop.f32.mrf.mxu1  ;;  %13041 = vpow2.f32 %v11916_v21  ;;  %v11917_v54 = vmul.f32 -1.442695, %v4490_v6 }
 0x426   :  { %v4360_v17 = vpop.f32.mrf.mxu0  ;;  %v11918_v9 = vmul.f32 -1.442695, %v4492_v37 }
 0x427   :  { %v4401_v7 = vpop.f32.mrf.mxu1  ;;  %13043 = vpow2.f32 %v11917_v54 }
 0x428   :  { %13045 = vtanh.f32 %v4491_v20 }
 0x429   :  { %13047 = vpow2.f32 %v11918_v9 }
 0x432   :  { %v13042_v38 = vpop.eup %13041 }
 0x433   :  { %v4504_v39 = vadd.f32 1.0, %v13042_v38 }
 0x434   :  { %v13044_v22 = vpop.eup %13043 }
 0x435   :  { %13049 = vrcp.f32 %v4504_v39  ;;  %v4510_v3 = vadd.f32 1.0, %v13044_v22  ;;  %v13046_v8 = vpop.eup %13045 }
 0x436   :  { %v13048_v40 = vpop.eup %13047 }
 0x437   :  { %13051 = vrcp.f32 %v4510_v3  ;;  %v4517_v21 = vadd.f32 1.0, %v13048_v40 }
 0x439   :  { %13053 = vrcp.f32 %v4517_v21 }
 0x442   :  { %v13050_v57 = vpop.eup %13049 }
 0x443   :  { %v4521_v6 = vmul.f32 %v13050_v57, %v13046_v8  ;;  %v16517_v57 = vld [vmem:[#allocation69_spill] sm:$0xff] }
 0x444   :  { %v13052_v17 = vpop.eup %13051 }
 0x445   :  { %v4520_v50 = vmul.f32 %v13052_v17, %v14274_v15 }
 0x446   :  { %v13054_v38 = vpop.eup %13053 }
 0x447   :  { %v14579_v55 = vadd.f32 %v4521_v6, %v4520_v50 }
 0x449   :  { %16516 = vst [vmem:[#allocation106_spill] sm:$0xff] %v14579_v55  ;;  %13055 = vtanh.f32 %v14579_v55 }
 0x456   :  { %v13056_v45 = vpop.eup %13055 }
 0x457   :  { %v14582_v37 = vmul.f32 %v13056_v45, %v13054_v38  ;;  %v16518_v45 = vld [vmem:[#allocation71_spill] sm:$0xff] }
 0x459   :  { %v4550_v39 = vcombine.high %v14582_v37, %v14582_v37  ;;  %v4557_v9 = vrot.slane %v14582_v37, %v13983_v4 }
 0x45b   :  { %v4564_v20 = vrot.slane %v4550_v39, %v13983_v4  ;;  %v4565_v13 = vcombine.high %v4557_v9, %v4557_v9  ;;  %v4573_v15 = vrot.slane %v4557_v9, %v13983_v4  ;;  %11922 = vst.sshfl [vmem:[#allocation4 + $0x2] sm:$0x1 pattern:$0x73625140] %v4557_v9 }
 0x45d   :  { %v4566_v11 = vcombine.high %v4564_v20, %v4564_v20  ;;  %v4580_v54 = vrot.slane %v4564_v20, %v13983_v4  ;;  %v4587_v7 = vrot.slane %v4565_v13, %v13983_v4  ;;  %v4595_v61 = vcombine.high %v4573_v15, %v4573_v15  ;;  %11923 = vst.sshfl [vmem:[#allocation4 + $0xa] sm:$0x1 pattern:$0x73625140] %v4565_v13 }
 0x45e   :  { %11924 = vst.sshfl [vmem:[#allocation4 + $0x22] sm:$0x1 pattern:$0x73625140] %v4564_v20 }
 0x45f   :  { %v4594_v22 = vrot.slane %v4566_v11, %v13983_v4  ;;  %v4596_v3 = vcombine.high %v4580_v54, %v4580_v54  ;;  %v4597_v8 = vcombine.high %v4587_v7, %v4587_v7  ;;  %4609 = vst [vmem:[#allocation4 + $0x12] sm:$0x1] %v4595_v61  ;;  %11925 = vst.sshfl [vmem:[#allocation4 + $0x2a] sm:$0x1 pattern:$0x73625140] %v4566_v11 }
 0x460   :  { %v16519_v7 = vld [vmem:[#allocation72_spill] sm:$0xff] }
 0x461   :  { %v4437_v40 = vpop.f32.mrf.mxu0  ;;  %v4478_v17 = vpop.f32.mrf.mxu1  ;;  %v4598_v21 = vcombine.high %v4594_v22, %v4594_v22  ;;  %4610 = vst [vmem:[#allocation4 + $0x1a] sm:$0x1] %v4597_v8  ;;  %4613 = vst [vmem:[#allocation4 + $0x32] sm:$0x1] %v4596_v3 }
 0x462   :  { %v4497_v6 = vadd.f32 %v4437_v40, %v16517_v57  ;;  %v16520_v40 = vld [vmem:[#allocation70_spill] sm:$0xff] }
 0x463   :  { %v4439_v50 = vpop.f32.mrf.mxu0  ;;  %v4480_v9 = vpop.f32.mrf.mxu1  ;;  %4614 = vst [vmem:[#allocation4 + $0x3a] sm:$0x1] %v4598_v21  ;;  %v4499_v57 = vadd.f32 %v4478_v17, %v16520_v40 }
 0x464   :  { %v11919_v38 = vmul.f32 -1.442695, %v4497_v6  ;;  %v4498_v39 = vadd.f32 %v4439_v50, %v16518_v45  ;;  %v4500_v61 = vadd.f32 %v4480_v9, %v16519_v7  ;;  %v4733_v7 = vld [vmem:[#allocation11 + $0x190] sm:$0xff] }
 0x465   :  { %v4441_v20 = vpop.f32.mrf.mxu0  ;;  %v4482_v15 = vpop.f32.mrf.mxu1 }
 0x466   :  { %13057 = vpow2.f32 %v11919_v38  ;;  %v11920_v13 = vmul.f32 -1.442695, %v4498_v39  ;;  %v11921_v22 = vmul.f32 -1.442695, %v4500_v61  ;;  %v4737_v61 = vld [vmem:[#allocation11 + $0x1b0] sm:$0xff] }
 0x467   :  { %v4442_v54 = vpop.f32.mrf.mxu0  ;;  %v4483_v11 = vpop.f32.mrf.mxu1 }
 0x468   :  { %13059 = vpow2.f32 %v11920_v13 }
 0x469   :  { %13061 = vtanh.f32 %v4499_v57 }
 0x46a   :  { %13063 = vpow2.f32 %v11921_v22 }
 0x473   :  { %v13058_v8 = vpop.eup %13057 }
 0x474   :  { %v4528_v3 = vadd.f32 1.0, %v13058_v8  ;;  %v4734_v8 = vld [vmem:[#allocation11 + $0x198] sm:$0xff] }
 0x475   :  { %v13060_v6 = vpop.eup %13059 }
 0x476   :  { %13065 = vrcp.f32 %v4528_v3  ;;  %v4534_v50 = vadd.f32 1.0, %v13060_v6  ;;  %v13062_v21 = vpop.eup %13061  ;;  %v4738_v3 = vld [vmem:[#allocation11 + $0x1b8] sm:$0xff]  ;;  %v14604_v6 = vpack.c.bf16 %v14582_v37, %v14582_v37  ;;  %v14612_v37 = vcombine.low %v4733_v7, %v4737_v61 }
 0x477   :  { %v13064_v38 = vpop.eup %13063 }
 0x478   :  { %13067 = vrcp.f32 %v4534_v50  ;;  %v4541_v13 = vadd.f32 1.0, %v13064_v38  ;;  %v4725_v50 = vld [vmem:[#allocation11 + $0x150] sm:$0xff] }
 0x47a   :  { %13069 = vrcp.f32 %v4541_v13  ;;  %v4730_v13 = vld [vmem:[#allocation11 + $0x178] sm:$0xff] }
 0x483   :  { %v13066_v45 = vpop.eup %13065 }
 0x484   :  { %v4545_v39 = vmul.f32 %v13066_v45, %v13062_v21 }
 0x485   :  { %v13068_v20 = vpop.eup %13067 }
 0x486   :  { %v4544_v15 = vmul.f32 %v13068_v20, %v14293_v31  ;;  %v14606_v31 = vcombine.high %v4733_v7, %v4737_v61  ;;  %v4726_v20 = vld [vmem:[#allocation11 + $0x158] sm:$0xff] }
 0x487   :  { %v13070_v17 = vpop.eup %13069  ;;  %v14624_v7 = vcombine.high %v4726_v20, %v4730_v13 }
 0x488   :  { %v14598_v9 = vadd.f32 %v4545_v39, %v4544_v15  ;;  %v4729_v39 = vld [vmem:[#allocation11 + $0x170] sm:$0xff]  ;;  %v14614_v15 = vcombine.high %v4734_v8, %v4738_v3 }
 0x489   :  { %16523 = vst [vmem:[#allocation110_spill] sm:$0xff] %v14624_v7 }
 0x48a   :  { %16521 = vst [vmem:[#allocation108_spill] sm:$0xff] %v14598_v9  ;;  %13071 = vtanh.f32 %v14598_v9  ;;  %v14622_v9 = vcombine.high %v4725_v50, %v4729_v39 }
 0x48c   :  { %16522 = vst [vmem:[#allocation109_spill] sm:$0xff] %v14622_v9 }
 0x497   :  { %v13072_v54 = vpop.eup %13071 }
 0x498   :  { %v4548_v11 = vmul.f32 %v13072_v54, %v13070_v17 }
 0x49a   :  { %v4616_v40 = vcombine.high %v4548_v11, %v4548_v11  ;;  %v4623_v57 = vrot.slane %v4548_v11, %v13983_v4  ;;  %v4682_v22 = vpack.c.bf16 %v4548_v11, %v4548_v11 }
 0x49c   :  { %v4630_v21 = vrot.slane %v4616_v40, %v13983_v4  ;;  %v4631_v38 = vcombine.high %v4623_v57, %v4623_v57  ;;  %v4639_v45 = vrot.slane %v4623_v57, %v13983_v4  ;;  %11926 = vst.sshfl [vmem:[#allocation5 + $0x5] sm:$0x1 pattern:$0x73625140] %v4623_v57  ;;  %5483 = vmatprep.mubr.bf16.mxu0 %v4682_v22 }
 0x49d   :  { %5524 = vmatprep.mubr.bf16.mxu1 %v4682_v22  ;;  %5484 = vmatmul.mubr.bf16.vlgmr.msra.gmra.mxu0 %v14604_v6  ;;  %v14620_v57 = vcombine.low %v4734_v8, %v4738_v3  ;;  %v4722_v8 = vld [vmem:[#allocation11 + $0x138] sm:$0xff] }
 0x49e   :  { %5525 = vmatmul.mubr.bf16.vlgmr.msra.gmra.mxu1 %v14604_v6  ;;  %v4632_v17 = vcombine.high %v4630_v21, %v4630_v21  ;;  %v4646_v54 = vrot.slane %v4630_v21, %v13983_v4  ;;  %v4653_v11 = vrot.slane %v4631_v38, %v13983_v4  ;;  %v4661_v40 = vcombine.high %v4639_v45, %v4639_v45  ;;  %v4718_v45 = vld [vmem:[#allocation11 + $0x118] sm:$0xff] }
 0x49f   :  { %11927 = vst.sshfl [vmem:[#allocation5 + $0xd] sm:$0x1 pattern:$0x73625140] %v4631_v38  ;;  %5534 = vmatpush1.bf16.msra.mxu0 %v14566_v42  ;;  %5575 = vmatpush1.bf16.msra.mxu1 %v14568_v26  ;;  %v4721_v38 = vld [vmem:[#allocation11 + $0x130] sm:$0xff]  ;;  %v14630_v26 = vcombine.low %v4725_v50, %v4729_v39  ;;  %v14646_v39 = vcombine.low %v4718_v45, %v4722_v8 }
 0x4a0   :  { %11928 = vst.sshfl [vmem:[#allocation5 + $0x25] sm:$0x1 pattern:$0x73625140] %v4630_v21  ;;  %5565 = vmatprep.mubr.bf16.mxu0 %v4682_v22  ;;  %v4660_v61 = vrot.slane %v4632_v17, %v13983_v4  ;;  %v4662_v55 = vcombine.high %v4646_v54, %v4646_v54  ;;  %v4663_v18 = vcombine.high %v4653_v11, %v4653_v11  ;;  %4675 = vst [vmem:[#allocation5 + $0x15] sm:$0x1] %v4661_v40 }
 0x4a1   :  { %11929 = vst.sshfl [vmem:[#allocation5 + $0x2d] sm:$0x1 pattern:$0x73625140] %v4632_v17  ;;  %5606 = vmatprep.mubr.bf16.mxu1 %v4682_v22  ;;  %5535 = vmatprep.subr.bf16.mxu0 %v14606_v31  ;;  %v4717_v21 = vld [vmem:[#allocation11 + $0x110] sm:$0xff]  ;;  %16524 = vst [vmem:[#allocation111_spill] sm:$0xff] %v14630_v26  ;;  %v14634_v22 = vcombine.low %v4726_v20, %v4730_v13  ;;  %v14639_v54 = vcombine.high %v4718_v45, %v4722_v8 }
 0x4a2   :  { %5576 = vmatprep.subr.bf16.mxu1 %v14614_v15  ;;  %v4664_v3 = vcombine.high %v4660_v61, %v4660_v61  ;;  %4676 = vst [vmem:[#allocation5 + $0x1d] sm:$0x1] %v4663_v18  ;;  %4679 = vst [vmem:[#allocation5 + $0x35] sm:$0x1] %v4662_v55  ;;  %v14636_v17 = vcombine.high %v4717_v21, %v4721_v38  ;;  %v4709_v11 = vld [vmem:[#allocation11 + $0xd0] sm:$0xff]  ;;  %v4710_v55 = vld [vmem:[#allocation11 + $0xd8] sm:$0xff]  ;;  %v14642_v50 = vcombine.low %v4717_v21, %v4721_v38 }
 0x4a3   :  { %5536 = vmatpush1.bf16.msra.mxu0 %v14612_v37  ;;  %5577 = vmatpush1.bf16.msra.mxu1 %v14620_v57  ;;  %16525 = vst [vmem:[#allocation112_spill] sm:$0xff] %v14634_v22  ;;  %16527 = vst [vmem:[#allocation23_spill] sm:$0xff] %v14639_v54  ;;  %v4713_v18 = vld [vmem:[#allocation11 + $0xf0] sm:$0xff]  ;;  %v4714_v40 = vld [vmem:[#allocation11 + $0xf8] sm:$0xff] }
 0x4a4   :  { %5537 = vmatprep.subr.bf16.mxu0 %v14622_v9  ;;  %16526 = vst [vmem:[#allocation21_spill] sm:$0xff] %v14636_v17  ;;  %4680 = vst [vmem:[#allocation5 + $0x3d] sm:$0x1] %v4664_v3  ;;  %5578 = vmatprep.subr.bf16.mxu1 %v14624_v7  ;;  %v14648_v20 = vcombine.high %v4709_v11, %v4713_v18  ;;  %v14651_v13 = vcombine.high %v4710_v55, %v4714_v40  ;;  %v4701_v61 = vld [vmem:[#allocation11 + $0x90] sm:$0xff]  ;;  %v4702_v7 = vld [vmem:[#allocation11 + $0x98] sm:$0xff] }
 0x4a5   :  { %16528 = vst [vmem:[#allocation24_spill] sm:$0xff] %v14642_v50  ;;  %16529 = vst [vmem:[#allocation22_spill] sm:$0xff] %v14646_v39  ;;  %v4705_v3 = vld [vmem:[#allocation11 + $0xb0] sm:$0xff]  ;;  %v4706_v9 = vld [vmem:[#allocation11 + $0xb8] sm:$0xff]  ;;  %v14654_v21 = vcombine.low %v4709_v11, %v4713_v18  ;;  %v14658_v38 = vcombine.low %v4710_v55, %v4714_v40 }
 0x4a6   :  { %16530 = vst [vmem:[#allocation75_spill] sm:$0xff] %v14648_v20  ;;  %16531 = vst [vmem:[#allocation78_spill] sm:$0xff] %v14651_v13  ;;  %v14660_v45 = vcombine.high %v4701_v61, %v4705_v3  ;;  %v14663_v8 = vcombine.high %v4702_v7, %v4706_v9  ;;  %v14666_v11 = vcombine.low %v4701_v61, %v4705_v3 }
 0x4a7   :  { %5538 = vmatpush1.bf16.msra.mxu0 %v14630_v26  ;;  %5579 = vmatpush1.bf16.msra.mxu1 %v14634_v22  ;;  %16532 = vst [vmem:[#allocation79_spill] sm:$0xff] %v14654_v21  ;;  %16533 = vst [vmem:[#allocation76_spill] sm:$0xff] %v14658_v38  ;;  %v4694_v22 = vld [vmem:[#allocation11 + $0x58] sm:$0xff]  ;;  %v14670_v18 = vcombine.low %v4702_v7, %v4706_v9 }
 0x4a8   :  { %5539 = vmatprep.subr.bf16.mxu0 %v14636_v17  ;;  %5580 = vmatprep.subr.bf16.mxu1 %v14639_v54  ;;  %16534 = vst [vmem:[#allocation113_spill] sm:$0xff] %v14660_v45  ;;  %16535 = vst [vmem:[#allocation114_spill] sm:$0xff] %v14663_v8  ;;  %v4693_v54 = vld [vmem:[#allocation11 + $0x50] sm:$0xff]  ;;  %v4698_v26 = vld [vmem:[#allocation11 + $0x78] sm:$0xff] }
 0x4a9   :  { %v4697_v17 = vld [vmem:[#allocation11 + $0x70] sm:$0xff]  ;;  %16536 = vst [vmem:[#allocation115_spill] sm:$0xff] %v14666_v11  ;;  %16537 = vst [vmem:[#allocation116_spill] sm:$0xff] %v14670_v18  ;;  %v14675_v40 = vcombine.high %v4694_v22, %v4698_v26  ;;  %v14682_v9 = vcombine.low %v4694_v22, %v4698_v26 }
 0x4aa   :  { %v14672_v55 = vcombine.high %v4693_v54, %v4697_v17  ;;  %v14678_v61 = vcombine.low %v4693_v54, %v4697_v17 }
 0x4ab   :  { %5540 = vmatpush1.bf16.msra.mxu0 %v14642_v50  ;;  %5581 = vmatpush1.bf16.msra.mxu1 %v14646_v39  ;;  %16539 = vst [vmem:[#allocation118_spill] sm:$0xff] %v14675_v40  ;;  %v4686_v39 = vld [vmem:[#allocation11 + $0x18] sm:$0xff]  ;;  %16541 = vst [vmem:[#allocation120_spill] sm:$0xff] %v14682_v9 }
 0x4ac   :  { %5541 = vmatprep.subr.bf16.mxu0 %v14648_v20  ;;  %5582 = vmatprep.subr.bf16.mxu1 %v14651_v13  ;;  %16538 = vst [vmem:[#allocation117_spill] sm:$0xff] %v14672_v55  ;;  %v4685_v13 = vld [vmem:[#allocation11 + $0x10] sm:$0xff]  ;;  %v4690_v50 = vld [vmem:[#allocation11 + $0x38] sm:$0xff]  ;;  %16540 = vst [vmem:[#allocation119_spill] sm:$0xff] %v14678_v61 }
 0x4ad   :  { %v4689_v20 = vld [vmem:[#allocation11 + $0x30] sm:$0xff]  ;;  %v14687_v3 = vcombine.high %v4686_v39, %v4690_v50  ;;  %v14694_v26 = vcombine.low %v4686_v39, %v4690_v50 }
 0x4ae   :  { %v14684_v7 = vcombine.high %v4685_v13, %v4689_v20  ;;  %v14690_v17 = vcombine.low %v4685_v13, %v4689_v20 }
 0x4af   :  { %5542 = vmatpush1.bf16.msra.mxu0 %v14654_v21  ;;  %5583 = vmatpush1.bf16.msra.mxu1 %v14658_v38  ;;  %16543 = vst [vmem:[#allocation122_spill] sm:$0xff] %v14687_v3  ;;  %v4806_v38 = vld [vmem:[#allocation11 + $0x3d8] sm:$0xff]  ;;  %16545 = vst [vmem:[#allocation124_spill] sm:$0xff] %v14694_v26 }
 0x4b0   :  { %5543 = vmatprep.subr.bf16.mxu0 %v14660_v45  ;;  %5584 = vmatprep.subr.bf16.mxu1 %v14663_v8  ;;  %16542 = vst [vmem:[#allocation121_spill] sm:$0xff] %v14684_v7  ;;  %v4805_v8 = vld [vmem:[#allocation11 + $0x3d0] sm:$0xff]  ;;  %v4810_v21 = vld [vmem:[#allocation11 + $0x3f8] sm:$0xff]  ;;  %16544 = vst [vmem:[#allocation123_spill] sm:$0xff] %v14690_v17 }
 0x4b1   :  { %v4809_v45 = vld [vmem:[#allocation11 + $0x3f0] sm:$0xff]  ;;  %v14699_v54 = vcombine.high %v4806_v38, %v4810_v21  ;;  %v14706_v50 = vcombine.low %v4806_v38, %v4810_v21 }
 0x4b2   :  { %v14696_v22 = vcombine.high %v4805_v8, %v4809_v45  ;;  %v14702_v20 = vcombine.low %v4805_v8, %v4809_v45 }
 0x4b3   :  { %5544 = vmatpush1.bf16.msra.mxu0 %v14666_v11  ;;  %5585 = vmatpush1.bf16.msra.mxu1 %v14670_v18  ;;  %16547 = vst [vmem:[#allocation126_spill] sm:$0xff] %v14699_v54  ;;  %v4798_v18 = vld [vmem:[#allocation11 + $0x398] sm:$0xff]  ;;  %16549 = vst [vmem:[#allocation128_spill] sm:$0xff] %v14706_v50 }
 0x4b4   :  { %5545 = vmatprep.subr.bf16.mxu0 %v14672_v55  ;;  %5586 = vmatprep.subr.bf16.mxu1 %v14675_v40  ;;  %16546 = vst [vmem:[#allocation125_spill] sm:$0xff] %v14696_v22  ;;  %v4797_v40 = vld [vmem:[#allocation11 + $0x390] sm:$0xff]  ;;  %v4802_v11 = vld [vmem:[#allocation11 + $0x3b8] sm:$0xff]  ;;  %16548 = vst [vmem:[#allocation127_spill] sm:$0xff] %v14702_v20 }
 0x4b5   :  { %v4801_v55 = vld [vmem:[#allocation11 + $0x3b0] sm:$0xff]  ;;  %v14711_v13 = vcombine.high %v4798_v18, %v4802_v11  ;;  %v14718_v21 = vcombine.low %v4798_v18, %v4802_v11 }
 0x4b6   :  { %v14708_v39 = vcombine.high %v4797_v40, %v4801_v55  ;;  %v14714_v45 = vcombine.low %v4797_v40, %v4801_v55 }
 0x4b7   :  { %5546 = vmatpush1.bf16.msra.mxu0 %v14678_v61  ;;  %5587 = vmatpush1.bf16.msra.mxu1 %v14682_v9  ;;  %16551 = vst [vmem:[#allocation130_spill] sm:$0xff] %v14711_v13  ;;  %v4790_v9 = vld [vmem:[#allocation11 + $0x358] sm:$0xff]  ;;  %16553 = vst [vmem:[#allocation132_spill] sm:$0xff] %v14718_v21 }
 0x4b8   :  { %5547 = vmatprep.subr.bf16.mxu0 %v14684_v7  ;;  %5588 = vmatprep.subr.bf16.mxu1 %v14687_v3  ;;  %16550 = vst [vmem:[#allocation129_spill] sm:$0xff] %v14708_v39  ;;  %v4789_v3 = vld [vmem:[#allocation11 + $0x350] sm:$0xff]  ;;  %v4794_v61 = vld [vmem:[#allocation11 + $0x378] sm:$0xff]  ;;  %16552 = vst [vmem:[#allocation131_spill] sm:$0xff] %v14714_v45 }
 0x4b9   :  { %v4793_v7 = vld [vmem:[#allocation11 + $0x370] sm:$0xff]  ;;  %v14723_v8 = vcombine.high %v4790_v9, %v4794_v61  ;;  %v14730_v11 = vcombine.low %v4790_v9, %v4794_v61 }
 0x4ba   :  { %v14720_v38 = vcombine.high %v4789_v3, %v4793_v7  ;;  %v14726_v55 = vcombine.low %v4789_v3, %v4793_v7 }
 0x4bb   :  { %5548 = vmatpush1.bf16.msra.mxu0 %v14690_v17  ;;  %5589 = vmatpush1.bf16.msra.mxu1 %v14694_v26  ;;  %16555 = vst [vmem:[#allocation134_spill] sm:$0xff] %v14723_v8  ;;  %v4782_v26 = vld [vmem:[#allocation11 + $0x318] sm:$0xff]  ;;  %16557 = vst [vmem:[#allocation136_spill] sm:$0xff] %v14730_v11 }
 0x4bc   :  { %5549 = vmatprep.subr.bf16.mxu0 %v14696_v22  ;;  %5590 = vmatprep.subr.bf16.mxu1 %v14699_v54  ;;  %16554 = vst [vmem:[#allocation133_spill] sm:$0xff] %v14720_v38  ;;  %v4781_v54 = vld [vmem:[#allocation11 + $0x310] sm:$0xff]  ;;  %v4786_v17 = vld [vmem:[#allocation11 + $0x338] sm:$0xff]  ;;  %16556 = vst [vmem:[#allocation135_spill] sm:$0xff] %v14726_v55 }
 0x4bd   :  { %v4785_v22 = vld [vmem:[#allocation11 + $0x330] sm:$0xff]  ;;  %v14735_v40 = vcombine.high %v4782_v26, %v4786_v17  ;;  %v14742_v61 = vcombine.low %v4782_v26, %v4786_v17 }
 0x4be   :  { %v14732_v18 = vcombine.high %v4781_v54, %v4785_v22  ;;  %v14738_v7 = vcombine.low %v4781_v54, %v4785_v22 }
 0x4bf   :  { %5550 = vmatpush2.bf16.msra.mxu0 %v14702_v20  ;;  %5591 = vmatpush2.bf16.msra.mxu1 %v14706_v50  ;;  %16559 = vst [vmem:[#allocation138_spill] sm:$0xff] %v14735_v40  ;;  %v4774_v50 = vld [vmem:[#allocation11 + $0x2d8] sm:$0xff]  ;;  %16561 = vst [vmem:[#allocation140_spill] sm:$0xff] %v14742_v61 }
 0x4c0   :  { %5551 = vmatprep.subr.bf16.mxu0 %v14708_v39  ;;  %5592 = vmatprep.subr.bf16.mxu1 %v14711_v13  ;;  %16558 = vst [vmem:[#allocation137_spill] sm:$0xff] %v14732_v18  ;;  %v4773_v13 = vld [vmem:[#allocation11 + $0x2d0] sm:$0xff]  ;;  %v4778_v20 = vld [vmem:[#allocation11 + $0x2f8] sm:$0xff]  ;;  %16560 = vst [vmem:[#allocation139_spill] sm:$0xff] %v14738_v7 }
 0x4c1   :  { %v4777_v39 = vld [vmem:[#allocation11 + $0x2f0] sm:$0xff]  ;;  %v14747_v3 = vcombine.high %v4774_v50, %v4778_v20  ;;  %v14754_v17 = vcombine.low %v4774_v50, %v4778_v20 }
 0x4c2   :  { %v14744_v9 = vcombine.high %v4773_v13, %v4777_v39  ;;  %v14750_v22 = vcombine.low %v4773_v13, %v4777_v39 }
 0x4c3   :  { %5552 = vmatpush2.bf16.msra.mxu0 %v14714_v45  ;;  %5593 = vmatpush2.bf16.msra.mxu1 %v14718_v21  ;;  %16563 = vst [vmem:[#allocation142_spill] sm:$0xff] %v14747_v3  ;;  %v4766_v21 = vld [vmem:[#allocation11 + $0x298] sm:$0xff] }
 0x4c4   :  { %5553 = vmatprep.subr.bf16.mxu0 %v14720_v38  ;;  %5594 = vmatprep.subr.bf16.mxu1 %v14723_v8  ;;  %16562 = vst [vmem:[#allocation141_spill] sm:$0xff] %v14744_v9  ;;  %v4765_v8 = vld [vmem:[#allocation11 + $0x290] sm:$0xff]  ;;  %v4770_v45 = vld [vmem:[#allocation11 + $0x2b8] sm:$0xff] }
 0x4c5   :  { %v4769_v38 = vld [vmem:[#allocation11 + $0x2b0] sm:$0xff]  ;;  %v14759_v54 = vcombine.high %v4766_v21, %v4770_v45  ;;  %v14766_v20 = vcombine.low %v4766_v21, %v4770_v45 }
 0x4c6   :  { %v14756_v26 = vcombine.high %v4765_v8, %v4769_v38  ;;  %v14762_v39 = vcombine.low %v4765_v8, %v4769_v38 }
 0x4c7   :  { %5554 = vmatpush2.bf16.msra.mxu0 %v14726_v55  ;;  %5595 = vmatpush2.bf16.msra.mxu1 %v14730_v11  ;;  %16564 = vst [vmem:[#allocation143_spill] sm:$0xff] %v14759_v54  ;;  %v4758_v11 = vld [vmem:[#allocation11 + $0x258] sm:$0xff] }
 0x4c8   :  { %5555 = vmatprep.subr.bf16.mxu0 %v14732_v18  ;;  %5596 = vmatprep.subr.bf16.mxu1 %v14735_v40  ;;  %v4757_v40 = vld [vmem:[#allocation11 + $0x250] sm:$0xff]  ;;  %v4762_v55 = vld [vmem:[#allocation11 + $0x278] sm:$0xff] }
 0x4c9   :  { %v4761_v18 = vld [vmem:[#allocation11 + $0x270] sm:$0xff]  ;;  %v14771_v13 = vcombine.high %v4758_v11, %v4762_v55  ;;  %v14778_v45 = vcombine.low %v4758_v11, %v4762_v55 }
 0x4ca   :  { %v14768_v50 = vcombine.high %v4757_v40, %v4761_v18  ;;  %v14774_v38 = vcombine.low %v4757_v40, %v4761_v18 }
 0x4cb   :  { %5556 = vmatpush2.bf16.msra.mxu0 %v14738_v7  ;;  %5597 = vmatpush2.bf16.msra.mxu1 %v14742_v61  ;;  %v4750_v61 = vld [vmem:[#allocation11 + $0x218] sm:$0xff] }
 0x4cc   :  { %5557 = vmatprep.subr.bf16.mxu0 %v14744_v9  ;;  %5598 = vmatprep.subr.bf16.mxu1 %v14747_v3  ;;  %v4749_v3 = vld [vmem:[#allocation11 + $0x210] sm:$0xff]  ;;  %v4754_v7 = vld [vmem:[#allocation11 + $0x238] sm:$0xff] }
 0x4cd   :  { %v4753_v9 = vld [vmem:[#allocation11 + $0x230] sm:$0xff]  ;;  %v14783_v8 = vcombine.high %v4750_v61, %v4754_v7  ;;  %v14790_v18 = vcombine.low %v4750_v61, %v4754_v7 }
 0x4ce   :  { %v14780_v21 = vcombine.high %v4749_v3, %v4753_v9 }
 0x4cf   :  { %5558 = vmatpush2.bf16.msra.mxu0 %v14750_v22  ;;  %5599 = vmatpush2.bf16.msra.mxu1 %v14754_v17 }
 0x4d0   :  { %5559 = vmatprep.subr.bf16.mxu0 %v14756_v26  ;;  %5600 = vmatprep.subr.bf16.mxu1 %v14759_v54  ;;  %v14786_v54 = vcombine.low %v4749_v3, %v4753_v9  ;;  %v16596_v9 = vld [vmem:[#allocation32_spill] sm:$0xff] }
 0x4d3   :  { %5560 = vmatpush2.bf16.msra.mxu0 %v14762_v39  ;;  %5601 = vmatpush2.bf16.msra.mxu1 %v14766_v20 }
 0x4d4   :  { %5561 = vmatprep.subr.bf16.mxu0 %v14768_v50  ;;  %5602 = vmatprep.subr.bf16.mxu1 %v14771_v13 }
 0x4d7   :  { %5562 = vmatpush2.bf16.msra.mxu0 %v14774_v38  ;;  %5603 = vmatpush2.bf16.msra.mxu1 %v14778_v45 }
 0x4d8   :  { %5563 = vmatprep.subr.bf16.mxu0 %v14780_v21  ;;  %5604 = vmatprep.subr.bf16.mxu1 %v14783_v8 }
 0x4db   :  { %5564 = vmatpush2.bf16.msra.mxu0 %v14786_v54  ;;  %5605 = vmatpush2.bf16.msra.mxu1 %v14790_v18 }
 0x4dc   :  { %6581 = vmatprep.subr.bf16.mxu0 %v14374_v41  ;;  %6622 = vmatprep.subr.bf16.mxu1 %v14378_v43  ;;  %v16566_v41 = vld [vmem:[#allocation73_spill] sm:$0xff]  ;;  %v16568_v43 = vld [vmem:[#allocation82_spill] sm:$0xff] }
 0x4de   :  { %5566 = vmatmul.mubr.bf16.vlgmr.msra.gmra.mxu0 %v14604_v6  ;;  %5607 = vmatmul.mubr.bf16.vlgmr.msra.gmra.mxu1 %v14604_v6 }
 0x4df   :  { %6582 = vmatpush1.bf16.msra.mxu0 %v14372_v47  ;;  %6623 = vmatpush1.bf16.msra.mxu1 %v14376_v30  ;;  %v16565_v47 = vld [vmem:[#allocation77_spill] sm:$0xff]  ;;  %v16567_v30 = vld [vmem:[#allocation74_spill] sm:$0xff] }
 0x4e0   :  { %6583 = vmatprep.subr.bf16.mxu0 %v14380_v27  ;;  %6624 = vmatprep.subr.bf16.mxu1 %v14383_v23  ;;  %v16569_v27 = vld [vmem:[#allocation83_spill] sm:$0xff]  ;;  %v16570_v23 = vld [vmem:[#allocation80_spill] sm:$0xff] }
 0x4e3   :  { %6584 = vmatpush1.bf16.msra.mxu0 %v14387_v51  ;;  %6625 = vmatpush1.bf16.msra.mxu1 %v14391_v58  ;;  %v16571_v51 = vld [vmem:[#allocation81_spill] sm:$0xff]  ;;  %v16572_v58 = vld [vmem:[#allocation86_spill] sm:$0xff] }
 0x4e4   :  { %6585 = vmatprep.subr.bf16.mxu0 %v14396_v2  ;;  %6626 = vmatprep.subr.bf16.mxu1 %v14402_v36  ;;  %v16573_v2 = vld [vmem:[#allocation87_spill] sm:$0xff]  ;;  %v16576_v36 = vld [vmem:[#allocation88_spill] sm:$0xff] }
 0x4e7   :  { %6586 = vmatpush1.bf16.msra.mxu0 %v14398_v25  ;;  %6627 = vmatpush1.bf16.msra.mxu1 %v14400_v5  ;;  %v16574_v25 = vld [vmem:[#allocation84_spill] sm:$0xff]  ;;  %v16575_v5 = vld [vmem:[#allocation85_spill] sm:$0xff] }
 0x4e8   :  { %6587 = vmatprep.subr.bf16.mxu0 %v14408_v56  ;;  %6628 = vmatprep.subr.bf16.mxu1 %v14414_v33  ;;  %v16577_v56 = vld [vmem:[#allocation91_spill] sm:$0xff]  ;;  %v16580_v33 = vld [vmem:[#allocation94_spill] sm:$0xff] }
 0x4eb   :  { %6588 = vmatpush1.bf16.msra.mxu0 %v14410_v49  ;;  %6629 = vmatpush1.bf16.msra.mxu1 %v14412_v60  ;;  %v16578_v49 = vld [vmem:[#allocation90_spill] sm:$0xff]  ;;  %v16579_v60 = vld [vmem:[#allocation89_spill] sm:$0xff] }
 0x4ec   :  { %6589 = vmatprep.subr.bf16.mxu0 %v14420_v44  ;;  %6630 = vmatprep.subr.bf16.mxu1 %v14426_v1  ;;  %v16581_v44 = vld [vmem:[#allocation92_spill] sm:$0xff]  ;;  %v16584_v1 = vld [vmem:[#allocation98_spill] sm:$0xff] }
 0x4ef   :  { %6590 = vmatpush1.bf16.msra.mxu0 %v14422_v32  ;;  %6631 = vmatpush1.bf16.msra.mxu1 %v14424_v52  ;;  %v16582_v32 = vld [vmem:[#allocation93_spill] sm:$0xff]  ;;  %v16583_v52 = vld [vmem:[#allocation96_spill] sm:$0xff] }
 0x4f0   :  { %6591 = vmatprep.subr.bf16.mxu0 %v14432_v63  ;;  %6632 = vmatprep.subr.bf16.mxu1 %v14438_v35  ;;  %v16585_v63 = vld [vmem:[#allocation95_spill] sm:$0xff]  ;;  %v16588_v35 = vld [vmem:[#allocation100_spill] sm:$0xff] }
 0x4f3   :  { %6592 = vmatpush1.bf16.msra.mxu0 %v14434_v53  ;;  %6633 = vmatpush1.bf16.msra.mxu1 %v14436_v34  ;;  %v16586_v53 = vld [vmem:[#allocation97_spill] sm:$0xff]  ;;  %v16587_v34 = vld [vmem:[#allocation99_spill] sm:$0xff] }
 0x4f4   :  { %6593 = vmatprep.subr.bf16.mxu0 %v14444_v28  ;;  %6634 = vmatprep.subr.bf16.mxu1 %v14450_v0  ;;  %v16589_v28 = vld [vmem:[#allocation101_spill] sm:$0xff]  ;;  %v16592_v0 = vld [vmem:[#allocation104_spill] sm:$0xff] }
 0x4f7   :  { %6594 = vmatpush1.bf16.msra.mxu0 %v14446_v19  ;;  %6635 = vmatpush1.bf16.msra.mxu1 %v14448_v24  ;;  %v16590_v19 = vld [vmem:[#allocation103_spill] sm:$0xff]  ;;  %v16591_v24 = vld [vmem:[#allocation102_spill] sm:$0xff] }
 0x4f8   :  { %6595 = vmatprep.subr.bf16.mxu0 %v14456_v48  ;;  %6636 = vmatprep.subr.bf16.mxu1 %v14462_v12  ;;  %v16593_v48 = vld [vmem:[#allocation107_spill] sm:$0xff]  ;;  %v16594_v12 = vld [vmem:[#allocation29_spill] sm:$0xff] }
 0x4fb   :  { %6596 = vmatpush1.bf16.msra.mxu0 %v14458_v14  ;;  %6637 = vmatpush1.bf16.msra.mxu1 %v14460_v16 }
 0x4fc   :  { %6597 = vmatprep.subr.bf16.mxu0 %v14468_v10  ;;  %6638 = vmatprep.subr.bf16.mxu1 %v14474_v29 }
 0x4ff   :  { %6598 = vmatpush2.bf16.msra.mxu0 %v14470_v59  ;;  %6639 = vmatpush2.bf16.msra.mxu1 %v14472_v62 }
 0x500   :  { %6599 = vmatprep.subr.bf16.mxu0 %v14480_v46  ;;  %6640 = vmatprep.subr.bf16.mxu1 %v16565_v47  ;;  %v16595_v46 = vld [vmem:[#allocation31_spill] sm:$0xff]  ;;  %v16597_v47 = vld [vmem:[#allocation30_spill] sm:$0xff] }
 0x503   :  { %6600 = vmatpush2.bf16.msra.mxu0 %v16566_v41  ;;  %6641 = vmatpush2.bf16.msra.mxu1 %v16567_v30 }
 0x504   :  { %6601 = vmatprep.subr.bf16.mxu0 %v16568_v43  ;;  %6642 = vmatprep.subr.bf16.mxu1 %v16569_v27 }
 0x507   :  { %6602 = vmatpush2.bf16.msra.mxu0 %v16570_v23  ;;  %6643 = vmatpush2.bf16.msra.mxu1 %v16571_v51 }
 0x508   :  { %6603 = vmatprep.subr.bf16.mxu0 %v16572_v58  ;;  %6644 = vmatprep.subr.bf16.mxu1 %v16573_v2 }
 0x50b   :  { %6604 = vmatpush2.bf16.msra.mxu0 %v16574_v25  ;;  %6645 = vmatpush2.bf16.msra.mxu1 %v16575_v5 }
 0x50c   :  { %6605 = vmatprep.subr.bf16.mxu0 %v16576_v36  ;;  %6646 = vmatprep.subr.bf16.mxu1 %v16577_v56 }
 0x50f   :  { %6606 = vmatpush2.bf16.msra.mxu0 %v16578_v49  ;;  %6647 = vmatpush2.bf16.msra.mxu1 %v16579_v60  ;;  %v16598_v49 = vld [vmem:[#allocation106_spill] sm:$0xff] }
 0x510   :  { %6607 = vmatprep.subr.bf16.mxu0 %v16580_v33  ;;  %6648 = vmatprep.subr.bf16.mxu1 %v16581_v44 }
 0x513   :  { %6608 = vmatpush2.bf16.msra.mxu0 %v16582_v32  ;;  %6649 = vmatpush2.bf16.msra.mxu1 %v16583_v52 }
 0x514   :  { %6609 = vmatprep.subr.bf16.mxu0 %v16584_v1  ;;  %6650 = vmatprep.subr.bf16.mxu1 %v16585_v63 }
 0x517   :  { %6610 = vmatpush2.bf16.msra.mxu0 %v16586_v53  ;;  %6651 = vmatpush2.bf16.msra.mxu1 %v16587_v34 }
 0x518   :  { %6611 = vmatprep.subr.bf16.mxu0 %v16588_v35  ;;  %6652 = vmatprep.subr.bf16.mxu1 %v16589_v28 }
 0x51b   :  { %6612 = vmatpush2.bf16.msra.mxu0 %v16590_v19  ;;  %6653 = vmatpush2.bf16.msra.mxu1 %v16591_v24 }
 0x51c   :  { %6663 = vmatprep.subr.bf16.mxu0 %v16592_v0  ;;  %6704 = vmatprep.subr.bf16.mxu1 %v16593_v48 }
 0x55d   :  { %v5485_v14 = vpop.f32.mrf.mxu0 }
 0x55e   :  { %v5526_v16 = vpop.f32.mrf.mxu1  ;;  %v5619_v10 = vadd.f32 %v5485_v14, %v16594_v12 }
 0x55f   :  { %v5487_v59 = vpop.f32.mrf.mxu0  ;;  %v5621_v41 = vadd.f32 %v5526_v16, %v16597_v47 }
 0x560   :  { %v5528_v62 = vpop.f32.mrf.mxu1  ;;  %v12058_v29 = vmul.f32 -1.442695, %v5619_v10  ;;  %v5620_v6 = vadd.f32 %v5487_v59, %v16595_v46  ;;  %v16599_v10 = vld [vmem:[#allocation65_spill] sm:$0xff] }
 0x561   :  { %v5489_v55 = vpop.f32.mrf.mxu0  ;;  %v5622_v3 = vadd.f32 %v5528_v62, %v16596_v9 }
 0x562   :  { %v5530_v11 = vpop.f32.mrf.mxu1  ;;  %13073 = vpow2.f32 %v12058_v29  ;;  %v12059_v40 = vmul.f32 -1.442695, %v5620_v6  ;;  %v16600_v55 = vld [vmem:[#allocation67_spill] sm:$0xff] }
 0x563   :  { %v5490_v7 = vpop.f32.mrf.mxu0  ;;  %v12060_v30 = vmul.f32 -1.442695, %v5622_v3 }
 0x564   :  { %v5531_v61 = vpop.f32.mrf.mxu1  ;;  %13075 = vpow2.f32 %v12059_v40 }
 0x565   :  { %13077 = vtanh.f32 %v5621_v41  ;;  %v16601_v41 = vld [vmem:[#allocation68_spill] sm:$0xff] }
 0x566   :  { %13079 = vpow2.f32 %v12060_v30 }
 0x56f   :  { %v13074_v43 = vpop.eup %13073 }
 0x570   :  { %v5634_v27 = vadd.f32 1.0, %v13074_v43  ;;  %v16602_v43 = vld [vmem:[#allocation66_spill] sm:$0xff] }
 0x571   :  { %v13076_v23 = vpop.eup %13075 }
 0x572   :  { %13081 = vrcp.f32 %v5634_v27  ;;  %v5640_v51 = vadd.f32 1.0, %v13076_v23  ;;  %v13078_v58 = vpop.eup %13077 }
 0x573   :  { %v13080_v2 = vpop.eup %13079 }
 0x574   :  { %13083 = vrcp.f32 %v5640_v51  ;;  %v5647_v56 = vadd.f32 1.0, %v13080_v2 }
 0x576   :  { %13085 = vrcp.f32 %v5647_v56 }
 0x57f   :  { %v13082_v25 = vpop.eup %13081 }
 0x580   :  { %v5651_v5 = vmul.f32 %v13082_v25, %v13078_v58 }
 0x581   :  { %v13084_v36 = vpop.eup %13083 }
 0x582   :  { %v5650_v60 = vmul.f32 %v13084_v36, %v16598_v49 }
 0x583   :  { %v13086_v44 = vpop.eup %13085 }
 0x584   :  { %v14868_v33 = vadd.f32 %v5651_v5, %v5650_v60 }
 0x586   :  { %13087 = vtanh.f32 %v14868_v33 }
 0x593   :  { %v13088_v32 = vpop.eup %13087 }
 0x594   :  { %v14871_v52 = vmul.f32 %v13088_v32, %v13086_v44  ;;  %v16603_v32 = vld [vmem:[#allocation108_spill] sm:$0xff] }
 0x596   :  { %v5680_v1 = vcombine.high %v14871_v52, %v14871_v52  ;;  %v5687_v63 = vrot.slane %v14871_v52, %v13983_v4 }
 0x598   :  { %v5694_v53 = vrot.slane %v5680_v1, %v13983_v4  ;;  %v5695_v34 = vcombine.high %v5687_v63, %v5687_v63  ;;  %v5703_v35 = vrot.slane %v5687_v63, %v13983_v4  ;;  %12064 = vst.sshfl [vmem:[#allocation4 + $0x3] sm:$0x1 pattern:$0x73625140] %v5687_v63 }
 0x59a   :  { %v5696_v28 = vcombine.high %v5694_v53, %v5694_v53  ;;  %v5710_v19 = vrot.slane %v5694_v53, %v13983_v4  ;;  %v5717_v24 = vrot.slane %v5695_v34, %v13983_v4  ;;  %v5725_v0 = vcombine.high %v5703_v35, %v5703_v35  ;;  %12065 = vst.sshfl [vmem:[#allocation4 + $0xb] sm:$0x1 pattern:$0x73625140] %v5695_v34 }
 0x59b   :  { %12066 = vst.sshfl [vmem:[#allocation4 + $0x23] sm:$0x1 pattern:$0x73625140] %v5694_v53 }
 0x59c   :  { %v5724_v48 = vrot.slane %v5696_v28, %v13983_v4  ;;  %v5726_v14 = vcombine.high %v5710_v19, %v5710_v19  ;;  %v5727_v16 = vcombine.high %v5717_v24, %v5717_v24  ;;  %5739 = vst [vmem:[#allocation4 + $0x13] sm:$0x1] %v5725_v0  ;;  %12067 = vst.sshfl [vmem:[#allocation4 + $0x2b] sm:$0x1 pattern:$0x73625140] %v5696_v28 }
 0x59d   :  { %v14893_v0 = vpack.c.bf16 %v14871_v52, %v14871_v52  ;;  %v16604_v52 = vld [vmem:[#allocation105_spill] sm:$0xff] }
 0x59e   :  { %v5567_v12 = vpop.f32.mrf.mxu0  ;;  %v5608_v62 = vpop.f32.mrf.mxu1  ;;  %v5728_v29 = vcombine.high %v5724_v48, %v5724_v48  ;;  %5740 = vst [vmem:[#allocation4 + $0x1b] sm:$0x1] %v5727_v16  ;;  %5743 = vst [vmem:[#allocation4 + $0x33] sm:$0x1] %v5726_v14 }
 0x59f   :  { %v5627_v59 = vadd.f32 %v5567_v12, %v16599_v10  ;;  %v5629_v27 = vadd.f32 %v5608_v62, %v16602_v43  ;;  %v16619_v43 = vld [vmem:[#allocation115_spill] sm:$0xff] }
 0x5a0   :  { %v5569_v46 = vpop.f32.mrf.mxu0  ;;  %v5610_v40 = vpop.f32.mrf.mxu1  ;;  %5744 = vst [vmem:[#allocation4 + $0x3b] sm:$0x1] %v5728_v29 }
 0x5a1   :  { %v12061_v6 = vmul.f32 -1.442695, %v5627_v59  ;;  %v5628_v11 = vadd.f32 %v5569_v46, %v16600_v55  ;;  %v5630_v30 = vadd.f32 %v5610_v40, %v16601_v41  ;;  %v16607_v40 = vld [vmem:[#allocation111_spill] sm:$0xff]  ;;  %v16617_v41 = vld [vmem:[#allocation113_spill] sm:$0xff] }
 0x5a2   :  { %v5571_v7 = vpop.f32.mrf.mxu0  ;;  %v5612_v9 = vpop.f32.mrf.mxu1 }
 0x5a3   :  { %13089 = vpow2.f32 %v12061_v6  ;;  %v12062_v61 = vmul.f32 -1.442695, %v5628_v11  ;;  %v12063_v23 = vmul.f32 -1.442695, %v5630_v30  ;;  %v16606_v11 = vld [vmem:[#allocation110_spill] sm:$0xff]  ;;  %v16608_v7 = vld [vmem:[#allocation112_spill] sm:$0xff] }
 0x5a4   :  { %v5572_v3 = vpop.f32.mrf.mxu0  ;;  %v5613_v47 = vpop.f32.mrf.mxu1  ;;  %v16612_v9 = vld [vmem:[#allocation22_spill] sm:$0xff] }
 0x5a5   :  { %13091 = vpow2.f32 %v12062_v61  ;;  %v16609_v61 = vld [vmem:[#allocation21_spill] sm:$0xff]  ;;  %v16615_v3 = vld [vmem:[#allocation79_spill] sm:$0xff]  ;;  %v16616_v47 = vld [vmem:[#allocation76_spill] sm:$0xff] }
 0x5a6   :  { %13093 = vtanh.f32 %v5629_v27  ;;  %v16618_v30 = vld [vmem:[#allocation114_spill] sm:$0xff]  ;;  %v16620_v27 = vld [vmem:[#allocation116_spill] sm:$0xff] }
 0x5a7   :  { %13095 = vpow2.f32 %v12063_v23  ;;  %v16621_v23 = vld [vmem:[#allocation117_spill] sm:$0xff] }
 0x5b0   :  { %v13090_v51 = vpop.eup %13089 }
 0x5b1   :  { %v5658_v58 = vadd.f32 1.0, %v13090_v51  ;;  %v16622_v51 = vld [vmem:[#allocation118_spill] sm:$0xff] }
 0x5b2   :  { %v13092_v2 = vpop.eup %13091 }
 0x5b3   :  { %13097 = vrcp.f32 %v5658_v58  ;;  %v5664_v25 = vadd.f32 1.0, %v13092_v2  ;;  %v13094_v5 = vpop.eup %13093  ;;  %v16623_v58 = vld [vmem:[#allocation119_spill] sm:$0xff]  ;;  %v16624_v2 = vld [vmem:[#allocation120_spill] sm:$0xff] }
 0x5b4   :  { %v13096_v36 = vpop.eup %13095 }
 0x5b5   :  { %13099 = vrcp.f32 %v5664_v25  ;;  %v5671_v44 = vadd.f32 1.0, %v13096_v36  ;;  %v16625_v25 = vld [vmem:[#allocation121_spill] sm:$0xff]  ;;  %v16627_v36 = vld [vmem:[#allocation123_spill] sm:$0xff] }
 0x5b7   :  { %13101 = vrcp.f32 %v5671_v44  ;;  %v16631_v44 = vld [vmem:[#allocation127_spill] sm:$0xff] }
 0x5c0   :  { %v13098_v56 = vpop.eup %13097 }
 0x5c1   :  { %v5675_v49 = vmul.f32 %v13098_v56, %v13094_v5  ;;  %v16626_v5 = vld [vmem:[#allocation122_spill] sm:$0xff]  ;;  %v16628_v56 = vld [vmem:[#allocation124_spill] sm:$0xff] }
 0x5c2   :  { %v13100_v60 = vpop.eup %13099 }
 0x5c3   :  { %v5674_v1 = vmul.f32 %v13100_v60, %v16603_v32  ;;  %v16630_v60 = vld [vmem:[#allocation126_spill] sm:$0xff]  ;;  %v16632_v32 = vld [vmem:[#allocation128_spill] sm:$0xff] }
 0x5c4   :  { %v13102_v53 = vpop.eup %13101 }
 0x5c5   :  { %v14887_v63 = vadd.f32 %v5675_v49, %v5674_v1  ;;  %v16629_v49 = vld [vmem:[#allocation125_spill] sm:$0xff] }
 0x5c6   :  { %v16633_v1 = vld [vmem:[#allocation129_spill] sm:$0xff] }
 0x5c7   :  { %13103 = vtanh.f32 %v14887_v63 }
 0x5d4   :  { %v13104_v34 = vpop.eup %13103 }
 0x5d5   :  { %v5678_v35 = vmul.f32 %v13104_v34, %v13102_v53  ;;  %v16634_v53 = vld [vmem:[#allocation130_spill] sm:$0xff]  ;;  %v16635_v34 = vld [vmem:[#allocation131_spill] sm:$0xff] }
 0x5d7   :  { %v5746_v28 = vcombine.high %v5678_v35, %v5678_v35  ;;  %v5753_v19 = vrot.slane %v5678_v35, %v13983_v4  ;;  %v5812_v24 = vpack.c.bf16 %v5678_v35, %v5678_v35  ;;  %v16636_v35 = vld [vmem:[#allocation132_spill] sm:$0xff] }
 0x5d9   :  { %v5760_v48 = vrot.slane %v5746_v28, %v13983_v4  ;;  %v5761_v14 = vcombine.high %v5753_v19, %v5753_v19  ;;  %v5769_v16 = vrot.slane %v5753_v19, %v13983_v4  ;;  %12068 = vst.sshfl [vmem:[#allocation5 + $0x4] sm:$0x1 pattern:$0x73625140] %v5753_v19  ;;  %6613 = vmatprep.mubr.bf16.mxu0 %v5812_v24  ;;  %v16637_v28 = vld [vmem:[#allocation133_spill] sm:$0xff]  ;;  %v16638_v19 = vld [vmem:[#allocation134_spill] sm:$0xff] }
 0x5da   :  { %6654 = vmatprep.mubr.bf16.mxu1 %v5812_v24  ;;  %6614 = vmatmul.mubr.bf16.vlgmr.msra.gmra.mxu0 %v14893_v0 }
 0x5db   :  { %6655 = vmatmul.mubr.bf16.vlgmr.msra.gmra.mxu1 %v14893_v0  ;;  %v5762_v12 = vcombine.high %v5760_v48, %v5760_v48  ;;  %v5776_v10 = vrot.slane %v5760_v48, %v13983_v4  ;;  %v5783_v59 = vrot.slane %v5761_v14, %v13983_v4  ;;  %v5791_v62 = vcombine.high %v5769_v16, %v5769_v16  ;;  %v16642_v16 = vld [vmem:[#allocation138_spill] sm:$0xff] }
 0x5dc   :  { %12069 = vst.sshfl [vmem:[#allocation5 + $0xc] sm:$0x1 pattern:$0x73625140] %v5761_v14  ;;  %6664 = vmatpush1.bf16.msra.mxu0 %v14566_v42  ;;  %6705 = vmatpush1.bf16.msra.mxu1 %v16604_v52  ;;  %v16605_v42 = vld [vmem:[#allocation109_spill] sm:$0xff]  ;;  %v16647_v52 = vld [vmem:[#allocation143_spill] sm:$0xff] }
 0x5dd   :  { %12070 = vst.sshfl [vmem:[#allocation5 + $0x24] sm:$0x1 pattern:$0x73625140] %v5760_v48  ;;  %6695 = vmatprep.mubr.bf16.mxu0 %v5812_v24  ;;  %v5790_v29 = vrot.slane %v5762_v12, %v13983_v4  ;;  %v5792_v46 = vcombine.high %v5776_v10, %v5776_v10  ;;  %v5793_v6 = vcombine.high %v5783_v59, %v5783_v59  ;;  %5805 = vst [vmem:[#allocation5 + $0x14] sm:$0x1] %v5791_v62 }
 0x5de   :  { %12071 = vst.sshfl [vmem:[#allocation5 + $0x2c] sm:$0x1 pattern:$0x73625140] %v5762_v12  ;;  %6736 = vmatprep.mubr.bf16.mxu1 %v5812_v24  ;;  %6665 = vmatprep.subr.bf16.mxu0 %v14606_v31  ;;  %v16610_v31 = vld [vmem:[#allocation23_spill] sm:$0xff]  ;;  %v16640_v48 = vld [vmem:[#allocation136_spill] sm:$0xff] }
 0x5df   :  { %6706 = vmatprep.subr.bf16.mxu1 %v14614_v15  ;;  %v5794_v55 = vcombine.high %v5790_v29, %v5790_v29  ;;  %5806 = vst [vmem:[#allocation5 + $0x1c] sm:$0x1] %v5793_v6  ;;  %5809 = vst [vmem:[#allocation5 + $0x34] sm:$0x1] %v5792_v46  ;;  %v16611_v15 = vld [vmem:[#allocation24_spill] sm:$0xff]  ;;  %v16639_v24 = vld [vmem:[#allocation135_spill] sm:$0xff] }
 0x5e0   :  { %6666 = vmatpush1.bf16.msra.mxu0 %v14612_v37  ;;  %6707 = vmatpush1.bf16.msra.mxu1 %v14620_v57  ;;  %v16613_v37 = vld [vmem:[#allocation75_spill] sm:$0xff]  ;;  %v16614_v57 = vld [vmem:[#allocation78_spill] sm:$0xff]  ;;  %v16641_v14 = vld [vmem:[#allocation137_spill] sm:$0xff] }
 0x5e1   :  { %6667 = vmatprep.subr.bf16.mxu0 %v16605_v42  ;;  %5810 = vst [vmem:[#allocation5 + $0x3c] sm:$0x1] %v5794_v55  ;;  %6708 = vmatprep.subr.bf16.mxu1 %v16606_v11  ;;  %v16643_v12 = vld [vmem:[#allocation139_spill] sm:$0xff]  ;;  %v16644_v10 = vld [vmem:[#allocation140_spill] sm:$0xff]  ;;  %v16645_v59 = vld [vmem:[#allocation141_spill] sm:$0xff] }
 0x5e2   :  { %v16646_v62 = vld [vmem:[#allocation142_spill] sm:$0xff]  ;;  %v6983_v6 = vld [vmem:[#allocation11 + $0x140] sm:$0xff]  ;;  %v6984_v42 = vld [vmem:[#allocation11 + $0x148] sm:$0xff] }
 0x5e3   :  { %v6987_v55 = vld [vmem:[#allocation11 + $0x160] sm:$0xff] }
 0x5e4   :  { %6668 = vmatpush1.bf16.msra.mxu0 %v16607_v40  ;;  %6709 = vmatpush1.bf16.msra.mxu1 %v16608_v7  ;;  %v14990_v11 = vcombine.high %v6983_v6, %v6987_v55  ;;  %v6988_v40 = vld [vmem:[#allocation11 + $0x168] sm:$0xff]  ;;  %v14992_v7 = vcombine.low %v6983_v6, %v6987_v55 }
 0x5e5   :  { %6669 = vmatprep.subr.bf16.mxu0 %v16609_v61  ;;  %6710 = vmatprep.subr.bf16.mxu1 %v16610_v31  ;;  %v14994_v61 = vcombine.low %v6984_v42, %v6988_v40  ;;  %v14996_v31 = vcombine.high %v6984_v42, %v6988_v40  ;;  %v7055_v40 = vld [vmem:[#allocation11 + $0x380] sm:$0xff] }
 0x5e8   :  { %6670 = vmatpush1.bf16.msra.mxu0 %v16611_v15  ;;  %6711 = vmatpush1.bf16.msra.mxu1 %v16612_v9  ;;  %v6975_v15 = vld [vmem:[#allocation11 + $0x100] sm:$0xff] }
 0x5e9   :  { %6671 = vmatprep.subr.bf16.mxu0 %v16613_v37  ;;  %6712 = vmatprep.subr.bf16.mxu1 %v16614_v57  ;;  %v6979_v9 = vld [vmem:[#allocation11 + $0x120] sm:$0xff]  ;;  %v6976_v37 = vld [vmem:[#allocation11 + $0x108] sm:$0xff] }
 0x5ea   :  { %v15002_v57 = vcombine.high %v6975_v15, %v6979_v9 }
 0x5ec   :  { %6672 = vmatpush1.bf16.msra.mxu0 %v16615_v3  ;;  %6713 = vmatpush1.bf16.msra.mxu1 %v16616_v47  ;;  %v6980_v3 = vld [vmem:[#allocation11 + $0x128] sm:$0xff]  ;;  %v15004_v47 = vcombine.low %v6975_v15, %v6979_v9  ;;  %v7059_v15 = vld [vmem:[#allocation11 + $0x3a0] sm:$0xff] }
 0x5ed   :  { %6673 = vmatprep.subr.bf16.mxu0 %v16617_v41  ;;  %6714 = vmatprep.subr.bf16.mxu1 %v16618_v30  ;;  %v15006_v41 = vcombine.low %v6976_v37, %v6980_v3  ;;  %v15008_v30 = vcombine.high %v6976_v37, %v6980_v3  ;;  %v7056_v9 = vld [vmem:[#allocation11 + $0x388] sm:$0xff]  ;;  %v15074_v37 = vcombine.high %v7055_v40, %v7059_v15 }
 0x5ee   :  { %v7060_v3 = vld [vmem:[#allocation11 + $0x3a8] sm:$0xff] }
 0x5f0   :  { %6674 = vmatpush1.bf16.msra.mxu0 %v16619_v43  ;;  %6715 = vmatpush1.bf16.msra.mxu1 %v16620_v27  ;;  %v6967_v43 = vld [vmem:[#allocation11 + $0xc0] sm:$0xff] }
 0x5f1   :  { %6675 = vmatprep.subr.bf16.mxu0 %v16621_v23  ;;  %6716 = vmatprep.subr.bf16.mxu1 %v16622_v51  ;;  %v6971_v27 = vld [vmem:[#allocation11 + $0xe0] sm:$0xff]  ;;  %v6968_v23 = vld [vmem:[#allocation11 + $0xc8] sm:$0xff] }
 0x5f2   :  { %v15014_v51 = vcombine.high %v6967_v43, %v6971_v27 }
 0x5f4   :  { %6676 = vmatpush1.bf16.msra.mxu0 %v16623_v58  ;;  %6717 = vmatpush1.bf16.msra.mxu1 %v16624_v2  ;;  %v6972_v58 = vld [vmem:[#allocation11 + $0xe8] sm:$0xff]  ;;  %v15016_v2 = vcombine.low %v6967_v43, %v6971_v27  ;;  %v15076_v43 = vcombine.low %v7055_v40, %v7059_v15  ;;  %v15078_v27 = vcombine.low %v7056_v9, %v7060_v3  ;;  %v7035_v40 = vld [vmem:[#allocation11 + $0x2e0] sm:$0xff] }
 0x5f5   :  { %6677 = vmatprep.subr.bf16.mxu0 %v16625_v25  ;;  %6718 = vmatprep.subr.bf16.mxu1 %v16626_v5  ;;  %v15018_v25 = vcombine.low %v6968_v23, %v6972_v58  ;;  %v15020_v5 = vcombine.high %v6968_v23, %v6972_v58  ;;  %v15080_v23 = vcombine.high %v7056_v9, %v7060_v3  ;;  %v7047_v58 = vld [vmem:[#allocation11 + $0x340] sm:$0xff]  ;;  %v7032_v15 = vld [vmem:[#allocation11 + $0x2c8] sm:$0xff] }
 0x5f6   :  { %16648 = vst [vmem:[#allocation144_spill] sm:$0xff] %v15076_v43  ;;  %16649 = vst [vmem:[#allocation145_spill] sm:$0xff] %v15078_v27 }
 0x5f7   :  { %16650 = vst [vmem:[#allocation146_spill] sm:$0xff] %v15080_v23 }
 0x5f8   :  { %6678 = vmatpush1.bf16.msra.mxu0 %v16627_v36  ;;  %6719 = vmatpush1.bf16.msra.mxu1 %v16628_v56  ;;  %v6959_v36 = vld [vmem:[#allocation11 + $0x80] sm:$0xff] }
 0x5f9   :  { %6679 = vmatprep.subr.bf16.mxu0 %v16629_v49  ;;  %6720 = vmatprep.subr.bf16.mxu1 %v16630_v60  ;;  %v6963_v56 = vld [vmem:[#allocation11 + $0xa0] sm:$0xff]  ;;  %v6960_v49 = vld [vmem:[#allocation11 + $0x88] sm:$0xff] }
 0x5fa   :  { %v15026_v60 = vcombine.high %v6959_v36, %v6963_v56 }
 0x5fc   :  { %6680 = vmatpush2.bf16.msra.mxu0 %v16631_v44  ;;  %6721 = vmatpush2.bf16.msra.mxu1 %v16632_v32  ;;  %v6964_v44 = vld [vmem:[#allocation11 + $0xa8] sm:$0xff]  ;;  %v15028_v32 = vcombine.low %v6959_v36, %v6963_v56  ;;  %v7051_v36 = vld [vmem:[#allocation11 + $0x360] sm:$0xff] }
 0x5fd   :  { %6681 = vmatprep.subr.bf16.mxu0 %v16633_v1  ;;  %6722 = vmatprep.subr.bf16.mxu1 %v16634_v53  ;;  %v15030_v1 = vcombine.low %v6960_v49, %v6964_v44  ;;  %v15032_v53 = vcombine.high %v6960_v49, %v6964_v44  ;;  %v7048_v56 = vld [vmem:[#allocation11 + $0x348] sm:$0xff]  ;;  %v15086_v49 = vcombine.high %v7047_v58, %v7051_v36 }
 0x5fe   :  { %v7052_v44 = vld [vmem:[#allocation11 + $0x368] sm:$0xff] }
 0x5ff   :  { %16651 = vst [vmem:[#allocation147_spill] sm:$0xff] %v15086_v49 }
 0x600   :  { %6682 = vmatpush2.bf16.msra.mxu0 %v16635_v34  ;;  %6723 = vmatpush2.bf16.msra.mxu1 %v16636_v35  ;;  %v6951_v34 = vld [vmem:[#allocation11 + $0x40] sm:$0xff] }
 0x601   :  { %6683 = vmatprep.subr.bf16.mxu0 %v16637_v28  ;;  %6724 = vmatprep.subr.bf16.mxu1 %v16638_v19  ;;  %v6955_v35 = vld [vmem:[#allocation11 + $0x60] sm:$0xff]  ;;  %v6952_v28 = vld [vmem:[#allocation11 + $0x48] sm:$0xff] }
 0x602   :  { %v15038_v19 = vcombine.high %v6951_v34, %v6955_v35 }
 0x604   :  { %6684 = vmatpush2.bf16.msra.mxu0 %v16639_v24  ;;  %6725 = vmatpush2.bf16.msra.mxu1 %v16640_v48  ;;  %v6956_v24 = vld [vmem:[#allocation11 + $0x68] sm:$0xff]  ;;  %v15040_v48 = vcombine.low %v6951_v34, %v6955_v35  ;;  %v15088_v34 = vcombine.low %v7047_v58, %v7051_v36  ;;  %v15090_v35 = vcombine.low %v7048_v56, %v7052_v44  ;;  %v7023_v36 = vld [vmem:[#allocation11 + $0x280] sm:$0xff] }
 0x605   :  { %6685 = vmatprep.subr.bf16.mxu0 %v16641_v14  ;;  %6726 = vmatprep.subr.bf16.mxu1 %v16642_v16  ;;  %v15042_v14 = vcombine.low %v6952_v28, %v6956_v24  ;;  %v15044_v16 = vcombine.high %v6952_v28, %v6956_v24  ;;  %v15092_v28 = vcombine.high %v7048_v56, %v7052_v44  ;;  %v7039_v24 = vld [vmem:[#allocation11 + $0x300] sm:$0xff]  ;;  %v7036_v58 = vld [vmem:[#allocation11 + $0x2e8] sm:$0xff] }
 0x606   :  { %16652 = vst [vmem:[#allocation148_spill] sm:$0xff] %v15088_v34  ;;  %16653 = vst [vmem:[#allocation149_spill] sm:$0xff] %v15090_v35  ;;  %v7027_v56 = vld [vmem:[#allocation11 + $0x2a0] sm:$0xff]  ;;  %v15114_v44 = vcombine.low %v7032_v15, %v7036_v58 }
 0x607   :  { %16654 = vst [vmem:[#allocation150_spill] sm:$0xff] %v15092_v28 }
 0x608   :  { %6686 = vmatpush2.bf16.msra.mxu0 %v16643_v12  ;;  %6727 = vmatpush2.bf16.msra.mxu1 %v16644_v10  ;;  %v6943_v12 = vld [vmem:[#allocation11] sm:$0xff]  ;;  %16661 = vst [vmem:[#allocation71_spill] sm:$0xff] %v15114_v44 }
 0x609   :  { %6687 = vmatprep.subr.bf16.mxu0 %v16645_v59  ;;  %6728 = vmatprep.subr.bf16.mxu1 %v16646_v62  ;;  %v6947_v10 = vld [vmem:[#allocation11 + $0x20] sm:$0xff]  ;;  %v6944_v59 = vld [vmem:[#allocation11 + $0x8] sm:$0xff] }
 0x60a   :  { %v15050_v62 = vcombine.high %v6943_v12, %v6947_v10 }
 0x60c   :  { %6688 = vmatpush2.bf16.msra.mxu0 %v14750_v22  ;;  %6729 = vmatpush2.bf16.msra.mxu1 %v14754_v17  ;;  %v6999_v22 = vld [vmem:[#allocation11 + $0x1c0] sm:$0xff] }
 0x60d   :  { %6689 = vmatprep.subr.bf16.mxu0 %v14756_v26  ;;  %6730 = vmatprep.subr.bf16.mxu1 %v16647_v52  ;;  %v7003_v17 = vld [vmem:[#allocation11 + $0x1e0] sm:$0xff]  ;;  %v7000_v26 = vld [vmem:[#allocation11 + $0x1c8] sm:$0xff] }
 0x60e   :  { %v6948_v52 = vld [vmem:[#allocation11 + $0x28] sm:$0xff] }
 0x610   :  { %6690 = vmatpush2.bf16.msra.mxu0 %v14762_v39  ;;  %6731 = vmatpush2.bf16.msra.mxu1 %v14766_v20  ;;  %v14966_v39 = vcombine.low %v6999_v22, %v7003_v17  ;;  %v14968_v20 = vcombine.high %v6999_v22, %v7003_v17  ;;  %v15052_v22 = vcombine.low %v6943_v12, %v6947_v10  ;;  %v7043_v12 = vld [vmem:[#allocation11 + $0x320] sm:$0xff]  ;;  %v7040_v10 = vld [vmem:[#allocation11 + $0x308] sm:$0xff] }
 0x611   :  { %6691 = vmatprep.subr.bf16.mxu0 %v14768_v50  ;;  %6732 = vmatprep.subr.bf16.mxu1 %v14771_v13  ;;  %v7004_v50 = vld [vmem:[#allocation11 + $0x1e8] sm:$0xff]  ;;  %v6991_v13 = vld [vmem:[#allocation11 + $0x180] sm:$0xff]  ;;  %v15054_v17 = vcombine.low %v6944_v59, %v6948_v52 }
 0x614   :  { %6692 = vmatpush2.bf16.msra.mxu0 %v14774_v38  ;;  %6733 = vmatpush2.bf16.msra.mxu1 %v14778_v45  ;;  %v6995_v38 = vld [vmem:[#allocation11 + $0x1a0] sm:$0xff]  ;;  %v14970_v45 = vcombine.low %v7000_v26, %v7004_v50 }
 0x615   :  { %6693 = vmatprep.subr.bf16.mxu0 %v14780_v21  ;;  %6734 = vmatprep.subr.bf16.mxu1 %v14783_v8  ;;  %v14972_v21 = vcombine.high %v7000_v26, %v7004_v50  ;;  %v6992_v8 = vld [vmem:[#allocation11 + $0x188] sm:$0xff]  ;;  %v14981_v29 = vcombine.low %v6991_v13, %v6995_v38  ;;  %v15056_v26 = vcombine.high %v6944_v59, %v6948_v52  ;;  %v7063_v50 = vld [vmem:[#allocation11 + $0x3c0] sm:$0xff] }
 0x616   :  { %v15098_v59 = vcombine.high %v7039_v24, %v7043_v12  ;;  %v7044_v52 = vld [vmem:[#allocation11 + $0x328] sm:$0xff] }
 0x618   :  { %6694 = vmatpush2.bf16.msra.mxu0 %v14786_v54  ;;  %6735 = vmatpush2.bf16.msra.mxu1 %v14790_v18  ;;  %v14974_v54 = vcombine.high %v6991_v13, %v6995_v38  ;;  %v6996_v18 = vld [vmem:[#allocation11 + $0x1a8] sm:$0xff]  ;;  %v7067_v13 = vld [vmem:[#allocation11 + $0x3e0] sm:$0xff]  ;;  %16655 = vst [vmem:[#allocation151_spill] sm:$0xff] %v15098_v59 }
 0x619   :  { %7711 = vmatprep.subr.bf16.mxu0 %v14968_v20  ;;  %7752 = vmatprep.subr.bf16.mxu1 %v14972_v21  ;;  %v14985_v46 = vcombine.low %v6992_v8, %v6996_v18  ;;  %v7064_v38 = vld [vmem:[#allocation11 + $0x3c8] sm:$0xff]  ;;  %v15064_v6 = vcombine.low %v7063_v50, %v7067_v13 }
 0x61b   :  { %6696 = vmatmul.mubr.bf16.vlgmr.msra.gmra.mxu0 %v14893_v0  ;;  %6737 = vmatmul.mubr.bf16.vlgmr.msra.gmra.mxu1 %v14893_v0  ;;  %v14977_v0 = vcombine.high %v6992_v8, %v6996_v18  ;;  %v15062_v8 = vcombine.high %v7063_v50, %v7067_v13  ;;  %v7068_v18 = vld [vmem:[#allocation11 + $0x3e8] sm:$0xff]  ;;  %v15100_v50 = vcombine.low %v7039_v24, %v7043_v12 }
 0x61c   :  { %7712 = vmatpush1.bf16.msra.mxu0 %v14966_v39  ;;  %7753 = vmatpush1.bf16.msra.mxu1 %v14970_v45  ;;  %v15066_v55 = vcombine.low %v7064_v38, %v7068_v18  ;;  %v15068_v42 = vcombine.high %v7064_v38, %v7068_v18  ;;  %v15102_v13 = vcombine.low %v7040_v10, %v7044_v52  ;;  %v7031_v18 = vld [vmem:[#allocation11 + $0x2c0] sm:$0xff] }
 0x61d   :  { %7713 = vmatprep.subr.bf16.mxu0 %v14974_v54  ;;  %7754 = vmatprep.subr.bf16.mxu1 %v14977_v0  ;;  %16656 = vst [vmem:[#allocation25_spill] sm:$0xff] %v15100_v50  ;;  %v15104_v38 = vcombine.high %v7040_v10, %v7044_v52  ;;  %v15110_v9 = vcombine.low %v7031_v18, %v7035_v40  ;;  %v7024_v10 = vld [vmem:[#allocation11 + $0x288] sm:$0xff] }
 0x61e   :  { %16657 = vst [vmem:[#allocation27_spill] sm:$0xff] %v15102_v13  ;;  %v15112_v3 = vcombine.high %v7031_v18, %v7035_v40  ;;  %v15116_v24 = vcombine.high %v7032_v15, %v7036_v58  ;;  %v15118_v12 = vcombine.high %v7023_v36, %v7027_v56  ;;  %v7028_v52 = vld [vmem:[#allocation11 + $0x2a8] sm:$0xff]  ;;  %v15125_v40 = vcombine.low %v7023_v36, %v7027_v56 }
 0x61f   :  { %16658 = vst [vmem:[#allocation28_spill] sm:$0xff] %v15104_v38  ;;  %16659 = vst [vmem:[#allocation26_spill] sm:$0xff] %v15110_v9  ;;  %v7020_v18 = vld [vmem:[#allocation11 + $0x268] sm:$0xff]  ;;  %v15129_v15 = vcombine.low %v7024_v10, %v7028_v52 }
 0x620   :  { %7714 = vmatpush1.bf16.msra.mxu0 %v14981_v29  ;;  %7755 = vmatpush1.bf16.msra.mxu1 %v14985_v46  ;;  %16660 = vst [vmem:[#allocation69_spill] sm:$0xff] %v15112_v3  ;;  %16662 = vst [vmem:[#allocation72_spill] sm:$0xff] %v15116_v24 }
 0x621   :  { %7715 = vmatprep.subr.bf16.mxu0 %v14990_v11  ;;  %7756 = vmatprep.subr.bf16.mxu1 %v14996_v31  ;;  %16663 = vst [vmem:[#allocation70_spill] sm:$0xff] %v15118_v12  ;;  %16665 = vst [vmem:[#allocation73_spill] sm:$0xff] %v15125_v40 }
 0x622   :  { %16666 = vst [vmem:[#allocation74_spill] sm:$0xff] %v15129_v15 }
 0x624   :  { %7716 = vmatpush1.bf16.msra.mxu0 %v14992_v7  ;;  %7757 = vmatpush1.bf16.msra.mxu1 %v14994_v61 }
 0x625   :  { %7717 = vmatprep.subr.bf16.mxu0 %v15002_v57  ;;  %7758 = vmatprep.subr.bf16.mxu1 %v15008_v30 }
 0x628   :  { %7718 = vmatpush1.bf16.msra.mxu0 %v15004_v47  ;;  %7759 = vmatpush1.bf16.msra.mxu1 %v15006_v41 }
 0x629   :  { %7719 = vmatprep.subr.bf16.mxu0 %v15014_v51  ;;  %7760 = vmatprep.subr.bf16.mxu1 %v15020_v5 }
 0x62c   :  { %7720 = vmatpush1.bf16.msra.mxu0 %v15016_v2  ;;  %7761 = vmatpush1.bf16.msra.mxu1 %v15018_v25 }
 0x62d   :  { %7721 = vmatprep.subr.bf16.mxu0 %v15026_v60  ;;  %7762 = vmatprep.subr.bf16.mxu1 %v15032_v53 }
 0x630   :  { %7722 = vmatpush1.bf16.msra.mxu0 %v15028_v32  ;;  %7763 = vmatpush1.bf16.msra.mxu1 %v15030_v1 }
 0x631   :  { %7723 = vmatprep.subr.bf16.mxu0 %v15038_v19  ;;  %7764 = vmatprep.subr.bf16.mxu1 %v15044_v16 }
 0x634   :  { %7724 = vmatpush1.bf16.msra.mxu0 %v15040_v48  ;;  %7765 = vmatpush1.bf16.msra.mxu1 %v15042_v14 }
 0x635   :  { %7725 = vmatprep.subr.bf16.mxu0 %v15050_v62  ;;  %7766 = vmatprep.subr.bf16.mxu1 %v15056_v26 }
 0x638   :  { %7726 = vmatpush1.bf16.msra.mxu0 %v15052_v22  ;;  %7767 = vmatpush1.bf16.msra.mxu1 %v15054_v17 }
 0x639   :  { %7727 = vmatprep.subr.bf16.mxu0 %v15062_v8  ;;  %7768 = vmatprep.subr.bf16.mxu1 %v15068_v42 }
 0x63c   :  { %7728 = vmatpush2.bf16.msra.mxu0 %v15064_v6  ;;  %7769 = vmatpush2.bf16.msra.mxu1 %v15066_v55 }
 0x63d   :  { %7729 = vmatprep.subr.bf16.mxu0 %v15074_v37  ;;  %7770 = vmatprep.subr.bf16.mxu1 %v15080_v23 }
 0x640   :  { %7730 = vmatpush2.bf16.msra.mxu0 %v15076_v43  ;;  %7771 = vmatpush2.bf16.msra.mxu1 %v15078_v27 }
 0x641   :  { %7731 = vmatprep.subr.bf16.mxu0 %v15086_v49  ;;  %7772 = vmatprep.subr.bf16.mxu1 %v15092_v28  ;;  %v7008_v28 = vld [vmem:[#allocation11 + $0x208] sm:$0xff] }
 0x644   :  { %7732 = vmatpush2.bf16.msra.mxu0 %v15088_v34  ;;  %7773 = vmatpush2.bf16.msra.mxu1 %v15090_v35  ;;  %v7007_v35 = vld [vmem:[#allocation11 + $0x200] sm:$0xff] }
 0x645   :  { %7733 = vmatprep.subr.bf16.mxu0 %v15098_v59  ;;  %7774 = vmatprep.subr.bf16.mxu1 %v15104_v38  ;;  %v15121_v38 = vcombine.high %v7024_v10, %v7028_v52  ;;  %v7016_v59 = vld [vmem:[#allocation11 + $0x248] sm:$0xff]  ;;  %v7011_v34 = vld [vmem:[#allocation11 + $0x220] sm:$0xff] }
 0x646   :  { %v15141_v56 = vcombine.low %v7016_v59, %v7020_v18  ;;  %v15143_v10 = vcombine.high %v7007_v35, %v7011_v34 }
 0x647   :  { %16664 = vst [vmem:[#allocation77_spill] sm:$0xff] %v15121_v38 }
 0x648   :  { %7734 = vmatpush2.bf16.msra.mxu0 %v15100_v50  ;;  %7775 = vmatpush2.bf16.msra.mxu1 %v15102_v13  ;;  %v7015_v50 = vld [vmem:[#allocation11 + $0x240] sm:$0xff]  ;;  %16670 = vst [vmem:[#allocation81_spill] sm:$0xff] %v15141_v56  ;;  %16671 = vst [vmem:[#allocation86_spill] sm:$0xff] %v15143_v10 }
 0x649   :  { %7735 = vmatprep.subr.bf16.mxu0 %v15112_v3  ;;  %v7019_v13 = vld [vmem:[#allocation11 + $0x260] sm:$0xff]  ;;  %7776 = vmatprep.subr.bf16.mxu1 %v15116_v24  ;;  %v15134_v3 = vcombine.high %v7016_v59, %v7020_v18  ;;  %v7012_v24 = vld [vmem:[#allocation11 + $0x228] sm:$0xff]  ;;  %v7001_v59 = vld [vmem:[#allocation11 + $0x1d0] sm:$0xff] }
 0x64a   :  { %v15131_v58 = vcombine.high %v7015_v50, %v7019_v13  ;;  %v15137_v36 = vcombine.low %v7015_v50, %v7019_v13  ;;  %v15146_v52 = vcombine.high %v7008_v28, %v7012_v24  ;;  %v15153_v50 = vcombine.low %v7008_v28, %v7012_v24  ;;  %v7005_v13 = vld [vmem:[#allocation11 + $0x1f0] sm:$0xff]  ;;  %v7002_v18 = vld [vmem:[#allocation11 + $0x1d8] sm:$0xff] }
 0x64b   :  { %16668 = vst [vmem:[#allocation83_spill] sm:$0xff] %v15134_v3 }
 0x64c   :  { %7736 = vmatpush2.bf16.msra.mxu0 %v15110_v9  ;;  %7777 = vmatpush2.bf16.msra.mxu1 %v15114_v44  ;;  %16667 = vst [vmem:[#allocation82_spill] sm:$0xff] %v15131_v58  ;;  %16669 = vst [vmem:[#allocation80_spill] sm:$0xff] %v15137_v36  ;;  %v16681_v9 = vld [vmem:[#allocation34_spill] sm:$0xff] }
 0x64d   :  { %7737 = vmatprep.subr.bf16.mxu0 %v15118_v12  ;;  %7778 = vmatprep.subr.bf16.mxu1 %v15121_v38  ;;  %16672 = vst [vmem:[#allocation87_spill] sm:$0xff] %v15146_v52  ;;  %v15149_v38 = vcombine.low %v7007_v35, %v7011_v34  ;;  %16674 = vst [vmem:[#allocation85_spill] sm:$0xff] %v15153_v50  ;;  %v15160_v34 = vcombine.low %v7001_v59, %v7005_v13 }
 0x64f   :  { %16673 = vst [vmem:[#allocation84_spill] sm:$0xff] %v15149_v38 }
 0x650   :  { %7738 = vmatpush2.bf16.msra.mxu0 %v15125_v40  ;;  %7779 = vmatpush2.bf16.msra.mxu1 %v15129_v15  ;;  %v16679_v15 = vld [vmem:[#allocation35_spill] sm:$0xff] }
 0x651   :  { %7739 = vmatprep.subr.bf16.mxu0 %v15131_v58  ;;  %7780 = vmatprep.subr.bf16.mxu1 %v15134_v3  ;;  %v15158_v3 = vcombine.high %v7001_v59, %v7005_v13 }
 0x653   :  { %16675 = vst [vmem:[#allocation88_spill] sm:$0xff] %v15158_v3 }
 0x654   :  { %7740 = vmatpush2.bf16.msra.mxu0 %v15137_v36  ;;  %7781 = vmatpush2.bf16.msra.mxu1 %v15141_v56  ;;  %v7006_v36 = vld [vmem:[#allocation11 + $0x1f8] sm:$0xff] }
 0x655   :  { %7741 = vmatprep.subr.bf16.mxu0 %v15143_v10  ;;  %7782 = vmatprep.subr.bf16.mxu1 %v15146_v52  ;;  %v15162_v35 = vcombine.low %v7002_v18, %v7006_v36  ;;  %v15164_v56 = vcombine.high %v7002_v18, %v7006_v36  ;;  %v16680_v18 = vld [vmem:[#allocation36_spill] sm:$0xff] }
 0x657   :  { %16676 = vst [vmem:[#allocation91_spill] sm:$0xff] %v15162_v35  ;;  %16677 = vst [vmem:[#allocation90_spill] sm:$0xff] %v15164_v56 }
 0x658   :  { %7742 = vmatpush2.bf16.msra.mxu0 %v15149_v38  ;;  %7783 = vmatpush2.bf16.msra.mxu1 %v15153_v50  ;;  %v16678_v38 = vld [vmem:[#allocation33_spill] sm:$0xff] }
 0x659   :  { %7793 = vmatprep.subr.bf16.mxu0 %v15158_v3  ;;  %7834 = vmatprep.subr.bf16.mxu1 %v15164_v56 }
 0x69a   :  { %v6615_v28 = vpop.f32.mrf.mxu0 }
 0x69b   :  { %v6656_v24 = vpop.f32.mrf.mxu1  ;;  %v6749_v52 = vadd.f32 %v6615_v28, %v16678_v38 }
 0x69c   :  { %v6617_v10 = vpop.f32.mrf.mxu0  ;;  %v6751_v56 = vadd.f32 %v6656_v24, %v16681_v9 }
 0x69d   :  { %v6658_v58 = vpop.f32.mrf.mxu1  ;;  %v12200_v50 = vmul.f32 -1.442695, %v6749_v52  ;;  %v6750_v40 = vadd.f32 %v6617_v10, %v16679_v15 }
 0x69e   :  { %v6619_v12 = vpop.f32.mrf.mxu0  ;;  %v6752_v3 = vadd.f32 %v6658_v58, %v16680_v18 }
 0x69f   :  { %v6660_v59 = vpop.f32.mrf.mxu1  ;;  %13105 = vpow2.f32 %v12200_v50  ;;  %v12201_v13 = vmul.f32 -1.442695, %v6750_v40 }
 0x6a0   :  { %v6620_v44 = vpop.f32.mrf.mxu0  ;;  %v12202_v49 = vmul.f32 -1.442695, %v6752_v3 }
 0x6a1   :  { %v6661_v36 = vpop.f32.mrf.mxu1  ;;  %13107 = vpow2.f32 %v12201_v13 }
 0x6a2   :  { %13109 = vtanh.f32 %v6751_v56 }
 0x6a3   :  { %13111 = vpow2.f32 %v12202_v49 }
 0x6ac   :  { %v13106_v27 = vpop.eup %13105 }
 0x6ad   :  { %v6764_v43 = vadd.f32 1.0, %v13106_v27 }
 0x6ae   :  { %v13108_v38 = vpop.eup %13107 }
 0x6af   :  { %13113 = vrcp.f32 %v6764_v43  ;;  %v6770_v52 = vadd.f32 1.0, %v13108_v38  ;;  %v13110_v12 = vpop.eup %13109 }
 0x6b0   :  { %v13112_v15 = vpop.eup %13111 }
 0x6b1   :  { %13115 = vrcp.f32 %v6770_v52  ;;  %v6777_v50 = vadd.f32 1.0, %v13112_v15 }
 0x6b3   :  { %13117 = vrcp.f32 %v6777_v50 }
 0x6bc   :  { %v13114_v10 = vpop.eup %13113 }
 0x6bd   :  { %v6781_v40 = vmul.f32 %v13114_v10, %v13110_v12  ;;  %v16683_v10 = vld [vmem:[#allocation61_spill] sm:$0xff] }
 0x6be   :  { %v13116_v44 = vpop.eup %13115 }
 0x6bf   :  { %v6780_v28 = vmul.f32 %v13116_v44, %v14868_v33 }
 0x6c0   :  { %v13118_v27 = vpop.eup %13117 }
 0x6c1   :  { %v15173_v58 = vadd.f32 %v6781_v40, %v6780_v28 }
 0x6c3   :  { %16682 = vst [vmem:[#allocation89_spill] sm:$0xff] %v15173_v58  ;;  %13119 = vtanh.f32 %v15173_v58 }
 0x6d0   :  { %v13120_v9 = vpop.eup %13119 }
 0x6d1   :  { %v15176_v3 = vmul.f32 %v13120_v9, %v13118_v27  ;;  %v16684_v9 = vld [vmem:[#allocation63_spill] sm:$0xff] }
 0x6d3   :  { %v6810_v43 = vcombine.high %v15176_v3, %v15176_v3  ;;  %v6817_v49 = vrot.slane %v15176_v3, %v13983_v4 }
 0x6d5   :  { %v6824_v56 = vrot.slane %v6810_v43, %v13983_v4  ;;  %v6825_v24 = vcombine.high %v6817_v49, %v6817_v49  ;;  %v6833_v33 = vrot.slane %v6817_v49, %v13983_v4  ;;  %12206 = vst.sshfl [vmem:[#allocation4 + $0x4] sm:$0x1 pattern:$0x73625140] %v6817_v49 }
 0x6d7   :  { %v6826_v59 = vcombine.high %v6824_v56, %v6824_v56  ;;  %v6840_v13 = vrot.slane %v6824_v56, %v13983_v4  ;;  %v6847_v36 = vrot.slane %v6825_v24, %v13983_v4  ;;  %v6855_v18 = vcombine.high %v6833_v33, %v6833_v33  ;;  %12207 = vst.sshfl [vmem:[#allocation4 + $0xc] sm:$0x1 pattern:$0x73625140] %v6825_v24 }
 0x6d8   :  { %12208 = vst.sshfl [vmem:[#allocation4 + $0x24] sm:$0x1 pattern:$0x73625140] %v6824_v56 }
 0x6d9   :  { %v6854_v38 = vrot.slane %v6826_v59, %v13983_v4  ;;  %v6856_v52 = vcombine.high %v6840_v13, %v6840_v13  ;;  %v6857_v12 = vcombine.high %v6847_v36, %v6847_v36  ;;  %6869 = vst [vmem:[#allocation4 + $0x14] sm:$0x1] %v6855_v18  ;;  %12209 = vst.sshfl [vmem:[#allocation4 + $0x2c] sm:$0x1 pattern:$0x73625140] %v6826_v59 }
 0x6da   :  { %v16685_v36 = vld [vmem:[#allocation64_spill] sm:$0xff] }
 0x6db   :  { %v6697_v15 = vpop.f32.mrf.mxu0  ;;  %v6738_v44 = vpop.f32.mrf.mxu1  ;;  %v6858_v50 = vcombine.high %v6854_v38, %v6854_v38  ;;  %6870 = vst [vmem:[#allocation4 + $0x1c] sm:$0x1] %v6857_v12  ;;  %6873 = vst [vmem:[#allocation4 + $0x34] sm:$0x1] %v6856_v52 }
 0x6dc   :  { %v6757_v40 = vadd.f32 %v6697_v15, %v16683_v10  ;;  %v16686_v15 = vld [vmem:[#allocation62_spill] sm:$0xff] }
 0x6dd   :  { %v6699_v28 = vpop.f32.mrf.mxu0  ;;  %v6740_v49 = vpop.f32.mrf.mxu1  ;;  %6874 = vst [vmem:[#allocation4 + $0x3c] sm:$0x1] %v6858_v50  ;;  %v6759_v10 = vadd.f32 %v6738_v44, %v16686_v15 }
 0x6de   :  { %v12203_v27 = vmul.f32 -1.442695, %v6757_v40  ;;  %v6758_v43 = vadd.f32 %v6699_v28, %v16684_v9  ;;  %v6760_v18 = vadd.f32 %v6740_v49, %v16685_v36  ;;  %v6993_v36 = vld [vmem:[#allocation11 + $0x190] sm:$0xff] }
 0x6df   :  { %v6701_v56 = vpop.f32.mrf.mxu0  ;;  %v6742_v33 = vpop.f32.mrf.mxu1 }
 0x6e0   :  { %13121 = vpow2.f32 %v12203_v27  ;;  %v12204_v24 = vmul.f32 -1.442695, %v6758_v43  ;;  %v12205_v38 = vmul.f32 -1.442695, %v6760_v18  ;;  %v6997_v18 = vld [vmem:[#allocation11 + $0x1b0] sm:$0xff] }
 0x6e1   :  { %v6702_v13 = vpop.f32.mrf.mxu0  ;;  %v6743_v59 = vpop.f32.mrf.mxu1 }
 0x6e2   :  { %13123 = vpow2.f32 %v12204_v24 }
 0x6e3   :  { %13125 = vtanh.f32 %v6759_v10 }
 0x6e4   :  { %13127 = vpow2.f32 %v12205_v38 }
 0x6ed   :  { %v13122_v12 = vpop.eup %13121 }
 0x6ee   :  { %v6788_v52 = vadd.f32 1.0, %v13122_v12  ;;  %v6994_v12 = vld [vmem:[#allocation11 + $0x198] sm:$0xff] }
 0x6ef   :  { %v13124_v40 = vpop.eup %13123 }
 0x6f0   :  { %13129 = vrcp.f32 %v6788_v52  ;;  %v6794_v28 = vadd.f32 1.0, %v13124_v40  ;;  %v13126_v50 = vpop.eup %13125  ;;  %v6998_v52 = vld [vmem:[#allocation11 + $0x1b8] sm:$0xff]  ;;  %v15198_v40 = vpack.c.bf16 %v15176_v3, %v15176_v3  ;;  %v15206_v3 = vcombine.low %v6993_v36, %v6997_v18 }
 0x6f1   :  { %v13128_v27 = vpop.eup %13127 }
 0x6f2   :  { %13131 = vrcp.f32 %v6794_v28  ;;  %v6801_v24 = vadd.f32 1.0, %v13128_v27  ;;  %v6985_v28 = vld [vmem:[#allocation11 + $0x150] sm:$0xff] }
 0x6f4   :  { %13133 = vrcp.f32 %v6801_v24  ;;  %v6990_v24 = vld [vmem:[#allocation11 + $0x178] sm:$0xff] }
 0x6fd   :  { %v13130_v9 = vpop.eup %13129 }
 0x6fe   :  { %v6805_v43 = vmul.f32 %v13130_v9, %v13126_v50 }
 0x6ff   :  { %v13132_v56 = vpop.eup %13131 }
 0x700   :  { %v6804_v33 = vmul.f32 %v13132_v56, %v14887_v63  ;;  %v15200_v63 = vcombine.high %v6993_v36, %v6997_v18  ;;  %v6986_v56 = vld [vmem:[#allocation11 + $0x158] sm:$0xff] }
 0x701   :  { %v13134_v44 = vpop.eup %13133  ;;  %v15218_v36 = vcombine.high %v6986_v56, %v6990_v24 }
 0x702   :  { %v15192_v49 = vadd.f32 %v6805_v43, %v6804_v33  ;;  %v6989_v43 = vld [vmem:[#allocation11 + $0x170] sm:$0xff]  ;;  %v15208_v33 = vcombine.high %v6994_v12, %v6998_v52 }
 0x703   :  { %16689 = vst [vmem:[#allocation93_spill] sm:$0xff] %v15218_v36 }
 0x704   :  { %16687 = vst [vmem:[#allocation94_spill] sm:$0xff] %v15192_v49  ;;  %13135 = vtanh.f32 %v15192_v49  ;;  %v15216_v49 = vcombine.high %v6985_v28, %v6989_v43 }
 0x706   :  { %16688 = vst [vmem:[#allocation92_spill] sm:$0xff] %v15216_v49 }
 0x711   :  { %v13136_v13 = vpop.eup %13135 }
 0x712   :  { %v6808_v59 = vmul.f32 %v13136_v13, %v13134_v44 }
 0x714   :  { %v6876_v15 = vcombine.high %v6808_v59, %v6808_v59  ;;  %v6883_v10 = vrot.slane %v6808_v59, %v13983_v4  ;;  %v6942_v38 = vpack.c.bf16 %v6808_v59, %v6808_v59 }
 0x716   :  { %v6890_v50 = vrot.slane %v6876_v15, %v13983_v4  ;;  %v6891_v27 = vcombine.high %v6883_v10, %v6883_v10  ;;  %v6899_v9 = vrot.slane %v6883_v10, %v13983_v4  ;;  %12210 = vst.sshfl [vmem:[#allocation5 + $0x3] sm:$0x1 pattern:$0x73625140] %v6883_v10  ;;  %7743 = vmatprep.mubr.bf16.mxu0 %v6942_v38 }
 0x717   :  { %7784 = vmatprep.mubr.bf16.mxu1 %v6942_v38  ;;  %7744 = vmatmul.mubr.bf16.vlgmr.msra.gmra.mxu0 %v15198_v40  ;;  %v15214_v10 = vcombine.low %v6994_v12, %v6998_v52  ;;  %v6982_v12 = vld [vmem:[#allocation11 + $0x138] sm:$0xff] }
 0x718   :  { %7785 = vmatmul.mubr.bf16.vlgmr.msra.gmra.mxu1 %v15198_v40  ;;  %v6892_v44 = vcombine.high %v6890_v50, %v6890_v50  ;;  %v6906_v13 = vrot.slane %v6890_v50, %v13983_v4  ;;  %v6913_v59 = vrot.slane %v6891_v27, %v13983_v4  ;;  %v6921_v15 = vcombine.high %v6899_v9, %v6899_v9  ;;  %v6978_v9 = vld [vmem:[#allocation11 + $0x118] sm:$0xff] }
 0x719   :  { %12211 = vst.sshfl [vmem:[#allocation5 + $0xb] sm:$0x1 pattern:$0x73625140] %v6891_v27  ;;  %7794 = vmatpush1.bf16.msra.mxu0 %v15160_v34  ;;  %7835 = vmatpush1.bf16.msra.mxu1 %v15162_v35  ;;  %v6981_v27 = vld [vmem:[#allocation11 + $0x130] sm:$0xff]  ;;  %v15224_v35 = vcombine.low %v6985_v28, %v6989_v43  ;;  %v15240_v43 = vcombine.low %v6978_v9, %v6982_v12 }
 0x71a   :  { %12212 = vst.sshfl [vmem:[#allocation5 + $0x23] sm:$0x1 pattern:$0x73625140] %v6890_v50  ;;  %7825 = vmatprep.mubr.bf16.mxu0 %v6942_v38  ;;  %v6920_v18 = vrot.slane %v6892_v44, %v13983_v4  ;;  %v6922_v58 = vcombine.high %v6906_v13, %v6906_v13  ;;  %v6923_v23 = vcombine.high %v6913_v59, %v6913_v59  ;;  %6935 = vst [vmem:[#allocation5 + $0x13] sm:$0x1] %v6921_v15 }
 0x71b   :  { %12213 = vst.sshfl [vmem:[#allocation5 + $0x2b] sm:$0x1 pattern:$0x73625140] %v6892_v44  ;;  %7866 = vmatprep.mubr.bf16.mxu1 %v6942_v38  ;;  %7795 = vmatprep.subr.bf16.mxu0 %v15200_v63  ;;  %v6977_v50 = vld [vmem:[#allocation11 + $0x110] sm:$0xff]  ;;  %16690 = vst [vmem:[#allocation96_spill] sm:$0xff] %v15224_v35  ;;  %v15228_v38 = vcombine.low %v6986_v56, %v6990_v24  ;;  %v15233_v13 = vcombine.high %v6978_v9, %v6982_v12 }
 0x71c   :  { %7836 = vmatprep.subr.bf16.mxu1 %v15208_v33  ;;  %v6924_v52 = vcombine.high %v6920_v18, %v6920_v18  ;;  %6936 = vst [vmem:[#allocation5 + $0x1b] sm:$0x1] %v6923_v23  ;;  %6939 = vst [vmem:[#allocation5 + $0x33] sm:$0x1] %v6922_v58  ;;  %v15230_v44 = vcombine.high %v6977_v50, %v6981_v27  ;;  %v6969_v59 = vld [vmem:[#allocation11 + $0xd0] sm:$0xff]  ;;  %v6970_v58 = vld [vmem:[#allocation11 + $0xd8] sm:$0xff]  ;;  %v15236_v28 = vcombine.low %v6977_v50, %v6981_v27 }
 0x71d   :  { %7796 = vmatpush1.bf16.msra.mxu0 %v15206_v3  ;;  %7837 = vmatpush1.bf16.msra.mxu1 %v15214_v10  ;;  %16691 = vst [vmem:[#allocation98_spill] sm:$0xff] %v15228_v38  ;;  %16693 = vst [vmem:[#allocation97_spill] sm:$0xff] %v15233_v13  ;;  %v6973_v23 = vld [vmem:[#allocation11 + $0xf0] sm:$0xff]  ;;  %v6974_v15 = vld [vmem:[#allocation11 + $0xf8] sm:$0xff] }
 0x71e   :  { %7797 = vmatprep.subr.bf16.mxu0 %v15216_v49  ;;  %16692 = vst [vmem:[#allocation95_spill] sm:$0xff] %v15230_v44  ;;  %6940 = vst [vmem:[#allocation5 + $0x3b] sm:$0x1] %v6924_v52  ;;  %7838 = vmatprep.subr.bf16.mxu1 %v15218_v36  ;;  %v15242_v56 = vcombine.high %v6969_v59, %v6973_v23  ;;  %v15245_v24 = vcombine.high %v6970_v58, %v6974_v15  ;;  %v6961_v18 = vld [vmem:[#allocation11 + $0x90] sm:$0xff]  ;;  %v6962_v36 = vld [vmem:[#allocation11 + $0x98] sm:$0xff] }
 0x71f   :  { %16694 = vst [vmem:[#allocation99_spill] sm:$0xff] %v15236_v28  ;;  %16695 = vst [vmem:[#allocation100_spill] sm:$0xff] %v15240_v43  ;;  %v6965_v52 = vld [vmem:[#allocation11 + $0xb0] sm:$0xff]  ;;  %v6966_v49 = vld [vmem:[#allocation11 + $0xb8] sm:$0xff]  ;;  %v15248_v50 = vcombine.low %v6969_v59, %v6973_v23  ;;  %v15252_v27 = vcombine.low %v6970_v58, %v6974_v15 }
 0x720   :  { %16696 = vst [vmem:[#allocation101_spill] sm:$0xff] %v15242_v56  ;;  %16697 = vst [vmem:[#allocation103_spill] sm:$0xff] %v15245_v24  ;;  %v15254_v9 = vcombine.high %v6961_v18, %v6965_v52  ;;  %v15257_v12 = vcombine.high %v6962_v36, %v6966_v49  ;;  %v15260_v59 = vcombine.low %v6961_v18, %v6965_v52 }
 0x721   :  { %7798 = vmatpush1.bf16.msra.mxu0 %v15224_v35  ;;  %7839 = vmatpush1.bf16.msra.mxu1 %v15228_v38  ;;  %16698 = vst [vmem:[#allocation102_spill] sm:$0xff] %v15248_v50  ;;  %16699 = vst [vmem:[#allocation104_spill] sm:$0xff] %v15252_v27  ;;  %v6954_v38 = vld [vmem:[#allocation11 + $0x58] sm:$0xff]  ;;  %v15264_v23 = vcombine.low %v6962_v36, %v6966_v49 }
 0x722   :  { %7799 = vmatprep.subr.bf16.mxu0 %v15230_v44  ;;  %7840 = vmatprep.subr.bf16.mxu1 %v15233_v13  ;;  %16700 = vst [vmem:[#allocation107_spill] sm:$0xff] %v15254_v9  ;;  %16701 = vst [vmem:[#allocation29_spill] sm:$0xff] %v15257_v12  ;;  %v6953_v13 = vld [vmem:[#allocation11 + $0x50] sm:$0xff]  ;;  %v6958_v35 = vld [vmem:[#allocation11 + $0x78] sm:$0xff] }
 0x723   :  { %v6957_v44 = vld [vmem:[#allocation11 + $0x70] sm:$0xff]  ;;  %16702 = vst [vmem:[#allocation31_spill] sm:$0xff] %v15260_v59  ;;  %16703 = vst [vmem:[#allocation32_spill] sm:$0xff] %v15264_v23  ;;  %v15269_v15 = vcombine.high %v6954_v38, %v6958_v35  ;;  %v15276_v49 = vcombine.low %v6954_v38, %v6958_v35 }
 0x724   :  { %v15266_v58 = vcombine.high %v6953_v13, %v6957_v44  ;;  %v15272_v18 = vcombine.low %v6953_v13, %v6957_v44 }
 0x725   :  { %7800 = vmatpush1.bf16.msra.mxu0 %v15236_v28  ;;  %7841 = vmatpush1.bf16.msra.mxu1 %v15240_v43  ;;  %16705 = vst [vmem:[#allocation106_spill] sm:$0xff] %v15269_v15  ;;  %v6946_v43 = vld [vmem:[#allocation11 + $0x18] sm:$0xff]  ;;  %16707 = vst [vmem:[#allocation67_spill] sm:$0xff] %v15276_v49 }
 0x726   :  { %7801 = vmatprep.subr.bf16.mxu0 %v15242_v56  ;;  %7842 = vmatprep.subr.bf16.mxu1 %v15245_v24  ;;  %16704 = vst [vmem:[#allocation30_spill] sm:$0xff] %v15266_v58  ;;  %v6945_v24 = vld [vmem:[#allocation11 + $0x10] sm:$0xff]  ;;  %v6950_v28 = vld [vmem:[#allocation11 + $0x38] sm:$0xff]  ;;  %16706 = vst [vmem:[#allocation65_spill] sm:$0xff] %v15272_v18 }
 0x727   :  { %v6949_v56 = vld [vmem:[#allocation11 + $0x30] sm:$0xff]  ;;  %v15281_v52 = vcombine.high %v6946_v43, %v6950_v28  ;;  %v15288_v35 = vcombine.low %v6946_v43, %v6950_v28 }
 0x728   :  { %v15278_v36 = vcombine.high %v6945_v24, %v6949_v56  ;;  %v15284_v44 = vcombine.low %v6945_v24, %v6949_v56 }
 0x729   :  { %7802 = vmatpush1.bf16.msra.mxu0 %v15248_v50  ;;  %7843 = vmatpush1.bf16.msra.mxu1 %v15252_v27  ;;  %16709 = vst [vmem:[#allocation66_spill] sm:$0xff] %v15281_v52  ;;  %v7066_v27 = vld [vmem:[#allocation11 + $0x3d8] sm:$0xff]  ;;  %16711 = vst [vmem:[#allocation105_spill] sm:$0xff] %v15288_v35 }
 0x72a   :  { %7803 = vmatprep.subr.bf16.mxu0 %v15254_v9  ;;  %7844 = vmatprep.subr.bf16.mxu1 %v15257_v12  ;;  %16708 = vst [vmem:[#allocation68_spill] sm:$0xff] %v15278_v36  ;;  %v7065_v12 = vld [vmem:[#allocation11 + $0x3d0] sm:$0xff]  ;;  %v7070_v50 = vld [vmem:[#allocation11 + $0x3f8] sm:$0xff]  ;;  %16710 = vst [vmem:[#allocation108_spill] sm:$0xff] %v15284_v44 }
 0x72b   :  { %v7069_v9 = vld [vmem:[#allocation11 + $0x3f0] sm:$0xff]  ;;  %v15293_v13 = vcombine.high %v7066_v27, %v7070_v50  ;;  %v15300_v28 = vcombine.low %v7066_v27, %v7070_v50 }
 0x72c   :  { %v15290_v38 = vcombine.high %v7065_v12, %v7069_v9  ;;  %v15296_v56 = vcombine.low %v7065_v12, %v7069_v9 }
 0x72d   :  { %7804 = vmatpush1.bf16.msra.mxu0 %v15260_v59  ;;  %7845 = vmatpush1.bf16.msra.mxu1 %v15264_v23  ;;  %16713 = vst [vmem:[#allocation110_spill] sm:$0xff] %v15293_v13  ;;  %v7058_v23 = vld [vmem:[#allocation11 + $0x398] sm:$0xff]  ;;  %16715 = vst [vmem:[#allocation112_spill] sm:$0xff] %v15300_v28 }
 0x72e   :  { %7805 = vmatprep.subr.bf16.mxu0 %v15266_v58  ;;  %7846 = vmatprep.subr.bf16.mxu1 %v15269_v15  ;;  %16712 = vst [vmem:[#allocation109_spill] sm:$0xff] %v15290_v38  ;;  %v7057_v15 = vld [vmem:[#allocation11 + $0x390] sm:$0xff]  ;;  %v7062_v59 = vld [vmem:[#allocation11 + $0x3b8] sm:$0xff]  ;;  %16714 = vst [vmem:[#allocation111_spill] sm:$0xff] %v15296_v56 }
 0x72f   :  { %v7061_v58 = vld [vmem:[#allocation11 + $0x3b0] sm:$0xff]  ;;  %v15305_v24 = vcombine.high %v7058_v23, %v7062_v59  ;;  %v15312_v50 = vcombine.low %v7058_v23, %v7062_v59 }
 0x730   :  { %v15302_v43 = vcombine.high %v7057_v15, %v7061_v58  ;;  %v15308_v9 = vcombine.low %v7057_v15, %v7061_v58 }
 0x731   :  { %7806 = vmatpush1.bf16.msra.mxu0 %v15272_v18  ;;  %7847 = vmatpush1.bf16.msra.mxu1 %v15276_v49  ;;  %16717 = vst [vmem:[#allocation23_spill] sm:$0xff] %v15305_v24  ;;  %v7050_v49 = vld [vmem:[#allocation11 + $0x358] sm:$0xff]  ;;  %16719 = vst [vmem:[#allocation22_spill] sm:$0xff] %v15312_v50 }
 0x732   :  { %7807 = vmatprep.subr.bf16.mxu0 %v15278_v36  ;;  %7848 = vmatprep.subr.bf16.mxu1 %v15281_v52  ;;  %16716 = vst [vmem:[#allocation21_spill] sm:$0xff] %v15302_v43  ;;  %v7049_v52 = vld [vmem:[#allocation11 + $0x350] sm:$0xff]  ;;  %v7054_v18 = vld [vmem:[#allocation11 + $0x378] sm:$0xff]  ;;  %16718 = vst [vmem:[#allocation24_spill] sm:$0xff] %v15308_v9 }
 0x733   :  { %v7053_v36 = vld [vmem:[#allocation11 + $0x370] sm:$0xff]  ;;  %v15317_v12 = vcombine.high %v7050_v49, %v7054_v18  ;;  %v15324_v59 = vcombine.low %v7050_v49, %v7054_v18 }
 0x734   :  { %v15314_v27 = vcombine.high %v7049_v52, %v7053_v36  ;;  %v15320_v58 = vcombine.low %v7049_v52, %v7053_v36 }
 0x735   :  { %7808 = vmatpush1.bf16.msra.mxu0 %v15284_v44  ;;  %7849 = vmatpush1.bf16.msra.mxu1 %v15288_v35  ;;  %16721 = vst [vmem:[#allocation78_spill] sm:$0xff] %v15317_v12  ;;  %v7042_v35 = vld [vmem:[#allocation11 + $0x318] sm:$0xff]  ;;  %16723 = vst [vmem:[#allocation76_spill] sm:$0xff] %v15324_v59 }
 0x736   :  { %7809 = vmatprep.subr.bf16.mxu0 %v15290_v38  ;;  %7850 = vmatprep.subr.bf16.mxu1 %v15293_v13  ;;  %16720 = vst [vmem:[#allocation75_spill] sm:$0xff] %v15314_v27  ;;  %v7041_v13 = vld [vmem:[#allocation11 + $0x310] sm:$0xff]  ;;  %v7046_v44 = vld [vmem:[#allocation11 + $0x338] sm:$0xff]  ;;  %16722 = vst [vmem:[#allocation79_spill] sm:$0xff] %v15320_v58 }
 0x737   :  { %v7045_v38 = vld [vmem:[#allocation11 + $0x330] sm:$0xff]  ;;  %v15329_v15 = vcombine.high %v7042_v35, %v7046_v44  ;;  %v15336_v18 = vcombine.low %v7042_v35, %v7046_v44 }
 0x738   :  { %v15326_v23 = vcombine.high %v7041_v13, %v7045_v38  ;;  %v15332_v36 = vcombine.low %v7041_v13, %v7045_v38 }
 0x739   :  { %7810 = vmatpush2.bf16.msra.mxu0 %v15296_v56  ;;  %7851 = vmatpush2.bf16.msra.mxu1 %v15300_v28  ;;  %16725 = vst [vmem:[#allocation114_spill] sm:$0xff] %v15329_v15  ;;  %v7034_v28 = vld [vmem:[#allocation11 + $0x2d8] sm:$0xff]  ;;  %16727 = vst [vmem:[#allocation116_spill] sm:$0xff] %v15336_v18 }
 0x73a   :  { %7811 = vmatprep.subr.bf16.mxu0 %v15302_v43  ;;  %7852 = vmatprep.subr.bf16.mxu1 %v15305_v24  ;;  %16724 = vst [vmem:[#allocation113_spill] sm:$0xff] %v15326_v23  ;;  %v7033_v24 = vld [vmem:[#allocation11 + $0x2d0] sm:$0xff]  ;;  %v7038_v56 = vld [vmem:[#allocation11 + $0x2f8] sm:$0xff]  ;;  %16726 = vst [vmem:[#allocation115_spill] sm:$0xff] %v15332_v36 }
 0x73b   :  { %v7037_v43 = vld [vmem:[#allocation11 + $0x2f0] sm:$0xff]  ;;  %v15341_v52 = vcombine.high %v7034_v28, %v7038_v56  ;;  %v15348_v44 = vcombine.low %v7034_v28, %v7038_v56 }
 0x73c   :  { %v15338_v49 = vcombine.high %v7033_v24, %v7037_v43  ;;  %v15344_v38 = vcombine.low %v7033_v24, %v7037_v43 }
 0x73d   :  { %7812 = vmatpush2.bf16.msra.mxu0 %v15308_v9  ;;  %7853 = vmatpush2.bf16.msra.mxu1 %v15312_v50  ;;  %16729 = vst [vmem:[#allocation118_spill] sm:$0xff] %v15341_v52  ;;  %v7026_v50 = vld [vmem:[#allocation11 + $0x298] sm:$0xff] }
 0x73e   :  { %7813 = vmatprep.subr.bf16.mxu0 %v15314_v27  ;;  %7854 = vmatprep.subr.bf16.mxu1 %v15317_v12  ;;  %16728 = vst [vmem:[#allocation117_spill] sm:$0xff] %v15338_v49  ;;  %v7025_v12 = vld [vmem:[#allocation11 + $0x290] sm:$0xff]  ;;  %v7030_v9 = vld [vmem:[#allocation11 + $0x2b8] sm:$0xff] }
 0x73f   :  { %v7029_v27 = vld [vmem:[#allocation11 + $0x2b0] sm:$0xff]  ;;  %v15353_v13 = vcombine.high %v7026_v50, %v7030_v9  ;;  %v15360_v56 = vcombine.low %v7026_v50, %v7030_v9 }
 0x740   :  { %v15350_v35 = vcombine.high %v7025_v12, %v7029_v27  ;;  %v15356_v43 = vcombine.low %v7025_v12, %v7029_v27 }
 0x741   :  { %7814 = vmatpush2.bf16.msra.mxu0 %v15320_v58  ;;  %7855 = vmatpush2.bf16.msra.mxu1 %v15324_v59  ;;  %16730 = vst [vmem:[#allocation119_spill] sm:$0xff] %v15353_v13  ;;  %v7018_v59 = vld [vmem:[#allocation11 + $0x258] sm:$0xff] }
 0x742   :  { %7815 = vmatprep.subr.bf16.mxu0 %v15326_v23  ;;  %7856 = vmatprep.subr.bf16.mxu1 %v15329_v15  ;;  %v7017_v15 = vld [vmem:[#allocation11 + $0x250] sm:$0xff]  ;;  %v7022_v58 = vld [vmem:[#allocation11 + $0x278] sm:$0xff] }
 0x743   :  { %v7021_v23 = vld [vmem:[#allocation11 + $0x270] sm:$0xff]  ;;  %v15365_v24 = vcombine.high %v7018_v59, %v7022_v58  ;;  %v15372_v9 = vcombine.low %v7018_v59, %v7022_v58 }
 0x744   :  { %v15362_v28 = vcombine.high %v7017_v15, %v7021_v23  ;;  %v15368_v27 = vcombine.low %v7017_v15, %v7021_v23 }
 0x745   :  { %7816 = vmatpush2.bf16.msra.mxu0 %v15332_v36  ;;  %7857 = vmatpush2.bf16.msra.mxu1 %v15336_v18  ;;  %v7010_v18 = vld [vmem:[#allocation11 + $0x218] sm:$0xff] }
 0x746   :  { %7817 = vmatprep.subr.bf16.mxu0 %v15338_v49  ;;  %7858 = vmatprep.subr.bf16.mxu1 %v15341_v52  ;;  %v7009_v52 = vld [vmem:[#allocation11 + $0x210] sm:$0xff]  ;;  %v7014_v36 = vld [vmem:[#allocation11 + $0x238] sm:$0xff] }
 0x747   :  { %v7013_v49 = vld [vmem:[#allocation11 + $0x230] sm:$0xff]  ;;  %v15377_v12 = vcombine.high %v7010_v18, %v7014_v36  ;;  %v15384_v23 = vcombine.low %v7010_v18, %v7014_v36 }
 0x748   :  { %v15374_v50 = vcombine.high %v7009_v52, %v7013_v49 }
 0x749   :  { %7818 = vmatpush2.bf16.msra.mxu0 %v15344_v38  ;;  %7859 = vmatpush2.bf16.msra.mxu1 %v15348_v44 }
 0x74a   :  { %7819 = vmatprep.subr.bf16.mxu0 %v15350_v35  ;;  %7860 = vmatprep.subr.bf16.mxu1 %v15353_v13  ;;  %v15380_v13 = vcombine.low %v7009_v52, %v7013_v49  ;;  %v16762_v49 = vld [vmem:[#allocation40_spill] sm:$0xff] }
 0x74d   :  { %7820 = vmatpush2.bf16.msra.mxu0 %v15356_v43  ;;  %7861 = vmatpush2.bf16.msra.mxu1 %v15360_v56 }
 0x74e   :  { %7821 = vmatprep.subr.bf16.mxu0 %v15362_v28  ;;  %7862 = vmatprep.subr.bf16.mxu1 %v15365_v24 }
 0x751   :  { %7822 = vmatpush2.bf16.msra.mxu0 %v15368_v27  ;;  %7863 = vmatpush2.bf16.msra.mxu1 %v15372_v9 }
 0x752   :  { %7823 = vmatprep.subr.bf16.mxu0 %v15374_v50  ;;  %7864 = vmatprep.subr.bf16.mxu1 %v15377_v12 }
 0x755   :  { %7824 = vmatpush2.bf16.msra.mxu0 %v15380_v13  ;;  %7865 = vmatpush2.bf16.msra.mxu1 %v15384_v23 }
 0x756   :  { %8841 = vmatprep.subr.bf16.mxu0 %v14968_v20  ;;  %8882 = vmatprep.subr.bf16.mxu1 %v14972_v21  ;;  %v16732_v20 = vld [vmem:[#allocation144_spill] sm:$0xff]  ;;  %v16734_v21 = vld [vmem:[#allocation147_spill] sm:$0xff] }
 0x758   :  { %7826 = vmatmul.mubr.bf16.vlgmr.msra.gmra.mxu0 %v15198_v40  ;;  %7867 = vmatmul.mubr.bf16.vlgmr.msra.gmra.mxu1 %v15198_v40 }
 0x759   :  { %8842 = vmatpush1.bf16.msra.mxu0 %v14966_v39  ;;  %8883 = vmatpush1.bf16.msra.mxu1 %v14970_v45  ;;  %v16731_v39 = vld [vmem:[#allocation146_spill] sm:$0xff]  ;;  %v16733_v45 = vld [vmem:[#allocation145_spill] sm:$0xff] }
 0x75a   :  { %8843 = vmatprep.subr.bf16.mxu0 %v14974_v54  ;;  %8884 = vmatprep.subr.bf16.mxu1 %v14977_v0  ;;  %v16735_v54 = vld [vmem:[#allocation150_spill] sm:$0xff]  ;;  %v16736_v0 = vld [vmem:[#allocation148_spill] sm:$0xff] }
 0x75d   :  { %8844 = vmatpush1.bf16.msra.mxu0 %v14981_v29  ;;  %8885 = vmatpush1.bf16.msra.mxu1 %v14985_v46  ;;  %v16737_v29 = vld [vmem:[#allocation149_spill] sm:$0xff]  ;;  %v16738_v46 = vld [vmem:[#allocation151_spill] sm:$0xff] }
 0x75e   :  { %8845 = vmatprep.subr.bf16.mxu0 %v14990_v11  ;;  %8886 = vmatprep.subr.bf16.mxu1 %v14996_v31  ;;  %v16739_v11 = vld [vmem:[#allocation28_spill] sm:$0xff]  ;;  %v16742_v31 = vld [vmem:[#allocation69_spill] sm:$0xff] }
 0x761   :  { %8846 = vmatpush1.bf16.msra.mxu0 %v14992_v7  ;;  %8887 = vmatpush1.bf16.msra.mxu1 %v14994_v61  ;;  %v16740_v7 = vld [vmem:[#allocation25_spill] sm:$0xff]  ;;  %v16741_v61 = vld [vmem:[#allocation27_spill] sm:$0xff] }
 0x762   :  { %8847 = vmatprep.subr.bf16.mxu0 %v15002_v57  ;;  %8888 = vmatprep.subr.bf16.mxu1 %v15008_v30  ;;  %v16743_v57 = vld [vmem:[#allocation72_spill] sm:$0xff]  ;;  %v16746_v30 = vld [vmem:[#allocation70_spill] sm:$0xff] }
 0x765   :  { %8848 = vmatpush1.bf16.msra.mxu0 %v15004_v47  ;;  %8889 = vmatpush1.bf16.msra.mxu1 %v15006_v41  ;;  %v16744_v47 = vld [vmem:[#allocation26_spill] sm:$0xff]  ;;  %v16745_v41 = vld [vmem:[#allocation71_spill] sm:$0xff] }
 0x766   :  { %8849 = vmatprep.subr.bf16.mxu0 %v15014_v51  ;;  %8890 = vmatprep.subr.bf16.mxu1 %v15020_v5  ;;  %v16747_v51 = vld [vmem:[#allocation77_spill] sm:$0xff]  ;;  %v16750_v5 = vld [vmem:[#allocation82_spill] sm:$0xff] }
 0x769   :  { %8850 = vmatpush1.bf16.msra.mxu0 %v15016_v2  ;;  %8891 = vmatpush1.bf16.msra.mxu1 %v15018_v25  ;;  %v16748_v2 = vld [vmem:[#allocation73_spill] sm:$0xff]  ;;  %v16749_v25 = vld [vmem:[#allocation74_spill] sm:$0xff] }
 0x76a   :  { %8851 = vmatprep.subr.bf16.mxu0 %v15026_v60  ;;  %8892 = vmatprep.subr.bf16.mxu1 %v15032_v53  ;;  %v16751_v60 = vld [vmem:[#allocation83_spill] sm:$0xff]  ;;  %v16754_v53 = vld [vmem:[#allocation86_spill] sm:$0xff] }
 0x76d   :  { %8852 = vmatpush1.bf16.msra.mxu0 %v15028_v32  ;;  %8893 = vmatpush1.bf16.msra.mxu1 %v15030_v1  ;;  %v16752_v32 = vld [vmem:[#allocation80_spill] sm:$0xff]  ;;  %v16753_v1 = vld [vmem:[#allocation81_spill] sm:$0xff] }
 0x76e   :  { %8853 = vmatprep.subr.bf16.mxu0 %v15038_v19  ;;  %8894 = vmatprep.subr.bf16.mxu1 %v15044_v16  ;;  %v16755_v19 = vld [vmem:[#allocation87_spill] sm:$0xff]  ;;  %v16758_v16 = vld [vmem:[#allocation88_spill] sm:$0xff] }
 0x771   :  { %8854 = vmatpush1.bf16.msra.mxu0 %v15040_v48  ;;  %8895 = vmatpush1.bf16.msra.mxu1 %v15042_v14  ;;  %v16756_v48 = vld [vmem:[#allocation84_spill] sm:$0xff]  ;;  %v16757_v14 = vld [vmem:[#allocation85_spill] sm:$0xff] }
 0x772   :  { %8855 = vmatprep.subr.bf16.mxu0 %v15050_v62  ;;  %8896 = vmatprep.subr.bf16.mxu1 %v15056_v26  ;;  %v16759_v62 = vld [vmem:[#allocation90_spill] sm:$0xff]  ;;  %v16760_v26 = vld [vmem:[#allocation37_spill] sm:$0xff] }
 0x775   :  { %8856 = vmatpush1.bf16.msra.mxu0 %v15052_v22  ;;  %8897 = vmatpush1.bf16.msra.mxu1 %v15054_v17 }
 0x776   :  { %8857 = vmatprep.subr.bf16.mxu0 %v15062_v8  ;;  %8898 = vmatprep.subr.bf16.mxu1 %v15068_v42 }
 0x779   :  { %8858 = vmatpush2.bf16.msra.mxu0 %v15064_v6  ;;  %8899 = vmatpush2.bf16.msra.mxu1 %v15066_v55 }
 0x77a   :  { %8859 = vmatprep.subr.bf16.mxu0 %v15074_v37  ;;  %8900 = vmatprep.subr.bf16.mxu1 %v16731_v39  ;;  %v16761_v37 = vld [vmem:[#allocation39_spill] sm:$0xff]  ;;  %v16763_v39 = vld [vmem:[#allocation38_spill] sm:$0xff] }
 0x77d   :  { %8860 = vmatpush2.bf16.msra.mxu0 %v16732_v20  ;;  %8901 = vmatpush2.bf16.msra.mxu1 %v16733_v45 }
 0x77e   :  { %8861 = vmatprep.subr.bf16.mxu0 %v16734_v21  ;;  %8902 = vmatprep.subr.bf16.mxu1 %v16735_v54 }
 0x781   :  { %8862 = vmatpush2.bf16.msra.mxu0 %v16736_v0  ;;  %8903 = vmatpush2.bf16.msra.mxu1 %v16737_v29 }
 0x782   :  { %8863 = vmatprep.subr.bf16.mxu0 %v16738_v46  ;;  %8904 = vmatprep.subr.bf16.mxu1 %v16739_v11 }
 0x785   :  { %8864 = vmatpush2.bf16.msra.mxu0 %v16740_v7  ;;  %8905 = vmatpush2.bf16.msra.mxu1 %v16741_v61 }
 0x786   :  { %8865 = vmatprep.subr.bf16.mxu0 %v16742_v31  ;;  %8906 = vmatprep.subr.bf16.mxu1 %v16743_v57 }
 0x789   :  { %8866 = vmatpush2.bf16.msra.mxu0 %v16744_v47  ;;  %8907 = vmatpush2.bf16.msra.mxu1 %v16745_v41  ;;  %v16764_v47 = vld [vmem:[#allocation89_spill] sm:$0xff] }
 0x78a   :  { %8867 = vmatprep.subr.bf16.mxu0 %v16746_v30  ;;  %8908 = vmatprep.subr.bf16.mxu1 %v16747_v51 }
 0x78d   :  { %8868 = vmatpush2.bf16.msra.mxu0 %v16748_v2  ;;  %8909 = vmatpush2.bf16.msra.mxu1 %v16749_v25 }
 0x78e   :  { %8869 = vmatprep.subr.bf16.mxu0 %v16750_v5  ;;  %8910 = vmatprep.subr.bf16.mxu1 %v16751_v60 }
 0x791   :  { %8870 = vmatpush2.bf16.msra.mxu0 %v16752_v32  ;;  %8911 = vmatpush2.bf16.msra.mxu1 %v16753_v1 }
 0x792   :  { %8871 = vmatprep.subr.bf16.mxu0 %v16754_v53  ;;  %8912 = vmatprep.subr.bf16.mxu1 %v16755_v19 }
 0x795   :  { %8872 = vmatpush2.bf16.msra.mxu0 %v16756_v48  ;;  %8913 = vmatpush2.bf16.msra.mxu1 %v16757_v14 }
 0x796   :  { %8923 = vmatprep.subr.bf16.mxu0 %v16758_v16  ;;  %8964 = vmatprep.subr.bf16.mxu1 %v16759_v62 }
 0x7d7   :  { %v7745_v22 = vpop.f32.mrf.mxu0 }
 0x7d8   :  { %v7786_v17 = vpop.f32.mrf.mxu1  ;;  %v7879_v8 = vadd.f32 %v7745_v22, %v16760_v26 }
 0x7d9   :  { %v7747_v6 = vpop.f32.mrf.mxu0  ;;  %v7881_v20 = vadd.f32 %v7786_v17, %v16763_v39 }
 0x7da   :  { %v7788_v55 = vpop.f32.mrf.mxu1  ;;  %v12342_v42 = vmul.f32 -1.442695, %v7879_v8  ;;  %v7880_v40 = vadd.f32 %v7747_v6, %v16761_v37  ;;  %v16765_v8 = vld [vmem:[#allocation57_spill] sm:$0xff] }
 0x7db   :  { %v7749_v58 = vpop.f32.mrf.mxu0  ;;  %v7882_v52 = vadd.f32 %v7788_v55, %v16762_v49 }
 0x7dc   :  { %v7790_v59 = vpop.f32.mrf.mxu1  ;;  %13137 = vpow2.f32 %v12342_v42  ;;  %v12343_v15 = vmul.f32 -1.442695, %v7880_v40  ;;  %v16766_v58 = vld [vmem:[#allocation59_spill] sm:$0xff] }
 0x7dd   :  { %v7750_v36 = vpop.f32.mrf.mxu0  ;;  %v12344_v45 = vmul.f32 -1.442695, %v7882_v52 }
 0x7de   :  { %v7791_v18 = vpop.f32.mrf.mxu1  ;;  %13139 = vpow2.f32 %v12343_v15 }
 0x7df   :  { %13141 = vtanh.f32 %v7881_v20  ;;  %v16767_v20 = vld [vmem:[#allocation60_spill] sm:$0xff] }
 0x7e0   :  { %13143 = vpow2.f32 %v12344_v45 }
 0x7e9   :  { %v13138_v21 = vpop.eup %13137 }
 0x7ea   :  { %v7894_v54 = vadd.f32 1.0, %v13138_v21  ;;  %v16768_v21 = vld [vmem:[#allocation58_spill] sm:$0xff] }
 0x7eb   :  { %v13140_v0 = vpop.eup %13139 }
 0x7ec   :  { %13145 = vrcp.f32 %v7894_v54  ;;  %v7900_v29 = vadd.f32 1.0, %v13140_v0  ;;  %v13142_v46 = vpop.eup %13141 }
 0x7ed   :  { %v13144_v11 = vpop.eup %13143 }
 0x7ee   :  { %13147 = vrcp.f32 %v7900_v29  ;;  %v7907_v57 = vadd.f32 1.0, %v13144_v11 }
 0x7f0   :  { %13149 = vrcp.f32 %v7907_v57 }
 0x7f9   :  { %v13146_v7 = vpop.eup %13145 }
 0x7fa   :  { %v7911_v61 = vmul.f32 %v13146_v7, %v13142_v46 }
 0x7fb   :  { %v13148_v31 = vpop.eup %13147 }
 0x7fc   :  { %v7910_v41 = vmul.f32 %v13148_v31, %v16764_v47 }
 0x7fd   :  { %v13150_v51 = vpop.eup %13149 }
 0x7fe   :  { %v15462_v30 = vadd.f32 %v7911_v61, %v7910_v41 }
 0x800   :  { %13151 = vtanh.f32 %v15462_v30 }
 0x80d   :  { %v13152_v2 = vpop.eup %13151 }
 0x80e   :  { %v15465_v25 = vmul.f32 %v13152_v2, %v13150_v51  ;;  %v16769_v2 = vld [vmem:[#allocation94_spill] sm:$0xff] }
 0x810   :  { %v7940_v5 = vcombine.high %v15465_v25, %v15465_v25  ;;  %v7947_v60 = vrot.slane %v15465_v25, %v13983_v4 }
 0x812   :  { %v7954_v32 = vrot.slane %v7940_v5, %v13983_v4  ;;  %v7955_v1 = vcombine.high %v7947_v60, %v7947_v60  ;;  %v7963_v53 = vrot.slane %v7947_v60, %v13983_v4  ;;  %12348 = vst.sshfl [vmem:[#allocation4 + $0x5] sm:$0x1 pattern:$0x73625140] %v7947_v60 }
 0x814   :  { %v7956_v19 = vcombine.high %v7954_v32, %v7954_v32  ;;  %v7970_v48 = vrot.slane %v7954_v32, %v13983_v4  ;;  %v7977_v14 = vrot.slane %v7955_v1, %v13983_v4  ;;  %v7985_v16 = vcombine.high %v7963_v53, %v7963_v53  ;;  %12349 = vst.sshfl [vmem:[#allocation4 + $0xd] sm:$0x1 pattern:$0x73625140] %v7955_v1 }
 0x815   :  { %12350 = vst.sshfl [vmem:[#allocation4 + $0x25] sm:$0x1 pattern:$0x73625140] %v7954_v32 }
 0x816   :  { %v7984_v62 = vrot.slane %v7956_v19, %v13983_v4  ;;  %v7986_v22 = vcombine.high %v7970_v48, %v7970_v48  ;;  %v7987_v17 = vcombine.high %v7977_v14, %v7977_v14  ;;  %7999 = vst [vmem:[#allocation4 + $0x15] sm:$0x1] %v7985_v16  ;;  %12351 = vst.sshfl [vmem:[#allocation4 + $0x2d] sm:$0x1 pattern:$0x73625140] %v7956_v19 }
 0x817   :  { %v15487_v16 = vpack.c.bf16 %v15465_v25, %v15465_v25  ;;  %v16770_v25 = vld [vmem:[#allocation91_spill] sm:$0xff] }
 0x818   :  { %v7827_v26 = vpop.f32.mrf.mxu0  ;;  %v7868_v55 = vpop.f32.mrf.mxu1  ;;  %v7988_v42 = vcombine.high %v7984_v62, %v7984_v62  ;;  %8000 = vst [vmem:[#allocation4 + $0x1d] sm:$0x1] %v7987_v17  ;;  %8003 = vst [vmem:[#allocation4 + $0x35] sm:$0x1] %v7986_v22 }
 0x819   :  { %v7887_v6 = vadd.f32 %v7827_v26, %v16765_v8  ;;  %v7889_v54 = vadd.f32 %v7868_v55, %v16768_v21  ;;  %v16785_v21 = vld [vmem:[#allocation31_spill] sm:$0xff] }
 0x81a   :  { %v7829_v37 = vpop.f32.mrf.mxu0  ;;  %v7870_v15 = vpop.f32.mrf.mxu1  ;;  %8004 = vst [vmem:[#allocation4 + $0x3d] sm:$0x1] %v7988_v42 }
 0x81b   :  { %v12345_v40 = vmul.f32 -1.442695, %v7887_v6  ;;  %v7888_v59 = vadd.f32 %v7829_v37, %v16766_v58  ;;  %v7890_v45 = vadd.f32 %v7870_v15, %v16767_v20  ;;  %v16773_v15 = vld [vmem:[#allocation96_spill] sm:$0xff]  ;;  %v16783_v20 = vld [vmem:[#allocation107_spill] sm:$0xff] }
 0x81c   :  { %v7831_v36 = vpop.f32.mrf.mxu0  ;;  %v7872_v49 = vpop.f32.mrf.mxu1 }
 0x81d   :  { %13153 = vpow2.f32 %v12345_v40  ;;  %v12346_v18 = vmul.f32 -1.442695, %v7888_v59  ;;  %v12347_v0 = vmul.f32 -1.442695, %v7890_v45  ;;  %v16772_v59 = vld [vmem:[#allocation93_spill] sm:$0xff]  ;;  %v16774_v36 = vld [vmem:[#allocation98_spill] sm:$0xff] }
 0x81e   :  { %v7832_v52 = vpop.f32.mrf.mxu0  ;;  %v7873_v39 = vpop.f32.mrf.mxu1  ;;  %v16778_v49 = vld [vmem:[#allocation100_spill] sm:$0xff]  ;;  %v16784_v45 = vld [vmem:[#allocation29_spill] sm:$0xff] }
 0x81f   :  { %13155 = vpow2.f32 %v12346_v18  ;;  %v16775_v18 = vld [vmem:[#allocation95_spill] sm:$0xff]  ;;  %v16781_v52 = vld [vmem:[#allocation102_spill] sm:$0xff]  ;;  %v16782_v39 = vld [vmem:[#allocation104_spill] sm:$0xff] }
 0x820   :  { %13157 = vtanh.f32 %v7889_v54  ;;  %v16786_v54 = vld [vmem:[#allocation32_spill] sm:$0xff] }
 0x821   :  { %13159 = vpow2.f32 %v12347_v0  ;;  %v16787_v0 = vld [vmem:[#allocation30_spill] sm:$0xff] }
 0x82a   :  { %v13154_v29 = vpop.eup %13153 }
 0x82b   :  { %v7918_v46 = vadd.f32 1.0, %v13154_v29  ;;  %v16788_v29 = vld [vmem:[#allocation106_spill] sm:$0xff] }
 0x82c   :  { %v13156_v11 = vpop.eup %13155 }
 0x82d   :  { %13161 = vrcp.f32 %v7918_v46  ;;  %v7924_v7 = vadd.f32 1.0, %v13156_v11  ;;  %v13158_v61 = vpop.eup %13157  ;;  %v16789_v46 = vld [vmem:[#allocation65_spill] sm:$0xff]  ;;  %v16790_v11 = vld [vmem:[#allocation67_spill] sm:$0xff] }
 0x82e   :  { %v13160_v31 = vpop.eup %13159 }
 0x82f   :  { %13163 = vrcp.f32 %v7924_v7  ;;  %v7931_v51 = vadd.f32 1.0, %v13160_v31  ;;  %v16791_v7 = vld [vmem:[#allocation68_spill] sm:$0xff] }
 0x830   :  { %v16793_v31 = vld [vmem:[#allocation108_spill] sm:$0xff] }
 0x831   :  { %13165 = vrcp.f32 %v7931_v51  ;;  %v16797_v51 = vld [vmem:[#allocation111_spill] sm:$0xff] }
 0x83a   :  { %v13162_v57 = vpop.eup %13161 }
 0x83b   :  { %v7935_v47 = vmul.f32 %v13162_v57, %v13158_v61  ;;  %v16792_v61 = vld [vmem:[#allocation66_spill] sm:$0xff]  ;;  %v16794_v57 = vld [vmem:[#allocation105_spill] sm:$0xff] }
 0x83c   :  { %v13164_v41 = vpop.eup %13163 }
 0x83d   :  { %v7934_v5 = vmul.f32 %v13164_v41, %v16769_v2  ;;  %v16796_v41 = vld [vmem:[#allocation110_spill] sm:$0xff]  ;;  %v16798_v2 = vld [vmem:[#allocation112_spill] sm:$0xff] }
 0x83e   :  { %v13166_v32 = vpop.eup %13165 }
 0x83f   :  { %v15481_v60 = vadd.f32 %v7935_v47, %v7934_v5  ;;  %v16795_v47 = vld [vmem:[#allocation109_spill] sm:$0xff] }
 0x840   :  { %v16799_v5 = vld [vmem:[#allocation21_spill] sm:$0xff] }
 0x841   :  { %13167 = vtanh.f32 %v15481_v60 }
 0x84e   :  { %v13168_v1 = vpop.eup %13167 }
 0x84f   :  { %v7938_v53 = vmul.f32 %v13168_v1, %v13166_v32  ;;  %v16800_v32 = vld [vmem:[#allocation23_spill] sm:$0xff]  ;;  %v16801_v1 = vld [vmem:[#allocation24_spill] sm:$0xff] }
 0x851   :  { %v8006_v19 = vcombine.high %v7938_v53, %v7938_v53  ;;  %v8013_v48 = vrot.slane %v7938_v53, %v13983_v4  ;;  %v8072_v14 = vpack.c.bf16 %v7938_v53, %v7938_v53  ;;  %v16802_v53 = vld [vmem:[#allocation22_spill] sm:$0xff] }
 0x853   :  { %v8020_v62 = vrot.slane %v8006_v19, %v13983_v4  ;;  %v8021_v22 = vcombine.high %v8013_v48, %v8013_v48  ;;  %v8029_v17 = vrot.slane %v8013_v48, %v13983_v4  ;;  %12352 = vst.sshfl [vmem:[#allocation5 + $0x2] sm:$0x1 pattern:$0x73625140] %v8013_v48  ;;  %8873 = vmatprep.mubr.bf16.mxu0 %v8072_v14  ;;  %v16803_v19 = vld [vmem:[#allocation75_spill] sm:$0xff]  ;;  %v16804_v48 = vld [vmem:[#allocation78_spill] sm:$0xff] }
 0x854   :  { %8914 = vmatprep.mubr.bf16.mxu1 %v8072_v14  ;;  %8874 = vmatmul.mubr.bf16.vlgmr.msra.gmra.mxu0 %v15487_v16 }
 0x855   :  { %8915 = vmatmul.mubr.bf16.vlgmr.msra.gmra.mxu1 %v15487_v16  ;;  %v8022_v26 = vcombine.high %v8020_v62, %v8020_v62  ;;  %v8036_v8 = vrot.slane %v8020_v62, %v13983_v4  ;;  %v8043_v6 = vrot.slane %v8021_v22, %v13983_v4  ;;  %v8051_v55 = vcombine.high %v8029_v17, %v8029_v17  ;;  %v16808_v17 = vld [vmem:[#allocation114_spill] sm:$0xff] }
 0x856   :  { %12353 = vst.sshfl [vmem:[#allocation5 + $0xa] sm:$0x1 pattern:$0x73625140] %v8021_v22  ;;  %8924 = vmatpush1.bf16.msra.mxu0 %v15160_v34  ;;  %8965 = vmatpush1.bf16.msra.mxu1 %v16770_v25  ;;  %v16771_v34 = vld [vmem:[#allocation92_spill] sm:$0xff]  ;;  %v16807_v22 = vld [vmem:[#allocation113_spill] sm:$0xff] }
 0x857   :  { %12354 = vst.sshfl [vmem:[#allocation5 + $0x22] sm:$0x1 pattern:$0x73625140] %v8020_v62  ;;  %8955 = vmatprep.mubr.bf16.mxu0 %v8072_v14  ;;  %v8050_v42 = vrot.slane %v8022_v26, %v13983_v4  ;;  %v8052_v37 = vcombine.high %v8036_v8, %v8036_v8  ;;  %v8053_v40 = vcombine.high %v8043_v6, %v8043_v6  ;;  %8065 = vst [vmem:[#allocation5 + $0x12] sm:$0x1] %v8051_v55 }
 0x858   :  { %12355 = vst.sshfl [vmem:[#allocation5 + $0x2a] sm:$0x1 pattern:$0x73625140] %v8022_v26  ;;  %8996 = vmatprep.mubr.bf16.mxu1 %v8072_v14  ;;  %8925 = vmatprep.subr.bf16.mxu0 %v15200_v63  ;;  %v16776_v63 = vld [vmem:[#allocation97_spill] sm:$0xff]  ;;  %v16805_v14 = vld [vmem:[#allocation79_spill] sm:$0xff] }
 0x859   :  { %8966 = vmatprep.subr.bf16.mxu1 %v15208_v33  ;;  %v8054_v58 = vcombine.high %v8050_v42, %v8050_v42  ;;  %8066 = vst [vmem:[#allocation5 + $0x1a] sm:$0x1] %v8053_v40  ;;  %8069 = vst [vmem:[#allocation5 + $0x32] sm:$0x1] %v8052_v37  ;;  %v16777_v33 = vld [vmem:[#allocation99_spill] sm:$0xff]  ;;  %v16806_v62 = vld [vmem:[#allocation76_spill] sm:$0xff] }
 0x85a   :  { %8926 = vmatpush1.bf16.msra.mxu0 %v15206_v3  ;;  %8967 = vmatpush1.bf16.msra.mxu1 %v15214_v10  ;;  %v16779_v3 = vld [vmem:[#allocation101_spill] sm:$0xff]  ;;  %v16780_v10 = vld [vmem:[#allocation103_spill] sm:$0xff]  ;;  %v16810_v8 = vld [vmem:[#allocation116_spill] sm:$0xff] }
 0x85b   :  { %8927 = vmatprep.subr.bf16.mxu0 %v16771_v34  ;;  %8070 = vst [vmem:[#allocation5 + $0x3a] sm:$0x1] %v8054_v58  ;;  %8968 = vmatprep.subr.bf16.mxu1 %v16772_v59  ;;  %v16809_v26 = vld [vmem:[#allocation115_spill] sm:$0xff]  ;;  %v16811_v6 = vld [vmem:[#allocation117_spill] sm:$0xff]  ;;  %v16812_v55 = vld [vmem:[#allocation118_spill] sm:$0xff] }
 0x85c   :  { %v16813_v25 = vld [vmem:[#allocation119_spill] sm:$0xff]  ;;  %v9256_v37 = vld [vmem:[#allocation11 + $0x1a8] sm:$0xff] }
 0x85d   :  { %v9243_v40 = vld [vmem:[#allocation11 + $0x140] sm:$0xff]  ;;  %v9244_v34 = vld [vmem:[#allocation11 + $0x148] sm:$0xff] }
 0x85e   :  { %8928 = vmatpush1.bf16.msra.mxu0 %v16773_v15  ;;  %8969 = vmatpush1.bf16.msra.mxu1 %v16774_v36  ;;  %v9247_v58 = vld [vmem:[#allocation11 + $0x160] sm:$0xff]  ;;  %v9248_v15 = vld [vmem:[#allocation11 + $0x168] sm:$0xff] }
 0x85f   :  { %8929 = vmatprep.subr.bf16.mxu0 %v16775_v18  ;;  %8970 = vmatprep.subr.bf16.mxu1 %v16776_v63  ;;  %v12539_v59 = vcombine.high %v9243_v40, %v9247_v58  ;;  %v12538_v36 = vcombine.low %v9243_v40, %v9247_v58  ;;  %v12540_v18 = vcombine.low %v9244_v34, %v9248_v15 }
 0x860   :  { %v12541_v63 = vcombine.high %v9244_v34, %v9248_v15  ;;  %v9311_v15 = vld [vmem:[#allocation11 + $0x360] sm:$0xff] }
 0x862   :  { %8930 = vmatpush1.bf16.msra.mxu0 %v16777_v33  ;;  %8971 = vmatpush1.bf16.msra.mxu1 %v16778_v49  ;;  %v9235_v33 = vld [vmem:[#allocation11 + $0x100] sm:$0xff] }
 0x863   :  { %8931 = vmatprep.subr.bf16.mxu0 %v16779_v3  ;;  %8972 = vmatprep.subr.bf16.mxu1 %v16780_v10  ;;  %v9239_v49 = vld [vmem:[#allocation11 + $0x120] sm:$0xff]  ;;  %v9236_v3 = vld [vmem:[#allocation11 + $0x108] sm:$0xff] }
 0x864   :  { %v12531_v10 = vcombine.high %v9235_v33, %v9239_v49 }
 0x866   :  { %8932 = vmatpush1.bf16.msra.mxu0 %v16781_v52  ;;  %8973 = vmatpush1.bf16.msra.mxu1 %v16782_v39  ;;  %v9240_v52 = vld [vmem:[#allocation11 + $0x128] sm:$0xff]  ;;  %v12530_v39 = vcombine.low %v9235_v33, %v9239_v49 }
 0x867   :  { %8933 = vmatprep.subr.bf16.mxu0 %v16783_v20  ;;  %8974 = vmatprep.subr.bf16.mxu1 %v16784_v45  ;;  %v12532_v20 = vcombine.low %v9236_v3, %v9240_v52  ;;  %v12533_v45 = vcombine.high %v9236_v3, %v9240_v52  ;;  %v9303_v52 = vld [vmem:[#allocation11 + $0x320] sm:$0xff] }
 0x86a   :  { %8934 = vmatpush1.bf16.msra.mxu0 %v16785_v21  ;;  %8975 = vmatpush1.bf16.msra.mxu1 %v16786_v54  ;;  %v9227_v21 = vld [vmem:[#allocation11 + $0xc0] sm:$0xff] }
 0x86b   :  { %8935 = vmatprep.subr.bf16.mxu0 %v16787_v0  ;;  %8976 = vmatprep.subr.bf16.mxu1 %v16788_v29  ;;  %v9231_v54 = vld [vmem:[#allocation11 + $0xe0] sm:$0xff]  ;;  %v9228_v0 = vld [vmem:[#allocation11 + $0xc8] sm:$0xff] }
 0x86c   :  { %v12523_v29 = vcombine.high %v9227_v21, %v9231_v54 }
 0x86e   :  { %8936 = vmatpush1.bf16.msra.mxu0 %v16789_v46  ;;  %8977 = vmatpush1.bf16.msra.mxu1 %v16790_v11  ;;  %v9232_v46 = vld [vmem:[#allocation11 + $0xe8] sm:$0xff]  ;;  %v12522_v11 = vcombine.low %v9227_v21, %v9231_v54 }
 0x86f   :  { %8937 = vmatprep.subr.bf16.mxu0 %v16791_v7  ;;  %8978 = vmatprep.subr.bf16.mxu1 %v16792_v61  ;;  %v12524_v7 = vcombine.low %v9228_v0, %v9232_v46  ;;  %v12525_v61 = vcombine.high %v9228_v0, %v9232_v46  ;;  %v9295_v46 = vld [vmem:[#allocation11 + $0x2e0] sm:$0xff] }
 0x872   :  { %8938 = vmatpush1.bf16.msra.mxu0 %v16793_v31  ;;  %8979 = vmatpush1.bf16.msra.mxu1 %v16794_v57  ;;  %v9219_v31 = vld [vmem:[#allocation11 + $0x80] sm:$0xff] }
 0x873   :  { %8939 = vmatprep.subr.bf16.mxu0 %v16795_v47  ;;  %8980 = vmatprep.subr.bf16.mxu1 %v16796_v41  ;;  %v9223_v57 = vld [vmem:[#allocation11 + $0xa0] sm:$0xff]  ;;  %v9220_v47 = vld [vmem:[#allocation11 + $0x88] sm:$0xff] }
 0x874   :  { %v12515_v41 = vcombine.high %v9219_v31, %v9223_v57 }
 0x876   :  { %8940 = vmatpush2.bf16.msra.mxu0 %v16797_v51  ;;  %8981 = vmatpush2.bf16.msra.mxu1 %v16798_v2  ;;  %v9224_v51 = vld [vmem:[#allocation11 + $0xa8] sm:$0xff]  ;;  %v12514_v2 = vcombine.low %v9219_v31, %v9223_v57  ;;  %v9283_v57 = vld [vmem:[#allocation11 + $0x280] sm:$0xff] }
 0x877   :  { %8941 = vmatprep.subr.bf16.mxu0 %v16799_v5  ;;  %8982 = vmatprep.subr.bf16.mxu1 %v16800_v32  ;;  %v12516_v5 = vcombine.low %v9220_v47, %v9224_v51  ;;  %v12517_v32 = vcombine.high %v9220_v47, %v9224_v51  ;;  %v9296_v31 = vld [vmem:[#allocation11 + $0x2e8] sm:$0xff]  ;;  %v9287_v47 = vld [vmem:[#allocation11 + $0x2a0] sm:$0xff] }
 0x87a   :  { %8942 = vmatpush2.bf16.msra.mxu0 %v16801_v1  ;;  %8983 = vmatpush2.bf16.msra.mxu1 %v16802_v53  ;;  %v9211_v1 = vld [vmem:[#allocation11 + $0x40] sm:$0xff] }
 0x87b   :  { %8943 = vmatprep.subr.bf16.mxu0 %v16803_v19  ;;  %8984 = vmatprep.subr.bf16.mxu1 %v16804_v48  ;;  %v9215_v53 = vld [vmem:[#allocation11 + $0x60] sm:$0xff]  ;;  %v9212_v19 = vld [vmem:[#allocation11 + $0x48] sm:$0xff] }
 0x87c   :  { %v12507_v48 = vcombine.high %v9211_v1, %v9215_v53 }
 0x87e   :  { %8944 = vmatpush2.bf16.msra.mxu0 %v16805_v14  ;;  %8985 = vmatpush2.bf16.msra.mxu1 %v16806_v62  ;;  %v9216_v14 = vld [vmem:[#allocation11 + $0x68] sm:$0xff]  ;;  %v12506_v62 = vcombine.low %v9211_v1, %v9215_v53  ;;  %v9275_v1 = vld [vmem:[#allocation11 + $0x240] sm:$0xff] }
 0x87f   :  { %8945 = vmatprep.subr.bf16.mxu0 %v16807_v22  ;;  %8986 = vmatprep.subr.bf16.mxu1 %v16808_v17  ;;  %v12508_v22 = vcombine.low %v9212_v19, %v9216_v14  ;;  %v12509_v17 = vcombine.high %v9212_v19, %v9216_v14  ;;  %v9279_v19 = vld [vmem:[#allocation11 + $0x260] sm:$0xff]  ;;  %v9280_v14 = vld [vmem:[#allocation11 + $0x268] sm:$0xff] }
 0x882   :  { %8946 = vmatpush2.bf16.msra.mxu0 %v16809_v26  ;;  %8987 = vmatpush2.bf16.msra.mxu1 %v16810_v8  ;;  %v9203_v26 = vld [vmem:[#allocation11] sm:$0xff] }
 0x883   :  { %8947 = vmatprep.subr.bf16.mxu0 %v16811_v6  ;;  %8988 = vmatprep.subr.bf16.mxu1 %v16812_v55  ;;  %v9207_v8 = vld [vmem:[#allocation11 + $0x20] sm:$0xff]  ;;  %v9204_v6 = vld [vmem:[#allocation11 + $0x8] sm:$0xff] }
 0x884   :  { %v12499_v55 = vcombine.high %v9203_v26, %v9207_v8 }
 0x886   :  { %8948 = vmatpush2.bf16.msra.mxu0 %v15344_v38  ;;  %8989 = vmatpush2.bf16.msra.mxu1 %v15348_v44  ;;  %v9259_v38 = vld [vmem:[#allocation11 + $0x1c0] sm:$0xff] }
 0x887   :  { %8949 = vmatprep.subr.bf16.mxu0 %v15350_v35  ;;  %8990 = vmatprep.subr.bf16.mxu1 %v16813_v25  ;;  %v9263_v44 = vld [vmem:[#allocation11 + $0x1e0] sm:$0xff]  ;;  %v9260_v35 = vld [vmem:[#allocation11 + $0x1c8] sm:$0xff] }
 0x888   :  { %v9208_v25 = vld [vmem:[#allocation11 + $0x28] sm:$0xff] }
 0x88a   :  { %8950 = vmatpush2.bf16.msra.mxu0 %v15356_v43  ;;  %8991 = vmatpush2.bf16.msra.mxu1 %v15360_v56  ;;  %v12554_v43 = vcombine.low %v9259_v38, %v9263_v44  ;;  %v12555_v56 = vcombine.high %v9259_v38, %v9263_v44  ;;  %v12498_v38 = vcombine.low %v9203_v26, %v9207_v8  ;;  %v9267_v8 = vld [vmem:[#allocation11 + $0x200] sm:$0xff] }
 0x88b   :  { %8951 = vmatprep.subr.bf16.mxu0 %v15362_v28  ;;  %8992 = vmatprep.subr.bf16.mxu1 %v15365_v24  ;;  %v9264_v28 = vld [vmem:[#allocation11 + $0x1e8] sm:$0xff]  ;;  %v9251_v24 = vld [vmem:[#allocation11 + $0x180] sm:$0xff]  ;;  %v12500_v44 = vcombine.low %v9204_v6, %v9208_v25 }
 0x88e   :  { %8952 = vmatpush2.bf16.msra.mxu0 %v15368_v27  ;;  %8993 = vmatpush2.bf16.msra.mxu1 %v15372_v9  ;;  %v9255_v27 = vld [vmem:[#allocation11 + $0x1a0] sm:$0xff]  ;;  %v12556_v9 = vcombine.low %v9260_v35, %v9264_v28 }
 0x88f   :  { %8953 = vmatprep.subr.bf16.mxu0 %v15374_v50  ;;  %8994 = vmatprep.subr.bf16.mxu1 %v15377_v12  ;;  %v12557_v50 = vcombine.high %v9260_v35, %v9264_v28  ;;  %v12547_v42 = vcombine.high %v9251_v24, %v9255_v27  ;;  %v9252_v12 = vld [vmem:[#allocation11 + $0x188] sm:$0xff]  ;;  %v12501_v35 = vcombine.high %v9204_v6, %v9208_v25  ;;  %v9271_v6 = vld [vmem:[#allocation11 + $0x220] sm:$0xff] }
 0x890   :  { %v9324_v28 = vld [vmem:[#allocation11 + $0x3c8] sm:$0xff] }
 0x891   :  { %v9272_v25 = vld [vmem:[#allocation11 + $0x228] sm:$0xff] }
 0x892   :  { %8954 = vmatpush2.bf16.msra.mxu0 %v15380_v13  ;;  %8995 = vmatpush2.bf16.msra.mxu1 %v15384_v23  ;;  %v12549_v13 = vcombine.high %v9252_v12, %v9256_v37  ;;  %v12546_v23 = vcombine.low %v9251_v24, %v9255_v27  ;;  %v9328_v27 = vld [vmem:[#allocation11 + $0x3e8] sm:$0xff] }
 0x893   :  { %9971 = vmatprep.subr.bf16.mxu0 %v12555_v56  ;;  %10012 = vmatprep.subr.bf16.mxu1 %v12557_v50  ;;  %v9327_v56 = vld [vmem:[#allocation11 + $0x3e0] sm:$0xff]  ;;  %v12620_v50 = vcombine.low %v9324_v28, %v9328_v27 }
 0x895   :  { %8956 = vmatmul.mubr.bf16.vlgmr.msra.gmra.mxu0 %v15487_v16  ;;  %8997 = vmatmul.mubr.bf16.vlgmr.msra.gmra.mxu1 %v15487_v16  ;;  %v12548_v16 = vcombine.low %v9252_v12, %v9256_v37  ;;  %v9315_v12 = vld [vmem:[#allocation11 + $0x380] sm:$0xff] }
 0x896   :  { %9972 = vmatpush1.bf16.msra.mxu0 %v12554_v43  ;;  %10013 = vmatpush1.bf16.msra.mxu1 %v12556_v9  ;;  %v9323_v43 = vld [vmem:[#allocation11 + $0x3c0] sm:$0xff] }
 0x897   :  { %9973 = vmatprep.subr.bf16.mxu0 %v12547_v42  ;;  %10014 = vmatprep.subr.bf16.mxu1 %v12549_v13  ;;  %v12619_v24 = vcombine.high %v9323_v43, %v9327_v56  ;;  %v12618_v9 = vcombine.low %v9323_v43, %v9327_v56  ;;  %v12621_v42 = vcombine.high %v9324_v28, %v9328_v27  ;;  %v9319_v37 = vld [vmem:[#allocation11 + $0x3a0] sm:$0xff]  ;;  %v9316_v13 = vld [vmem:[#allocation11 + $0x388] sm:$0xff]  ;;  %v15562_v27 = vld [vmem:[#allocation11 + $0x1f0] sm:$0xff] }
 0x898   :  { %v12610_v40 = vcombine.low %v9315_v12, %v9319_v37  ;;  %v12562_v56 = vcombine.low %v9267_v8, %v9271_v6 }
 0x89a   :  { %9974 = vmatpush1.bf16.msra.mxu0 %v12546_v23  ;;  %10015 = vmatpush1.bf16.msra.mxu1 %v12548_v16  ;;  %v12611_v23 = vcombine.high %v9315_v12, %v9319_v37  ;;  %v9320_v16 = vld [vmem:[#allocation11 + $0x3a8] sm:$0xff] }
 0x89b   :  { %9975 = vmatprep.subr.bf16.mxu0 %v12539_v59  ;;  %10016 = vmatprep.subr.bf16.mxu1 %v12541_v63  ;;  %v12612_v58 = vcombine.low %v9316_v13, %v9320_v16  ;;  %v12613_v34 = vcombine.high %v9316_v13, %v9320_v16  ;;  %v9307_v59 = vld [vmem:[#allocation11 + $0x340] sm:$0xff]  ;;  %v9312_v63 = vld [vmem:[#allocation11 + $0x368] sm:$0xff] }
 0x89c   :  { %v12602_v33 = vcombine.low %v9307_v59, %v9311_v15 }
 0x89e   :  { %9976 = vmatpush1.bf16.msra.mxu0 %v12538_v36  ;;  %10017 = vmatpush1.bf16.msra.mxu1 %v12540_v18  ;;  %v9308_v36 = vld [vmem:[#allocation11 + $0x348] sm:$0xff]  ;;  %v12603_v18 = vcombine.high %v9307_v59, %v9311_v15 }
 0x89f   :  { %9977 = vmatprep.subr.bf16.mxu0 %v12531_v10  ;;  %10018 = vmatprep.subr.bf16.mxu1 %v12533_v45  ;;  %v12604_v49 = vcombine.low %v9308_v36, %v9312_v63  ;;  %v12605_v3 = vcombine.high %v9308_v36, %v9312_v63  ;;  %v9299_v10 = vld [vmem:[#allocation11 + $0x300] sm:$0xff]  ;;  %v9304_v45 = vld [vmem:[#allocation11 + $0x328] sm:$0xff] }
 0x8a0   :  { %v12594_v21 = vcombine.low %v9299_v10, %v9303_v52  ;;  %v16815_v36 = vld [vmem:[#allocation43_spill] sm:$0xff] }
 0x8a2   :  { %9978 = vmatpush1.bf16.msra.mxu0 %v12530_v39  ;;  %10019 = vmatpush1.bf16.msra.mxu1 %v12532_v20  ;;  %v9300_v39 = vld [vmem:[#allocation11 + $0x308] sm:$0xff]  ;;  %v12595_v20 = vcombine.high %v9299_v10, %v9303_v52 }
 0x8a3   :  { %9979 = vmatprep.subr.bf16.mxu0 %v12523_v29  ;;  %10020 = vmatprep.subr.bf16.mxu1 %v12525_v61  ;;  %v12596_v54 = vcombine.low %v9300_v39, %v9304_v45  ;;  %v12597_v0 = vcombine.high %v9300_v39, %v9304_v45  ;;  %v9291_v29 = vld [vmem:[#allocation11 + $0x2c0] sm:$0xff]  ;;  %v16816_v52 = vld [vmem:[#allocation44_spill] sm:$0xff] }
 0x8a4   :  { %v12587_v61 = vcombine.high %v9291_v29, %v9295_v46 }
 0x8a6   :  { %9980 = vmatpush1.bf16.msra.mxu0 %v12522_v11  ;;  %10021 = vmatpush1.bf16.msra.mxu1 %v12524_v7  ;;  %v9292_v11 = vld [vmem:[#allocation11 + $0x2c8] sm:$0xff]  ;;  %v12586_v7 = vcombine.low %v9291_v29, %v9295_v46 }
 0x8a7   :  { %9981 = vmatprep.subr.bf16.mxu0 %v12515_v41  ;;  %10022 = vmatprep.subr.bf16.mxu1 %v12517_v32  ;;  %v12588_v41 = vcombine.low %v9292_v11, %v9296_v31  ;;  %v12589_v51 = vcombine.high %v9292_v11, %v9296_v31  ;;  %v9288_v32 = vld [vmem:[#allocation11 + $0x2a8] sm:$0xff] }
 0x8aa   :  { %9982 = vmatpush1.bf16.msra.mxu0 %v12514_v2  ;;  %10023 = vmatpush1.bf16.msra.mxu1 %v12516_v5  ;;  %v12579_v2 = vcombine.high %v9283_v57, %v9287_v47  ;;  %v9284_v5 = vld [vmem:[#allocation11 + $0x288] sm:$0xff] }
 0x8ab   :  { %9983 = vmatprep.subr.bf16.mxu0 %v12507_v48  ;;  %10024 = vmatprep.subr.bf16.mxu1 %v12509_v17  ;;  %v12581_v53 = vcombine.high %v9284_v5, %v9288_v32  ;;  %v9276_v48 = vld [vmem:[#allocation11 + $0x248] sm:$0xff]  ;;  %v12571_v17 = vcombine.high %v9275_v1, %v9279_v19 }
 0x8ac   :  { %v12573_v26 = vcombine.high %v9276_v48, %v9280_v14 }
 0x8ae   :  { %9984 = vmatpush1.bf16.msra.mxu0 %v12506_v62  ;;  %10025 = vmatpush1.bf16.msra.mxu1 %v12508_v22  ;;  %v12578_v62 = vcombine.low %v9283_v57, %v9287_v47  ;;  %v12580_v22 = vcombine.low %v9284_v5, %v9288_v32 }
 0x8af   :  { %9985 = vmatprep.subr.bf16.mxu0 %v12499_v55  ;;  %10026 = vmatprep.subr.bf16.mxu1 %v12501_v35  ;;  %v9268_v55 = vld [vmem:[#allocation11 + $0x208] sm:$0xff]  ;;  %v12563_v35 = vcombine.high %v9267_v8, %v9271_v6 }
 0x8b0   :  { %v12565_v43 = vcombine.high %v9268_v55, %v9272_v25  ;;  %v12564_v28 = vcombine.low %v9268_v55, %v9272_v25  ;;  %v16818_v25 = vld [vmem:[#allocation53_spill] sm:$0xff] }
 0x8b2   :  { %9986 = vmatpush1.bf16.msra.mxu0 %v12498_v38  ;;  %10027 = vmatpush1.bf16.msra.mxu1 %v12500_v44  ;;  %v12570_v38 = vcombine.low %v9275_v1, %v9279_v19  ;;  %v12572_v44 = vcombine.low %v9276_v48, %v9280_v14 }
 0x8b3   :  { %9987 = vmatprep.subr.bf16.mxu0 %v12619_v24  ;;  %10028 = vmatprep.subr.bf16.mxu1 %v12621_v42  ;;  %v15560_v24 = vld [vmem:[#allocation11 + $0x1d0] sm:$0xff]  ;;  %v15568_v42 = vld [vmem:[#allocation11 + $0x1f8] sm:$0xff] }
 0x8b4   :  { %v12558_v12 = vcombine.low %v15560_v24, %v15562_v27 }
 0x8b6   :  { %9988 = vmatpush2.bf16.msra.mxu0 %v12618_v9  ;;  %10029 = vmatpush2.bf16.msra.mxu1 %v12620_v50  ;;  %v15564_v9 = vld [vmem:[#allocation11 + $0x1d8] sm:$0xff]  ;;  %v12559_v50 = vcombine.high %v15560_v24, %v15562_v27 }
 0x8b7   :  { %9989 = vmatprep.subr.bf16.mxu0 %v12611_v23  ;;  %10030 = vmatprep.subr.bf16.mxu1 %v12613_v34  ;;  %v12560_v37 = vcombine.low %v15564_v9, %v15568_v42  ;;  %v12561_v13 = vcombine.high %v15564_v9, %v15568_v42  ;;  %v9238_v24 = vld [vmem:[#allocation11 + $0x118] sm:$0xff] }
 0x8b8   :  { %v9242_v27 = vld [vmem:[#allocation11 + $0x138] sm:$0xff] }
 0x8ba   :  { %9990 = vmatpush2.bf16.msra.mxu0 %v12610_v40  ;;  %10031 = vmatpush2.bf16.msra.mxu1 %v12612_v58  ;;  %v16814_v40 = vld [vmem:[#allocation41_spill] sm:$0xff] }
 0x8bb   :  { %9991 = vmatprep.subr.bf16.mxu0 %v12603_v18  ;;  %10032 = vmatprep.subr.bf16.mxu1 %v12605_v3 }
 0x8be   :  { %9992 = vmatpush2.bf16.msra.mxu0 %v12602_v33  ;;  %10033 = vmatpush2.bf16.msra.mxu1 %v12604_v49 }
 0x8bf   :  { %9993 = vmatprep.subr.bf16.mxu0 %v12595_v20  ;;  %10034 = vmatprep.subr.bf16.mxu1 %v12597_v0  ;;  %v16817_v20 = vld [vmem:[#allocation42_spill] sm:$0xff] }
 0x8c2   :  { %9994 = vmatpush2.bf16.msra.mxu0 %v12594_v21  ;;  %10035 = vmatpush2.bf16.msra.mxu1 %v12596_v54 }
 0x8c3   :  { %9995 = vmatprep.subr.bf16.mxu0 %v12587_v61  ;;  %10036 = vmatprep.subr.bf16.mxu1 %v12589_v51 }
 0x8c6   :  { %9996 = vmatpush2.bf16.msra.mxu0 %v12586_v7  ;;  %10037 = vmatpush2.bf16.msra.mxu1 %v12588_v41 }
 0x8c7   :  { %9997 = vmatprep.subr.bf16.mxu0 %v12579_v2  ;;  %10038 = vmatprep.subr.bf16.mxu1 %v12581_v53 }
 0x8ca   :  { %9998 = vmatpush2.bf16.msra.mxu0 %v12578_v62  ;;  %10039 = vmatpush2.bf16.msra.mxu1 %v12580_v22 }
 0x8cb   :  { %9999 = vmatprep.subr.bf16.mxu0 %v12571_v17  ;;  %10040 = vmatprep.subr.bf16.mxu1 %v12573_v26 }
 0x8ce   :  { %10000 = vmatpush2.bf16.msra.mxu0 %v12570_v38  ;;  %10041 = vmatpush2.bf16.msra.mxu1 %v12572_v44 }
 0x8cf   :  { %10001 = vmatprep.subr.bf16.mxu0 %v12563_v35  ;;  %10042 = vmatprep.subr.bf16.mxu1 %v12565_v43 }
 0x8d2   :  { %10002 = vmatpush2.bf16.msra.mxu0 %v12562_v56  ;;  %10043 = vmatpush2.bf16.msra.mxu1 %v12564_v28  ;;  %v16819_v28 = vld [vmem:[#allocation55_spill] sm:$0xff] }
 0x8d3   :  { %10053 = vmatprep.subr.bf16.mxu0 %v12559_v50  ;;  %10094 = vmatprep.subr.bf16.mxu1 %v12561_v13 }
 0x914   :  { %v8875_v23 = vpop.f32.mrf.mxu0 }
 0x915   :  { %v8916_v16 = vpop.f32.mrf.mxu1  ;;  %v9009_v58 = vadd.f32 %v8875_v23, %v16814_v40 }
 0x916   :  { %v8877_v34 = vpop.f32.mrf.mxu0  ;;  %v9011_v45 = vadd.f32 %v8916_v16, %v16817_v20 }
 0x917   :  { %v8918_v59 = vpop.f32.mrf.mxu1  ;;  %v12484_v15 = vmul.f32 -1.442695, %v9009_v58  ;;  %v9010_v18 = vadd.f32 %v8877_v34, %v16815_v36  ;;  %v16821_v36 = vld [vmem:[#allocation54_spill] sm:$0xff] }
 0x918   :  { %v8879_v63 = vpop.f32.mrf.mxu0  ;;  %v9012_v39 = vadd.f32 %v8918_v59, %v16816_v52  ;;  %v16820_v59 = vld [vmem:[#allocation56_spill] sm:$0xff] }
 0x919   :  { %v8920_v33 = vpop.f32.mrf.mxu1  ;;  %13169 = vpow2.f32 %v12484_v15  ;;  %v12485_v49 = vmul.f32 -1.442695, %v9010_v18 }
 0x91a   :  { %v8880_v3 = vpop.f32.mrf.mxu0  ;;  %v12486_v21 = vmul.f32 -1.442695, %v9012_v39 }
 0x91b   :  { %v8921_v10 = vpop.f32.mrf.mxu1  ;;  %13171 = vpow2.f32 %v12485_v49 }
 0x91c   :  { %13173 = vtanh.f32 %v9011_v45 }
 0x91d   :  { %13175 = vpow2.f32 %v12486_v21 }
 0x926   :  { %v13170_v54 = vpop.eup %13169 }
 0x927   :  { %v9024_v0 = vadd.f32 1.0, %v13170_v54 }
 0x928   :  { %v13172_v29 = vpop.eup %13171 }
 0x929   :  { %13177 = vrcp.f32 %v9024_v0  ;;  %v9030_v46 = vadd.f32 1.0, %v13172_v29  ;;  %v13174_v11 = vpop.eup %13173 }
 0x92a   :  { %v13176_v7 = vpop.eup %13175 }
 0x92b   :  { %13179 = vrcp.f32 %v9030_v46  ;;  %v9037_v47 = vadd.f32 1.0, %v13176_v7 }
 0x92d   :  { %13181 = vrcp.f32 %v9037_v47 }
 0x936   :  { %v13178_v61 = vpop.eup %13177 }
 0x937   :  { %v9041_v31 = vmul.f32 %v13178_v61, %v13174_v11  ;;  %v9253_v61 = vld [vmem:[#allocation11 + $0x190] sm:$0xff] }
 0x938   :  { %v13180_v57 = vpop.eup %13179 }
 0x939   :  { %v9040_v41 = vmul.f32 %v13180_v57, %v15462_v30 }
 0x93a   :  { %v13182_v2 = vpop.eup %13181 }
 0x93b   :  { %v15581_v51 = vadd.f32 %v9041_v31, %v9040_v41  ;;  %v9257_v31 = vld [vmem:[#allocation11 + $0x1b0] sm:$0xff] }
 0x93d   :  { %13183 = vtanh.f32 %v15581_v51 }
 0x94a   :  { %v13184_v5 = vpop.eup %13183 }
 0x94b   :  { %v15584_v32 = vmul.f32 %v13184_v5, %v13182_v2  ;;  %v9254_v2 = vld [vmem:[#allocation11 + $0x198] sm:$0xff] }
 0x94c   :  { %v9258_v5 = vld [vmem:[#allocation11 + $0x1b8] sm:$0xff] }
 0x94d   :  { %v9070_v1 = vcombine.high %v15584_v32, %v15584_v32  ;;  %v9077_v53 = vrot.slane %v15584_v32, %v13983_v4 }
 0x94f   :  { %v9084_v19 = vrot.slane %v9070_v1, %v13983_v4  ;;  %v9085_v48 = vcombine.high %v9077_v53, %v9077_v53  ;;  %v9093_v30 = vrot.slane %v9077_v53, %v13983_v4  ;;  %12490 = vst.sshfl [vmem:[#allocation4 + $0x6] sm:$0x1 pattern:$0x73625140] %v9077_v53  ;;  %v15606_v1 = vpack.c.bf16 %v15584_v32, %v15584_v32  ;;  %v9245_v53 = vld [vmem:[#allocation11 + $0x150] sm:$0xff] }
 0x950   :  { %v12553_v32 = vcombine.high %v9254_v2, %v9258_v5 }
 0x951   :  { %v9086_v14 = vcombine.high %v9084_v19, %v9084_v19  ;;  %v9100_v62 = vrot.slane %v9084_v19, %v13983_v4  ;;  %v9107_v22 = vrot.slane %v9085_v48, %v13983_v4  ;;  %v9115_v17 = vcombine.high %v9093_v30, %v9093_v30  ;;  %12491 = vst.sshfl [vmem:[#allocation4 + $0xe] sm:$0x1 pattern:$0x73625140] %v9085_v48 }
 0x952   :  { %12492 = vst.sshfl [vmem:[#allocation4 + $0x26] sm:$0x1 pattern:$0x73625140] %v9084_v19 }
 0x953   :  { %v9114_v26 = vrot.slane %v9086_v14, %v13983_v4  ;;  %v9116_v8 = vcombine.high %v9100_v62, %v9100_v62  ;;  %v9117_v6 = vcombine.high %v9107_v22, %v9107_v22  ;;  %9129 = vst [vmem:[#allocation4 + $0x16] sm:$0x1] %v9115_v17  ;;  %12493 = vst.sshfl [vmem:[#allocation4 + $0x2e] sm:$0x1 pattern:$0x73625140] %v9086_v14 }
 0x954   :  { %v9249_v14 = vld [vmem:[#allocation11 + $0x170] sm:$0xff]  ;;  %v9246_v62 = vld [vmem:[#allocation11 + $0x158] sm:$0xff]  ;;  %v12550_v17 = vcombine.low %v9253_v61, %v9257_v31 }
 0x955   :  { %v8957_v55 = vpop.f32.mrf.mxu0  ;;  %v8998_v44 = vpop.f32.mrf.mxu1  ;;  %v9118_v35 = vcombine.high %v9114_v26, %v9114_v26  ;;  %9130 = vst [vmem:[#allocation4 + $0x1e] sm:$0x1] %v9117_v6  ;;  %9133 = vst [vmem:[#allocation4 + $0x36] sm:$0x1] %v9116_v8  ;;  %v9250_v22 = vld [vmem:[#allocation11 + $0x178] sm:$0xff]  ;;  %v12542_v9 = vcombine.low %v9245_v53, %v9249_v14 }
 0x956   :  { %v9017_v38 = vadd.f32 %v8957_v55, %v16818_v25  ;;  %v9019_v18 = vadd.f32 %v8998_v44, %v16821_v36  ;;  %v12552_v25 = vcombine.low %v9254_v2, %v9258_v5  ;;  %v12545_v44 = vcombine.high %v9246_v62, %v9250_v22 }
 0x957   :  { %v8959_v43 = vpop.f32.mrf.mxu0  ;;  %v9000_v13 = vpop.f32.mrf.mxu1  ;;  %9134 = vst [vmem:[#allocation4 + $0x3e] sm:$0x1] %v9118_v35  ;;  %v12544_v42 = vcombine.low %v9246_v62, %v9250_v22 }
 0x958   :  { %v12487_v56 = vmul.f32 -1.442695, %v9017_v38  ;;  %v9018_v50 = vadd.f32 %v8959_v43, %v16819_v28  ;;  %v9020_v15 = vadd.f32 %v9000_v13, %v16820_v59  ;;  %v12543_v38 = vcombine.high %v9245_v53, %v9249_v14  ;;  %v9237_v28 = vld [vmem:[#allocation11 + $0x110] sm:$0xff] }
 0x959   :  { %v8961_v23 = vpop.f32.mrf.mxu0  ;;  %v9002_v40 = vpop.f32.mrf.mxu1  ;;  %v12537_v13 = vcombine.high %v9238_v24, %v9242_v27  ;;  %v12536_v59 = vcombine.low %v9238_v24, %v9242_v27  ;;  %v9325_v53 = vld [vmem:[#allocation11 + $0x3d0] sm:$0xff] }
 0x95a   :  { %13185 = vpow2.f32 %v12487_v56  ;;  %v12488_v16 = vmul.f32 -1.442695, %v9018_v50  ;;  %v12489_v63 = vmul.f32 -1.442695, %v9020_v15  ;;  %v9241_v50 = vld [vmem:[#allocation11 + $0x130] sm:$0xff]  ;;  %v9230_v40 = vld [vmem:[#allocation11 + $0xd8] sm:$0xff] }
 0x95b   :  { %v8962_v58 = vpop.f32.mrf.mxu0  ;;  %v9003_v34 = vpop.f32.mrf.mxu1  ;;  %v9229_v23 = vld [vmem:[#allocation11 + $0xd0] sm:$0xff] }
 0x95c   :  { %13187 = vpow2.f32 %v12488_v16  ;;  %v9233_v16 = vld [vmem:[#allocation11 + $0xf0] sm:$0xff]  ;;  %v9234_v58 = vld [vmem:[#allocation11 + $0xf8] sm:$0xff]  ;;  %v12534_v34 = vcombine.low %v9237_v28, %v9241_v50 }
 0x95d   :  { %13189 = vtanh.f32 %v9019_v18  ;;  %v12527_v15 = vcombine.high %v9229_v23, %v9233_v16  ;;  %v12529_v36 = vcombine.high %v9230_v40, %v9234_v58  ;;  %v9221_v18 = vld [vmem:[#allocation11 + $0x90] sm:$0xff] }
 0x95e   :  { %13191 = vpow2.f32 %v12489_v63  ;;  %v9225_v63 = vld [vmem:[#allocation11 + $0xb0] sm:$0xff] }
 0x967   :  { %v13186_v33 = vpop.eup %13185 }
 0x968   :  { %v9048_v49 = vadd.f32 1.0, %v13186_v33  ;;  %v9222_v33 = vld [vmem:[#allocation11 + $0x98] sm:$0xff] }
 0x969   :  { %v13188_v3 = vpop.eup %13187 }
 0x96a   :  { %13193 = vrcp.f32 %v9048_v49  ;;  %v9054_v10 = vadd.f32 1.0, %v13188_v3  ;;  %v13190_v52 = vpop.eup %13189  ;;  %v9226_v49 = vld [vmem:[#allocation11 + $0xb8] sm:$0xff]  ;;  %v12526_v3 = vcombine.low %v9229_v23, %v9233_v16 }
 0x96b   :  { %v13192_v39 = vpop.eup %13191 }
 0x96c   :  { %13195 = vrcp.f32 %v9054_v10  ;;  %v9061_v54 = vadd.f32 1.0, %v13192_v39  ;;  %v12528_v10 = vcombine.low %v9230_v40, %v9234_v58  ;;  %v12521_v39 = vcombine.high %v9222_v33, %v9226_v49 }
 0x96e   :  { %13197 = vrcp.f32 %v9061_v54  ;;  %v9218_v54 = vld [vmem:[#allocation11 + $0x78] sm:$0xff] }
 0x977   :  { %v13194_v20 = vpop.eup %13193 }
 0x978   :  { %v9065_v45 = vmul.f32 %v13194_v20, %v13190_v52  ;;  %v12519_v52 = vcombine.high %v9221_v18, %v9225_v63  ;;  %v9213_v20 = vld [vmem:[#allocation11 + $0x50] sm:$0xff] }
 0x979   :  { %v13196_v21 = vpop.eup %13195 }
 0x97a   :  { %v9064_v0 = vmul.f32 %v13196_v21, %v15481_v60  ;;  %v12551_v60 = vcombine.high %v9253_v61, %v9257_v31  ;;  %v9214_v21 = vld [vmem:[#allocation11 + $0x58] sm:$0xff]  ;;  %v9205_v61 = vld [vmem:[#allocation11 + $0x10] sm:$0xff] }
 0x97b   :  { %v13198_v46 = vpop.eup %13197  ;;  %v9209_v31 = vld [vmem:[#allocation11 + $0x30] sm:$0xff]  ;;  %v12512_v2 = vcombine.low %v9214_v21, %v9218_v54 }
 0x97c   :  { %v15600_v29 = vadd.f32 %v9065_v45, %v9064_v0  ;;  %v9217_v45 = vld [vmem:[#allocation11 + $0x70] sm:$0xff]  ;;  %v12518_v0 = vcombine.low %v9221_v18, %v9225_v63  ;;  %v12503_v5 = vcombine.high %v9205_v61, %v9209_v31  ;;  %v12502_v14 = vcombine.low %v9205_v61, %v9209_v31 }
 0x97e   :  { %13199 = vtanh.f32 %v15600_v29 }
 0x98b   :  { %v13200_v11 = vpop.eup %13199 }
 0x98c   :  { %v9068_v7 = vmul.f32 %v13200_v11, %v13198_v46  ;;  %v12520_v46 = vcombine.low %v9222_v33, %v9226_v49  ;;  %v12511_v11 = vcombine.high %v9213_v20, %v9217_v45 }
 0x98e   :  { %v9136_v57 = vcombine.high %v9068_v7, %v9068_v7  ;;  %v9143_v47 = vrot.slane %v9068_v7, %v13983_v4  ;;  %v9202_v41 = vpack.c.bf16 %v9068_v7, %v9068_v7  ;;  %v12513_v7 = vcombine.high %v9214_v21, %v9218_v54 }
 0x990   :  { %v9150_v19 = vrot.slane %v9136_v57, %v13983_v4  ;;  %v9151_v48 = vcombine.high %v9143_v47, %v9143_v47  ;;  %v9159_v30 = vrot.slane %v9143_v47, %v13983_v4  ;;  %12494 = vst.sshfl [vmem:[#allocation5 + $0x1] sm:$0x1 pattern:$0x73625140] %v9143_v47  ;;  %10003 = vmatprep.mubr.bf16.mxu0 %v9202_v41  ;;  %v9206_v57 = vld [vmem:[#allocation11 + $0x18] sm:$0xff] }
 0x991   :  { %10044 = vmatprep.mubr.bf16.mxu1 %v9202_v41  ;;  %10004 = vmatmul.mubr.bf16.vlgmr.msra.gmra.mxu0 %v15606_v1  ;;  %v9210_v47 = vld [vmem:[#allocation11 + $0x38] sm:$0xff] }
 0x992   :  { %10045 = vmatmul.mubr.bf16.vlgmr.msra.gmra.mxu1 %v15606_v1  ;;  %v9152_v26 = vcombine.high %v9150_v19, %v9150_v19  ;;  %v9166_v8 = vrot.slane %v9150_v19, %v13983_v4  ;;  %v9173_v6 = vrot.slane %v9151_v48, %v13983_v4  ;;  %v9181_v55 = vcombine.high %v9159_v30, %v9159_v30  ;;  %v9330_v30 = vld [vmem:[#allocation11 + $0x3f8] sm:$0xff] }
 0x993   :  { %12495 = vst.sshfl [vmem:[#allocation5 + $0x9] sm:$0x1 pattern:$0x73625140] %v9151_v48  ;;  %10054 = vmatpush1.bf16.msra.mxu0 %v12558_v12  ;;  %10095 = vmatpush1.bf16.msra.mxu1 %v12560_v37  ;;  %v12535_v37 = vcombine.high %v9237_v28, %v9241_v50  ;;  %v9326_v48 = vld [vmem:[#allocation11 + $0x3d8] sm:$0xff]  ;;  %v12504_v62 = vcombine.low %v9206_v57, %v9210_v47 }
 0x994   :  { %12496 = vst.sshfl [vmem:[#allocation5 + $0x21] sm:$0x1 pattern:$0x73625140] %v9150_v19  ;;  %10085 = vmatprep.mubr.bf16.mxu0 %v9202_v41  ;;  %v9180_v35 = vrot.slane %v9152_v26, %v13983_v4  ;;  %v9182_v43 = vcombine.high %v9166_v8, %v9166_v8  ;;  %v9183_v56 = vcombine.high %v9173_v6, %v9173_v6  ;;  %9195 = vst [vmem:[#allocation5 + $0x11] sm:$0x1] %v9181_v55 }
 0x995   :  { %12497 = vst.sshfl [vmem:[#allocation5 + $0x29] sm:$0x1 pattern:$0x73625140] %v9152_v26  ;;  %10126 = vmatprep.mubr.bf16.mxu1 %v9202_v41  ;;  %10055 = vmatprep.subr.bf16.mxu0 %v12551_v60  ;;  %v12510_v41 = vcombine.low %v9213_v20, %v9217_v45  ;;  %v12505_v60 = vcombine.high %v9206_v57, %v9210_v47  ;;  %v9329_v19 = vld [vmem:[#allocation11 + $0x3f0] sm:$0xff]  ;;  %v9318_v8 = vld [vmem:[#allocation11 + $0x398] sm:$0xff] }
 0x996   :  { %10096 = vmatprep.subr.bf16.mxu1 %v12553_v32  ;;  %v9184_v12 = vcombine.high %v9180_v35, %v9180_v35  ;;  %9196 = vst [vmem:[#allocation5 + $0x19] sm:$0x1] %v9183_v56  ;;  %9199 = vst [vmem:[#allocation5 + $0x31] sm:$0x1] %v9182_v43  ;;  %v12623_v22 = vcombine.high %v9325_v53, %v9329_v19  ;;  %v9317_v32 = vld [vmem:[#allocation11 + $0x390] sm:$0xff]  ;;  %v9322_v6 = vld [vmem:[#allocation11 + $0x3b8] sm:$0xff]  ;;  %v12622_v55 = vcombine.low %v9325_v53, %v9329_v19 }
 0x997   :  { %10056 = vmatpush1.bf16.msra.mxu0 %v12550_v17  ;;  %10097 = vmatpush1.bf16.msra.mxu1 %v12552_v25  ;;  %v12625_v17 = vcombine.high %v9326_v48, %v9330_v30  ;;  %v9321_v26 = vld [vmem:[#allocation11 + $0x3b0] sm:$0xff]  ;;  %v12624_v25 = vcombine.low %v9326_v48, %v9330_v30  ;;  %v9310_v56 = vld [vmem:[#allocation11 + $0x358] sm:$0xff]  ;;  %v12616_v24 = vcombine.low %v9318_v8, %v9322_v6 }
 0x998   :  { %10057 = vmatprep.subr.bf16.mxu0 %v12543_v38  ;;  %9200 = vst [vmem:[#allocation5 + $0x39] sm:$0x1] %v9184_v12  ;;  %10098 = vmatprep.subr.bf16.mxu1 %v12545_v44  ;;  %v12615_v38 = vcombine.high %v9317_v32, %v9321_v26  ;;  %v12617_v44 = vcombine.high %v9318_v8, %v9322_v6  ;;  %v9309_v35 = vld [vmem:[#allocation11 + $0x350] sm:$0xff]  ;;  %v9314_v28 = vld [vmem:[#allocation11 + $0x378] sm:$0xff] }
 0x999   :  { %v9313_v43 = vld [vmem:[#allocation11 + $0x370] sm:$0xff]  ;;  %v12614_v50 = vcombine.low %v9317_v32, %v9321_v26  ;;  %v12609_v12 = vcombine.high %v9310_v56, %v9314_v28  ;;  %v12608_v16 = vcombine.low %v9310_v56, %v9314_v28 }
 0x99a   :  { %v12607_v27 = vcombine.high %v9309_v35, %v9313_v43  ;;  %v12606_v23 = vcombine.low %v9309_v35, %v9313_v43  ;;  %v16822_v26 = vld [vmem:[#allocation45_spill] sm:$0xff] }
 0x99b   :  { %10058 = vmatpush1.bf16.msra.mxu0 %v12542_v9  ;;  %10099 = vmatpush1.bf16.msra.mxu1 %v12544_v42  ;;  %v9301_v9 = vld [vmem:[#allocation11 + $0x310] sm:$0xff] }
 0x99c   :  { %10059 = vmatprep.subr.bf16.mxu0 %v12535_v37  ;;  %10100 = vmatprep.subr.bf16.mxu1 %v12537_v13  ;;  %v9305_v42 = vld [vmem:[#allocation11 + $0x330] sm:$0xff]  ;;  %v9302_v37 = vld [vmem:[#allocation11 + $0x318] sm:$0xff] }
 0x99d   :  { %v9306_v13 = vld [vmem:[#allocation11 + $0x338] sm:$0xff]  ;;  %v12599_v40 = vcombine.high %v9301_v9, %v9305_v42  ;;  %v12598_v18 = vcombine.low %v9301_v9, %v9305_v42 }
 0x99e   :  { %v12601_v58 = vcombine.high %v9302_v37, %v9306_v13  ;;  %v12600_v63 = vcombine.low %v9302_v37, %v9306_v13 }
 0x99f   :  { %10060 = vmatpush1.bf16.msra.mxu0 %v12534_v34  ;;  %10101 = vmatpush1.bf16.msra.mxu1 %v12536_v59  ;;  %v9293_v34 = vld [vmem:[#allocation11 + $0x2d0] sm:$0xff] }
 0x9a0   :  { %10061 = vmatprep.subr.bf16.mxu0 %v12527_v15  ;;  %10102 = vmatprep.subr.bf16.mxu1 %v12529_v36  ;;  %v9297_v59 = vld [vmem:[#allocation11 + $0x2f0] sm:$0xff]  ;;  %v9294_v15 = vld [vmem:[#allocation11 + $0x2d8] sm:$0xff] }
 0x9a1   :  { %v9298_v36 = vld [vmem:[#allocation11 + $0x2f8] sm:$0xff]  ;;  %v12591_v33 = vcombine.high %v9293_v34, %v9297_v59  ;;  %v12590_v20 = vcombine.low %v9293_v34, %v9297_v59 }
 0x9a2   :  { %v12593_v49 = vcombine.high %v9294_v15, %v9298_v36  ;;  %v12592_v45 = vcombine.low %v9294_v15, %v9298_v36 }
 0x9a3   :  { %10062 = vmatpush1.bf16.msra.mxu0 %v12526_v3  ;;  %10103 = vmatpush1.bf16.msra.mxu1 %v12528_v10  ;;  %v9285_v3 = vld [vmem:[#allocation11 + $0x290] sm:$0xff] }
 0x9a4   :  { %10063 = vmatprep.subr.bf16.mxu0 %v12519_v52  ;;  %10104 = vmatprep.subr.bf16.mxu1 %v12521_v39  ;;  %v9289_v10 = vld [vmem:[#allocation11 + $0x2b0] sm:$0xff]  ;;  %v9286_v52 = vld [vmem:[#allocation11 + $0x298] sm:$0xff] }
 0x9a5   :  { %v9290_v39 = vld [vmem:[#allocation11 + $0x2b8] sm:$0xff]  ;;  %v12583_v21 = vcombine.high %v9285_v3, %v9289_v10  ;;  %v12582_v61 = vcombine.low %v9285_v3, %v9289_v10 }
 0x9a6   :  { %v12585_v54 = vcombine.high %v9286_v52, %v9290_v39  ;;  %v12584_v31 = vcombine.low %v9286_v52, %v9290_v39 }
 0x9a7   :  { %10064 = vmatpush1.bf16.msra.mxu0 %v12518_v0  ;;  %10105 = vmatpush1.bf16.msra.mxu1 %v12520_v46  ;;  %v9277_v0 = vld [vmem:[#allocation11 + $0x250] sm:$0xff] }
 0x9a8   :  { %10065 = vmatprep.subr.bf16.mxu0 %v12511_v11  ;;  %10106 = vmatprep.subr.bf16.mxu1 %v12513_v7  ;;  %v9281_v46 = vld [vmem:[#allocation11 + $0x270] sm:$0xff]  ;;  %v9278_v11 = vld [vmem:[#allocation11 + $0x258] sm:$0xff] }
 0x9a9   :  { %v9282_v7 = vld [vmem:[#allocation11 + $0x278] sm:$0xff]  ;;  %v12575_v57 = vcombine.high %v9277_v0, %v9281_v46  ;;  %v12574_v53 = vcombine.low %v9277_v0, %v9281_v46 }
 0x9aa   :  { %v12577_v47 = vcombine.high %v9278_v11, %v9282_v7  ;;  %v12576_v19 = vcombine.low %v9278_v11, %v9282_v7 }
 0x9ab   :  { %10066 = vmatpush1.bf16.msra.mxu0 %v12510_v41  ;;  %10107 = vmatpush1.bf16.msra.mxu1 %v12512_v2  ;;  %v9269_v41 = vld [vmem:[#allocation11 + $0x210] sm:$0xff] }
 0x9ac   :  { %10067 = vmatprep.subr.bf16.mxu0 %v12503_v5  ;;  %10108 = vmatprep.subr.bf16.mxu1 %v12505_v60  ;;  %v9273_v2 = vld [vmem:[#allocation11 + $0x230] sm:$0xff]  ;;  %v9270_v5 = vld [vmem:[#allocation11 + $0x218] sm:$0xff] }
 0x9ad   :  { %v9274_v60 = vld [vmem:[#allocation11 + $0x238] sm:$0xff]  ;;  %v12567_v48 = vcombine.high %v9269_v41, %v9273_v2 }
 0x9ae   :  { %v12569_v30 = vcombine.high %v9270_v5, %v9274_v60 }
 0x9af   :  { %10068 = vmatpush1.bf16.msra.mxu0 %v12502_v14  ;;  %10109 = vmatpush1.bf16.msra.mxu1 %v12504_v62  ;;  %v12566_v14 = vcombine.low %v9269_v41, %v9273_v2  ;;  %v12568_v62 = vcombine.low %v9270_v5, %v9274_v60  ;;  %v16827_v5 = vld [vmem:[#allocation51_spill] sm:$0xff] }
 0x9b0   :  { %10069 = vmatprep.subr.bf16.mxu0 %v12623_v22  ;;  %10110 = vmatprep.subr.bf16.mxu1 %v12625_v17  ;;  %v10363_v22 = vld [vmem:[%s16024_s8] sm:$0xff] }
 0x9b3   :  { %10070 = vmatpush2.bf16.msra.mxu0 %v12622_v55  ;;  %10111 = vmatpush2.bf16.msra.mxu1 %v12624_v25 }
 0x9b4   :  { %10071 = vmatprep.subr.bf16.mxu0 %v12615_v38  ;;  %10112 = vmatprep.subr.bf16.mxu1 %v12617_v44  ;;  %v16823_v38 = vld [vmem:[#allocation47_spill] sm:$0xff] }
 0x9b7   :  { %10072 = vmatpush2.bf16.msra.mxu0 %v12614_v50  ;;  %10113 = vmatpush2.bf16.msra.mxu1 %v12616_v24  ;;  %v16824_v50 = vld [vmem:[#allocation48_spill] sm:$0xff] }
 0x9b8   :  { %10073 = vmatprep.subr.bf16.mxu0 %v12607_v27  ;;  %10114 = vmatprep.subr.bf16.mxu1 %v12609_v12  ;;  %v16825_v27 = vld [vmem:[#allocation46_spill] sm:$0xff] }
 0x9bb   :  { %10074 = vmatpush2.bf16.msra.mxu0 %v12606_v23  ;;  %10115 = vmatpush2.bf16.msra.mxu1 %v12608_v16 }
 0x9bc   :  { %10075 = vmatprep.subr.bf16.mxu0 %v12599_v40  ;;  %10116 = vmatprep.subr.bf16.mxu1 %v12601_v58 }
 0x9bf   :  { %10076 = vmatpush2.bf16.msra.mxu0 %v12598_v18  ;;  %10117 = vmatpush2.bf16.msra.mxu1 %v12600_v63 }
 0x9c0   :  { %10077 = vmatprep.subr.bf16.mxu0 %v12591_v33  ;;  %10118 = vmatprep.subr.bf16.mxu1 %v12593_v49 }
 0x9c3   :  { %10078 = vmatpush2.bf16.msra.mxu0 %v12590_v20  ;;  %10119 = vmatpush2.bf16.msra.mxu1 %v12592_v45 }
 0x9c4   :  { %10079 = vmatprep.subr.bf16.mxu0 %v12583_v21  ;;  %10120 = vmatprep.subr.bf16.mxu1 %v12585_v54 }
 0x9c7   :  { %10080 = vmatpush2.bf16.msra.mxu0 %v12582_v61  ;;  %10121 = vmatpush2.bf16.msra.mxu1 %v12584_v31  ;;  %v16826_v61 = vld [vmem:[#allocation49_spill] sm:$0xff] }
 0x9c8   :  { %10081 = vmatprep.subr.bf16.mxu0 %v12575_v57  ;;  %10122 = vmatprep.subr.bf16.mxu1 %v12577_v47 }
 0x9cb   :  { %10082 = vmatpush2.bf16.msra.mxu0 %v12574_v53  ;;  %10123 = vmatpush2.bf16.msra.mxu1 %v12576_v19 }
 0x9cc   :  { %10083 = vmatprep.subr.bf16.mxu0 %v12567_v48  ;;  %10124 = vmatprep.subr.bf16.mxu1 %v12569_v30 }
 0x9cf   :  { %10084 = vmatpush2.bf16.msra.mxu0 %v12566_v14  ;;  %10125 = vmatpush2.bf16.msra.mxu1 %v12568_v62 }
 0x9d2   :  { %10086 = vmatmul.mubr.bf16.vlgmr.msra.gmra.mxu0 %v15606_v1  ;;  %10127 = vmatmul.mubr.bf16.vlgmr.msra.gmra.mxu1 %v15606_v1 }
 0x9d3   :  { %12685 = vmatprep.mubr.msk.f32.mxu0 %vm10365_vm0, %v10363_v22  ;;  %v16828_v22 = vld [vmem:[#allocation52_spill] sm:$0xff] }
 0xa51   :  { %v10005_v17 = vpop.f32.mrf.mxu0 }
 0xa52   :  { %v10046_v32 = vpop.f32.mrf.mxu1  ;;  %v10139_v8 = vadd.f32 %v10005_v17, %v16822_v26 }
 0xa53   :  { %v10007_v6 = vpop.f32.mrf.mxu0  ;;  %v10141_v12 = vadd.f32 %v10046_v32, %v16825_v27  ;;  %v16829_v32 = vld [vmem:[#allocation50_spill] sm:$0xff] }
 0xa54   :  { %v10048_v55 = vpop.f32.mrf.mxu1  ;;  %v12626_v25 = vmul.f32 -1.442695, %v10139_v8  ;;  %v10140_v44 = vadd.f32 %v10007_v6, %v16823_v38 }
 0xa55   :  { %v10009_v35 = vpop.f32.mrf.mxu0  ;;  %v10142_v24 = vadd.f32 %v10048_v55, %v16824_v50 }
 0xa56   :  { %v10050_v43 = vpop.f32.mrf.mxu1  ;;  %13201 = vpow2.f32 %v12626_v25  ;;  %v12627_v1 = vmul.f32 -1.442695, %v10140_v44 }
 0xa57   :  { %v10010_v56 = vpop.f32.mrf.mxu0  ;;  %v12628_v9 = vmul.f32 -1.442695, %v10142_v24 }
 0xa58   :  { %v10051_v28 = vpop.f32.mrf.mxu1  ;;  %13203 = vpow2.f32 %v12627_v1 }
 0xa59   :  { %13205 = vtanh.f32 %v10141_v12 }
 0xa5a   :  { %13207 = vpow2.f32 %v12628_v9 }
 0xa63   :  { %v13202_v42 = vpop.eup %13201 }
 0xa64   :  { %v10154_v37 = vadd.f32 1.0, %v13202_v42 }
 0xa65   :  { %v13204_v13 = vpop.eup %13203 }
 0xa66   :  { %13209 = vrcp.f32 %v10154_v37  ;;  %v10160_v23 = vadd.f32 1.0, %v13204_v13  ;;  %v13206_v16 = vpop.eup %13205  ;;  %v10364_v13 = vld [vmem:[%s16024_s8 + $0x8] sm:$0xff] }
 0xa67   :  { %v13208_v40 = vpop.eup %13207 }
 0xa68   :  { %13211 = vrcp.f32 %v10160_v23  ;;  %v10167_v15 = vadd.f32 1.0, %v13208_v40 }
 0xa6a   :  { %13213 = vrcp.f32 %v10167_v15 }
 0xa73   :  { %v13210_v58 = vpop.eup %13209 }
 0xa74   :  { %v10171_v34 = vmul.f32 %v13210_v58, %v13206_v16 }
 0xa75   :  { %v13212_v59 = vpop.eup %13211 }
 0xa76   :  { %v10170_v36 = vmul.f32 %v13212_v59, %v15581_v51 }
 0xa77   :  { %v13214_v63 = vpop.eup %13213 }
 0xa78   :  { %v10172_v18 = vadd.f32 %v10171_v34, %v10170_v36 }
 0xa7a   :  { %13215 = vtanh.f32 %v10172_v18 }
 0xa87   :  { %v13216_v33 = vpop.eup %13215 }
 0xa88   :  { %v15632_v49 = vmul.f32 %v13216_v33, %v13214_v63 }
 0xa8a   :  { %v10200_v3 = vcombine.high %v15632_v49, %v15632_v49  ;;  %v10207_v10 = vrot.slane %v15632_v49, %v13983_v4 }
 0xa8c   :  { %v10214_v52 = vrot.slane %v10200_v3, %v13983_v4  ;;  %v10215_v39 = vcombine.high %v10207_v10, %v10207_v10  ;;  %v10223_v20 = vrot.slane %v10207_v10, %v13983_v4  ;;  %12632 = vst.sshfl [vmem:[#allocation4 + $0x7] sm:$0x1 pattern:$0x73625140] %v10207_v10 }
 0xa8e   :  { %v10216_v51 = vcombine.high %v10214_v52, %v10214_v52  ;;  %v10230_v45 = vrot.slane %v10214_v52, %v13983_v4  ;;  %v10237_v21 = vrot.slane %v10215_v39, %v13983_v4  ;;  %v10245_v54 = vcombine.high %v10223_v20, %v10223_v20  ;;  %12633 = vst.sshfl [vmem:[#allocation4 + $0xf] sm:$0x1 pattern:$0x73625140] %v10215_v39 }
 0xa8f   :  { %12634 = vst.sshfl [vmem:[#allocation4 + $0x27] sm:$0x1 pattern:$0x73625140] %v10214_v52 }
 0xa90   :  { %v10244_v0 = vrot.slane %v10216_v51, %v13983_v4  ;;  %v10246_v46 = vcombine.high %v10230_v45, %v10230_v45  ;;  %v10247_v11 = vcombine.high %v10237_v21, %v10237_v21  ;;  %10259 = vst [vmem:[#allocation4 + $0x17] sm:$0x1] %v10245_v54  ;;  %12635 = vst.sshfl [vmem:[#allocation4 + $0x2f] sm:$0x1 pattern:$0x73625140] %v10216_v51 }
 0xa92   :  { %v10087_v7 = vpop.f32.mrf.mxu0  ;;  %v10128_v57 = vpop.f32.mrf.mxu1  ;;  %v10248_v47 = vcombine.high %v10244_v0, %v10244_v0  ;;  %10260 = vst [vmem:[#allocation4 + $0x1f] sm:$0x1] %v10247_v11  ;;  %10263 = vst [vmem:[#allocation4 + $0x37] sm:$0x1] %v10246_v46 }
 0xa93   :  { %v10147_v31 = vadd.f32 %v10087_v7, %v16826_v61  ;;  %v10149_v26 = vadd.f32 %v10128_v57, %v16829_v32  ;;  %v16830_v7 = vld [vmem:[#allocation18_spill] sm:$0xff] }
 0xa94   :  { %v10089_v41 = vpop.f32.mrf.mxu0  ;;  %v10130_v53 = vpop.f32.mrf.mxu1  ;;  %10264 = vst [vmem:[#allocation4 + $0x3f] sm:$0x1] %v10248_v47 }
 0xa95   :  { %v12629_v2 = vmul.f32 -1.442695, %v10147_v31  ;;  %v10148_v60 = vadd.f32 %v10089_v41, %v16827_v5  ;;  %v10150_v17 = vadd.f32 %v10130_v53, %v16828_v22  ;;  %v10332_v10 = vld [vmem:[#allocation4 + $0x8] sm:$0xff] }
 0xa96   :  { %v10091_v19 = vpop.f32.mrf.mxu0  ;;  %v10132_v30 = vpop.f32.mrf.mxu1  ;;  %v10335_v57 = vld [vmem:[#allocation4 + $0x20] sm:$0xff] }
 0xa97   :  { %13217 = vpow2.f32 %v12629_v2  ;;  %v12630_v48 = vmul.f32 -1.442695, %v10148_v60  ;;  %v12631_v8 = vmul.f32 -1.442695, %v10150_v17  ;;  %v10333_v51 = vld [vmem:[#allocation4 + $0x10] sm:$0xff] }
 0xa98   :  { %v10092_v14 = vpop.f32.mrf.mxu0  ;;  %v10133_v62 = vpop.f32.mrf.mxu1 }
 0xa99   :  { %13219 = vpow2.f32 %v12630_v48  ;;  %v10334_v17 = vld [vmem:[#allocation4 + $0x18] sm:$0xff] }
 0xa9a   :  { %13221 = vtanh.f32 %v10149_v26 }
 0xa9b   :  { %13223 = vpow2.f32 %v12631_v8 }
 0xaa4   :  { %v13218_v6 = vpop.eup %13217 }
 0xaa5   :  { %v10178_v55 = vadd.f32 1.0, %v13218_v6 }
 0xaa6   :  { %v13220_v25 = vpop.eup %13219 }
 0xaa7   :  { %13225 = vrcp.f32 %v10178_v55  ;;  %v10184_v38 = vadd.f32 1.0, %v13220_v25  ;;  %v13222_v44 = vpop.eup %13221 }
 0xaa8   :  { %v13224_v35 = vpop.eup %13223 }
 0xaa9   :  { %13227 = vrcp.f32 %v10184_v38  ;;  %v10191_v28 = vadd.f32 1.0, %v13224_v35 }
 0xaab   :  { %13229 = vrcp.f32 %v10191_v28 }
 0xab4   :  { %v13226_v43 = vpop.eup %13225 }
 0xab5   :  { %v10195_v1 = vmul.f32 %v13226_v43, %v13222_v44 }
 0xab6   :  { %v13228_v56 = vpop.eup %13227 }
 0xab7   :  { %v10194_v50 = vmul.f32 %v13228_v56, %v15600_v29 }
 0xab8   :  { %v13230_v27 = vpop.eup %13229 }
 0xab9   :  { %v10196_v24 = vadd.f32 %v10195_v1, %v10194_v50  ;;  %v10336_v1 = vld [vmem:[#allocation4 + $0x28] sm:$0xff] }
 0xabb   :  { %13231 = vtanh.f32 %v10196_v24 }
 0xac8   :  { %v13232_v12 = vpop.eup %13231 }
 0xac9   :  { %v10198_v9 = vmul.f32 %v13232_v12, %v13230_v27 }
 0xacb   :  { %v10266_v42 = vcombine.high %v10198_v9, %v10198_v9  ;;  %v10273_v37 = vrot.slane %v10198_v9, %v13983_v4  ;;  %12681 = vmatprep.subr.mxu0 %v10198_v9 }
 0xacc   :  { %12682 = vmatpush3.msra.mxu0 %v10198_v9 }
 0xacd   :  { %v10280_v23 = vrot.slane %v10266_v42, %v13983_v4  ;;  %v10281_v16 = vcombine.high %v10273_v37, %v10273_v37  ;;  %v10289_v29 = vrot.slane %v10273_v37, %v13983_v4  ;;  %12636 = vst.sshfl [vmem:[#allocation5] sm:$0x1 pattern:$0x73625140] %v10273_v37  ;;  %12683 = vmatprep.subr.mxu0 %v15632_v49 }
 0xace   :  { %12684 = vmatpush3.msra.mxu0 %v15632_v49  ;;  %v10331_v49 = vld [vmem:[#allocation4] sm:$0xff] }
 0xacf   :  { %v10282_v40 = vcombine.high %v10280_v23, %v10280_v23  ;;  %v10296_v58 = vrot.slane %v10280_v23, %v13983_v4  ;;  %v10303_v34 = vrot.slane %v10281_v16, %v13983_v4  ;;  %v10311_v59 = vcombine.high %v10289_v29, %v10289_v29  ;;  %12637 = vst.sshfl [vmem:[#allocation5 + $0x8] sm:$0x1 pattern:$0x73625140] %v10281_v16 }
 0xad0   :  { %12638 = vst.sshfl [vmem:[#allocation5 + $0x20] sm:$0x1 pattern:$0x73625140] %v10280_v23  ;;  %12686 = vmatmul.mubr.msk.f32.vlgmr.msra.gmra.mxu0 %vm10365_vm0, %v10364_v13  ;;  %v10337_v23 = vld [vmem:[#allocation4 + $0x30] sm:$0xff] }
 0xad1   :  { %v10310_v15 = vrot.slane %v10282_v40, %v13983_v4  ;;  %v10312_v36 = vcombine.high %v10296_v58, %v10296_v58  ;;  %v10313_v18 = vcombine.high %v10303_v34, %v10303_v34  ;;  %10325 = vst [vmem:[#allocation5 + $0x10] sm:$0x1] %v10311_v59  ;;  %12639 = vst.sshfl [vmem:[#allocation5 + $0x28] sm:$0x1 pattern:$0x73625140] %v10282_v40 }
 0xad3   :  { %v10314_v63 = vcombine.high %v10310_v15, %v10310_v15  ;;  %10326 = vst [vmem:[#allocation5 + $0x18] sm:$0x1] %v10313_v18  ;;  %10329 = vst [vmem:[#allocation5 + $0x30] sm:$0x1] %v10312_v36 }
 0xad4   :  { %v10347_v33 = vld [vmem:[#allocation5] sm:$0xff] }
 0xad5   :  { %10330 = vst [vmem:[#allocation5 + $0x38] sm:$0x1] %v10314_v63  ;;  %13233 = vtanh.f32 %v10347_v33  ;;  %v10338_v33 = vld [vmem:[#allocation4 + $0x38] sm:$0xff] }
 0xad6   :  { %v10348_v3 = vld [vmem:[#allocation5 + $0x8] sm:$0xff]  ;;  %13235 = vtanh.f32 %v10331_v49 }
 0xad7   :  { %13237 = vtanh.f32 %v10348_v3  ;;  %v10351_v21 = vld [vmem:[#allocation5 + $0x20] sm:$0xff] }
 0xad8   :  { %v10349_v52 = vld [vmem:[#allocation5 + $0x10] sm:$0xff]  ;;  %13239 = vtanh.f32 %v10332_v10  ;;  %v10352_v25 = vld [vmem:[#allocation5 + $0x28] sm:$0xff] }
 0xad9   :  { %13241 = vtanh.f32 %v10349_v52 }
 0xada   :  { %13243 = vtanh.f32 %v10333_v51  ;;  %v10350_v60 = vld [vmem:[#allocation5 + $0x18] sm:$0xff]  ;;  %v10353_v27 = vld [vmem:[#allocation5 + $0x30] sm:$0xff] }
 0xadb   :  { %13245 = vtanh.f32 %v10351_v21 }
 0xadc   :  { %13247 = vtanh.f32 %v10335_v57  ;;  %v10354_v59 = vld [vmem:[#allocation5 + $0x38] sm:$0xff] }
 0xadd   :  { %13249 = vtanh.f32 %v10350_v60 }
 0xade   :  { %13251 = vtanh.f32 %v10334_v17 }
 0xadf   :  { %13253 = vtanh.f32 %v10352_v25 }
 0xae0   :  { %13255 = vtanh.f32 %v10336_v1 }
 0xae1   :  { %13257 = vtanh.f32 %v10353_v27 }
 0xae2   :  { %v15665_v47 = vpop.eup %13233  ;;  %13259 = vtanh.f32 %v10337_v23 }
 0xae3   :  { %v15673_v22 = vpop.eup %13235  ;;  %13261 = vtanh.f32 %v10354_v59 }
 0xae4   :  { %v15675_v32 = vpop.eup %13237  ;;  %13263 = vtanh.f32 %v10338_v33 }
 0xae5   :  { %v15683_v43 = vpop.eup %13239 }
 0xae6   :  { %v15685_v56 = vpop.eup %13241 }
 0xae7   :  { %v15692_v13 = vpop.eup %13243 }
 0xae8   :  { %v15694_v16 = vpop.eup %13245 }
 0xae9   :  { %v15701_v63 = vpop.eup %13247 }
 0xaea   :  { %v15703_v49 = vpop.eup %13249 }
 0xb90   :  { %v12687_v39 = vpop.f32.mrf.mxu0 }
 0xb91   :  { %v10569_v20 = vrot.slane %v12687_v39, %v13983_v4  ;;  %v10562_v54 = vcombine.high %v12687_v39, %v12687_v39 }
 0xb92   :  { %v10438_v45 = vpop.f32.mrf.mxu0 }
 0xb93   :  { %v10577_v0 = vcombine.high %v10569_v20, %v10569_v20  ;;  %v10585_v46 = vrot.slane %v10569_v20, %v13983_v4  ;;  %v10455_v11 = vrot.slane %v10438_v45, %v13983_v4  ;;  %v10448_v41 = vcombine.high %v10438_v45, %v10438_v45  ;;  %v15710_v45 = vpop.eup %13251 }
 0xb94   :  { %v10576_v53 = vrot.slane %v10562_v54, %v13983_v4  ;;  %v15712_v21 = vpop.eup %13253 }
 0xb95   :  { %v10614_v61 = vrot.slane %v10585_v46, %v16830_v7  ;;  %v10599_v31 = vrot.slane %v10577_v0, %v13983_v4  ;;  %v10463_v2 = vcombine.high %v10455_v11, %v10455_v11  ;;  %v10471_v5 = vrot.slane %v10455_v11, %v13983_v4 }
 0xb96   :  { %v10607_v30 = vcombine.high %v10585_v46, %v10585_v46  ;;  %v10462_v26 = vrot.slane %v10448_v41, %v13983_v4  ;;  %v10592_v35 = vrot.slane %v10576_v53, %v13983_v4  ;;  %v10578_v12 = vcombine.high %v10576_v53, %v10576_v53 }
 0xb97   :  { %v10651_v19 = vmul.f32 %v15665_v47, %v10614_v61  ;;  %v10618_v48 = vrot.slane %v10599_v31, %v16830_v7  ;;  %v10500_v14 = vrot.slane %v10471_v5, %v16830_v7  ;;  %v10485_v62 = vrot.slane %v10463_v2, %v13983_v4 }
 0xb98   :  { %v10493_v55 = vcombine.high %v10471_v5, %v10471_v5  ;;  %v10622_v44 = vrot.slane %v10607_v30, %v16830_v7  ;;  %v10478_v24 = vrot.slane %v10462_v26, %v13983_v4  ;;  %v10630_v42 = vrot.slane %v10592_v35, %v16830_v7 }
 0xb99   :  { %10659 = vadd.xlane.f32.xlu1 %v10651_v19  ;;  %v10537_v8 = vmul.f32 %v15673_v22, %v10500_v14  ;;  %v10504_v6 = vrot.slane %v10485_v62, %v16830_v7  ;;  %v10652_v38 = vmul.f32 %v15675_v32, %v10618_v48  ;;  %v10609_v37 = vcombine.high %v10599_v31, %v10599_v31  ;;  %v15718_v31 = vpop.eup %13255 }
 0xb9a   :  { %v10508_v50 = vrot.slane %v10493_v55, %v16830_v7  ;;  %v10653_v9 = vmul.f32 %v15685_v56, %v10622_v44  ;;  %v10464_v29 = vcombine.high %v10462_v26, %v10462_v26  ;;  %v10516_v58 = vrot.slane %v10478_v24, %v16830_v7  ;;  %v15720_v57 = vpop.eup %13257 }
 0xb9b   :  { %10545 = vadd.xlane.f32.xlu0 %v10537_v8  ;;  %v10538_v28 = vmul.f32 %v15683_v43, %v10504_v6  ;;  %v10495_v34 = vcombine.high %v10485_v62, %v10485_v62  ;;  %v10655_v15 = vmul.f32 %v15694_v16, %v10630_v42  ;;  %v10626_v36 = vrot.slane %v10609_v37, %v16830_v7  ;;  %v15726_v19 = vpop.eup %13259  ;;  %v16832_v37 = vld [vmem:[#allocation16_spill] sm:$0xff] }
 0xb9c   :  { %v10539_v40 = vmul.f32 %v15692_v13, %v10508_v50  ;;  %v10606_v18 = vrot.slane %v10578_v12, %v13983_v4  ;;  %v10541_v3 = vmul.f32 %v15701_v63, %v10516_v58  ;;  %v10492_v52 = vrot.slane %v10464_v29, %v13983_v4  ;;  %v15728_v48 = vpop.eup %13261 }
 0xb9d   :  { %10661 = vadd.xlane.f32.xlu1 %v10652_v38  ;;  %v10512_v10 = vrot.slane %v10495_v34, %v16830_v7  ;;  %v10654_v39 = vmul.f32 %v15703_v49, %v10626_v36  ;;  %v10608_v51 = vcombine.high %v10592_v35, %v10592_v35  ;;  %v10494_v46 = vcombine.high %v10478_v24, %v10478_v24  ;;  %v15733_v17 = vpop.eup %13263 }
 0xb9e   :  { %v10634_v20 = vrot.slane %v10606_v18, %v16830_v7  ;;  %v10520_v0 = vrot.slane %v10492_v52, %v16830_v7  ;;  %v10610_v61 = vcombine.high %v10606_v18, %v10606_v18  ;;  %v10496_v5 = vcombine.high %v10492_v52, %v10492_v52 }
 0xb9f   :  { %10547 = vadd.xlane.f32.xlu0 %v10538_v28  ;;  %v10540_v54 = vmul.f32 %v15710_v45, %v10512_v10  ;;  %v10638_v4 = vrot.slane %v10608_v51, %v16830_v7  ;;  %v10524_v2 = vrot.slane %v10494_v46, %v16830_v7  ;;  %v16831_v50 = vlaneseq }
 0xba0   :  { %v10656_v11 = vmul.f32 %v15712_v21, %v10634_v20  ;;  %v10542_v41 = vmul.f32 %v15718_v31, %v10520_v0  ;;  %v10642_v53 = vrot.slane %v10610_v61, %v16830_v7  ;;  %v10528_v14 = vrot.slane %v10496_v5, %v16830_v7 }
 0xba1   :  { %10663 = vadd.xlane.f32.xlu1 %v10653_v9  ;;  %v10657_v60 = vmul.f32 %v15720_v57, %v10638_v4  ;;  %v10543_v30 = vmul.f32 %v15726_v19, %v10524_v2  ;;  %v10692_v24 = vand.u32 127, %v16831_v50 }
 0xba2   :  { %v10658_v62 = vmul.f32 %v15728_v48, %v10642_v53  ;;  %v10544_v26 = vmul.f32 %v15733_v17, %v10528_v14  ;;  %v13392_v14 = vmov 0  }
 0xba3   :  { %10549 = vadd.xlane.f32.xlu0 %v10539_v40  ;;  %v15738_v23 = vsub.s32 %v10692_v24, %v16832_v37  ;;  %12771 = vset.pattern.permute.xlu1 %v13392_v14 }
 0xba4   :  { %12772 = vset.pattern.permute.xlu0 %v13392_v14 }
 0xba5   :  { %10667 = vadd.xlane.f32.xlu1 %v10655_v15 }
 0xba7   :  { %10553 = vadd.xlane.f32.xlu0 %v10541_v3 }
 0xba9   :  { %10665 = vadd.xlane.f32.xlu1 %v10654_v39 }
 0xbab   :  { %10551 = vadd.xlane.f32.xlu0 %v10540_v54 }
 0xbad   :  { %10669 = vadd.xlane.f32.xlu1 %v10656_v11 }
 0xbaf   :  { %10555 = vadd.xlane.f32.xlu0 %v10542_v41 }
 0xbb1   :  { %10671 = vadd.xlane.f32.xlu1 %v10657_v60 }
 0xbb3   :  { %10557 = vadd.xlane.f32.xlu0 %v10543_v30 }
 0xbb5   :  { %10673 = vadd.xlane.f32.xlu1 %v10658_v62 }
 0xbb7   :  { %10559 = vadd.xlane.f32.xlu0 %v10544_v26 }
 0xc22   :  { %v10660_v8 = vpop.xlane.xlu1 %10659 }
 0xc24   :  { %v10546_v6 = vpop.xlane.xlu0 %10545 }
 0xc25   :  { %v10675_v29 = vadd.f32 %v10660_v8, %v10546_v6  ;;  %v16833_v8 = vld [vmem:[#allocation20_spill] sm:$0xff] }
 0xc26   :  { %v10662_v55 = vpop.xlane.xlu1 %10661 }
 0xc27   :  { %v10696_v36 = vrot.slane %v10675_v29, %v15738_v23 }
 0xc28   :  { %v10548_v25 = vpop.xlane.xlu0 %10547 }
 0xc29   :  { %v10676_v12 = vadd.f32 %v10662_v55, %v10548_v25  ;;  %v16834_v55 = vld [vmem:[#allocation17_spill] sm:$0xff] }
 0xc2a   :  { %v10664_v38 = vpop.xlane.xlu1 %10663 }
 0xc2b   :  { %v10700_v34 = vrot.slane %v10676_v12, %v15738_v23 }
 0xc2c   :  { %v10550_v44 = vpop.xlane.xlu0 %10549 }
 0xc2d   :  { %v10677_v42 = vadd.f32 %v10664_v38, %v10550_v44  ;;  %v10726_v52 = vsel %vm10725_vm1, %v10700_v34, %v10696_v36  ;;  %v10763_v38 = vsub.s32 4, %v16832_v37  ;;  %v16835_v44 = vld [vmem:[#allocation19_spill] sm:$0xff] }
 0xc2e   :  { %v10668_v35 = vpop.xlane.xlu1 %10667 }
 0xc2f   :  { %v10704_v59 = vrot.slane %v10677_v42, %v15738_v23 }
 0xc30   :  { %v10554_v1 = vpop.xlane.xlu0 %10553 }
 0xc31   :  { %v10679_v3 = vadd.f32 %v10668_v35, %v10554_v1  ;;  %v10728_v20 = vsel %vm10727_vm2, %v10704_v59, %v10726_v52 }
 0xc32   :  { %v10666_v28 = vpop.xlane.xlu1 %10665 }
 0xc33   :  { %v10712_v0 = vrot.slane %v10679_v3, %v15738_v23 }
 0xc34   :  { %v10552_v27 = vpop.xlane.xlu0 %10551 }
 0xc35   :  { %v10678_v40 = vadd.f32 %v10666_v28, %v10552_v27 }
 0xc36   :  { %v10670_v9 = vpop.xlane.xlu1 %10669 }
 0xc37   :  { %v10708_v18 = vrot.slane %v10678_v40, %v15738_v23 }
 0xc38   :  { %v10556_v58 = vpop.xlane.xlu0 %10555 }
 0xc39   :  { %v10680_v33 = vadd.f32 %v10670_v9, %v10556_v58  ;;  %v10730_v51 = vsel %vm10729_vm3, %v10708_v18, %v10728_v20  ;;  %v10767_v9 = vsub.s32 5, %v16832_v37 }
 0xc3a   :  { %v10672_v15 = vpop.xlane.xlu1 %10671  ;;  %v10732_v41 = vsel %vm10731_vm4, %v10712_v0, %v10730_v51 }
 0xc3b   :  { %v10716_v54 = vrot.slane %v10680_v33, %v15738_v23 }
 0xc3c   :  { %v10558_v10 = vpop.xlane.xlu0 %10557 }
 0xc3d   :  { %v10681_v39 = vadd.f32 %v10672_v15, %v10558_v10  ;;  %v10734_v5 = vsel %vm10733_vm5, %v10716_v54, %v10732_v41  ;;  %v10771_v15 = vsub.s32 6, %v16832_v37 }
 0xc3e   :  { %v10674_v11 = vpop.xlane.xlu1 %10673 }
 0xc3f   :  { %v10720_v46 = vrot.slane %v10681_v39, %v15738_v23 }
 0xc40   :  { %v10560_v4 = vpop.xlane.xlu0 %10559 }
 0xc41   :  { %v10682_v61 = vadd.f32 %v10674_v11, %v10560_v4  ;;  %v10736_v60 = vsel %vm10735_vm6, %v10720_v46, %v10734_v5 }
 0xc43   :  { %v10724_v2 = vrot.slane %v10682_v61, %v15738_v23 }
 0xc45   :  { %v10738_v53 = vsel %vm10737_vm7, %v10724_v2, %v10736_v60 }
 0xc46   :  { %v10741_v30 = vsel %vm10740_vm8, %v10738_v53, -inf }
 0xc47   :  { %10742 = vmax.xlane.f32.xlu0 %v10741_v30 }
 0xcd0   :  { %v10743_v62 = vpop.xlane.xlu0 %10742 }
 0xcd1   :  { %v10748_v26 = vrot.slane %v10743_v62, %v16830_v7  ;;  %v10752_v6 = vrot.slane %v10743_v62, %v16833_v8  ;;  %v10756_v25 = vrot.slane %v10743_v62, %v16834_v55  ;;  %v10760_v35 = vrot.slane %v10743_v62, %v16835_v44 }
 0xcd2   :  { %v10764_v58 = vrot.slane %v10743_v62, %v10763_v38  ;;  %v10768_v36 = vrot.slane %v10743_v62, %v10767_v9 }
 0xcd3   :  { %v10785_v1 = vsub.f32 %v10675_v29, %v10748_v26  ;;  %v10786_v28 = vsub.f32 %v10676_v12, %v10752_v6  ;;  %v10787_v50 = vsub.f32 %v10677_v42, %v10756_v25  ;;  %v10788_v34 = vsub.f32 %v10678_v40, %v10760_v35 }
 0xcd4   :  { %v10789_v18 = vsub.f32 %v10679_v3, %v10764_v58  ;;  %v10775_v42 = vsub.s32 7, %v16832_v37  ;;  %v10772_v29 = vrot.slane %v10743_v62, %v10771_v15  ;;  %v10790_v10 = vsub.f32 %v10680_v33, %v10768_v36  ;;  %v11165_v37 = vld [vmem:[%s16022_s6 + $0xf8] sm:$0xff] }
 0xcd5   :  { %v10793_v24 = vmul.f32 1.442695, %v10785_v1  ;;  %v10795_v27 = vmul.f32 1.442695, %v10786_v28  ;;  %v10797_v59 = vmul.f32 1.442695, %v10787_v50 }
 0xcd6   :  { %v10799_v12 = vmul.f32 1.442695, %v10788_v34  ;;  %v10801_v52 = vmul.f32 1.442695, %v10789_v18  ;;  %v10776_v40 = vrot.slane %v10743_v62, %v10775_v42  ;;  %v10791_v20 = vsub.f32 %v10681_v39, %v10772_v29 }
 0xcd7   :  { %13265 = vpow2.f32 %v10793_v24  ;;  %v10803_v51 = vmul.f32 1.442695, %v10790_v10 }
 0xcd8   :  { %13267 = vpow2.f32 %v10795_v27  ;;  %v10792_v3 = vsub.f32 %v10682_v61, %v10776_v40  ;;  %v10805_v46 = vmul.f32 1.442695, %v10791_v20 }
 0xcd9   :  { %13269 = vpow2.f32 %v10797_v59 }
 0xcda   :  { %13271 = vpow2.f32 %v10799_v12  ;;  %v10807_v33 = vmul.f32 1.442695, %v10792_v3 }
 0xcdb   :  { %13273 = vpow2.f32 %v10801_v52 }
 0xcdc   :  { %13275 = vpow2.f32 %v10803_v51 }
 0xcdd   :  { %13277 = vpow2.f32 %v10805_v46 }
 0xcde   :  { %13279 = vpow2.f32 %v10807_v33 }
 0xce4   :  { %v13266_v54 = vpop.eup %13265 }
 0xce5   :  { %v15772_v0 = vpop.eup %13267  ;;  %10818 = vperm.xlu1 %12771, %v13266_v54  }
 0xce6   :  { %10821 = vperm.xlu0 %12772, %v15772_v0   ;;  %v15775_v11 = vpop.eup %13269 }
 0xce7   :  { %v15778_v4 = vpop.eup %13271 }
 0xce8   :  { %v15781_v39 = vpop.eup %13273 }
 0xce9   :  { %10824 = vperm.xlu1 %12771, %v15775_v11   ;;  %v15784_v41 = vpop.eup %13275 }
 0xcea   :  { %v15787_v61 = vpop.eup %13277 }
 0xceb   :  { %v15790_v2 = vpop.eup %13279 }
 0xced   :  { %10827 = vperm.xlu1 %12771, %v15778_v4  }
 0xcf1   :  { %10830 = vperm.xlu1 %12771, %v15781_v39  }
 0xcf5   :  { %10833 = vperm.xlu1 %12771, %v15784_v41  }
 0xcf9   :  { %10836 = vperm.xlu1 %12771, %v15787_v61  }
 0xcfd   :  { %10839 = vperm.xlu1 %12771, %v15790_v2  }
 0xd60   :  { %v10819_v5 = vpop.permute.xlu1 %10818 }
 0xd61   :  { %v10822_v14 = vpop.permute.xlu0 %10821  ;;  %v10844_v6 = vrot.slane %v10819_v5, %v15738_v23 }
 0xd62   :  { %v10848_v26 = vrot.slane %v10822_v14, %v15738_v23 }
 0xd64   :  { %v10825_v60 = vpop.permute.xlu1 %10824  ;;  %v10873_v50 = vsel %vm10725_vm1, %v10848_v26, %v10844_v6  ;;  %v11163_v26 = vld [vmem:[%s16022_s6 + $0xe8] sm:$0xff] }
 0xd65   :  { %v10852_v25 = vrot.slane %v10825_v60, %v15738_v23  ;;  %v11147_v6 = vld [vmem:[%s16022_s6 + $0x68] sm:$0xff] }
 0xd67   :  { %v10874_v27 = vsel %vm10727_vm2, %v10852_v25, %v10873_v50  ;;  %v11145_v50 = vld [vmem:[%s16022_s6 + $0x58] sm:$0xff] }
 0xd68   :  { %v10828_v53 = vpop.permute.xlu1 %10827 }
 0xd69   :  { %v10856_v35 = vrot.slane %v10828_v53, %v15738_v23 }
 0xd6b   :  { %v10875_v34 = vsel %vm10729_vm3, %v10856_v35, %v10874_v27  ;;  %v11146_v35 = vld [vmem:[%s16022_s6 + $0x60] sm:$0xff]  ;;  %v11144_v27 = vld [vmem:[%s16022_s6 + $0x50] sm:$0xff] }
 0xd6c   :  { %v10831_v30 = vpop.permute.xlu1 %10830 }
 0xd6d   :  { %v10860_v1 = vrot.slane %v10831_v30, %v15738_v23 }
 0xd6f   :  { %v10876_v59 = vsel %vm10731_vm4, %v10860_v1, %v10875_v34  ;;  %v11159_v34 = vld [vmem:[%s16022_s6 + $0xc8] sm:$0xff] }
 0xd70   :  { %v10834_v62 = vpop.permute.xlu1 %10833 }
 0xd71   :  { %v10864_v24 = vrot.slane %v10834_v62, %v15738_v23  ;;  %v13393_v62 = vmov 0.0  }
 0xd72   :  { %12688 = vmatprep.subr.mxu1 %v13393_v62  ;;  %12723 = vmatprep.subr.mxu0 %v13393_v62 }
 0xd73   :  { %v10877_v18 = vsel %vm10733_vm5, %v10864_v24, %v10876_v59  ;;  %12689 = vmatpush3.msra.mxu1 %v11165_v37  ;;  %v11143_v59 = vld [vmem:[%s16022_s6 + $0x48] sm:$0xff]  ;;  %12720 = vmatprep.mubr.msk.f32.mxu1 %vm13394_vm9, %v13393_v62 }
 0xd74   :  { %v10837_v28 = vpop.permute.xlu1 %10836  ;;  %12690 = vmatprep.subr.mxu1 %v13393_v62  ;;  %12755 = vmatprep.mubr.msk.f32.mxu0 %vm13394_vm9, %v13393_v62 }
 0xd75   :  { %v10868_v58 = vrot.slane %v10837_v28, %v15738_v23  ;;  %v11161_v28 = vld [vmem:[%s16022_s6 + $0xd8] sm:$0xff] }
 0xd77   :  { %v10878_v29 = vsel %vm10735_vm6, %v10868_v58, %v10877_v18  ;;  %v11157_v18 = vld [vmem:[%s16022_s6 + $0xb8] sm:$0xff] }
 0xd78   :  { %v10840_v36 = vpop.permute.xlu1 %10839 }
 0xd79   :  { %v10872_v12 = vrot.slane %v10840_v36, %v15738_v23  ;;  %v11142_v36 = vld [vmem:[%s16022_s6 + $0x40] sm:$0xff] }
 0xd7b   :  { %v10879_v10 = vsel %vm10737_vm7, %v10872_v12, %v10878_v29  ;;  %v11141_v12 = vld [vmem:[%s16022_s6 + $0x38] sm:$0xff]  ;;  %v11156_v29 = vld [vmem:[%s16022_s6 + $0xb0] sm:$0xff] }
 0xd7c   :  { %v10881_v52 = vsel %vm10740_vm8, %v10879_v10, 0.0  ;;  %v11140_v10 = vld [vmem:[%s16022_s6 + $0x30] sm:$0xff] }
 0xd7d   :  { %10882 = vadd.xlane.f32.xlu1 %v10881_v52  ;;  %v11155_v52 = vld [vmem:[%s16022_s6 + $0xa8] sm:$0xff] }
 0xe06   :  { %v10883_v40 = vpop.xlane.xlu1 %10882 }
 0xe07   :  { %v10888_v20 = vrot.slane %v10883_v40, %v16830_v7  ;;  %v10892_v51 = vrot.slane %v10883_v40, %v16833_v8  ;;  %v10896_v3 = vrot.slane %v10883_v40, %v16834_v55  ;;  %v10900_v46 = vrot.slane %v10883_v40, %v16835_v44 }
 0xe08   :  { %v10904_v33 = vrot.slane %v10883_v40, %v10763_v38  ;;  %v10908_v60 = vrot.slane %v10883_v40, %v10767_v9  ;;  %v10912_v8 = vrot.slane %v10883_v40, %v10771_v15  ;;  %v10916_v38 = vrot.slane %v10883_v40, %v10775_v42  ;;  %v11149_v42 = vld [vmem:[%s16022_s6 + $0x78] sm:$0xff]  ;;  %v11139_v40 = vld [vmem:[%s16022_s6 + $0x28] sm:$0xff] }
 0xe09   :  { %13281 = vrcp.f32 %v10888_v20  ;;  %12724 = vmatpush3.msra.mxu0 %v11149_v42  ;;  %v11154_v20 = vld [vmem:[%s16022_s6 + $0xa0] sm:$0xff] }
 0xe0a   :  { %13283 = vrcp.f32 %v10892_v51  ;;  %12725 = vmatprep.subr.mxu0 %v13393_v62  ;;  %v11138_v51 = vld [vmem:[%s16022_s6 + $0x20] sm:$0xff] }
 0xe0b   :  { %13285 = vrcp.f32 %v10896_v3  ;;  %v11153_v3 = vld [vmem:[%s16022_s6 + $0x98] sm:$0xff] }
 0xe0c   :  { %13287 = vrcp.f32 %v10900_v46  ;;  %v11137_v46 = vld [vmem:[%s16022_s6 + $0x18] sm:$0xff] }
 0xe0d   :  { %13289 = vrcp.f32 %v10904_v33  ;;  %v11152_v33 = vld [vmem:[%s16022_s6 + $0x90] sm:$0xff] }
 0xe0e   :  { %13291 = vrcp.f32 %v10908_v60  ;;  %v11151_v60 = vld [vmem:[%s16022_s6 + $0x88] sm:$0xff] }
 0xe0f   :  { %13293 = vrcp.f32 %v10912_v8  ;;  %v11134_v8 = vld [vmem:[%s16022_s6] sm:$0xff] }
 0xe10   :  { %13295 = vrcp.f32 %v10916_v38 }
 0xe16   :  { %v13282_v5 = vpop.eup %13281 }
 0xe17   :  { %v10926_v53 = vmul.f32 %v13282_v5, %v13266_v54  ;;  %v13284_v7 = vpop.eup %13283  ;;  %v11136_v5 = vld [vmem:[%s16022_s6 + $0x10] sm:$0xff] }
 0xe18   :  { %v10928_v55 = vmul.f32 %v13284_v7, %v15772_v0  ;;  %v13286_v44 = vpop.eup %13285  ;;  %v11150_v7 = vld [vmem:[%s16022_s6 + $0x80] sm:$0xff] }
 0xe19   :  { %10950 = vperm.xlu0 %12772, %v10926_v53   ;;  %v10930_v30 = vmul.f32 %v13286_v44, %v15775_v11  ;;  %v13288_v14 = vpop.eup %13287  ;;  %v11164_v11 = vld [vmem:[%s16022_s6 + $0xf0] sm:$0xff]  ;;  %v11135_v53 = vld [vmem:[%s16022_s6 + $0x8] sm:$0xff] }
 0xe1a   :  { %v10932_v9 = vmul.f32 %v13288_v14, %v15778_v4  ;;  %v13290_v54 = vpop.eup %13289  ;;  %v11148_v4 = vld [vmem:[%s16022_s6 + $0x70] sm:$0xff]  ;;  %12691 = vmatpush3.msra.mxu1 %v11164_v11 }
 0xe1b   :  { %v10934_v15 = vmul.f32 %v13290_v54, %v15781_v39  ;;  %v13292_v0 = vpop.eup %13291  ;;  %12726 = vmatpush3.msra.mxu0 %v11148_v4  ;;  %12692 = vmatprep.subr.mxu1 %v13393_v62 }
 0xe1c   :  { %v10936_v39 = vmul.f32 %v13292_v0, %v15784_v41  ;;  %v13294_v25 = vpop.eup %13293  ;;  %12727 = vmatprep.subr.mxu0 %v13393_v62  ;;  %12693 = vmatpush3.msra.mxu1 %v11163_v26  ;;  %v11162_v41 = vld [vmem:[%s16022_s6 + $0xe0] sm:$0xff] }
 0xe1d   :  { %10953 = vperm.xlu0 %12772, %v10928_v55   ;;  %12728 = vmatpush3.msra.mxu0 %v11147_v6  ;;  %v10938_v1 = vmul.f32 %v13294_v25, %v15787_v61  ;;  %v13296_v24 = vpop.eup %13295  ;;  %v11160_v61 = vld [vmem:[%s16022_s6 + $0xd0] sm:$0xff] }
 0xe1e   :  { %12694 = vmatprep.subr.mxu1 %v13393_v62  ;;  %12729 = vmatprep.subr.mxu0 %v13393_v62  ;;  %v10940_v58 = vmul.f32 %v13296_v24, %v15790_v2  ;;  %v11158_v2 = vld [vmem:[%s16022_s6 + $0xc0] sm:$0xff]  ;;  %s13395_s6 = smov [#allocation12]  }
 0xe1f   :  { %12695 = vmatpush3.msra.mxu1 %v11162_v41  ;;  %12730 = vmatpush3.msra.mxu0 %v11146_v35  ;;  %s11356_s16 = sshll.u32 %s13395_s6, 4  ;;  %s11357_s16 = int_to_ptr.vmem [resolvable:$true] %s11356_s16 }
 0xe20   :  { %12696 = vmatprep.subr.mxu1 %v13393_v62  ;;  %12731 = vmatprep.subr.mxu0 %v13393_v62  ;;  %s13357_s17 = scalar_lea.vmem %s11357_s16, 128  ;;  %p13362_p2 = scmp.lt.s32.totalorder %s11357_s16, %s11357_s16 }
 0xe21   :  { %10956 = vperm.xlu0 %12772, %v10930_v30   ;;  %12697 = vmatpush3.msra.mxu1 %v11161_v28  ;;  %p13358_p1 = scmp.ne.s32.totalorder %s11357_s16, %s13357_s17  ;;  %p13363_p3 = scmp.lt.s32.totalorder %s13357_s17, %s13357_s17 }
 0xe22   :  { %12732 = vmatpush3.msra.mxu0 %v11145_v50  ;;  %12698 = vmatprep.subr.mxu1 %v13393_v62 }
 0xe23   :  { %12733 = vmatprep.subr.mxu0 %v13393_v62  ;;  %12699 = vmatpush3.msra.mxu1 %v11160_v61  ;;  %p13364_p4 = por %p13363_p3, %p13362_p2 }
 0xe24   :  { %12734 = vmatpush3.msra.mxu0 %v11144_v27  ;;  %12700 = vmatprep.subr.mxu1 %v13393_v62 }
 0xe25   :  { %10959 = vperm.xlu0 %12772, %v10932_v9   ;;  %12735 = vmatprep.subr.mxu0 %v13393_v62  ;;  %p13365_p5 = pnand %p13364_p4, %p13358_p1 }
 0xe26   :  { %12701 = vmatpush3.msra.mxu1 %v11159_v34  ;;  %12736 = vmatpush3.msra.mxu0 %v11143_v59 }
 0xe27   :  { %12702 = vmatprep.subr.mxu1 %v13393_v62  ;;  %12737 = vmatprep.subr.mxu0 %v13393_v62 }
 0xe28   :  { %12703 = vmatpush3.msra.mxu1 %v11158_v2  ;;  %12738 = vmatpush3.msra.mxu0 %v11142_v36 }
 0xe29   :  { %10962 = vperm.xlu0 %12772, %v10934_v15   ;;  %12704 = vmatprep.subr.mxu1 %v13393_v62 }
 0xe2a   :  { %12739 = vmatprep.subr.mxu0 %v13393_v62  ;;  %12705 = vmatpush3.msra.mxu1 %v11157_v18 }
 0xe2b   :  { %12740 = vmatpush3.msra.mxu0 %v11141_v12  ;;  %12706 = vmatprep.subr.mxu1 %v13393_v62 }
 0xe2c   :  { %12741 = vmatprep.subr.mxu0 %v13393_v62  ;;  %12707 = vmatpush3.msra.mxu1 %v11156_v29 }
 0xe2d   :  { %10965 = vperm.xlu0 %12772, %v10936_v39   ;;  %12742 = vmatpush3.msra.mxu0 %v11140_v10 }
 0xe2e   :  { %12708 = vmatprep.subr.mxu1 %v13393_v62  ;;  %12743 = vmatprep.subr.mxu0 %v13393_v62 }
 0xe2f   :  { %12709 = vmatpush3.msra.mxu1 %v11155_v52  ;;  %12744 = vmatpush3.msra.mxu0 %v11139_v40 }
 0xe30   :  { %12710 = vmatprep.subr.mxu1 %v13393_v62  ;;  %12745 = vmatprep.subr.mxu0 %v13393_v62 }
 0xe31   :  { %10968 = vperm.xlu0 %12772, %v10938_v1   ;;  %12711 = vmatpush3.msra.mxu1 %v11154_v20 }
 0xe32   :  { %12746 = vmatpush3.msra.mxu0 %v11138_v51  ;;  %12712 = vmatprep.subr.mxu1 %v13393_v62 }
 0xe33   :  { %12747 = vmatprep.subr.mxu0 %v13393_v62  ;;  %12713 = vmatpush3.msra.mxu1 %v11153_v3 }
 0xe34   :  { %12748 = vmatpush3.msra.mxu0 %v11137_v46  ;;  %12714 = vmatprep.subr.mxu1 %v13393_v62 }
 0xe35   :  { %10971 = vperm.xlu0 %12772, %v10940_v58   ;;  %12749 = vmatprep.subr.mxu0 %v13393_v62 }
 0xe36   :  { %12715 = vmatpush3.msra.mxu1 %v11152_v33  ;;  %12750 = vmatpush3.msra.mxu0 %v11136_v5 }
 0xe37   :  { %12716 = vmatprep.subr.mxu1 %v13393_v62  ;;  %12751 = vmatprep.subr.mxu0 %v13393_v62 }
 0xe38   :  { %12717 = vmatpush3.msra.mxu1 %v11151_v60  ;;  %12752 = vmatpush3.msra.mxu0 %v11135_v53 }
 0xe39   :  { %12718 = vmatprep.subr.mxu1 %v13393_v62  ;;  %12753 = vmatprep.subr.mxu0 %v13393_v62 }
 0xe3a   :  { %12719 = vmatpush3.msra.mxu1 %v11150_v7  ;;  %12754 = vmatpush3.msra.mxu0 %v11134_v8 }
 0xe94   :  { %v10951_v55 = vpop.permute.xlu0 %10950 }
 0xe95   :  { %v11022_v44 = vmul.f32 %v15673_v22, %v10951_v55  ;;  %v11078_v38 = vmul.f32 %v15665_v47, %v10951_v55  ;;  %v10976_v59 = vrot.slane %v10951_v55, %v15738_v23 }
 0xe97   :  { %v11030_v30 = vrot.slane %v11022_v44, 4  ;;  %v11086_v14 = vrot.slane %v11078_v38, 4 }
 0xe98   :  { %v10954_v9 = vpop.permute.xlu0 %10953 }
 0xe99   :  { %v11031_v54 = vadd.f32 %v11030_v30, %v11022_v44  ;;  %v11087_v15 = vadd.f32 %v11086_v14, %v11078_v38  ;;  %v11023_v37 = vmul.f32 %v15683_v43, %v10954_v9  ;;  %v11079_v42 = vmul.f32 %v15675_v32, %v10954_v9 }
 0xe9a   :  { %v10980_v32 = vrot.slane %v10954_v9, %v15738_v23 }
 0xe9b   :  { %v11036_v0 = vrot.slane %v11023_v37, 4  ;;  %v11092_v11 = vrot.slane %v11079_v42, 4  ;;  %v11032_v39 = vrot.slane %v11031_v54, 2  ;;  %v11088_v26 = vrot.slane %v11087_v15, 2 }
 0xe9c   :  { %v10957_v4 = vpop.permute.xlu0 %10956  ;;  %v11005_v29 = vsel %vm10725_vm1, %v10980_v32, %v10976_v59 }
 0xe9d   :  { %v11037_v62 = vadd.f32 %v11036_v0, %v11023_v37  ;;  %v11093_v6 = vadd.f32 %v11092_v11, %v11079_v42  ;;  %v11024_v22 = vmul.f32 %v15692_v13, %v10957_v4  ;;  %v11080_v47 = vmul.f32 %v15685_v56, %v10957_v4 }
 0xe9e   :  { %v11033_v50 = vadd.f32 %v11032_v39, %v11031_v54  ;;  %v11089_v43 = vadd.f32 %v11088_v26, %v11087_v15  ;;  %v10984_v2 = vrot.slane %v10957_v4, %v15738_v23 }
 0xe9f   :  { %v11038_v25 = vrot.slane %v11037_v62, 2  ;;  %v11094_v41 = vrot.slane %v11093_v6, 2  ;;  %v11042_v35 = vrot.slane %v11024_v22, 4  ;;  %v11098_v1 = vrot.slane %v11080_v47, 4 }
 0xea0   :  { %v10960_v28 = vpop.permute.xlu0 %10959  ;;  %v11034_v20 = vrot.slane %v11033_v50, 1  ;;  %v11090_v51 = vrot.slane %v11089_v43, 1  ;;  %v11006_v53 = vsel %vm10727_vm2, %v10984_v2, %v11005_v29 }
 0xea1   :  { %v11039_v24 = vadd.f32 %v11038_v25, %v11037_v62  ;;  %v11095_v61 = vadd.f32 %v11094_v41, %v11093_v6  ;;  %v11043_v27 = vadd.f32 %v11042_v35, %v11024_v22  ;;  %v11099_v58 = vadd.f32 %v11098_v1, %v11080_v47 }
 0xea2   :  { %v11025_v34 = vmul.f32 %v15710_v45, %v10960_v28  ;;  %v11081_v13 = vmul.f32 %v15703_v49, %v10960_v28  ;;  %v10988_v33 = vrot.slane %v10960_v28, %v15738_v23  ;;  %v11035_v30 = vadd.f32 %v11034_v20, %v11033_v50 }
 0xea3   :  { %v11040_v56 = vrot.slane %v11039_v24, 1  ;;  %v11044_v36 = vrot.slane %v11043_v27, 2  ;;  %v11100_v10 = vrot.slane %v11099_v58, 2  ;;  %v11096_v3 = vrot.slane %v11095_v61, 1 }
 0xea4   :  { %v11048_v18 = vrot.slane %v11025_v34, 4  ;;  %v10963_v12 = vpop.permute.xlu0 %10962  ;;  %v11104_v52 = vrot.slane %v11081_v13, 4  ;;  %v11091_v14 = vadd.f32 %v11090_v51, %v11089_v43  ;;  %v11007_v37 = vsel %vm10729_vm3, %v10988_v33, %v11006_v53 }
 0xea5   :  { %v11026_v40 = vmul.f32 %v15701_v63, %v10963_v12  ;;  %v11045_v46 = vadd.f32 %v11044_v36, %v11043_v27  ;;  %v11041_v60 = vadd.f32 %v11040_v56, %v11039_v24  ;;  %v10992_v7 = vrot.slane %v10963_v12, %v15738_v23 }
 0xea6   :  { %v11049_v45 = vadd.f32 %v11048_v18, %v11025_v34  ;;  %v11105_v49 = vadd.f32 %v11104_v52, %v11081_v13  ;;  %v11101_v55 = vadd.f32 %v11100_v10, %v11099_v58  ;;  %v11082_v63 = vmul.f32 %v15694_v16, %v10963_v12 }
 0xea7   :  { %v11054_v5 = vrot.slane %v11026_v40, 4  ;;  %v11097_v9 = vadd.f32 %v11096_v3, %v11095_v61  ;;  %v11046_v15 = vrot.slane %v11045_v46, 1  ;;  %v15978_v11 = vsel %vm10725_vm1, %v11041_v60, %v11035_v30 }
 0xea8   :  { %v10966_v8 = vpop.permute.xlu0 %10965  ;;  %v11050_v44 = vrot.slane %v11049_v45, 2  ;;  %v11106_v42 = vrot.slane %v11105_v49, 2  ;;  %v11110_v0 = vrot.slane %v11082_v63, 4  ;;  %v11008_v4 = vsel %vm10731_vm4, %v10992_v7, %v11007_v37 }
 0xea9   :  { %v11055_v38 = vadd.f32 %v11054_v5, %v11026_v40  ;;  %v11027_v54 = vmul.f32 %v15718_v31, %v10966_v8  ;;  %v11102_v6 = vrot.slane %v11101_v55, 1  ;;  %v11083_v47 = vmul.f32 %v15712_v21, %v10966_v8 }
 0xeaa   :  { %v11051_v16 = vadd.f32 %v11050_v44, %v11049_v45  ;;  %v11111_v22 = vadd.f32 %v11110_v0, %v11082_v63  ;;  %v11174_v31 = vsel %vm10725_vm1, %v11097_v9, %v11091_v14  ;;  %v10996_v25 = vrot.slane %v10966_v8, %v15738_v23 }
 0xeab   :  { %v11056_v39 = vrot.slane %v11055_v38, 2  ;;  %v11060_v26 = vrot.slane %v11027_v54, 4  ;;  %v11047_v1 = vadd.f32 %v11046_v15, %v11045_v46  ;;  %v11107_v28 = vadd.f32 %v11106_v42, %v11105_v49 }
 0xeac   :  { %v10969_v62 = vpop.permute.xlu0 %10968  ;;  %v11112_v50 = vrot.slane %v11111_v22, 2  ;;  %v11116_v43 = vrot.slane %v11083_v47, 4  ;;  %v11103_v34 = vadd.f32 %v11102_v6, %v11101_v55  ;;  %v11052_v59 = vrot.slane %v11051_v16, 1 }
 0xead   :  { %v11061_v41 = vadd.f32 %v11060_v26, %v11027_v54  ;;  %v11028_v35 = vmul.f32 %v15726_v19, %v10969_v62  ;;  %v11057_v32 = vadd.f32 %v11056_v39, %v11055_v38  ;;  %v11084_v27 = vmul.f32 %v15720_v57, %v10969_v62 }
 0xeae   :  { %v11113_v21 = vadd.f32 %v11112_v50, %v11111_v22  ;;  %v11117_v13 = vadd.f32 %v11116_v43, %v11083_v47  ;;  %v11108_v19 = vrot.slane %v11107_v28, 1  ;;  %v11000_v29 = vrot.slane %v10969_v62, %v15738_v23 }
 0xeaf   :  { %v11062_v24 = vrot.slane %v11061_v41, 2  ;;  %v11066_v61 = vrot.slane %v11028_v35, 4  ;;  %v11122_v36 = vrot.slane %v11084_v27, 4  ;;  %v11058_v52 = vrot.slane %v11057_v32, 1 }
 0xeb0   :  { %v10972_v58 = vpop.permute.xlu0 %10971  ;;  %v11118_v12 = vrot.slane %v11117_v13, 2  ;;  %v11114_v51 = vrot.slane %v11113_v21, 1  ;;  %v11009_v53 = vsel %vm10733_vm5, %v10996_v25, %v11008_v4  ;;  %v11109_v63 = vadd.f32 %v11108_v19, %v11107_v28 }
 0xeb1   :  { %v11063_v56 = vadd.f32 %v11062_v24, %v11061_v41  ;;  %v11067_v2 = vadd.f32 %v11066_v61, %v11028_v35  ;;  %v11029_v18 = vmul.f32 %v15733_v17, %v10972_v58  ;;  %v11085_v10 = vmul.f32 %v15728_v48, %v10972_v58 }
 0xeb2   :  { %v11123_v20 = vadd.f32 %v11122_v36, %v11084_v27  ;;  %v11119_v3 = vadd.f32 %v11118_v12, %v11117_v13  ;;  %v11004_v45 = vrot.slane %v10972_v58, %v15738_v23  ;;  %v11053_v17 = vadd.f32 %v11052_v59, %v11051_v16 }
 0xeb3   :  { %v11068_v40 = vrot.slane %v11067_v2, 2  ;;  %v11072_v57 = vrot.slane %v11029_v18, 4  ;;  %v11128_v46 = vrot.slane %v11085_v10, 4  ;;  %v11064_v33 = vrot.slane %v11063_v56, 1 }
 0xeb4   :  { %v11124_v5 = vrot.slane %v11123_v20, 2  ;;  %v11120_v7 = vrot.slane %v11119_v3, 1  ;;  %v11010_v38 = vsel %vm10735_vm6, %v11000_v29, %v11009_v53  ;;  %v11059_v30 = vadd.f32 %v11058_v52, %v11057_v32 }
 0xeb5   :  { %v11069_v49 = vadd.f32 %v11068_v40, %v11067_v2  ;;  %v11073_v60 = vadd.f32 %v11072_v57, %v11029_v18  ;;  %v11129_v8 = vadd.f32 %v11128_v46, %v11085_v10  ;;  %v11011_v23 = vsel %vm10737_vm7, %v11004_v45, %v11010_v38 }
 0xeb6   :  { %v11125_v48 = vadd.f32 %v11124_v5, %v11123_v20  ;;  %v11115_v9 = vadd.f32 %v11114_v51, %v11113_v21  ;;  %v11065_v54 = vadd.f32 %v11064_v33, %v11063_v56  ;;  %11013 = vst.msk [vmem:[#allocation12] sm:$0xff] %vm10740_vm8, %v11011_v23  ;;  %v11261_v42 = vsel %vm10727_vm2, %v11047_v1, %v15978_v11 }
 0xeb7   :  { %v11070_v55 = vrot.slane %v11069_v49, 1  ;;  %v11074_v44 = vrot.slane %v11073_v60, 2  ;;  %v11130_v14 = vrot.slane %v11129_v8, 2  ;;  %v11121_v0 = vadd.f32 %v11120_v7, %v11119_v3 }
 0xeb8   :  { %v11126_v15 = vrot.slane %v11125_v48, 1  ;;  %v11175_v26 = vsel %vm10727_vm2, %v11103_v34, %v11174_v31  ;;  %v11262_v16 = vsel %vm10729_vm3, %v11053_v17, %v11261_v42 }
 0xeb9   :  { %v11075_v37 = vadd.f32 %v11074_v44, %v11073_v60  ;;  %v11071_v4 = vadd.f32 %v11070_v55, %v11069_v49  ;;  %v11131_v39 = vadd.f32 %v11130_v14, %v11129_v8  ;;  %v11176_v47 = vsel %vm10729_vm3, %v11109_v63, %v11175_v26 }
 0xeba   :  { %v11127_v62 = vadd.f32 %v11126_v15, %v11125_v48  ;;  %v11263_v25 = vsel %vm10731_vm4, %v11059_v30, %v11262_v16  ;;  %v11177_v35 = vsel %vm10731_vm4, %v11115_v9, %v11176_v47 }
 0xebb   :  { %v11076_v6 = vrot.slane %v11075_v37, 1  ;;  %v11132_v22 = vrot.slane %v11131_v39, 1  ;;  %v11264_v28 = vsel %vm10733_vm5, %v11065_v54, %v11263_v25  ;;  %v11178_v1 = vsel %vm10733_vm5, %v11121_v0, %v11177_v35 }
 0xebc   :  { %v11265_v50 = vsel %vm10735_vm6, %v11071_v4, %v11264_v28  ;;  %v11179_v31 = vsel %vm10735_vm6, %v11127_v62, %v11178_v1 }
 0xebd   :  { %v11077_v41 = vadd.f32 %v11076_v6, %v11075_v37  ;;  %v11133_v11 = vadd.f32 %v11132_v22, %v11131_v39 }
 0xebf   :  { %v11266_v43 = vsel %vm10737_vm7, %v11077_v41, %v11265_v50  ;;  %v11180_v32 = vsel %vm10737_vm7, %v11133_v11, %v11179_v31 }
 0xec0   :  { %12756 = vmatmul.mubr.f32.vlgmr.msra.gmra.mxu0 %v11266_v43  ;;  %12721 = vmatmul.mubr.f32.vlgmr.msra.gmra.mxu1 %v11180_v32 }
 0xec1   :  { %13368 = shalt.err (!%p13365_p5)
}
 0xec2   :  { %11359 = dma.vmem_to_hbm [thread:$0]  %s11357_s16, 128, %s16026_s10, [#allocation8]   ;;  %v12642_v27 = vld [vmem:[%s16023_s7] ss:$0 sm:$0xff]  ;;  %vm11346_vm10 = vcmask 31744  }
 0xf80   :  { %v11334_v24 = vpop.f32.mrf.mxu0  ;;  %v11248_v61 = vpop.f32.mrf.mxu1 }
 0xf81   :  { %v11335_v58 = vadd.f32 %v11334_v24, %v11248_v61 }
 0xf82   :  { %v12757_v34 = vpop.f32.mrf.mxu0  ;;  %v12722_v59 = vpop.f32.mrf.mxu1 }
 0xf83   :  { %v11345_v21 = vadd.f32 %v12642_v27, %v11335_v58 }
 0xf85   :  { %11347 = vst.msk [vmem:[%s16025_s9] sm:$0xff] %vm11346_vm10, %v11345_v21 }
 0xf86   :  { %13381 = dma.done.wait [#allocation8], 128  }
 0xf87   :  { %13382 = vsyncadd [#allocation8], 4294967168 }
 0xf88   :  { %11365 = vsyncpa [#allocation7], 1 }
 0xf89   :  { %11366 = vsyncpa [#allocation10], 1 }
 0xf8a   :  { %11367 = vsyncpa [#allocation8], 1 }

</bundles_post_ra>
